<compile_context>
chip_gen: v7x
topology: tpu7x:2x2x1
jax: 0.10.0
libtpu: 0.0.40
codegen_flags: <defaults>
</compile_context>

<pallas_src>
import jax
import jax.numpy as jnp
from jax import lax
from jax.experimental import pallas as pl
from jax.experimental.pallas import tpu as pltpu

# ---------------------------------------------------------------------------
# dimensions (fixed by the module)
# ---------------------------------------------------------------------------
VOCAB = 11
VOCAB_PAD = 128      # lane-padded vocab for in-kernel one-hot embedding matmul
D_EMB = 512
D_H1 = 256
D_LAT = 128
D_PROJ = 11          # logical proj output dim
D_PROJ_PAD = 128     # lane-padded proj output dim (keeps stores unmasked)

SEQ = 900            # 30*30 tokens per sample (hardcoded reshape in forward)
TM = 512             # 128-aligned row tile; N is padded to a multiple of TM


# ---------------------------------------------------------------------------
# Pallas kernel: embedding + full MLP chain for a tile of TM rows
# ---------------------------------------------------------------------------
def vae_mlp_kernel(tok_ref, eps_ref,
                   emb_ref,
                   w1_ref, b1_ref, w2_ref, b2_ref,
                   wms_ref, bms_ref,
                   wd1_ref, bd1_ref, wd2_ref, bd2_ref,
                   wp_ref, bp_ref,
                   out_ref):
    # ---- embedding: one-hot (TM, 128) @ (128, 512) on the MXU ----
    tok = tok_ref[...]                                            # (TM, 1) int32
    iota = lax.broadcasted_iota(jnp.int32, (TM, VOCAB_PAD), 1)    # lanes 0..127
    onehot = (tok == iota).astype(jnp.bfloat16)                   # (TM, 128)
    x = jnp.dot(onehot, emb_ref[...],
                preferred_element_type=jnp.float32).astype(jnp.bfloat16)  # (TM, 512)

    # ---- encoder: Linear(512,256)+ReLU ; Linear(256,128)+ReLU ----
    h1 = jnp.dot(x, w1_ref[...], preferred_element_type=jnp.float32) + b1_ref[...]
    h1 = jnp.maximum(h1, 0.0).astype(jnp.bfloat16)
    fm = jnp.dot(h1, w2_ref[...], preferred_element_type=jnp.float32) + b2_ref[...]
    fm = jnp.maximum(fm, 0.0).astype(jnp.bfloat16)                # (TM, 128)

    # ---- fused mu|sigma head (one (128,256) matmul), reparameterize in f32 ----
    ms = jnp.dot(fm, wms_ref[...], preferred_element_type=jnp.float32) + bms_ref[...]
    mu = ms[:, :D_LAT]                                            # (TM, 128) f32
    sg = ms[:, D_LAT:]                                            # (TM, 128) f32
    std = jnp.exp(0.5 * sg)
    z = (mu + std * eps_ref[...]).astype(jnp.bfloat16)            # (TM, 128)

    # ---- decoder: Linear(128,256)+ReLU ; Linear(256,512)+ReLU ----
    d1 = jnp.dot(z, wd1_ref[...], preferred_element_type=jnp.float32) + bd1_ref[...]
    d1 = jnp.maximum(d1, 0.0).astype(jnp.bfloat16)
    d2 = jnp.dot(d1, wd2_ref[...], preferred_element_type=jnp.float32) + bd2_ref[...]
    d2 = jnp.maximum(d2, 0.0).astype(jnp.bfloat16)                # (TM, 512)

    # ---- projection to (lane-padded) vocab logits ----
    out_ref[...] = (jnp.dot(d2, wp_ref[...], preferred_element_type=jnp.float32)
                    + bp_ref[...])                                # (TM, 128) f32


def _full_spec(shape):
    # whole-array resident block, same tile for every grid step (weights/biases)
    return pl.BlockSpec(shape, lambda i: (0, 0))


def vae_forward(tokens, eps, kp):
    """tokens: (B, 1, 30, 30) int32 in [0, 11); eps: (B*900, 128) f32.

    kp: kernel-ready params from prepare_params().  Returns (B, 30, 30, 11) f32.
    """
    B = tokens.shape[0]
    n_rows = B * SEQ
    flat = tokens.reshape(n_rows).astype(jnp.int32)

    # pad row axis to a multiple of TM (padded rows use token 0 / eps 0, sliced off)
    n_pad = pl.cdiv(n_rows, TM) * TM
    tok2d = jnp.pad(flat, (0, n_pad - n_rows)).reshape(n_pad, 1)
    eps_p = jnp.pad(eps, ((0, n_pad - n_rows), (0, 0))).astype(jnp.float32)

    grid = (n_pad // TM,)
    row_spec = lambda d: pl.BlockSpec((TM, d), lambda i: (i, 0))

    out_padded = pl.pallas_call(
        vae_mlp_kernel,
        out_shape=jax.ShapeDtypeStruct((n_pad, D_PROJ_PAD), jnp.float32),
        grid_spec=pltpu.PrefetchScalarGridSpec(
            num_scalar_prefetch=0,
            grid=grid,
            in_specs=[
                row_spec(1),                                         # tokens
                row_spec(D_LAT),                                     # eps
                _full_spec((VOCAB_PAD, D_EMB)),                      # emb table
                _full_spec((D_EMB, D_H1)),    _full_spec((1, D_H1)),        # w1, b1
                _full_spec((D_H1, D_LAT)),    _full_spec((1, D_LAT)),       # w2, b2
                _full_spec((D_LAT, 2 * D_LAT)), _full_spec((1, 2 * D_LAT)), # w_mu|sig
                _full_spec((D_LAT, D_H1)),    _full_spec((1, D_H1)),        # wd1, bd1
                _full_spec((D_H1, D_EMB)),    _full_spec((1, D_EMB)),       # wd2, bd2
                _full_spec((D_EMB, D_PROJ_PAD)), _full_spec((1, D_PROJ_PAD)),  # wp, bp
            ],
            out_specs=row_spec(D_PROJ_PAD),
        ),
        compiler_params=pltpu.CompilerParams(
            dimension_semantics=("parallel",)),
    )(tok2d, eps_p,
      kp["emb"],
      kp["w1"], kp["b1"], kp["w2"], kp["b2"],
      kp["wms"], kp["bms"],
      kp["wd1"], kp["bd1"], kp["wd2"], kp["bd2"],
      kp["wp"], kp["bp"])

    logits = out_padded[:n_rows, :D_PROJ]            # drop row + lane padding
    return logits.reshape(-1, 30, 30, VOCAB)


# ---------------------------------------------------------------------------
# deterministic parameter init (synthetic; matches module shapes) + kernel prep
# ---------------------------------------------------------------------------
def init_params(key):
    ks = jax.random.split(key, 16)

    def lin(kw, fan_in, fan_out):
        # stored as (in, out) so the kernel computes x @ W + b
        bound = 1.0 / jnp.sqrt(fan_in)
        kw1, kw2 = jax.random.split(kw)
        w = jax.random.uniform(kw1, (fan_in, fan_out), jnp.float32, -bound, bound)
        b = jax.random.uniform(kw2, (1, fan_out), jnp.float32, -bound, bound)
        return w, b

    emb = jax.random.normal(ks[0], (VOCAB, D_EMB), jnp.float32)
    w1, b1 = lin(ks[1], D_EMB, D_H1)
    w2, b2 = lin(ks[2], D_H1, D_LAT)
    wmu, bmu = lin(ks[3], D_LAT, D_LAT)
    wsig, bsig = lin(ks[4], D_LAT, D_LAT)
    wd1, bd1 = lin(ks[5], D_LAT, D_H1)
    wd2, bd2 = lin(ks[6], D_H1, D_EMB)
    wp, bp = lin(ks[7], D_EMB, D_PROJ)

    return dict(emb=emb, w1=w1, b1=b1, w2=w2, b2=b2,
                wmu=wmu, bmu=bmu, wsig=wsig, bsig=bsig,
                wd1=wd1, bd1=bd1, wd2=wd2, bd2=bd2, wp=wp, bp=bp)


def prepare_params(p):
    """One-time conversion to kernel-ready layout:
    bf16 weights (f32 MXU accumulation), f32 biases, lane-padded emb/proj,
    fused mu|sigma head."""
    bf = jnp.bfloat16

    emb = jnp.pad(p["emb"], ((0, VOCAB_PAD - VOCAB), (0, 0))).astype(bf)

    wms = jnp.concatenate([p["wmu"], p["wsig"]], axis=1).astype(bf)    # (128, 256)
    bms = jnp.concatenate([p["bmu"], p["bsig"]], axis=1)               # (1, 256) f32

    wp = jnp.pad(p["wp"], ((0, 0), (0, D_PROJ_PAD - D_PROJ))).astype(bf)
    bp = jnp.pad(p["bp"], ((0, 0), (0, D_PROJ_PAD - D_PROJ)))

    return dict(
        emb=emb,
        w1=p["w1"].astype(bf), b1=p["b1"],
        w2=p["w2"].astype(bf), b2=p["b2"],
        wms=wms, bms=bms,
        wd1=p["wd1"].astype(bf), bd1=p["bd1"],
        wd2=p["wd2"].astype(bf), bd2=p["bd2"],
        wp=wp, bp=bp,
    )


if __name__ == "__main__":
    key = jax.random.PRNGKey(0)
    kp_key, kx, ke = jax.random.split(key, 3)

    params = init_params(kp_key)
    kparams = prepare_params(params)      # convert once (bf16, padded, fused)

    B = 2
    # (B, 1, 30, 30) integer tokens in [0, VOCAB) — the module's batched 4-D branch.
    x = jax.random.randint(kx, (B, 1, 30, 30), 0, VOCAB, dtype=jnp.int32)
    # eps plays the role of torch.randn_like(std) — generated deterministically here.
    # TODO(synk): could use pltpu.prng_seed/stateful_normal in-kernel, but that
    # changes the random stream vs the host-side reference.
    eps = jax.random.normal(ke, (B * SEQ, D_LAT), jnp.float32)

    out = vae_forward(x, eps, kparams)
    out = jax.block_until_ready(out)
    assert out.shape == (B, 30, 30, VOCAB), out.shape
    assert jnp.all(jnp.isfinite(out))
    print("KERNEL_OK")
</pallas_src>

<mosaic_0001>
module attributes {stable_mosaic.version = 11 : i64} {
  func.func @vae_mlp_kernel(%arg0: i32, %arg1: memref<512x1xi32, #tpu.memory_space<vmem>>, %arg2: memref<512x128xf32, #tpu.memory_space<vmem>>, %arg3: memref<128x512xbf16, #tpu.memory_space<vmem>>, %arg4: memref<512x256xbf16, #tpu.memory_space<vmem>>, %arg5: memref<1x256xf32, #tpu.memory_space<vmem>>, %arg6: memref<256x128xbf16, #tpu.memory_space<vmem>>, %arg7: memref<1x128xf32, #tpu.memory_space<vmem>>, %arg8: memref<128x256xbf16, #tpu.memory_space<vmem>>, %arg9: memref<1x256xf32, #tpu.memory_space<vmem>>, %arg10: memref<128x256xbf16, #tpu.memory_space<vmem>>, %arg11: memref<1x256xf32, #tpu.memory_space<vmem>>, %arg12: memref<256x512xbf16, #tpu.memory_space<vmem>>, %arg13: memref<1x512xf32, #tpu.memory_space<vmem>>, %arg14: memref<512x128xbf16, #tpu.memory_space<vmem>>, %arg15: memref<1x128xf32, #tpu.memory_space<vmem>>, %arg16: memref<512x128xf32, #tpu.memory_space<vmem>>) attributes {dimension_semantics = [#tpu.dimension_semantics<parallel>], iteration_bounds = array<i64: 4>, scalar_prefetch = 0 : i64, scratch_operands = 0 : i64, tpu.core_type = #tpu.core_type<tc>, window_params = [{transform_indices = @transform_0, window_bounds = array<i64: 512, 1>}, {transform_indices = @transform_1, window_bounds = array<i64: 512, 128>}, {pipeline_mode = #tpu.pipeline_mode<synchronous>, transform_indices = @transform_2, window_bounds = array<i64: 128, 512>}, {pipeline_mode = #tpu.pipeline_mode<synchronous>, transform_indices = @transform_3, window_bounds = array<i64: 512, 256>}, {pipeline_mode = #tpu.pipeline_mode<synchronous>, transform_indices = @transform_4, window_bounds = array<i64: 1, 256>}, {pipeline_mode = #tpu.pipeline_mode<synchronous>, transform_indices = @transform_5, window_bounds = array<i64: 256, 128>}, {pipeline_mode = #tpu.pipeline_mode<synchronous>, transform_indices = @transform_6, window_bounds = array<i64: 1, 128>}, {pipeline_mode = #tpu.pipeline_mode<synchronous>, transform_indices = @transform_7, window_bounds = array<i64: 128, 256>}, {pipeline_mode = #tpu.pipeline_mode<synchronous>, transform_indices = @transform_8, window_bounds = array<i64: 1, 256>}, {pipeline_mode = #tpu.pipeline_mode<synchronous>, transform_indices = @transform_9, window_bounds = array<i64: 128, 256>}, {pipeline_mode = #tpu.pipeline_mode<synchronous>, transform_indices = @transform_10, window_bounds = array<i64: 1, 256>}, {pipeline_mode = #tpu.pipeline_mode<synchronous>, transform_indices = @transform_11, window_bounds = array<i64: 256, 512>}, {pipeline_mode = #tpu.pipeline_mode<synchronous>, transform_indices = @transform_12, window_bounds = array<i64: 1, 512>}, {pipeline_mode = #tpu.pipeline_mode<synchronous>, transform_indices = @transform_13, window_bounds = array<i64: 512, 128>}, {pipeline_mode = #tpu.pipeline_mode<synchronous>, transform_indices = @transform_14, window_bounds = array<i64: 1, 128>}, {transform_indices = @transform_15, window_bounds = array<i64: 512, 128>}]} {
    %c0 = arith.constant 0 : index
    %c0_0 = arith.constant 0 : index
    %0 = vector.load %arg1[%c0, %c0_0] : memref<512x1xi32, #tpu.memory_space<vmem>>, vector<512x1xi32>
    %1 = tpu.iota {dimensions = array<i32: 1>} : vector<512x128xi32>
    %2 = vector.broadcast %0 : vector<512x1xi32> to vector<512x128xi32>
    %3 = arith.cmpi eq, %2, %1 : vector<512x128xi32>
    %4 = arith.extui %3 : vector<512x128xi1> to vector<512x128xi32>
    %5 = arith.sitofp %4 : vector<512x128xi32> to vector<512x128xf32>
    %6 = arith.truncf %5 : vector<512x128xf32> to vector<512x128xbf16>
    %c0_1 = arith.constant 0 : index
    %c0_2 = arith.constant 0 : index
    %7 = vector.load %arg3[%c0_1, %c0_2] : memref<128x512xbf16, #tpu.memory_space<vmem>>, vector<128x512xbf16>
    %cst = arith.constant dense<0.000000e+00> : vector<512x512xf32>
    %8 = tpu.matmul %6, %7, %cst {dimension_numbers = #tpu.dot_dimension_numbers<[1], [0], [0], [1], [0, 0, 1, 1], [], []>} : vector<512x128xbf16>, vector<128x512xbf16>, vector<512x512xf32> -> vector<512x512xf32>
    %9 = arith.truncf %8 : vector<512x512xf32> to vector<512x512xbf16>
    %c0_3 = arith.constant 0 : index
    %c0_4 = arith.constant 0 : index
    %10 = vector.load %arg4[%c0_3, %c0_4] : memref<512x256xbf16, #tpu.memory_space<vmem>>, vector<512x256xbf16>
    %cst_5 = arith.constant dense<0.000000e+00> : vector<512x256xf32>
    %11 = tpu.matmul %9, %10, %cst_5 {dimension_numbers = #tpu.dot_dimension_numbers<[1], [0], [0], [1], [0, 0, 1, 1], [], []>} : vector<512x512xbf16>, vector<512x256xbf16>, vector<512x256xf32> -> vector<512x256xf32>
    %c0_6 = arith.constant 0 : index
    %c0_7 = arith.constant 0 : index
    %12 = vector.load %arg5[%c0_6, %c0_7] : memref<1x256xf32, #tpu.memory_space<vmem>>, vector<1x256xf32>
    %13 = vector.broadcast %12 : vector<1x256xf32> to vector<512x256xf32>
    %14 = arith.addf %11, %13 : vector<512x256xf32>
    %cst_8 = arith.constant 0.000000e+00 : f32
    %15 = vector.broadcast %cst_8 : f32 to vector<512x256xf32>
    %16 = arith.maximumf %14, %15 : vector<512x256xf32>
    %17 = arith.truncf %16 : vector<512x256xf32> to vector<512x256xbf16>
    %c0_9 = arith.constant 0 : index
    %c0_10 = arith.constant 0 : index
    %18 = vector.load %arg6[%c0_9, %c0_10] : memref<256x128xbf16, #tpu.memory_space<vmem>>, vector<256x128xbf16>
    %cst_11 = arith.constant dense<0.000000e+00> : vector<512x128xf32>
    %19 = tpu.matmul %17, %18, %cst_11 {dimension_numbers = #tpu.dot_dimension_numbers<[1], [0], [0], [1], [0, 0, 1, 1], [], []>} : vector<512x256xbf16>, vector<256x128xbf16>, vector<512x128xf32> -> vector<512x128xf32>
    %c0_12 = arith.constant 0 : index
    %c0_13 = arith.constant 0 : index
    %20 = vector.load %arg7[%c0_12, %c0_13] : memref<1x128xf32, #tpu.memory_space<vmem>>, vector<1x128xf32>
    %21 = vector.broadcast %20 : vector<1x128xf32> to vector<512x128xf32>
    %22 = arith.addf %19, %21 : vector<512x128xf32>
    %cst_14 = arith.constant 0.000000e+00 : f32
    %23 = vector.broadcast %cst_14 : f32 to vector<512x128xf32>
    %24 = arith.maximumf %22, %23 : vector<512x128xf32>
    %25 = arith.truncf %24 : vector<512x128xf32> to vector<512x128xbf16>
    %c0_15 = arith.constant 0 : index
    %c0_16 = arith.constant 0 : index
    %26 = vector.load %arg8[%c0_15, %c0_16] : memref<128x256xbf16, #tpu.memory_space<vmem>>, vector<128x256xbf16>
    %cst_17 = arith.constant dense<0.000000e+00> : vector<512x256xf32>
    %27 = tpu.matmul %25, %26, %cst_17 {dimension_numbers = #tpu.dot_dimension_numbers<[1], [0], [0], [1], [0, 0, 1, 1], [], []>} : vector<512x128xbf16>, vector<128x256xbf16>, vector<512x256xf32> -> vector<512x256xf32>
    %c0_18 = arith.constant 0 : index
    %c0_19 = arith.constant 0 : index
    %28 = vector.load %arg9[%c0_18, %c0_19] : memref<1x256xf32, #tpu.memory_space<vmem>>, vector<1x256xf32>
    %29 = vector.broadcast %28 : vector<1x256xf32> to vector<512x256xf32>
    %30 = arith.addf %27, %29 : vector<512x256xf32>
    %31 = vector.extract_strided_slice %30 {offsets = [0, 0], sizes = [512, 128], strides = [1, 1]} : vector<512x256xf32> to vector<512x128xf32>
    %32 = vector.extract_strided_slice %30 {offsets = [0, 128], sizes = [512, 128], strides = [1, 1]} : vector<512x256xf32> to vector<512x128xf32>
    %cst_20 = arith.constant 5.000000e-01 : f32
    %33 = vector.broadcast %cst_20 : f32 to vector<512x128xf32>
    %34 = arith.mulf %33, %32 : vector<512x128xf32>
    %35 = math.exp %34 : vector<512x128xf32>
    %c0_21 = arith.constant 0 : index
    %c0_22 = arith.constant 0 : index
    %36 = vector.load %arg2[%c0_21, %c0_22] : memref<512x128xf32, #tpu.memory_space<vmem>>, vector<512x128xf32>
    %37 = arith.mulf %35, %36 : vector<512x128xf32>
    %38 = arith.addf %31, %37 : vector<512x128xf32>
    %39 = arith.truncf %38 : vector<512x128xf32> to vector<512x128xbf16>
    %c0_23 = arith.constant 0 : index
    %c0_24 = arith.constant 0 : index
    %40 = vector.load %arg10[%c0_23, %c0_24] : memref<128x256xbf16, #tpu.memory_space<vmem>>, vector<128x256xbf16>
    %cst_25 = arith.constant dense<0.000000e+00> : vector<512x256xf32>
    %41 = tpu.matmul %39, %40, %cst_25 {dimension_numbers = #tpu.dot_dimension_numbers<[1], [0], [0], [1], [0, 0, 1, 1], [], []>} : vector<512x128xbf16>, vector<128x256xbf16>, vector<512x256xf32> -> vector<512x256xf32>
    %c0_26 = arith.constant 0 : index
    %c0_27 = arith.constant 0 : index
    %42 = vector.load %arg11[%c0_26, %c0_27] : memref<1x256xf32, #tpu.memory_space<vmem>>, vector<1x256xf32>
    %43 = vector.broadcast %42 : vector<1x256xf32> to vector<512x256xf32>
    %44 = arith.addf %41, %43 : vector<512x256xf32>
    %cst_28 = arith.constant 0.000000e+00 : f32
    %45 = vector.broadcast %cst_28 : f32 to vector<512x256xf32>
    %46 = arith.maximumf %44, %45 : vector<512x256xf32>
    %47 = arith.truncf %46 : vector<512x256xf32> to vector<512x256xbf16>
    %c0_29 = arith.constant 0 : index
    %c0_30 = arith.constant 0 : index
    %48 = vector.load %arg12[%c0_29, %c0_30] : memref<256x512xbf16, #tpu.memory_space<vmem>>, vector<256x512xbf16>
    %cst_31 = arith.constant dense<0.000000e+00> : vector<512x512xf32>
    %49 = tpu.matmul %47, %48, %cst_31 {dimension_numbers = #tpu.dot_dimension_numbers<[1], [0], [0], [1], [0, 0, 1, 1], [], []>} : vector<512x256xbf16>, vector<256x512xbf16>, vector<512x512xf32> -> vector<512x512xf32>
    %c0_32 = arith.constant 0 : index
    %c0_33 = arith.constant 0 : index
    %50 = vector.load %arg13[%c0_32, %c0_33] : memref<1x512xf32, #tpu.memory_space<vmem>>, vector<1x512xf32>
    %51 = vector.broadcast %50 : vector<1x512xf32> to vector<512x512xf32>
    %52 = arith.addf %49, %51 : vector<512x512xf32>
    %cst_34 = arith.constant 0.000000e+00 : f32
    %53 = vector.broadcast %cst_34 : f32 to vector<512x512xf32>
    %54 = arith.maximumf %52, %53 : vector<512x512xf32>
    %55 = arith.truncf %54 : vector<512x512xf32> to vector<512x512xbf16>
    %c0_35 = arith.constant 0 : index
    %c0_36 = arith.constant 0 : index
    %56 = vector.load %arg14[%c0_35, %c0_36] : memref<512x128xbf16, #tpu.memory_space<vmem>>, vector<512x128xbf16>
    %cst_37 = arith.constant dense<0.000000e+00> : vector<512x128xf32>
    %57 = tpu.matmul %55, %56, %cst_37 {dimension_numbers = #tpu.dot_dimension_numbers<[1], [0], [0], [1], [0, 0, 1, 1], [], []>} : vector<512x512xbf16>, vector<512x128xbf16>, vector<512x128xf32> -> vector<512x128xf32>
    %c0_38 = arith.constant 0 : index
    %c0_39 = arith.constant 0 : index
    %58 = vector.load %arg15[%c0_38, %c0_39] : memref<1x128xf32, #tpu.memory_space<vmem>>, vector<1x128xf32>
    %59 = vector.broadcast %58 : vector<1x128xf32> to vector<512x128xf32>
    %60 = arith.addf %57, %59 : vector<512x128xf32>
    %c0_40 = arith.constant 0 : index
    %c0_41 = arith.constant 0 : index
    %61 = vector.load %arg16[%c0_40, %c0_41] : memref<512x128xf32, #tpu.memory_space<vmem>>, vector<512x128xf32>
    tpu.vector_store %arg16[%c0_40, %c0_41], %60 {strides = array<i32>} : memref<512x128xf32, #tpu.memory_space<vmem>>, vector<512x128xf32>,
    return
  }
  func.func @transform_0(%arg0: i32) -> (i32, i32) {
    %c0_i32 = arith.constant 0 : i32
    %c0_i32_0 = arith.constant 0 : i32
    return %arg0, %c0_i32 : i32, i32
  }
  func.func @transform_1(%arg0: i32) -> (i32, i32) {
    %c0_i32 = arith.constant 0 : i32
    %c0_i32_0 = arith.constant 0 : i32
    return %arg0, %c0_i32 : i32, i32
  }
  func.func @transform_2(%arg0: i32) -> (i32, i32) {
    %c0_i32 = arith.constant 0 : i32
    %c0_i32_0 = arith.constant 0 : i32
    %c0_i32_1 = arith.constant 0 : i32
    return %c0_i32, %c0_i32_0 : i32, i32
  }
  func.func @transform_3(%arg0: i32) -> (i32, i32) {
    %c0_i32 = arith.constant 0 : i32
    %c0_i32_0 = arith.constant 0 : i32
    %c0_i32_1 = arith.constant 0 : i32
    return %c0_i32, %c0_i32_0 : i32, i32
  }
  func.func @transform_4(%arg0: i32) -> (i32, i32) {
    %c0_i32 = arith.constant 0 : i32
    %c0_i32_0 = arith.constant 0 : i32
    %c0_i32_1 = arith.constant 0 : i32
    return %c0_i32, %c0_i32_0 : i32, i32
  }
  func.func @transform_5(%arg0: i32) -> (i32, i32) {
    %c0_i32 = arith.constant 0 : i32
    %c0_i32_0 = arith.constant 0 : i32
    %c0_i32_1 = arith.constant 0 : i32
    return %c0_i32, %c0_i32_0 : i32, i32
  }
  func.func @transform_6(%arg0: i32) -> (i32, i32) {
    %c0_i32 = arith.constant 0 : i32
    %c0_i32_0 = arith.constant 0 : i32
    %c0_i32_1 = arith.constant 0 : i32
    return %c0_i32, %c0_i32_0 : i32, i32
  }
  func.func @transform_7(%arg0: i32) -> (i32, i32) {
    %c0_i32 = arith.constant 0 : i32
    %c0_i32_0 = arith.constant 0 : i32
    %c0_i32_1 = arith.constant 0 : i32
    return %c0_i32, %c0_i32_0 : i32, i32
  }
  func.func @transform_8(%arg0: i32) -> (i32, i32) {
    %c0_i32 = arith.constant 0 : i32
    %c0_i32_0 = arith.constant 0 : i32
    %c0_i32_1 = arith.constant 0 : i32
    return %c0_i32, %c0_i32_0 : i32, i32
  }
  func.func @transform_9(%arg0: i32) -> (i32, i32) {
    %c0_i32 = arith.constant 0 : i32
    %c0_i32_0 = arith.constant 0 : i32
    %c0_i32_1 = arith.constant 0 : i32
    return %c0_i32, %c0_i32_0 : i32, i32
  }
  func.func @transform_10(%arg0: i32) -> (i32, i32) {
    %c0_i32 = arith.constant 0 : i32
    %c0_i32_0 = arith.constant 0 : i32
    %c0_i32_1 = arith.constant 0 : i32
    return %c0_i32, %c0_i32_0 : i32, i32
  }
  func.func @transform_11(%arg0: i32) -> (i32, i32) {
    %c0_i32 = arith.constant 0 : i32
    %c0_i32_0 = arith.constant 0 : i32
    %c0_i32_1 = arith.constant 0 : i32
    return %c0_i32, %c0_i32_0 : i32, i32
  }
  func.func @transform_12(%arg0: i32) -> (i32, i32) {
    %c0_i32 = arith.constant 0 : i32
    %c0_i32_0 = arith.constant 0 : i32
    %c0_i32_1 = arith.constant 0 : i32
    return %c0_i32, %c0_i32_0 : i32, i32
  }
  func.func @transform_13(%arg0: i32) -> (i32, i32) {
    %c0_i32 = arith.constant 0 : i32
    %c0_i32_0 = arith.constant 0 : i32
    %c0_i32_1 = arith.constant 0 : i32
    return %c0_i32, %c0_i32_0 : i32, i32
  }
  func.func @transform_14(%arg0: i32) -> (i32, i32) {
    %c0_i32 = arith.constant 0 : i32
    %c0_i32_0 = arith.constant 0 : i32
    %c0_i32_1 = arith.constant 0 : i32
    return %c0_i32, %c0_i32_0 : i32, i32
  }
  func.func @transform_15(%arg0: i32) -> (i32, i32) {
    %c0_i32 = arith.constant 0 : i32
    %c0_i32_0 = arith.constant 0 : i32
    return %arg0, %c0_i32 : i32, i32
  }
}

</mosaic_0001>

<bundles_post_ra>
// kernel: tpu_custom_call.1
= control target key start
LH: loop header
LB: loop body
LE: loop exit
PB: predicated region body
PF: predicated region fallthrough
CT: control target
= control target key end

     0   :  { %s13872_s0 = inlined_call_operand.vmem [shape: s32[2048,1], index: 0, kind: input, shape index: {}]   ;;  %s13873_s1 = inlined_call_operand.vmem [shape: f32[2048,128], index: 1, kind: input, shape index: {}]   ;;  %s13874_s2 = inlined_call_operand.hbm [shape: bf16[128,512], index: 2, kind: input, shape index: {}]   ;;  %s13875_s3 = inlined_call_operand.hbm [shape: bf16[512,256], index: 3, kind: input, shape index: {}]   ;;  %s13876_s4 = inlined_call_operand.vmem [shape: f32[1,256], index: 4, kind: input, shape index: {}]   ;;  %s13877_s5 = inlined_call_operand.hbm [shape: bf16[256,128], index: 5, kind: input, shape index: {}]   ;;  %s13878_s6 = inlined_call_operand.vmem [shape: f32[1,128], index: 6, kind: input, shape index: {}]   ;;  %s13879_s7 = inlined_call_operand.hbm [shape: bf16[128,256], index: 7, kind: input, shape index: {}]   ;;  %s13880_s8 = inlined_call_operand.vmem [shape: f32[1,256], index: 8, kind: input, shape index: {}]   ;;  %s13881_s9 = inlined_call_operand.hbm [shape: bf16[128,256], index: 9, kind: input, shape index: {}]   ;;  %s13882_s10 = inlined_call_operand.vmem [shape: f32[1,256], index: 10, kind: input, shape index: {}]   ;;  %s13883_s11 = inlined_call_operand.hbm [shape: bf16[256,512], index: 11, kind: input, shape index: {}]   ;;  %s13884_s12 = inlined_call_operand.vmem [shape: f32[1,512], index: 12, kind: input, shape index: {}]   ;;  %s13885_s13 = inlined_call_operand.hbm [shape: bf16[512,128], index: 13, kind: input, shape index: {}]   ;;  %s13886_s14 = inlined_call_operand.vmem [shape: f32[1,128], index: 14, kind: input, shape index: {}]   ;;  %s13887_s15 = inlined_call_operand.hbm [shape: f32[2048,128], index: 15, kind: output, shape index: {}]  }
   0x1   :  { %14052 = sst [smem:[#allocation128_spill]] %s13874_s2 }
   0x2   :  { %14053 = sst [smem:[#allocation129_spill]] %s13875_s3 }
   0x3   :  { %14054 = sst [smem:[#allocation130_spill]] %s13879_s7 }
   0x4   :  { %14055 = sst [smem:[#allocation131_spill]] %s13886_s14 }
   0x5   :  { %14056 = sst [smem:[#allocation132_spill]] %s13887_s15 }
   0x6   :  { %20 = vsyncpa [#allocation3], 0 }
   0x7   :  { %21 = vsyncpa [#allocation6], 0 }
   0x8   :  { %22 = vsyncpa [#allocation9], 0 }
   0x9   :  { %23 = vsyncpa [#allocation12], 0 }
   0xa   :  { %24 = vsyncpa [#allocation4], 0 }
   0xb   :  { %26 = vsyncpa [#allocation4 + $0x1], 0  ;;  %s9918_s18 = smov 0   ;;  %s9920_s19 = smov 0  }
   0xc   :  { %s9922_s20 = smov 0   ;;  %s9924_s21 = smov 0  }
   0xd LB: > { %14057 = sst [smem:[#allocation20_spill]] %s9806_s18  ;;  %s9939_s22 = sadd.s32 4294967295, %s9818_s21   ;;  %s9818_s21 = sphi %s9924_s21, %s14599_s21   ;;  %s9814_s20 = sphi %s9922_s20, %s14602_s20   ;;  %s9810_s19 = sphi %s9920_s19, %s14601_s19   ;;  %s9806_s18 = sphi %s9918_s18, %s14600_s18  }
   0xe   : > { %14058 = sst [smem:[#allocation21_spill]] %s9810_s19  ;;  %s8031_s23 = sadd.s32 4294967294, %s9818_s21  }
   0xf   : > { %14059 = sst [smem:[#allocation22_spill]] %s9814_s20  ;;  %s9943_s24 = sadd.s32 1, %s9818_s21  }
  0x10   : > { %14060 = sst [smem:[#allocation23_spill]] %s9818_s21  ;;  %s364_s25 = sadd.s32 1, %s9814_s20 }
  0x11   : > { %14061 = sst [smem:[#allocation24_spill]] %s9943_s24  ;;  %s361_s26 = ssub.s32 %s9818_s21, %s9943_s24 }
  0x12   : > { %p374_p0 = scmp.ne.s32.totalorder %s9814_s20, %s9810_s19  ;;  %p362_p1 = scmp.eq.s32.totalorder %s361_s26, 0 }
  0x13   : > { %p375_p2 = scmp.eq.s32.totalorder %s9939_s22, 3  ;;  %p380_p3 = scmp.ne.s32.totalorder %s9810_s19, %s9806_s18 }
  0x14   : > { %p381_p4 = scmp.eq.s32.totalorder %s8031_s23, 3  ;;  %p8032_p7 = scmp.ge.s32.totalorder %s9818_s21, 1 }
  0x15   : > { %s9954_s27 = scalar_select %p362_p1, %s9814_s20, %s364_s25  }
  0x16   : > { %p9956_p5 = por %p375_p2, %p374_p0  ;;  %p9960_p6 = por %p381_p4, %p380_p3 }
  0x17   : > { %14062 = sst [smem:[#allocation25_spill]] %s9954_s27  ;;  %p388_p8 = scmp.lt.s32.totalorder %s9818_s21, 5 }
  0x18   : > { %s14063_s28 = scalar_select %p9956_p5, 1, 0 }
  0x19   : > { %s14065_s29 = scalar_select %p9960_p6, 1, 0 }
  0x1a   : > { %14064 = sst [smem:[#allocation26_spill]] %s14063_s28  ;;  %p13894_p9 = scmp.eq.s32.totalorder %s9939_s22, 0 }
  0x1b   : > { %14066 = sst [smem:[#allocation27_spill]] %s14065_s29  ;;  %p9967_p10 = pnand %p8032_p7, %p388_p8 }
  0x1c   : > { %s9820_s16 = smov [#allocation5]   ;;  %s9821_s25 = smov [#allocation8]  }
  0x1d   : > { %s14067_s30 = scalar_select %p9967_p10, 1, 0 }
  0x1e   : > { %s413_s17 = sshll.u32 %s9820_s16, 4  ;;  %p8988_p11 = pneg %p9967_p10  ;;  %s414_s17 = int_to_ptr.vmem [resolvable:$true] %s413_s17 }
  0x1f   : > { %s445_s26 = sshll.u32 %s9821_s25, 4  ;;  %s14069_s3 = sld [smem:[#allocation129_spill]]  ;;  %s9979_s26 = int_to_ptr.vmem [resolvable:$true] %s445_s26 }
  0x20   : > { %p9975_p12 = pnand %p13894_p9, %p8988_p11 }
  0x22   : > { %p9989_p0 = pneg %p9975_p12 }
  0x25   : > { %s9544_s24 = scalar_lea.hbm %s14069_s3, 8192 }
  0x26   : > { %p9545_p13 = scmp.ne.s32.totalorder %s14069_s3, %s9544_s24  ;;  %p9551_p3 = scmp.lt.u32.totalorder %s9544_s24, %s14069_s3 }
  0x28   : > { %p9547_p1 = pnand %p9989_p0, %p9545_p13 }
  0x2a   : > { %p9548_p2 = pneg %p9547_p1 }
  0x2c   : > { %p9553_p4 = pnand %p9551_p3, %p9548_p2 }
  0x2e   : > { %9556 = shalt.err (!%p9553_p4)
}
  0x2f   : > { %s9557_s20 = scalar_lea.vmem %s414_s17, 8192  ;;  %p9565_p9 = scmp.lt.s32.totalorder %s414_s17, %s414_s17 }
  0x30   : > { %p9558_p7 = scmp.ne.s32.totalorder %s414_s17, %s9557_s20  ;;  %p9566_p6 = scmp.lt.s32.totalorder %s9557_s20, %s9557_s20 }
  0x32   : > { %p9560_p8 = pnand %p9558_p7, %p9989_p0  ;;  %p9567_p5 = por %p9566_p6, %p9565_p9 }
  0x34   : > { %p9561_p11 = pneg %p9560_p8 }
  0x36   : > { %p9568_p10 = pnand %p9567_p5, %p9561_p11 }
  0x38   : > { %9571 = shalt.err (!%p9568_p10)
}
  0x39   : > { %s13902_s18 = smov 128   ;;  %s13903_s27 = smov 8  }
  0x3a   : > { %8994 = dma.hbm_to_vmem [thread:$0]  (!%p9975_p12), %s14069_s3, 8192, %s414_s17, [#allocation6], %s13902_s18, %s13902_s18, %s13903_s27  }
  0x3b   : > { %s14071_s7 = sld [smem:[#allocation130_spill]] }
  0x41   : > { %s9572_s15 = scalar_lea.hbm %s14071_s7, 2048 }
  0x42   : > { %p9573_p5 = scmp.ne.s32.totalorder %s14071_s7, %s9572_s15  ;;  %p9579_p10 = scmp.lt.u32.totalorder %s9572_s15, %s14071_s7 }
  0x44   : > { %p9575_p6 = pnand %p9573_p5, %p9989_p0 }
  0x46   : > { %p9576_p9 = pneg %p9575_p6 }
  0x48   : > { %p9581_p13 = pnand %p9579_p10, %p9576_p9 }
  0x4a   : > { %9584 = shalt.err (!%p9581_p13)
}
  0x4b   : > { %s9585_s17 = scalar_lea.vmem %s9979_s26, 2048  ;;  %p9593_p4 = scmp.lt.s32.totalorder %s9979_s26, %s9979_s26 }
  0x4c   : > { %p9586_p1 = scmp.ne.s32.totalorder %s9979_s26, %s9585_s17  ;;  %p9594_p7 = scmp.lt.s32.totalorder %s9585_s17, %s9585_s17 }
  0x4e   : > { %p9588_p2 = pnand %p9586_p1, %p9989_p0  ;;  %p9595_p8 = por %p9594_p7, %p9593_p4 }
  0x50   : > { %p9589_p3 = pneg %p9588_p2 }
  0x52   : > { %p9596_p11 = pnand %p9595_p8, %p9589_p3 }
  0x54   : > { %9599 = shalt.err (!%p9596_p11)
}
  0x55   : > { %9000 = dma.hbm_to_vmem [thread:$0]  (!%p9975_p12), %s14071_s7, 2048, %s9979_s26, [#allocation9], %s13902_s18, %s13902_s18, %s13903_s27  }
  0x56   : > { %s9824_s19 = smov [#allocation11]   ;;  %s9825_s21 = smov [#allocation2]  }
  0x57   : > { %s477_s28 = sshll.u32 %s9824_s19, 4  ;;  %s400_s24 = sshll.u32 %s9825_s21, 4  ;;  %s478_s28 = int_to_ptr.vmem [resolvable:$true] %s477_s28  ;;  %s10034_s24 = int_to_ptr.vmem [resolvable:$true] %s400_s24 }
  0x58   : > { %s9600_s20 = scalar_lea.hbm %s13883_s11, 8192 }
  0x59   : > { %p9601_p5 = scmp.ne.s32.totalorder %s13883_s11, %s9600_s20  ;;  %p9607_p10 = scmp.lt.u32.totalorder %s9600_s20, %s13883_s11 }
  0x5b   : > { %p9603_p6 = pnand %p9601_p5, %p9989_p0 }
  0x5d   : > { %p9604_p9 = pneg %p9603_p6 }
  0x5f   : > { %p9609_p13 = pnand %p9607_p10, %p9604_p9 }
  0x61   : > { %9612 = shalt.err (!%p9609_p13)
}
  0x62   : > { %s9613_s15 = scalar_lea.vmem %s478_s28, 8192  ;;  %p9621_p4 = scmp.lt.s32.totalorder %s478_s28, %s478_s28 }
  0x63   : > { %p9614_p1 = scmp.ne.s32.totalorder %s478_s28, %s9613_s15  ;;  %p9622_p7 = scmp.lt.s32.totalorder %s9613_s15, %s9613_s15 }
  0x65   : > { %p9616_p2 = pnand %p9614_p1, %p9989_p0  ;;  %p9623_p8 = por %p9622_p7, %p9621_p4 }
  0x67   : > { %p9617_p3 = pneg %p9616_p2 }
  0x69   : > { %p9624_p11 = pnand %p9623_p8, %p9617_p3 }
  0x6b   : > { %9627 = shalt.err (!%p9624_p11)
}
  0x6c   : > { %s9826_s3 = smov 256   ;;  %s9827_s19 = smov 16  }
  0x6d   : > { %9006 = dma.hbm_to_vmem [thread:$0]  (!%p9975_p12), %s13883_s11, 8192, %s478_s28, [#allocation12], %s9826_s3, %s9826_s3, %s9827_s19  }
  0x6e   : > { %s14072_s2 = sld [smem:[#allocation128_spill]] }
  0x74   : > { %s9628_s17 = scalar_lea.hbm %s14072_s2, 4096 }
  0x75   : > { %p9629_p5 = scmp.ne.s32.totalorder %s14072_s2, %s9628_s17  ;;  %p9635_p10 = scmp.lt.u32.totalorder %s9628_s17, %s14072_s2 }
  0x77   : > { %p9631_p6 = pnand %p9629_p5, %p9989_p0 }
  0x79   : > { %p9632_p9 = pneg %p9631_p6 }
  0x7b   : > { %p9637_p13 = pnand %p9635_p10, %p9632_p9 }
  0x7d   : > { %9640 = shalt.err (!%p9637_p13)
}
  0x7e   : > { %s9641_s28 = scalar_lea.vmem %s10034_s24, 4096  ;;  %p9649_p4 = scmp.lt.s32.totalorder %s10034_s24, %s10034_s24 }
  0x7f   : > { %p9642_p1 = scmp.ne.s32.totalorder %s10034_s24, %s9641_s28  ;;  %p9650_p7 = scmp.lt.s32.totalorder %s9641_s28, %s9641_s28 }
  0x81   : > { %p9644_p2 = pnand %p9642_p1, %p9989_p0  ;;  %p9651_p8 = por %p9650_p7, %p9649_p4 }
  0x83   : > { %p9645_p3 = pneg %p9644_p2 }
  0x85   : > { %p9652_p11 = pnand %p9651_p8, %p9645_p3 }
  0x87   : > { %9655 = shalt.err (!%p9652_p11)
}
  0x88   : > { %8991 = dma.hbm_to_vmem [thread:$0]  (!%p9975_p12), %s14072_s2, 4096, %s10034_s24, [#allocation3], %s9826_s3, %s9826_s3, %s9827_s19  }
  0x89   : > { %s9828_s29 = smov [#allocation7]   ;;  %s9656_s14 = scalar_lea.hbm %s13877_s5, 2048 }
  0x8a   : > { %s429_s25 = sshll.u32 %s9828_s29, 4  ;;  %p9657_p5 = scmp.ne.s32.totalorder %s13877_s5, %s9656_s14  ;;  %s430_s25 = int_to_ptr.vmem [resolvable:$true] %s429_s25 }
  0x8b   : > { %p9663_p10 = scmp.lt.u32.totalorder %s9656_s14, %s13877_s5 }
  0x8c   : > { %p9659_p6 = pnand %p9657_p5, %p9989_p0 }
  0x8e   : > { %p9660_p9 = pneg %p9659_p6 }
  0x90   : > { %p9665_p13 = pnand %p9663_p10, %p9660_p9 }
  0x92   : > { %9668 = shalt.err (!%p9665_p13)
}
  0x93   : > { %s9669_s24 = scalar_lea.vmem %s430_s25, 2048  ;;  %p9677_p4 = scmp.lt.s32.totalorder %s430_s25, %s430_s25 }
  0x94   : > { %p9670_p1 = scmp.ne.s32.totalorder %s430_s25, %s9669_s24  ;;  %p9678_p7 = scmp.lt.s32.totalorder %s9669_s24, %s9669_s24 }
  0x96   : > { %p9672_p2 = pnand %p9670_p1, %p9989_p0  ;;  %p9679_p8 = por %p9678_p7, %p9677_p4 }
  0x98   : > { %p9673_p3 = pneg %p9672_p2 }
  0x9a   : > { %p9680_p11 = pnand %p9679_p8, %p9673_p3 }
  0x9c   : > { %9683 = shalt.err (!%p9680_p11)
}
  0x9d   : > { %s9829_s3 = smov 64   ;;  %s9830_s19 = smov 4  }
  0x9e   : > { %8997 = dma.hbm_to_vmem [thread:$0]  (!%p9975_p12), %s13877_s5, 2048, %s430_s25, [#allocation6], %s9829_s3, %s9829_s3, %s9830_s19  }
  0x9f   : > { %s9831_s21 = smov [#allocation10]   ;;  %s9832_s20 = smov [#allocation13]  }
  0xa0   : > { %s461_s29 = sshll.u32 %s9831_s21, 4  ;;  %s493_s17 = sshll.u32 %s9832_s20, 4  ;;  %s462_s29 = int_to_ptr.vmem [resolvable:$true] %s461_s29  ;;  %s494_s17 = int_to_ptr.vmem [resolvable:$true] %s493_s17 }
  0xa1   : > { %s9684_s15 = scalar_lea.hbm %s13881_s9, 2048 }
  0xa2   : > { %p9685_p5 = scmp.ne.s32.totalorder %s13881_s9, %s9684_s15  ;;  %p9691_p10 = scmp.lt.u32.totalorder %s9684_s15, %s13881_s9 }
  0xa4   : > { %p9687_p6 = pnand %p9685_p5, %p9989_p0 }
  0xa6   : > { %p9688_p9 = pneg %p9687_p6 }
  0xa8   : > { %p9693_p13 = pnand %p9691_p10, %p9688_p9 }
  0xaa   : > { %9696 = shalt.err (!%p9693_p13)
}
  0xab   : > { %s9697_s25 = scalar_lea.vmem %s462_s29, 2048  ;;  %p9705_p4 = scmp.lt.s32.totalorder %s462_s29, %s462_s29 }
  0xac   : > { %p9698_p1 = scmp.ne.s32.totalorder %s462_s29, %s9697_s25  ;;  %p9706_p7 = scmp.lt.s32.totalorder %s9697_s25, %s9697_s25 }
  0xae   : > { %p9700_p2 = pnand %p9698_p1, %p9989_p0  ;;  %p9707_p8 = por %p9706_p7, %p9705_p4 }
  0xb0   : > { %p9701_p3 = pneg %p9700_p2 }
  0xb2   : > { %p9708_p11 = pnand %p9707_p8, %p9701_p3 }
  0xb4   : > { %9711 = shalt.err (!%p9708_p11)
}
  0xb5   : > { %s14073_s27 = smov 8   ;;  %s14074_s18 = smov 128  }
  0xb6   : > { %9003 = dma.hbm_to_vmem [thread:$0]  (!%p9975_p12), %s13881_s9, 2048, %s462_s29, [#allocation9], %s14074_s18, %s14074_s18, %s14073_s27  }
  0xb7   : > { %s9712_s14 = scalar_lea.hbm %s13885_s13, 4096 }
  0xb8   : > { %p9713_p5 = scmp.ne.s32.totalorder %s13885_s13, %s9712_s14  ;;  %p9719_p10 = scmp.lt.u32.totalorder %s9712_s14, %s13885_s13 }
  0xba   : > { %p9715_p6 = pnand %p9713_p5, %p9989_p0 }
  0xbc   : > { %p9716_p9 = pneg %p9715_p6 }
  0xbe   : > { %p9721_p13 = pnand %p9719_p10, %p9716_p9 }
  0xc0   : > { %9724 = shalt.err (!%p9721_p13)
}
  0xc1   : > { %s9725_s25 = scalar_lea.vmem %s494_s17, 4096  ;;  %p9733_p4 = scmp.lt.s32.totalorder %s494_s17, %s494_s17 }
  0xc2   : > { %p9726_p1 = scmp.ne.s32.totalorder %s494_s17, %s9725_s25  ;;  %p9734_p7 = scmp.lt.s32.totalorder %s9725_s25, %s9725_s25 }
  0xc4   : > { %p9728_p2 = pnand %p9726_p1, %p9989_p0  ;;  %p9735_p8 = por %p9734_p7, %p9733_p4 }
  0xc6   : > { %p9729_p3 = pneg %p9728_p2 }
  0xc8   : > { %p9736_p11 = pnand %p9735_p8, %p9729_p3 }
  0xca   : > { %9739 = shalt.err (!%p9736_p11)
}
  0xcb   : > { %9009 = dma.hbm_to_vmem [thread:$0]  (!%p9975_p12), %s13885_s13, 4096, %s494_s17, [#allocation12], %s9829_s3, %s9829_s3, %s9830_s19  }
  0xcc   : > { %p14075_p5 = scmp.ne.s32.totalorder %s14067_s30, 0 }
  0xce   : > { %530 = sbr.rel (%p14075_p5) target bundleno = 2935 (0xb77), region = 80 }
  0xd5   : > { %p14076_p0 = scmp.eq.s32.totalorder %s9939_s22, 0 }
  0xd7   : > { %9785 = dma.done.wait (%p14076_p0), [#allocation3], 4096   ;;  %p14077_p6 = pmov %p14076_p0 }
  0xd8   : > { %p14078_p9 = pmov %p14076_p0 }
  0xd9   : > { %9787 = vsyncadd (%p14077_p6), [#allocation3], 4294963200 }
  0xda   : > { %9789 = dma.done.wait (%p14078_p9), [#allocation6], 10240   ;;  %p14079_p10 = pmov %p14076_p0 }
  0xdb   : > { %p14080_p13 = pmov %p14076_p0 }
  0xdc   : > { %9791 = vsyncadd (%p14079_p10), [#allocation6], 4294957056 }
  0xdd   : > { %9793 = dma.done.wait (%p14080_p13), [#allocation9], 4096   ;;  %p14081_p12 = pmov %p14076_p0 }
  0xde   : > { %p14082_p1 = pmov %p14076_p0 }
  0xdf   : > { %9795 = vsyncadd (%p14081_p12), [#allocation9], 4294963200 }
  0xe0   : > { %9797 = dma.done.wait (%p14082_p1), [#allocation12], 12288   ;;  %p14083_p2 = pmov %p14076_p0 }
  0xe1   : > { %s8050_s30 = sshll.u32 %s9939_s22, 6  ;;  %v13919_v0 = vmov 0   ;;  %v9080_v13 = vld [vmem:[#allocation2 + $0x4] ss:$16 sps:$4 sm:$0xff]   ;;  %v9082_v14 = vld [vmem:[#allocation2] ss:$16 sps:$4 sm:$0xff]  }
  0xe2   : > { %9799 = vsyncadd (%p14083_p2), [#allocation12], 4294955008  ;;  %9079 = vset.pattern.permute.xlu1 %v13919_v0  ;;  %9078 = vset.pattern.permute.xlu0 %v13919_v0  ;;  %p608_p3 = scmp.lt.s32.totalorder %s8050_s30, 255  ;;  %v9083_v15 = vld [vmem:[#allocation2 + $0x24] ss:$16 sps:$4 sm:$0xff]   ;;  %s14577_s27 = sld [smem:[#allocation21_spill]] }
  0xe3   : > { %1327 = vmatprep.mubr.bf16.mxu0 %v13919_v0  ;;  %1840 = vmatprep.mubr.bf16.mxu1 %v13919_v0  ;;  %v9085_v18 = vld [vmem:[#allocation2 + $0x20] ss:$16 sps:$4 sm:$0xff]   ;;  %v9086_v19 = vld [vmem:[#allocation2 + $0x44] ss:$16 sps:$4 sm:$0xff]   ;;  %v10193_v31 = vld [vmem:[#allocation2 + $0x8] ss:$16 sps:$4 sm:$0xff]  }
  0xe4   : > { %s14604_s30 = smov (!%p608_p3, %s8050_s30), 255  ;;  %1295 = vmatprep.subr.bf16.mxu0 %v9080_v13  ;;  %v9088_v22 = vld [vmem:[#allocation2 + $0x40] ss:$16 sps:$4 sm:$0xff]   ;;  %v9089_v23 = vld [vmem:[#allocation2 + $0x64] ss:$16 sps:$4 sm:$0xff]   ;;  %s14592_s18 = sld [smem:[#allocation26_spill]] }
  0xe5   : > { %s8051_s23 = sshll.u32 %s14604_s30, 3  ;;  %1296 = vmatpush1.bf16.msra.mxu0 %v9082_v14  ;;  %v9091_v26 = vld [vmem:[#allocation2 + $0x60] ss:$16 sps:$4 sm:$0xff]   ;;  %v9092_v27 = vld [vmem:[#allocation2 + $0x84] ss:$16 sps:$4 sm:$0xff]   ;;  %s8493_s2 = sshll.u32 %s9939_s22, 13 }
  0xe6   : > { %s10171_s19 = scalar_lea.vmem %s13872_s0, %s8051_s23  ;;  %1297 = vmatprep.subr.bf16.mxu0 %v9083_v15  ;;  %v9094_v30 = vld [vmem:[#allocation2 + $0x80] ss:$16 sps:$4 sm:$0xff]   ;;  %v9095_v32 = vld [vmem:[#allocation2 + $0xa4] ss:$16 sps:$4 sm:$0xff]   ;;  %v9106_v33 = vld [vmem:[#allocation2 + $0xc] ss:$16 sps:$4 sm:$0xff]   ;;  %s12245_s15 = scalar_lea.vmem %s13873_s1, %s8051_s23 }
  0xe7   : > { %v623_v1 = vld [vmem:[%s10171_s19 + $0x10] sm:$0xff]  ;;  %v621_v2 = vld [vmem:[%s10171_s19] sm:$0xff]  ;;  %v624_v3 = vld [vmem:[%s10171_s19 + $0x18] sm:$0xff]  ;;  %8494 = vmatprep.subr.bf16.mxu1 %v9106_v33  ;;  %s14593_s14 = sld [smem:[#allocation132_spill]]  ;;  %s9835_s28 = smov [#allocation14]  }
  0xe8   : > { %694 = vperm.xlu1 %9079, %v623_v1   ;;  %688 = vperm.xlu0 %9078, %v621_v2   ;;  %v622_v4 = vld [vmem:[%s10171_s19 + $0x8] sm:$0xff]  ;;  %v625_v6 = vld [vmem:[%s10171_s19 + $0x20] sm:$0xff]  ;;  %v628_v7 = vld [vmem:[%s10171_s19 + $0x38] sm:$0xff]  ;;  %s604_s30 = sand.u32 1, %s14577_s27   ;;  %s9744_s24 = sshll.u32 %s9835_s28, 4  ;;  %s9745_s24 = int_to_ptr.vmem [resolvable:$false] %s9744_s24 }
  0xe9   : > { %v626_v5 = vld [vmem:[%s10171_s19 + $0x28] sm:$0xff]  ;;  %v627_v8 = vld [vmem:[%s10171_s19 + $0x30] sm:$0xff]  ;;  %v629_v10 = vld [vmem:[%s10171_s19 + $0x40] sm:$0xff]  ;;  %1298 = vmatpush1.bf16.msra.mxu0 %v9085_v18  ;;  %8502 = vmatpush1.bf16.msra.mxu1 %v10193_v31  ;;  %s8049_s23 = sshll.u32 %s604_s30, 9  ;;  %s13831_s22 = scalar_lea.sflag [#allocation4], %s604_s30 }
  0xea   : > { %v630_v9 = vld [vmem:[%s10171_s19 + $0x48] sm:$0xff]  ;;  %v632_v11 = vld [vmem:[%s10171_s19 + $0x58] sm:$0xff]  ;;  %v631_v12 = vld [vmem:[%s10171_s19 + $0x50] sm:$0xff]  ;;  %1299 = vmatprep.subr.bf16.mxu0 %v9086_v19  ;;  %s13682_s17 = scalar_lea.vmem [#allocation14], %s8049_s23  ;;  %p14594_p7 = scmp.ne.s32.totalorder %s14592_s18, 0 }
  0xeb   : > { %v634_v16 = vld [vmem:[%s10171_s19 + $0x68] sm:$0xff]  ;;  %v633_v17 = vld [vmem:[%s10171_s19 + $0x60] sm:$0xff]  ;;  %v636_v20 = vld [vmem:[%s10171_s19 + $0x78] sm:$0xff]  ;;  %s7888_s7 = sshll.u32 %s13682_s17, 4  ;;  %s9746_s25 = scalar_lea.vmem %s9745_s24, 16384  ;;  %s13824_s7 = int_to_ptr.vmem [resolvable:$true] %s7888_s7 }
  0xec   : > { %697 = vperm.xlu1 %9079, %v624_v3   ;;  %691 = vperm.xlu0 %9078, %v622_v4   ;;  %v635_v21 = vld [vmem:[%s10171_s19 + $0x70] sm:$0xff]  ;;  %v638_v24 = vld [vmem:[%s10171_s19 + $0x88] sm:$0xff]  ;;  %v637_v25 = vld [vmem:[%s10171_s19 + $0x80] sm:$0xff]  ;;  %p9747_p5 = scmp.lt.s32.totalorder %s13824_s7, %s9745_s24 }
  0xed   : > { %1300 = vmatpush1.bf16.msra.mxu0 %v9088_v22  ;;  %v640_v28 = vld [vmem:[%s10171_s19 + $0x98] sm:$0xff]  ;;  %v639_v29 = vld [vmem:[%s10171_s19 + $0x90] sm:$0xff]  ;;  %v642_v34 = vld [vmem:[%s10171_s19 + $0xa8] sm:$0xff]  ;;  %s13822_s26 = scalar_lea.hbm %s14593_s14, %s8493_s2 }
  0xee   : > { %1301 = vmatprep.subr.bf16.mxu0 %v9089_v23  ;;  %v641_v35 = vld [vmem:[%s10171_s19 + $0xa0] sm:$0xff]  ;;  %v10198_v38 = vld [vmem:[#allocation2 + $0x28] ss:$16 sps:$4 sm:$0xff]   ;;  %v10200_v39 = vld [vmem:[#allocation2 + $0x2c] ss:$16 sps:$4 sm:$0xff]  }
  0xef   : > { %v9097_v36 = vld [vmem:[#allocation2 + $0xa0] ss:$16 sps:$4 sm:$0xff]   ;;  %v9098_v37 = vld [vmem:[#allocation2 + $0xc4] ss:$16 sps:$4 sm:$0xff]   ;;  %v644_v40 = vld [vmem:[%s10171_s19 + $0xb8] sm:$0xff]  ;;  %8495 = vmatprep.subr.bf16.mxu1 %v10200_v39 }
  0xf0   : > { %703 = vperm.xlu1 %9079, %v626_v5   ;;  %700 = vperm.xlu0 %9078, %v625_v6   ;;  %v643_v41 = vld [vmem:[%s10171_s19 + $0xb0] sm:$0xff]  ;;  %v10206_v44 = vld [vmem:[#allocation2 + $0x4c] ss:$16 sps:$4 sm:$0xff]   ;;  %v10208_v45 = vld [vmem:[#allocation2 + $0x48] ss:$16 sps:$4 sm:$0xff]  }
  0xf1   : > { %1302 = vmatpush1.bf16.msra.mxu0 %v9091_v26  ;;  %v9100_v42 = vld [vmem:[#allocation2 + $0xc0] ss:$16 sps:$4 sm:$0xff]   ;;  %v9101_v43 = vld [vmem:[#allocation2 + $0xe4] ss:$16 sps:$4 sm:$0xff]   ;;  %8503 = vmatpush1.bf16.msra.mxu1 %v10198_v38  ;;  %v646_v46 = vld [vmem:[%s10171_s19 + $0xc8] sm:$0xff] }
  0xf2   : > { %1303 = vmatprep.subr.bf16.mxu0 %v9092_v27  ;;  %v645_v47 = vld [vmem:[%s10171_s19 + $0xc0] sm:$0xff]  ;;  %8496 = vmatprep.subr.bf16.mxu1 %v10206_v44  ;;  %v10214_v49 = vld [vmem:[#allocation2 + $0x6c] ss:$16 sps:$4 sm:$0xff]   ;;  %v10216_v50 = vld [vmem:[#allocation2 + $0x68] ss:$16 sps:$4 sm:$0xff]  }
  0xf3   : > { %v9103_v48 = vld [vmem:[#allocation2 + $0xe0] ss:$16 sps:$4 sm:$0xff]   ;;  %v648_v51 = vld [vmem:[%s10171_s19 + $0xd8] sm:$0xff]  ;;  %v650_v55 = vld [vmem:[%s10171_s19 + $0xe8] sm:$0xff] }
  0xf4   : > { %709 = vperm.xlu1 %9079, %v628_v7   ;;  %706 = vperm.xlu0 %9078, %v627_v8   ;;  %v647_v52 = vld [vmem:[%s10171_s19 + $0xd0] sm:$0xff]  ;;  %v10222_v53 = vld [vmem:[#allocation2 + $0x8c] ss:$16 sps:$4 sm:$0xff]   ;;  %v10224_v54 = vld [vmem:[#allocation2 + $0x88] ss:$16 sps:$4 sm:$0xff]  }
  0xf5   : > { %1304 = vmatpush1.bf16.msra.mxu0 %v9094_v30  ;;  %8504 = vmatpush1.bf16.msra.mxu1 %v10208_v45  ;;  %v649_v56 = vld [vmem:[%s10171_s19 + $0xe0] sm:$0xff]  ;;  %v10230_v57 = vld [vmem:[#allocation2 + $0xac] ss:$16 sps:$4 sm:$0xff]   ;;  %v10232_v58 = vld [vmem:[#allocation2 + $0xa8] ss:$16 sps:$4 sm:$0xff]  }
  0xf6   : > { %1305 = vmatprep.subr.bf16.mxu0 %v9095_v32  ;;  %8497 = vmatprep.subr.bf16.mxu1 %v10214_v49  ;;  %v652_v59 = vld [vmem:[%s10171_s19 + $0xf8] sm:$0xff]  ;;  %v651_v60 = vld [vmem:[%s10171_s19 + $0xf0] sm:$0xff]  ;;  %v654_v63 = vld [vmem:[%s10171_s19 + $0x108] sm:$0xff] }
  0xf7   : > { %v10238_v61 = vld [vmem:[#allocation2 + $0xcc] ss:$16 sps:$4 sm:$0xff]   ;;  %v10240_v62 = vld [vmem:[#allocation2 + $0xc8] ss:$16 sps:$4 sm:$0xff]   ;;  %v653_v1 = vld [vmem:[%s10171_s19 + $0x100] sm:$0xff] }
  0xf8   : > { %715 = vperm.xlu1 %9079, %v630_v9   ;;  %712 = vperm.xlu0 %9078, %v629_v10   ;;  %v10246_v2 = vld [vmem:[#allocation2 + $0xec] ss:$16 sps:$4 sm:$0xff]   ;;  %v10248_v3 = vld [vmem:[#allocation2 + $0xe8] ss:$16 sps:$4 sm:$0xff]   ;;  %v655_v5 = vld [vmem:[%s10171_s19 + $0x110] sm:$0xff] }
  0xf9   : > { %1306 = vmatpush1.bf16.msra.mxu0 %v9097_v36  ;;  %8505 = vmatpush1.bf16.msra.mxu1 %v10216_v50  ;;  %v656_v4 = vld [vmem:[%s10171_s19 + $0x118] sm:$0xff]  ;;  %v658_v6 = vld [vmem:[%s10171_s19 + $0x128] sm:$0xff]  ;;  %v657_v7 = vld [vmem:[%s10171_s19 + $0x120] sm:$0xff] }
  0xfa   : > { %1307 = vmatprep.subr.bf16.mxu0 %v9098_v37  ;;  %8498 = vmatprep.subr.bf16.mxu1 %v10222_v53  ;;  %v660_v8 = vld [vmem:[%s10171_s19 + $0x138] sm:$0xff]  ;;  %v659_v9 = vld [vmem:[%s10171_s19 + $0x130] sm:$0xff]  ;;  %v662_v10 = vld [vmem:[%s10171_s19 + $0x148] sm:$0xff] }
  0xfb   : > { %v663_v13 = vld [vmem:[%s10171_s19 + $0x150] sm:$0xff]  ;;  %v666_v14 = vld [vmem:[%s10171_s19 + $0x168] sm:$0xff]  ;;  %v665_v15 = vld [vmem:[%s10171_s19 + $0x160] sm:$0xff] }
  0xfc   : > { %721 = vperm.xlu1 %9079, %v632_v11   ;;  %718 = vperm.xlu0 %9078, %v631_v12   ;;  %v661_v11 = vld [vmem:[%s10171_s19 + $0x140] sm:$0xff]  ;;  %v664_v12 = vld [vmem:[%s10171_s19 + $0x158] sm:$0xff]  ;;  %v670_v18 = vld [vmem:[%s10171_s19 + $0x188] sm:$0xff] }
  0xfd   : > { %1308 = vmatpush1.bf16.msra.mxu0 %v9100_v42  ;;  %8506 = vmatpush1.bf16.msra.mxu1 %v10224_v54  ;;  %v669_v19 = vld [vmem:[%s10171_s19 + $0x180] sm:$0xff]  ;;  %v674_v22 = vld [vmem:[%s10171_s19 + $0x1a8] sm:$0xff] }
  0xfe   : > { %1309 = vmatprep.subr.bf16.mxu0 %v9101_v43  ;;  %8499 = vmatprep.subr.bf16.mxu1 %v10230_v57  ;;  %v673_v23 = vld [vmem:[%s10171_s19 + $0x1a0] sm:$0xff]  ;;  %v678_v26 = vld [vmem:[%s10171_s19 + $0x1c8] sm:$0xff] }
  0xff   : > { %v677_v27 = vld [vmem:[%s10171_s19 + $0x1c0] sm:$0xff]  ;;  %v682_v30 = vld [vmem:[%s10171_s19 + $0x1e8] sm:$0xff] }
 0x100   : > { %727 = vperm.xlu1 %9079, %v634_v16   ;;  %724 = vperm.xlu0 %9078, %v633_v17   ;;  %v668_v16 = vld [vmem:[%s10171_s19 + $0x178] sm:$0xff]  ;;  %v667_v17 = vld [vmem:[%s10171_s19 + $0x170] sm:$0xff]  ;;  %v681_v32 = vld [vmem:[%s10171_s19 + $0x1e0] sm:$0xff] }
 0x101   : > { %1310 = vmatpush1.bf16.msra.mxu0 %v9103_v48  ;;  %8507 = vmatpush1.bf16.msra.mxu1 %v10232_v58  ;;  %v9140_v43 = vld [vmem:[#allocation5 + $0x40] ss:$8 sps:$4 sm:$0xff]  }
 0x102   : > { %1648 = vmatprep.subr.bf16.mxu0 %v9106_v33  ;;  %8500 = vmatprep.subr.bf16.mxu1 %v10238_v61  ;;  %v684_v33 = vld [vmem:[%s10171_s19 + $0x1f8] sm:$0xff] }
 0x104   : > { %733 = vperm.xlu1 %9079, %v636_v20   ;;  %730 = vperm.xlu0 %9078, %v635_v21   ;;  %v672_v20 = vld [vmem:[%s10171_s19 + $0x198] sm:$0xff]  ;;  %v671_v21 = vld [vmem:[%s10171_s19 + $0x190] sm:$0xff] }
 0x105   : > { %8508 = vmatpush1.bf16.msra.mxu1 %v10240_v62 }
 0x106   : > { %8501 = vmatprep.subr.bf16.mxu1 %v10246_v2 }
 0x108   : > { %739 = vperm.xlu1 %9079, %v638_v24   ;;  %736 = vperm.xlu0 %9078, %v637_v25   ;;  %v676_v24 = vld [vmem:[%s10171_s19 + $0x1b8] sm:$0xff]  ;;  %v675_v25 = vld [vmem:[%s10171_s19 + $0x1b0] sm:$0xff] }
 0x109   : > { %8509 = vmatpush1.bf16.msra.mxu1 %v10248_v3 }
 0x10a   : > { %3558 = vmatprep.subr.bf16.mxu1 %v13919_v0 }
 0x10c   : > { %745 = vperm.xlu1 %9079, %v640_v28   ;;  %742 = vperm.xlu0 %9078, %v639_v29   ;;  %v680_v28 = vld [vmem:[%s10171_s19 + $0x1d8] sm:$0xff]  ;;  %v679_v29 = vld [vmem:[%s10171_s19 + $0x1d0] sm:$0xff] }
 0x110   : > { %751 = vperm.xlu1 %9079, %v642_v34   ;;  %748 = vperm.xlu0 %9078, %v641_v35   ;;  %v683_v34 = vld [vmem:[%s10171_s19 + $0x1f0] sm:$0xff]  ;;  %v13918_v35 = vlaneseq  ;;  %s14591_s19 = sld [smem:[#allocation131_spill]] }
 0x114   : > { %757 = vperm.xlu1 %9079, %v644_v40   ;;  %754 = vperm.xlu0 %9078, %v643_v41   ;;  %v10284_v40 = vand.u32 127, %v13918_v35  ;;  %v9139_v35 = vld [vmem:[#allocation5 + $0x34] ss:$8 sps:$4 sm:$0xff]  }
 0x118   : > { %763 = vperm.xlu1 %9079, %v646_v46   ;;  %760 = vperm.xlu0 %9078, %v645_v47   ;;  %v13923_v46 = vmov 1.0|1.0  }
 0x11c   : > { %769 = vperm.xlu1 %9079, %v648_v51   ;;  %766 = vperm.xlu0 %9078, %v647_v52  }
 0x120   : > { %775 = vperm.xlu1 %9079, %v650_v55   ;;  %772 = vperm.xlu0 %9078, %v649_v56   ;;  %v14088_v56 = vmov 0  ;;  %v9145_v55 = vld [vmem:[#allocation5 + $0x54] ss:$8 sps:$4 sm:$0xff]  }
 0x124   : > { %781 = vperm.xlu1 %9079, %v652_v59   ;;  %778 = vperm.xlu0 %9078, %v651_v60   ;;  %v14090_v59 = vmov 0 }
 0x128   : > { %787 = vperm.xlu1 %9079, %v654_v63   ;;  %784 = vperm.xlu0 %9078, %v653_v1  }
 0x12c   : > { %793 = vperm.xlu1 %9079, %v656_v4   ;;  %790 = vperm.xlu0 %9078, %v655_v5  }
 0x130   : > { %799 = vperm.xlu1 %9079, %v658_v6   ;;  %796 = vperm.xlu0 %9078, %v657_v7  }
 0x134   : > { %805 = vperm.xlu1 %9079, %v660_v8   ;;  %802 = vperm.xlu0 %9078, %v659_v9   ;;  %v14096_v8 = vmov 0 }
 0x138   : > { %811 = vperm.xlu1 %9079, %v662_v10   ;;  %808 = vperm.xlu0 %9078, %v661_v11  }
 0x13c   : > { %817 = vperm.xlu1 %9079, %v664_v12   ;;  %814 = vperm.xlu0 %9078, %v663_v13   ;;  %v14098_v13 = vmov 0 }
 0x140   : > { %823 = vperm.xlu1 %9079, %v666_v14   ;;  %820 = vperm.xlu0 %9078, %v665_v15   ;;  %v14100_v14 = vmov 0 }
 0x144   : > { %829 = vperm.xlu1 %9079, %v668_v16   ;;  %826 = vperm.xlu0 %9078, %v667_v17  }
 0x148   : > { %835 = vperm.xlu1 %9079, %v670_v18   ;;  %832 = vperm.xlu0 %9078, %v669_v19  }
 0x14c   : > { %841 = vperm.xlu1 %9079, %v672_v20   ;;  %838 = vperm.xlu0 %9078, %v671_v21   ;;  %v14104_v20 = vmov 0 }
 0x150   : > { %847 = vperm.xlu1 %9079, %v674_v22   ;;  %844 = vperm.xlu0 %9078, %v673_v23  }
 0x154   : > { %853 = vperm.xlu1 %9079, %v676_v24   ;;  %850 = vperm.xlu0 %9078, %v675_v25   ;;  %v14108_v24 = vmov 0 }
 0x158   : > { %859 = vperm.xlu1 %9079, %v678_v26   ;;  %856 = vperm.xlu0 %9078, %v677_v27  }
 0x15c   : > { %865 = vperm.xlu1 %9079, %v680_v28   ;;  %862 = vperm.xlu0 %9078, %v679_v29   ;;  %v14112_v28 = vmov 0 }
 0x160   : > { %871 = vperm.xlu1 %9079, %v682_v30   ;;  %868 = vperm.xlu0 %9078, %v681_v32  }
 0x164   : > { %877 = vperm.xlu1 %9079, %v684_v33   ;;  %874 = vperm.xlu0 %9078, %v683_v34   ;;  %v14116_v33 = vmov 0  ;;  %v9146_v34 = vld [vmem:[#allocation5 + $0x60] ss:$8 sps:$4 sm:$0xff]  }
 0x167   : > { %v695_v36 = vpop.permute.xlu1 %694  ;;  %v689_v37 = vpop.permute.xlu0 %688 }
 0x168   : > { %vm879_vm1 = vcmp.eq.s32.totalorder %v689_v37, %v10284_v40  ;;  %vm881_vm3 = vcmp.eq.s32.totalorder %v695_v36, %v10284_v40 }
 0x16b   : > { %v698_v41 = vpop.permute.xlu1 %697  ;;  %v692_v42 = vpop.permute.xlu0 %691 }
 0x16c   : > { %vm880_vm0 = vcmp.eq.s32.totalorder %v692_v42, %v10284_v40  ;;  %vm882_vm4 = vcmp.eq.s32.totalorder %v698_v41, %v10284_v40  ;;  %v14120_v41 = vmov 0 }
 0x16d   : > { %vm10288_vm2 = vmpackc.low %vm880_vm0, %vm879_vm1 }
 0x16e   : > { %8151 = vmatmul.mubr.msk.bf16.vlgmr.msra.gmra.mrb[0].mxu0 %vm10288_vm2, %v13923_v46  ;;  %vm10302_vm5 = vmpackc.low %vm882_vm4, %vm881_vm3 }
 0x16f   : > { %v704_v47 = vpop.permute.xlu1 %703  ;;  %v701_v48 = vpop.permute.xlu0 %700  ;;  %1649 = vmatpush1.bf16.msra.mxu0 %v10193_v31  ;;  %1337 = vmatprep.mubr.bf16.mxu0 %v13919_v0 }
 0x170   : > { %1650 = vmatprep.subr.bf16.mxu0 %v10200_v39  ;;  %vm884_vm6 = vcmp.eq.s32.totalorder %v704_v47, %v10284_v40  ;;  %vm883_vm7 = vcmp.eq.s32.totalorder %v701_v48, %v10284_v40 }
 0x171   : > { %vm10316_vm8 = vmpackc.low %vm884_vm6, %vm883_vm7 }
 0x172   : > { %v14089_v56 = vsel %vm10316_vm8, 4294967295, %v14088_v56 }
 0x173   : > { %v710_v51 = vpop.permute.xlu1 %709  ;;  %v707_v52 = vpop.permute.xlu0 %706  ;;  %1651 = vmatpush1.bf16.msra.mxu0 %v10198_v38 }
 0x174   : > { %1652 = vmatprep.subr.bf16.mxu0 %v10206_v44  ;;  %vm886_vm9 = vcmp.eq.s32.totalorder %v710_v51, %v10284_v40  ;;  %vm885_vm10 = vcmp.eq.s32.totalorder %v707_v52, %v10284_v40  ;;  %v14124_v51 = vmov 0 }
 0x175   : > { %vm10330_vm11 = vmpackc.low %vm886_vm9, %vm885_vm10 }
 0x176   : > { %8153 = vmatmul.mubr.msk.bf16.gmra.mrb[4].mxu0 %vm10302_vm5, %v13923_v46  ;;  %v14091_v59 = vsel %vm10330_vm11, 4294967295, %v14090_v59 }
 0x177   : > { %v716_v31 = vpop.permute.xlu1 %715  ;;  %v713_v39 = vpop.permute.xlu0 %712  ;;  %1347 = vmatprep.mubr.bf16.mxu0 %v13919_v0  ;;  %1653 = vmatpush1.bf16.msra.mxu0 %v10208_v45 }
 0x178   : > { %1654 = vmatprep.subr.bf16.mxu0 %v10214_v49  ;;  %vm888_vm12 = vcmp.eq.s32.totalorder %v716_v31, %v10284_v40  ;;  %vm887_vm13 = vcmp.eq.s32.totalorder %v713_v39, %v10284_v40 }
 0x179   : > { %vm10343_vm14 = vmpackc.low %vm888_vm12, %vm887_vm13 }
 0x17b   : > { %v722_v38 = vpop.permute.xlu1 %721  ;;  %v719_v44 = vpop.permute.xlu0 %718  ;;  %1655 = vmatpush1.bf16.msra.mxu0 %v10216_v50 }
 0x17c   : > { %1656 = vmatprep.subr.bf16.mxu0 %v10222_v53  ;;  %vm890_vm15 = vcmp.eq.s32.totalorder %v722_v38, %v10284_v40  ;;  %vm889_vm0 = vcmp.eq.s32.totalorder %v719_v44, %v10284_v40  ;;  %v14128_v38 = vmov 0 }
 0x17d   : > { %vm10361_vm1 = vmpackc.low %vm890_vm15, %vm889_vm0 }
 0x17e   : > { %8155 = vmatmul.mubr.msk.bf16.gmra.mrb[8].mxu0 %vm10316_vm8, %v13923_v46 }
 0x17f   : > { %v728_v45 = vpop.permute.xlu1 %727  ;;  %v725_v49 = vpop.permute.xlu0 %724  ;;  %1357 = vmatprep.mubr.bf16.mxu0 %v13919_v0  ;;  %1657 = vmatpush1.bf16.msra.mxu0 %v10224_v54 }
 0x180   : > { %1658 = vmatprep.subr.bf16.mxu0 %v10230_v57  ;;  %vm892_vm3 = vcmp.eq.s32.totalorder %v728_v45, %v10284_v40  ;;  %vm891_vm4 = vcmp.eq.s32.totalorder %v725_v49, %v10284_v40 }
 0x181   : > { %vm10379_vm6 = vmpackc.low %vm892_vm3, %vm891_vm4 }
 0x182   : > { %v14097_v8 = vsel %vm10379_vm6, 4294967295, %v14096_v8 }
 0x183   : > { %v734_v50 = vpop.permute.xlu1 %733  ;;  %v731_v53 = vpop.permute.xlu0 %730  ;;  %1659 = vmatpush1.bf16.msra.mxu0 %v10232_v58 }
 0x184   : > { %1660 = vmatprep.subr.bf16.mxu0 %v10238_v61  ;;  %v14092_v61 = vmov 0  ;;  %vm894_vm7 = vcmp.eq.s32.totalorder %v734_v50, %v10284_v40  ;;  %vm893_vm9 = vcmp.eq.s32.totalorder %v731_v53, %v10284_v40 }
 0x185   : > { %v14093_v61 = vsel %vm10343_vm14, 4294967295, %v14092_v61  ;;  %vm10399_vm15 = vmpackc.low %vm894_vm7, %vm893_vm9 }
 0x186   : > { %8157 = vmatmul.mubr.msk.bf16.gmra.mrb[12].mxu0 %vm10330_vm11, %v13923_v46  ;;  %v14101_v14 = vsel %vm10399_vm15, 4294967295, %v14100_v14 }
 0x187   : > { %v740_v54 = vpop.permute.xlu1 %739  ;;  %v737_v57 = vpop.permute.xlu0 %736  ;;  %1367 = vmatprep.mubr.bf16.mxu0 %v13919_v0  ;;  %1661 = vmatpush1.bf16.msra.mxu0 %v10240_v62 }
 0x188   : > { %1662 = vmatprep.subr.bf16.mxu0 %v10246_v2  ;;  %vm896_vm7 = vcmp.eq.s32.totalorder %v740_v54, %v10284_v40  ;;  %vm895_vm9 = vcmp.eq.s32.totalorder %v737_v57, %v10284_v40  ;;  %v9130_v57 = vld [vmem:[#allocation5 + $0x4] ss:$8 sps:$4 sm:$0xff]  }
 0x18b   : > { %v746_v58 = vpop.permute.xlu1 %745  ;;  %v743_v60 = vpop.permute.xlu0 %742  ;;  %1663 = vmatpush1.bf16.msra.mxu0 %v10248_v3  ;;  %v14094_v3 = vmov 0 }
 0x18c   : > { %v14095_v3 = vsel %vm10361_vm1, 4294967295, %v14094_v3  ;;  %2525 = vmatprep.subr.bf16.mxu0 %v9130_v57 }
 0x18e   : > { %8159 = vmatmul.mubr.msk.bf16.gmra.mrb[16].mxu0 %vm10343_vm14, %v13923_v46 }
 0x18f   : > { %v10350_v63 = vpop.permute.xlu1 %751  ;;  %v10352_v62 = vpop.permute.xlu0 %748  ;;  %1377 = vmatprep.mubr.bf16.mxu0 %v13919_v0 }
 0x193   : > { %v10357_v1 = vpop.permute.xlu1 %757  ;;  %v10359_v2 = vpop.permute.xlu0 %754 }
 0x196   : > { %8161 = vmatmul.mubr.msk.bf16.gmra.mrb[20].mxu0 %vm10361_vm1, %v13923_v46 }
 0x197   : > { %v10368_v4 = vpop.permute.xlu1 %763  ;;  %v10370_v5 = vpop.permute.xlu0 %760  ;;  %1387 = vmatprep.mubr.bf16.mxu0 %v13919_v0 }
 0x19b   : > { %v10375_v6 = vpop.permute.xlu1 %769  ;;  %v10377_v7 = vpop.permute.xlu0 %766 }
 0x19e   : > { %8163 = vmatmul.mubr.msk.bf16.gmra.mrb[24].mxu0 %vm10379_vm6, %v13923_v46 }
 0x19f   : > { %v10386_v9 = vpop.permute.xlu1 %775  ;;  %v10388_v10 = vpop.permute.xlu0 %772  ;;  %1397 = vmatprep.mubr.bf16.mxu0 %v13919_v0 }
 0x1a3   : > { %v782_v11 = vpop.permute.xlu1 %781  ;;  %v779_v12 = vpop.permute.xlu0 %778 }
 0x1a4   : > { %vm910_vm10 = vcmp.eq.s32.totalorder %v782_v11, %v10284_v40  ;;  %vm909_vm12 = vcmp.eq.s32.totalorder %v779_v12, %v10284_v40  ;;  %v9131_v11 = vld [vmem:[#allocation5 + $0x10] ss:$8 sps:$4 sm:$0xff]  }
 0x1a5   : > { %vm10395_vm13 = vmpackc.low %vm910_vm10, %vm909_vm12 }
 0x1a6   : > { %v14099_v13 = vsel %vm10395_vm13, 4294967295, %v14098_v13  ;;  %8165 = vmatmul.mubr.msk.bf16.gmra.mrb[28].mxu0 %vm10399_vm15, %v13923_v46  ;;  %vm10419_vm10 = vmpackc.low %vm896_vm7, %vm895_vm9  ;;  %vm898_vm7 = vcmp.eq.s32.totalorder %v746_v58, %v10284_v40  ;;  %vm897_vm9 = vcmp.eq.s32.totalorder %v743_v60, %v10284_v40 }
 0x1a7   : > { %v788_v15 = vpop.permute.xlu1 %787  ;;  %v785_v16 = vpop.permute.xlu0 %784  ;;  %1407 = vmatprep.mubr.bf16.mxu0 %v13919_v0  ;;  %v14105_v20 = vsel %vm10419_vm10, 4294967295, %v14104_v20  ;;  %vm10439_vm15 = vmpackc.low %vm898_vm7, %vm897_vm9  ;;  %vm900_vm7 = vcmp.eq.s32.totalorder %v10350_v63, %v10284_v40  ;;  %vm899_vm9 = vcmp.eq.s32.totalorder %v10352_v62, %v10284_v40 }
 0x1a8   : > { %vm912_vm0 = vcmp.eq.s32.totalorder %v788_v15, %v10284_v40  ;;  %vm911_vm3 = vcmp.eq.s32.totalorder %v785_v16, %v10284_v40  ;;  %v14109_v24 = vsel %vm10439_vm15, 4294967295, %v14108_v24 }
 0x1a9   : > { %vm10409_vm4 = vmpackc.low %vm912_vm0, %vm911_vm3 }
 0x1aa   : > { %8247 = vmatmul.mubr.msk.bf16.vlgmr.msra.gmra.mrb[0].mxu1 %vm10409_vm4, %v13923_v46 }
 0x1ab   : > { %v794_v18 = vpop.permute.xlu1 %793  ;;  %v791_v19 = vpop.permute.xlu0 %790  ;;  %1850 = vmatprep.mubr.bf16.mxu1 %v13919_v0 }
 0x1ac   : > { %vm914_vm12 = vcmp.eq.s32.totalorder %v794_v18, %v10284_v40  ;;  %vm913_vm0 = vcmp.eq.s32.totalorder %v791_v19, %v10284_v40 }
 0x1ad   : > { %vm10429_vm3 = vmpackc.low %vm914_vm12, %vm913_vm0 }
 0x1ae   : > { %8167 = vmatmul.mubr.msk.bf16.gmra.mrb[32].mxu0 %vm10419_vm10, %v13923_v46 }
 0x1af   : > { %1417 = vmatprep.mubr.bf16.mxu0 %v13919_v0  ;;  %v800_v22 = vpop.permute.xlu1 %799  ;;  %v797_v23 = vpop.permute.xlu0 %796 }
 0x1b0   : > { %vm916_vm12 = vcmp.eq.s32.totalorder %v800_v22, %v10284_v40  ;;  %vm915_vm0 = vcmp.eq.s32.totalorder %v797_v23, %v10284_v40  ;;  %v9149_v23 = vld [vmem:[#allocation5 + $0x70] ss:$8 sps:$4 sm:$0xff]  }
 0x1b1   : > { %vm10449_vm10 = vmpackc.low %vm916_vm12, %vm915_vm0 }
 0x1b2   : > { %8249 = vmatmul.mubr.msk.bf16.gmra.mrb[4].mxu1 %vm10429_vm3, %v13923_v46 }
 0x1b3   : > { %1860 = vmatprep.mubr.bf16.mxu1 %v13919_v0  ;;  %v806_v26 = vpop.permute.xlu1 %805  ;;  %v803_v27 = vpop.permute.xlu0 %802 }
 0x1b4   : > { %vm918_vm12 = vcmp.eq.s32.totalorder %v806_v26, %v10284_v40  ;;  %vm917_vm0 = vcmp.eq.s32.totalorder %v803_v27, %v10284_v40 }
 0x1b5   : > { %vm10471_vm6 = vmpackc.low %vm918_vm12, %vm917_vm0 }
 0x1b6   : > { %8169 = vmatmul.mubr.msk.bf16.gmra.mrb[36].mxu0 %vm10439_vm15, %v13923_v46  ;;  %vm10461_vm15 = vmpackc.low %vm900_vm7, %vm899_vm9  ;;  %vm902_vm7 = vcmp.eq.s32.totalorder %v10357_v1, %v10284_v40  ;;  %vm901_vm9 = vcmp.eq.s32.totalorder %v10359_v2, %v10284_v40 }
 0x1b7   : > { %1427 = vmatprep.mubr.bf16.mxu0 %v13919_v0  ;;  %v14113_v28 = vsel %vm10461_vm15, 4294967295, %v14112_v28  ;;  %v812_v30 = vpop.permute.xlu1 %811  ;;  %v809_v32 = vpop.permute.xlu0 %808 }
 0x1b8   : > { %vm920_vm12 = vcmp.eq.s32.totalorder %v812_v30, %v10284_v40  ;;  %vm919_vm0 = vcmp.eq.s32.totalorder %v809_v32, %v10284_v40 }
 0x1b9   : > { %vm10493_vm1 = vmpackc.low %vm920_vm12, %vm919_vm0 }
 0x1ba   : > { %8251 = vmatmul.mubr.msk.bf16.gmra.mrb[8].mxu1 %vm10449_vm10, %v13923_v46 }
 0x1bb   : > { %1870 = vmatprep.mubr.bf16.mxu1 %v13919_v0  ;;  %v818_v36 = vpop.permute.xlu1 %817  ;;  %v815_v37 = vpop.permute.xlu0 %814 }
 0x1bc   : > { %vm922_vm12 = vcmp.eq.s32.totalorder %v818_v36, %v10284_v40  ;;  %vm921_vm0 = vcmp.eq.s32.totalorder %v815_v37, %v10284_v40 }
 0x1bd   : > { %vm10515_vm14 = vmpackc.low %vm922_vm12, %vm921_vm0 }
 0x1be   : > { %8171 = vmatmul.mubr.msk.bf16.gmra.mrb[40].mxu0 %vm10461_vm15, %v13923_v46  ;;  %vm10483_vm15 = vmpackc.low %vm902_vm7, %vm901_vm9  ;;  %vm904_vm7 = vcmp.eq.s32.totalorder %v10368_v4, %v10284_v40  ;;  %vm903_vm9 = vcmp.eq.s32.totalorder %v10370_v5, %v10284_v40 }
 0x1bf   : > { %1437 = vmatprep.mubr.bf16.mxu0 %v13919_v0  ;;  %v14117_v33 = vsel %vm10483_vm15, 4294967295, %v14116_v33  ;;  %v824_v47 = vpop.permute.xlu1 %823  ;;  %v821_v48 = vpop.permute.xlu0 %820 }
 0x1c0   : > { %vm924_vm12 = vcmp.eq.s32.totalorder %v824_v47, %v10284_v40  ;;  %vm923_vm0 = vcmp.eq.s32.totalorder %v821_v48, %v10284_v40 }
 0x1c1   : > { %vm10537_vm11 = vmpackc.low %vm924_vm12, %vm923_vm0 }
 0x1c2   : > { %8253 = vmatmul.mubr.msk.bf16.gmra.mrb[12].mxu1 %vm10471_vm6, %v13923_v46 }
 0x1c3   : > { %1880 = vmatprep.mubr.bf16.mxu1 %v13919_v0  ;;  %v830_v31 = vpop.permute.xlu1 %829  ;;  %v827_v39 = vpop.permute.xlu0 %826 }
 0x1c4   : > { %vm926_vm12 = vcmp.eq.s32.totalorder %v830_v31, %v10284_v40  ;;  %vm925_vm0 = vcmp.eq.s32.totalorder %v827_v39, %v10284_v40 }
 0x1c5   : > { %vm10559_vm8 = vmpackc.low %vm926_vm12, %vm925_vm0 }
 0x1c6   : > { %8173 = vmatmul.mubr.msk.bf16.gmra.mrb[44].mxu0 %vm10483_vm15, %v13923_v46  ;;  %vm10505_vm15 = vmpackc.low %vm904_vm7, %vm903_vm9  ;;  %vm906_vm7 = vcmp.eq.s32.totalorder %v10375_v6, %v10284_v40  ;;  %vm905_vm9 = vcmp.eq.s32.totalorder %v10377_v7, %v10284_v40  ;;  %v9133_v7 = vld [vmem:[#allocation5 + $0x14] ss:$8 sps:$4 sm:$0xff]  }
 0x1c7   : > { %1447 = vmatprep.mubr.bf16.mxu0 %v13919_v0  ;;  %v14121_v41 = vsel %vm10505_vm15, 4294967295, %v14120_v41  ;;  %v836_v45 = vpop.permute.xlu1 %835  ;;  %v833_v49 = vpop.permute.xlu0 %832 }
 0x1ca   : > { %8255 = vmatmul.mubr.msk.bf16.gmra.mrb[16].mxu1 %vm10493_vm1, %v13923_v46 }
 0x1cb   : > { %1890 = vmatprep.mubr.bf16.mxu1 %v13919_v0  ;;  %v842_v53 = vpop.permute.xlu1 %841  ;;  %v839_v54 = vpop.permute.xlu0 %838 }
 0x1cc   : > { %vm930_vm0 = vcmp.eq.s32.totalorder %v842_v53, %v10284_v40 }
 0x1ce   : > { %8175 = vmatmul.mubr.msk.bf16.gmra.mrb[48].mxu0 %vm10505_vm15, %v13923_v46  ;;  %vm10527_vm15 = vmpackc.low %vm906_vm7, %vm905_vm9  ;;  %vm908_vm7 = vcmp.eq.s32.totalorder %v10386_v9, %v10284_v40  ;;  %vm907_vm9 = vcmp.eq.s32.totalorder %v10388_v10, %v10284_v40 }
 0x1cf   : > { %1457 = vmatprep.mubr.bf16.mxu0 %v13919_v0  ;;  %v14125_v51 = vsel %vm10527_vm15, 4294967295, %v14124_v51  ;;  %v848_v60 = vpop.permute.xlu1 %847  ;;  %v845_v63 = vpop.permute.xlu0 %844 }
 0x1d2   : > { %8257 = vmatmul.mubr.msk.bf16.gmra.mrb[20].mxu1 %vm10515_vm14, %v13923_v46 }
 0x1d3   : > { %1900 = vmatprep.mubr.bf16.mxu1 %v13919_v0  ;;  %v854_v1 = vpop.permute.xlu1 %853  ;;  %v851_v2 = vpop.permute.xlu0 %850 }
 0x1d6   : > { %8177 = vmatmul.mubr.msk.bf16.gmra.mrb[52].mxu0 %vm10527_vm15, %v13923_v46  ;;  %vm10549_vm15 = vmpackc.low %vm908_vm7, %vm907_vm9  ;;  %vm928_vm7 = vcmp.eq.s32.totalorder %v836_v45, %v10284_v40  ;;  %vm927_vm9 = vcmp.eq.s32.totalorder %v833_v49, %v10284_v40 }
 0x1d7   : > { %1467 = vmatprep.mubr.bf16.mxu0 %v13919_v0  ;;  %v14129_v38 = vsel %vm10549_vm15, 4294967295, %v14128_v38  ;;  %vm10573_vm12 = vmpackc.low %vm928_vm7, %vm927_vm9  ;;  %vm932_vm9 = vcmp.eq.s32.totalorder %v848_v60, %v10284_v40  ;;  %v860_v5 = vpop.permute.xlu1 %859  ;;  %v857_v6 = vpop.permute.xlu0 %856 }
 0x1da   : > { %8259 = vmatmul.mubr.msk.bf16.gmra.mrb[24].mxu1 %vm10537_vm11, %v13923_v46 }
 0x1db   : > { %1910 = vmatprep.mubr.bf16.mxu1 %v13919_v0  ;;  %v866_v9 = vpop.permute.xlu1 %865  ;;  %v863_v10 = vpop.permute.xlu0 %862 }
 0x1de   : > { %8179 = vmatmul.mubr.msk.bf16.gmra.mrb[56].mxu0 %vm10549_vm15, %v13923_v46  ;;  %vm929_vm15 = vcmp.eq.s32.totalorder %v839_v54, %v10284_v40 }
 0x1df   : > { %1477 = vmatprep.mubr.bf16.mxu0 %v13919_v0  ;;  %vm10587_vm7 = vmpackc.low %vm930_vm0, %vm929_vm15  ;;  %vm933_vm0 = vcmp.eq.s32.totalorder %v851_v2, %v10284_v40  ;;  %v872_v12 = vpop.permute.xlu1 %871  ;;  %v869_v15 = vpop.permute.xlu0 %868 }
 0x1e2   : > { %8261 = vmatmul.mubr.msk.bf16.gmra.mrb[28].mxu1 %vm10559_vm8, %v13923_v46 }
 0x1e3   : > { %1920 = vmatprep.mubr.bf16.mxu1 %v13919_v0  ;;  %v878_v17 = vpop.permute.xlu1 %877  ;;  %v875_v18 = vpop.permute.xlu0 %874 }
 0x1e6   : > { %8181 = vmatmul.mubr.msk.bf16.gmra.mrb[60].mxu0 %vm10395_vm13, %v13923_v46  ;;  %vm931_vm13 = vcmp.eq.s32.totalorder %v845_v63, %v10284_v40 }
 0x1e7   : > { %1487 = vmatprep.mubr.bf16.mxu0 %v13919_v0  ;;  %vm10601_vm15 = vmpackc.low %vm932_vm9, %vm931_vm13  ;;  %vm935_vm9 = vcmp.eq.s32.totalorder %v857_v6, %v10284_v40 }
 0x1ea   : > { %8263 = vmatmul.mubr.msk.bf16.gmra.mrb[32].mxu1 %vm10573_vm12, %v13923_v46 }
 0x1eb   : > { %1930 = vmatprep.mubr.bf16.mxu1 %v13919_v0 }
 0x1ee   : > { %8183 = vmatmul.mubr.msk.bf16.gmra.mrb[64].mxu0 %vm10409_vm4, %v13923_v46  ;;  %vm934_vm4 = vcmp.eq.s32.totalorder %v854_v1, %v10284_v40 }
 0x1ef   : > { %1497 = vmatprep.mubr.bf16.mxu0 %v13919_v0  ;;  %vm10615_vm13 = vmpackc.low %vm934_vm4, %vm933_vm0  ;;  %vm938_vm4 = vcmp.eq.s32.totalorder %v866_v9, %v10284_v40  ;;  %vm937_vm0 = vcmp.eq.s32.totalorder %v863_v10, %v10284_v40 }
 0x1f2   : > { %8265 = vmatmul.mubr.msk.bf16.gmra.mrb[36].mxu1 %vm10587_vm7, %v13923_v46 }
 0x1f3   : > { %1940 = vmatprep.mubr.bf16.mxu1 %v13919_v0 }
 0x1f6   : > { %8185 = vmatmul.mubr.msk.bf16.gmra.mrb[68].mxu0 %vm10429_vm3, %v13923_v46  ;;  %vm936_vm3 = vcmp.eq.s32.totalorder %v860_v5, %v10284_v40  ;;  %v9128_v5 = vld [vmem:[#allocation5] ss:$8 sps:$4 sm:$0xff]  }
 0x1f7   : > { %1507 = vmatprep.mubr.bf16.mxu0 %v13919_v0 }
 0x1fa   : > { %8267 = vmatmul.mubr.msk.bf16.gmra.mrb[40].mxu1 %vm10601_vm15, %v13923_v46 }
 0x1fb   : > { %1950 = vmatprep.mubr.bf16.mxu1 %v13919_v0 }
 0x1fe   : > { %8187 = vmatmul.mubr.msk.bf16.gmra.mrb[72].mxu0 %vm10449_vm10, %v13923_v46  ;;  %vm10629_vm10 = vmpackc.low %vm936_vm3, %vm935_vm9  ;;  %vm940_vm3 = vcmp.eq.s32.totalorder %v872_v12, %v10284_v40  ;;  %vm939_vm9 = vcmp.eq.s32.totalorder %v869_v15, %v10284_v40  ;;  %v9136_v12 = vld [vmem:[#allocation5 + $0x24] ss:$8 sps:$4 sm:$0xff]  }
 0x1ff   : > { %1517 = vmatprep.mubr.bf16.mxu0 %v13919_v0 }
 0x202   : > { %8269 = vmatmul.mubr.msk.bf16.gmra.mrb[44].mxu1 %vm10615_vm13, %v13923_v46 }
 0x203   : > { %1960 = vmatprep.mubr.bf16.mxu1 %v13919_v0 }
 0x206   : > { %8189 = vmatmul.mubr.msk.bf16.gmra.mrb[76].mxu0 %vm10471_vm6, %v13923_v46  ;;  %vm10643_vm6 = vmpackc.low %vm938_vm4, %vm937_vm0  ;;  %vm942_vm4 = vcmp.eq.s32.totalorder %v878_v17, %v10284_v40  ;;  %vm941_vm0 = vcmp.eq.s32.totalorder %v875_v18, %v10284_v40  ;;  %v9134_v18 = vld [vmem:[#allocation5 + $0x20] ss:$8 sps:$4 sm:$0xff]  }
 0x207   : > { %1527 = vmatprep.mubr.bf16.mxu0 %v13919_v0 }
 0x20a   : > { %8271 = vmatmul.mubr.msk.bf16.gmra.mrb[48].mxu1 %vm10629_vm10, %v13923_v46 }
 0x20b   : > { %1970 = vmatprep.mubr.bf16.mxu1 %v13919_v0 }
 0x20e   : > { %8191 = vmatmul.mubr.msk.bf16.gmra.mrb[80].mxu0 %vm10493_vm1, %v13923_v46  ;;  %vm10657_vm1 = vmpackc.low %vm940_vm3, %vm939_vm9  ;;  %vm14227_vm3 = vnez %v14121_v41  ;;  %vm14235_vm9 = vnez %v14125_v51 }
 0x20f   : > { %1537 = vmatprep.mubr.bf16.mxu0 %v13919_v0 }
 0x212   : > { %8273 = vmatmul.mubr.msk.bf16.gmra.mrb[52].mxu1 %vm10643_vm6, %v13923_v46 }
 0x213   : > { %1980 = vmatprep.mubr.bf16.mxu1 %v13919_v0 }
 0x216   : > { %8193 = vmatmul.mubr.msk.bf16.gmra.mrb[84].mxu0 %vm10515_vm14, %v13923_v46  ;;  %vm10671_vm14 = vmpackc.low %vm942_vm4, %vm941_vm0  ;;  %vm14249_vm4 = vnez %v14099_v13 }
 0x217   : > { %1547 = vmatprep.mubr.bf16.mxu0 %v13919_v0 }
 0x21a   : > { %8275 = vmatmul.mubr.msk.bf16.gmra.mrb[56].mxu1 %vm10657_vm1, %v13923_v46 }
 0x21b   : > { %1990 = vmatprep.mubr.bf16.mxu1 %v13919_v0 }
 0x21e   : > { %8195 = vmatmul.mubr.msk.bf16.gmra.mrb[88].mxu0 %vm10537_vm11, %v13923_v46  ;;  %vm14173_vm11 = vnez %v14095_v3 }
 0x21f   : > { %1557 = vmatprep.mubr.bf16.mxu0 %v13919_v0 }
 0x222   : > { %8277 = vmatmul.mubr.msk.bf16.gmra.mrb[60].mxu1 %vm10671_vm14, %v13923_v46 }
 0x226   : > { %8197 = vmatmul.mubr.msk.bf16.gmra.mrb[92].mxu0 %vm10559_vm8, %v13923_v46  ;;  %vm14165_vm8 = vnez %v14093_v61 }
 0x227   : > { %1567 = vmatprep.mubr.bf16.mxu0 %v13919_v0 }
 0x22e   : > { %8199 = vmatmul.mubr.msk.bf16.gmra.mrb[96].mxu0 %vm10573_vm12, %v13923_v46  ;;  %vm14181_vm12 = vnez %v14097_v8 }
 0x22f   : > { %1577 = vmatprep.mubr.bf16.mxu0 %v13919_v0 }
 0x236   : > { %8201 = vmatmul.mubr.msk.bf16.gmra.mrb[100].mxu0 %vm10587_vm7, %v13923_v46  ;;  %vm14189_vm7 = vnez %v14101_v14 }
 0x237   : > { %1587 = vmatprep.mubr.bf16.mxu0 %v13919_v0 }
 0x23e   : > { %8203 = vmatmul.mubr.msk.bf16.gmra.mrb[104].mxu0 %vm10601_vm15, %v13923_v46  ;;  %vm14194_vm15 = vnez %v14105_v20 }
 0x23f   : > { %1597 = vmatprep.mubr.bf16.mxu0 %v13919_v0 }
 0x241   : > { %v10694_v40 = vpop.f32.mrb[0].mxu0 }
 0x242   : > { %v10696_v21 = vpop.f32.mrb[1].mxu0 }
 0x243   : > { %v10698_v22 = vpop.f32.mrb[2].mxu0 }
 0x244   : > { %v10702_v25 = vpop.f32.mrb[3].mxu0 }
 0x246   : > { %8205 = vmatmul.mubr.msk.bf16.gmra.mrb[108].mxu0 %vm10615_vm13, %v13923_v46  ;;  %vm14202_vm13 = vnez %v14109_v24 }
 0x247   : > { %1607 = vmatprep.mubr.bf16.mxu0 %v13919_v0 }
 0x249   : > { %v10710_v27 = vpop.f32.mrb[4].mxu0 }
 0x24a   : > { %v10712_v29 = vpop.f32.mrb[5].mxu0 }
 0x24b   : > { %v10714_v30 = vpop.f32.mrb[6].mxu0 }
 0x24c   : > { %v10716_v32 = vpop.f32.mrb[7].mxu0 }
 0x24e   : > { %8207 = vmatmul.mubr.msk.bf16.gmra.mrb[112].mxu0 %vm10629_vm10, %v13923_v46  ;;  %vm14211_vm10 = vnez %v14113_v28 }
 0x24f   : > { %1617 = vmatprep.mubr.bf16.mxu0 %v13919_v0 }
 0x251   : > { %v10726_v37 = vpop.f32.mrb[8].mxu0 }
 0x252   : > { %v10728_v42 = vpop.f32.mrb[9].mxu0 }
 0x253   : > { %v10730_v47 = vpop.f32.mrb[10].mxu0 }
 0x254   : > { %v10732_v48 = vpop.f32.mrb[11].mxu0 }
 0x256   : > { %8209 = vmatmul.mubr.msk.bf16.gmra.mrb[116].mxu0 %vm10643_vm6, %v13923_v46  ;;  %vm14219_vm6 = vnez %v14117_v33 }
 0x257   : > { %1627 = vmatprep.mubr.bf16.mxu0 %v13919_v0 }
 0x259   : > { %v10742_v39 = vpop.f32.mrb[12].mxu0 }
 0x25a   : > { %v10744_v44 = vpop.f32.mrb[13].mxu0 }
 0x25b   : > { %v10746_v45 = vpop.f32.mrb[14].mxu0 }
 0x25c   : > { %v10748_v49 = vpop.f32.mrb[15].mxu0 }
 0x25e   : > { %8211 = vmatmul.mubr.msk.bf16.gmra.mrb[120].mxu0 %vm10657_vm1, %v13923_v46  ;;  %vm14243_vm1 = vnez %v14129_v38  ;;  %v14251_v38 = vpack.c.bf16 %v10702_v25, %v10696_v21  ;;  %v9181_v21 = vld [vmem:[#allocation5 + $0x114] ss:$8 sps:$4 sm:$0xff]  }
 0x25f   : > { %1637 = vmatprep.mubr.bf16.mxu0 %v13919_v0 }
 0x261   : > { %v10758_v54 = vpop.f32.mrb[16].mxu0 }
 0x262   : > { %v10760_v57 = vpop.f32.mrb[17].mxu0 }
 0x263   : > { %v10762_v58 = vpop.f32.mrb[18].mxu0 }
 0x264   : > { %v10764_v60 = vpop.f32.mrb[19].mxu0 }
 0x266   : > { %8213 = vmatmul.mubr.msk.bf16.gmra.mrb[124].mxu0 %vm10671_vm14, %v13923_v46 }
 0x267   : > { %1680 = vmatprep.mubr.bf16.mxu0 %v13919_v0 }
 0x269   : > { %v10774_v1 = vpop.f32.mrb[20].mxu0 }
 0x26a   : > { %v10776_v2 = vpop.f32.mrb[21].mxu0 }
 0x26b   : > { %v10778_v4 = vpop.f32.mrb[22].mxu0 }
 0x26c   : > { %v10780_v6 = vpop.f32.mrb[23].mxu0 }
 0x26e   : > { %8215 = vmatmul.mubr.msk.bf16.vlgmr.msra.gmra.mrb[128].mxu0 %vm10288_vm2, %v13923_v46  ;;  %vm14150_vm2 = vnez %v14089_v56 }
 0x26f   : > { %2526 = vmatpush1.bf16.msra.mxu0 %v9128_v5  ;;  %1690 = vmatprep.mubr.bf16.mxu0 %v13919_v0 }
 0x270   : > { %2527 = vmatprep.subr.bf16.mxu0 %v9133_v7  ;;  %v9137_v7 = vld [vmem:[#allocation5 + $0x30] ss:$8 sps:$4 sm:$0xff]  }
 0x271   : > { %v10790_v15 = vpop.f32.mrb[24].mxu0 }
 0x272   : > { %v10792_v16 = vpop.f32.mrb[25].mxu0 }
 0x273   : > { %v10794_v17 = vpop.f32.mrb[26].mxu0  ;;  %2528 = vmatpush1.bf16.msra.mxu0 %v9131_v11  ;;  %v9142_v11 = vld [vmem:[#allocation5 + $0x44] ss:$8 sps:$4 sm:$0xff]  }
 0x274   : > { %v10796_v19 = vpop.f32.mrb[27].mxu0  ;;  %2529 = vmatprep.subr.bf16.mxu0 %v9136_v12 }
 0x276   : > { %8217 = vmatmul.mubr.msk.bf16.gmra.mrb[132].mxu0 %vm10302_vm5, %v13923_v46  ;;  %vm14155_vm5 = vnez %v14091_v59 }
 0x277   : > { %1700 = vmatprep.mubr.bf16.mxu0 %v13919_v0  ;;  %2530 = vmatpush1.bf16.msra.mxu0 %v9134_v18 }
 0x278   : > { %2531 = vmatprep.subr.bf16.mxu0 %v9139_v35  ;;  %v9148_v35 = vld [vmem:[#allocation5 + $0x64] ss:$8 sps:$4 sm:$0xff]  }
 0x279   : > { %v10806_v9 = vpop.f32.mrb[28].mxu0 }
 0x27a   : > { %v10808_v12 = vpop.f32.mrb[29].mxu0 }
 0x27b   : > { %v10810_v10 = vpop.f32.mrb[30].mxu0  ;;  %2532 = vmatpush1.bf16.msra.mxu0 %v9137_v7 }
 0x27c   : > { %v10812_v63 = vpop.f32.mrb[31].mxu0  ;;  %2533 = vmatprep.subr.bf16.mxu0 %v9142_v11  ;;  %v9143_v11 = vld [vmem:[#allocation5 + $0x50] ss:$8 sps:$4 sm:$0xff]  }
 0x27d   : > { %v10814_v5 = vpop.f32.mrb[0].mxu1 }
 0x27e   : > { %14148 = vst [vmem:[#allocation28_spill] sm:$0xff] %v10814_v5  ;;  %v10818_v62 = vpop.f32.mrb[1].mxu1  ;;  %8219 = vmatmul.mubr.msk.bf16.gmra.mrb[136].mxu0 %vm14150_vm2, %v13923_v46 }
 0x27f   : > { %14149 = vst [vmem:[#allocation29_spill] sm:$0xff] %v10818_v62  ;;  %v10825_v7 = vpop.f32.mrb[2].mxu1  ;;  %1710 = vmatprep.mubr.bf16.mxu0 %v13919_v0  ;;  %2534 = vmatpush1.bf16.msra.mxu0 %v9140_v43  ;;  %v9151_v43 = vld [vmem:[#allocation5 + $0x74] ss:$8 sps:$4 sm:$0xff]   ;;  %v9152_v62 = vld [vmem:[#allocation5 + $0x80] ss:$8 sps:$4 sm:$0xff]  }
 0x280   : > { %14151 = vst [vmem:[#allocation30_spill] sm:$0xff] %v10825_v7  ;;  %v10829_v53 = vpop.f32.mrb[3].mxu1  ;;  %2535 = vmatprep.subr.bf16.mxu0 %v9145_v55  ;;  %v9154_v55 = vld [vmem:[#allocation5 + $0x84] ss:$8 sps:$4 sm:$0xff]  }
 0x281   : > { %14152 = vst [vmem:[#allocation31_spill] sm:$0xff] %v10829_v53  ;;  %v10834_v52 = vpop.f32.mrb[32].mxu0 }
 0x282   : > { %v10836_v56 = vpop.f32.mrb[33].mxu0 }
 0x283   : > { %v10838_v31 = vpop.f32.mrb[34].mxu0  ;;  %2536 = vmatpush1.bf16.msra.mxu0 %v9143_v11 }
 0x284   : > { %v10840_v50 = vpop.f32.mrb[35].mxu0  ;;  %2537 = vmatprep.subr.bf16.mxu0 %v9148_v35  ;;  %v14158_v35 = vmov 0  }
 0x285   : > { %v10842_v36 = vpop.f32.mrb[4].mxu1 }
 0x286   : > { %14153 = vst [vmem:[#allocation32_spill] sm:$0xff] %v10842_v36  ;;  %v10846_v18 = vpop.f32.mrb[5].mxu1  ;;  %8221 = vmatmul.mubr.msk.bf16.gmra.mrb[140].mxu0 %vm14155_vm5, %v13923_v46 }
 0x287   : > { %14154 = vst [vmem:[#allocation33_spill] sm:$0xff] %v10846_v18  ;;  %v10853_v11 = vpop.f32.mrb[6].mxu1  ;;  %1720 = vmatprep.mubr.bf16.mxu0 %v14158_v35  ;;  %2538 = vmatpush1.bf16.msra.mxu0 %v9146_v34  ;;  %v9157_v34 = vld [vmem:[#allocation5 + $0x94] ss:$8 sps:$4 sm:$0xff]   ;;  %v14164_v18 = vmov 1.0|1.0  }
 0x288   : > { %14156 = vst [vmem:[#allocation34_spill] sm:$0xff] %v10853_v11  ;;  %v10857_v0 = vpop.f32.mrb[7].mxu1  ;;  %2539 = vmatprep.subr.bf16.mxu0 %v9151_v43  ;;  %v9160_v43 = vld [vmem:[#allocation5 + $0xa4] ss:$8 sps:$4 sm:$0xff]  }
 0x289   : > { %14157 = vst [vmem:[#allocation35_spill] sm:$0xff] %v10857_v0  ;;  %v10862_v7 = vpop.f32.mrb[36].mxu0 }
 0x28a   : > { %14159 = vst [vmem:[#allocation36_spill] sm:$0xff] %v10862_v7  ;;  %v10864_v59 = vpop.f32.mrb[37].mxu0 }
 0x28b   : > { %14160 = vst [vmem:[#allocation37_spill] sm:$0xff] %v10864_v59  ;;  %v10866_v46 = vpop.f32.mrb[38].mxu0  ;;  %2540 = vmatpush1.bf16.msra.mxu0 %v9149_v23  ;;  %v9158_v59 = vld [vmem:[#allocation5 + $0xa0] ss:$8 sps:$4 sm:$0xff]  }
 0x28c   : > { %14161 = vst [vmem:[#allocation38_spill] sm:$0xff] %v10866_v46  ;;  %v10868_v26 = vpop.f32.mrb[39].mxu0  ;;  %2541 = vmatprep.subr.bf16.mxu0 %v9154_v55  ;;  %v9155_v55 = vld [vmem:[#allocation5 + $0x90] ss:$8 sps:$4 sm:$0xff]  }
 0x28d   : > { %v10870_v36 = vpop.f32.mrb[8].mxu1 }
 0x28e   : > { %14162 = vst [vmem:[#allocation39_spill] sm:$0xff] %v10870_v36  ;;  %v10874_v5 = vpop.f32.mrb[9].mxu1  ;;  %8223 = vmatmul.mubr.msk.bf16.gmra.mrb[144].mxu0 %vm14165_vm8, %v14164_v18 }
 0x28f   : > { %14163 = vst [vmem:[#allocation40_spill] sm:$0xff] %v10874_v5  ;;  %v10881_v23 = vpop.f32.mrb[10].mxu1  ;;  %1730 = vmatprep.mubr.bf16.mxu0 %v14158_v35  ;;  %2542 = vmatpush1.bf16.msra.mxu0 %v9152_v62  ;;  %v9163_v62 = vld [vmem:[#allocation5 + $0xb4] ss:$8 sps:$4 sm:$0xff]  }
 0x290   : > { %14166 = vst [vmem:[#allocation41_spill] sm:$0xff] %v10881_v23  ;;  %v10885_v53 = vpop.f32.mrb[11].mxu1  ;;  %2543 = vmatprep.subr.bf16.mxu0 %v9157_v34  ;;  %v9166_v34 = vld [vmem:[#allocation5 + $0xc4] ss:$8 sps:$4 sm:$0xff]  }
 0x291   : > { %14167 = vst [vmem:[#allocation42_spill] sm:$0xff] %v10885_v53  ;;  %v10890_v7 = vpop.f32.mrb[40].mxu0 }
 0x292   : > { %14168 = vst [vmem:[#allocation43_spill] sm:$0xff] %v10890_v7  ;;  %v10892_v61 = vpop.f32.mrb[41].mxu0 }
 0x293   : > { %14169 = vst [vmem:[#allocation44_spill] sm:$0xff] %v10892_v61  ;;  %v10894_v46 = vpop.f32.mrb[42].mxu0  ;;  %2544 = vmatpush1.bf16.msra.mxu0 %v9155_v55  ;;  %v9164_v61 = vld [vmem:[#allocation5 + $0xc0] ss:$8 sps:$4 sm:$0xff]  }
 0x294   : > { %14170 = vst [vmem:[#allocation45_spill] sm:$0xff] %v10894_v46  ;;  %v10896_v0 = vpop.f32.mrb[43].mxu0  ;;  %2545 = vmatprep.subr.bf16.mxu0 %v9160_v43  ;;  %v9161_v43 = vld [vmem:[#allocation5 + $0xb0] ss:$8 sps:$4 sm:$0xff]  }
 0x295   : > { %v10898_v36 = vpop.f32.mrb[12].mxu1 }
 0x296   : > { %14171 = vst [vmem:[#allocation46_spill] sm:$0xff] %v10898_v36  ;;  %v10902_v11 = vpop.f32.mrb[13].mxu1  ;;  %8225 = vmatmul.mubr.msk.bf16.gmra.mrb[148].mxu0 %vm14173_vm11, %v14164_v18 }
 0x297   : > { %14172 = vst [vmem:[#allocation47_spill] sm:$0xff] %v10902_v11  ;;  %v10909_v55 = vpop.f32.mrb[14].mxu1  ;;  %1740 = vmatprep.mubr.bf16.mxu0 %v14158_v35  ;;  %2546 = vmatpush1.bf16.msra.mxu0 %v9158_v59  ;;  %v9169_v59 = vld [vmem:[#allocation5 + $0xd4] ss:$8 sps:$4 sm:$0xff]  }
 0x298   : > { %14174 = vst [vmem:[#allocation48_spill] sm:$0xff] %v10909_v55  ;;  %v10913_v53 = vpop.f32.mrb[15].mxu1  ;;  %2547 = vmatprep.subr.bf16.mxu0 %v9163_v62  ;;  %v9172_v62 = vld [vmem:[#allocation5 + $0xe4] ss:$8 sps:$4 sm:$0xff]  }
 0x299   : > { %14175 = vst [vmem:[#allocation49_spill] sm:$0xff] %v10913_v53  ;;  %v10918_v7 = vpop.f32.mrb[44].mxu0 }
 0x29a   : > { %14176 = vst [vmem:[#allocation50_spill] sm:$0xff] %v10918_v7  ;;  %v10920_v3 = vpop.f32.mrb[45].mxu0 }
 0x29b   : > { %14177 = vst [vmem:[#allocation51_spill] sm:$0xff] %v10920_v3  ;;  %v10922_v46 = vpop.f32.mrb[46].mxu0  ;;  %2548 = vmatpush1.bf16.msra.mxu0 %v9161_v43  ;;  %v9170_v3 = vld [vmem:[#allocation5 + $0xe0] ss:$8 sps:$4 sm:$0xff]  }
 0x29c   : > { %14178 = vst [vmem:[#allocation52_spill] sm:$0xff] %v10922_v46  ;;  %v10924_v5 = vpop.f32.mrb[47].mxu0  ;;  %2549 = vmatprep.subr.bf16.mxu0 %v9166_v34  ;;  %v9167_v34 = vld [vmem:[#allocation5 + $0xd0] ss:$8 sps:$4 sm:$0xff]  }
 0x29d   : > { %v10926_v36 = vpop.f32.mrb[16].mxu1 }
 0x29e   : > { %14179 = vst [vmem:[#allocation53_spill] sm:$0xff] %v10926_v36  ;;  %v10930_v23 = vpop.f32.mrb[17].mxu1  ;;  %8227 = vmatmul.mubr.msk.bf16.gmra.mrb[152].mxu0 %vm14181_vm12, %v14164_v18 }
 0x29f   : > { %14180 = vst [vmem:[#allocation54_spill] sm:$0xff] %v10930_v23  ;;  %v10937_v43 = vpop.f32.mrb[18].mxu1  ;;  %1750 = vmatprep.mubr.bf16.mxu0 %v14158_v35  ;;  %2550 = vmatpush1.bf16.msra.mxu0 %v9164_v61  ;;  %v9175_v61 = vld [vmem:[#allocation5 + $0xf4] ss:$8 sps:$4 sm:$0xff]  }
 0x2a0   : > { %14182 = vst [vmem:[#allocation55_spill] sm:$0xff] %v10937_v43  ;;  %v10941_v53 = vpop.f32.mrb[19].mxu1  ;;  %2551 = vmatprep.subr.bf16.mxu0 %v9169_v59  ;;  %v9178_v59 = vld [vmem:[#allocation5 + $0x104] ss:$8 sps:$4 sm:$0xff]  }
 0x2a1   : > { %14183 = vst [vmem:[#allocation56_spill] sm:$0xff] %v10941_v53  ;;  %v10946_v7 = vpop.f32.mrb[48].mxu0 }
 0x2a2   : > { %14184 = vst [vmem:[#allocation57_spill] sm:$0xff] %v10946_v7  ;;  %v10948_v8 = vpop.f32.mrb[49].mxu0 }
 0x2a3   : > { %14185 = vst [vmem:[#allocation58_spill] sm:$0xff] %v10948_v8  ;;  %v10950_v46 = vpop.f32.mrb[50].mxu0  ;;  %2552 = vmatpush1.bf16.msra.mxu0 %v9167_v34 }
 0x2a4   : > { %14186 = vst [vmem:[#allocation59_spill] sm:$0xff] %v10950_v46  ;;  %v10952_v11 = vpop.f32.mrb[51].mxu0  ;;  %2553 = vmatprep.subr.bf16.mxu0 %v9172_v62  ;;  %v9173_v62 = vld [vmem:[#allocation5 + $0xf0] ss:$8 sps:$4 sm:$0xff]  }
 0x2a5   : > { %v10954_v36 = vpop.f32.mrb[20].mxu1 }
 0x2a6   : > { %14187 = vst [vmem:[#allocation60_spill] sm:$0xff] %v10954_v36  ;;  %v10958_v55 = vpop.f32.mrb[21].mxu1  ;;  %8229 = vmatmul.mubr.msk.bf16.gmra.mrb[156].mxu0 %vm14189_vm7, %v14164_v18 }
 0x2a7   : > { %14188 = vst [vmem:[#allocation61_spill] sm:$0xff] %v10958_v55  ;;  %v10965_v34 = vpop.f32.mrb[22].mxu1  ;;  %1760 = vmatprep.mubr.bf16.mxu0 %v14158_v35  ;;  %2554 = vmatpush1.bf16.msra.mxu0 %v9170_v3 }
 0x2a8   : > { %14190 = vst [vmem:[#allocation62_spill] sm:$0xff] %v10965_v34  ;;  %v10969_v53 = vpop.f32.mrb[23].mxu1  ;;  %2555 = vmatprep.subr.bf16.mxu0 %v9175_v61 }
 0x2a9   : > { %14191 = vst [vmem:[#allocation63_spill] sm:$0xff] %v10969_v53  ;;  %v10974_v7 = vpop.f32.mrb[52].mxu0 }
 0x2aa   : > { %v10976_v14 = vpop.f32.mrb[53].mxu0 }
 0x2ab   : > { %v10978_v46 = vpop.f32.mrb[54].mxu0  ;;  %2556 = vmatpush1.bf16.msra.mxu0 %v9173_v62 }
 0x2ac   : > { %v10980_v8 = vpop.f32.mrb[55].mxu0  ;;  %2878 = vmatprep.subr.bf16.mxu0 %v9178_v59 }
 0x2ad   : > { %v10982_v23 = vpop.f32.mrb[24].mxu1 }
 0x2ae   : > { %14192 = vst [vmem:[#allocation64_spill] sm:$0xff] %v10982_v23  ;;  %v10986_v36 = vpop.f32.mrb[25].mxu1  ;;  %8231 = vmatmul.mubr.msk.bf16.gmra.mrb[160].mxu0 %vm14194_vm15, %v14164_v18 }
 0x2af   : > { %14193 = vst [vmem:[#allocation65_spill] sm:$0xff] %v10986_v36  ;;  %v10993_v43 = vpop.f32.mrb[26].mxu1  ;;  %1770 = vmatprep.mubr.bf16.mxu0 %v14158_v35 }
 0x2b0   : > { %14195 = vst [vmem:[#allocation66_spill] sm:$0xff] %v10993_v43  ;;  %v10997_v34 = vpop.f32.mrb[27].mxu1 }
 0x2b1   : > { %14196 = vst [vmem:[#allocation67_spill] sm:$0xff] %v10997_v34  ;;  %v11002_v3 = vpop.f32.mrb[56].mxu0 }
 0x2b2   : > { %14197 = vst [vmem:[#allocation68_spill] sm:$0xff] %v11002_v3  ;;  %v11004_v55 = vpop.f32.mrb[57].mxu0 }
 0x2b3   : > { %14198 = vst [vmem:[#allocation69_spill] sm:$0xff] %v11004_v55  ;;  %v11006_v61 = vpop.f32.mrb[58].mxu0 }
 0x2b4   : > { %14199 = vst [vmem:[#allocation70_spill] sm:$0xff] %v11006_v61  ;;  %v11008_v20 = vpop.f32.mrb[59].mxu0 }
 0x2b5   : > { %v11010_v53 = vpop.f32.mrb[28].mxu1 }
 0x2b6   : > { %14200 = vst [vmem:[#allocation71_spill] sm:$0xff] %v11010_v53  ;;  %v11014_v23 = vpop.f32.mrb[29].mxu1  ;;  %8233 = vmatmul.mubr.msk.bf16.gmra.mrb[164].mxu0 %vm14202_vm13, %v14164_v18 }
 0x2b7   : > { %14201 = vst [vmem:[#allocation72_spill] sm:$0xff] %v11014_v23  ;;  %v11021_v59 = vpop.f32.mrb[30].mxu1  ;;  %1780 = vmatprep.mubr.bf16.mxu0 %v14158_v35 }
 0x2b8   : > { %14203 = vst [vmem:[#allocation73_spill] sm:$0xff] %v11021_v59  ;;  %v11025_v34 = vpop.f32.mrb[31].mxu1 }
 0x2b9   : > { %14204 = vst [vmem:[#allocation74_spill] sm:$0xff] %v11025_v34  ;;  %v11030_v3 = vpop.f32.mrb[60].mxu0 }
 0x2ba   : > { %14205 = vst [vmem:[#allocation75_spill] sm:$0xff] %v11030_v3  ;;  %v11032_v61 = vpop.f32.mrb[61].mxu0 }
 0x2bb   : > { %14206 = vst [vmem:[#allocation76_spill] sm:$0xff] %v11032_v61  ;;  %v11034_v43 = vpop.f32.mrb[62].mxu0 }
 0x2bc   : > { %14207 = vst [vmem:[#allocation77_spill] sm:$0xff] %v11034_v43  ;;  %v11036_v24 = vpop.f32.mrb[63].mxu0 }
 0x2bd   : > { %14208 = vst [vmem:[#allocation78_spill] sm:$0xff] %v11036_v24  ;;  %v11038_v55 = vpop.f32.mrb[32].mxu1 }
 0x2be   : > { %14209 = vst [vmem:[#allocation79_spill] sm:$0xff] %v11038_v55  ;;  %v11042_v53 = vpop.f32.mrb[33].mxu1  ;;  %8235 = vmatmul.mubr.msk.bf16.gmra.mrb[168].mxu0 %vm14211_vm10, %v14164_v18 }
 0x2bf   : > { %14210 = vst [vmem:[#allocation80_spill] sm:$0xff] %v11042_v53  ;;  %v11049_v62 = vpop.f32.mrb[34].mxu1  ;;  %1790 = vmatprep.mubr.bf16.mxu0 %v14158_v35 }
 0x2c0   : > { %14212 = vst [vmem:[#allocation81_spill] sm:$0xff] %v11049_v62  ;;  %v11053_v34 = vpop.f32.mrb[35].mxu1 }
 0x2c1   : > { %14213 = vst [vmem:[#allocation82_spill] sm:$0xff] %v11053_v34  ;;  %v11058_v3 = vpop.f32.mrb[64].mxu0 }
 0x2c2   : > { %14214 = vst [vmem:[#allocation83_spill] sm:$0xff] %v11058_v3  ;;  %v11060_v43 = vpop.f32.mrb[65].mxu0 }
 0x2c3   : > { %14215 = vst [vmem:[#allocation84_spill] sm:$0xff] %v11060_v43  ;;  %v11062_v59 = vpop.f32.mrb[66].mxu0 }
 0x2c4   : > { %14216 = vst [vmem:[#allocation85_spill] sm:$0xff] %v11062_v59  ;;  %v11066_v61 = vpop.f32.mrb[67].mxu0 }
 0x2c5   : > { %v11068_v24 = vpop.f32.mrb[36].mxu1 }
 0x2c6   : > { %14217 = vst [vmem:[#allocation86_spill] sm:$0xff] %v11068_v24  ;;  %v11072_v55 = vpop.f32.mrb[37].mxu1  ;;  %8237 = vmatmul.mubr.msk.bf16.gmra.mrb[172].mxu0 %vm14219_vm6, %v14164_v18 }
 0x2c7   : > { %14218 = vst [vmem:[#allocation87_spill] sm:$0xff] %v11072_v55  ;;  %v11077_v36 = vpop.f32.mrb[38].mxu1  ;;  %1800 = vmatprep.mubr.bf16.mxu0 %v14158_v35 }
 0x2c8   : > { %14220 = vst [vmem:[#allocation88_spill] sm:$0xff] %v11077_v36  ;;  %v11081_v53 = vpop.f32.mrb[39].mxu1 }
 0x2c9   : > { %14221 = vst [vmem:[#allocation89_spill] sm:$0xff] %v11081_v53  ;;  %v11086_v34 = vpop.f32.mrb[68].mxu0 }
 0x2ca   : > { %14222 = vst [vmem:[#allocation90_spill] sm:$0xff] %v11086_v34  ;;  %v11088_v23 = vpop.f32.mrb[69].mxu0 }
 0x2cb   : > { %14223 = vst [vmem:[#allocation91_spill] sm:$0xff] %v11088_v23  ;;  %v11090_v3 = vpop.f32.mrb[70].mxu0 }
 0x2cc   : > { %14224 = vst [vmem:[#allocation92_spill] sm:$0xff] %v11090_v3  ;;  %v11094_v59 = vpop.f32.mrb[71].mxu0 }
 0x2cd   : > { %v11096_v43 = vpop.f32.mrb[40].mxu1 }
 0x2ce   : > { %14225 = vst [vmem:[#allocation93_spill] sm:$0xff] %v11096_v43  ;;  %v11100_v24 = vpop.f32.mrb[41].mxu1  ;;  %8239 = vmatmul.mubr.msk.bf16.gmra.mrb[176].mxu0 %vm14227_vm3, %v14164_v18 }
 0x2cf   : > { %14226 = vst [vmem:[#allocation94_spill] sm:$0xff] %v11100_v24  ;;  %v11105_v28 = vpop.f32.mrb[42].mxu1  ;;  %1810 = vmatprep.mubr.bf16.mxu0 %v14158_v35 }
 0x2d0   : > { %14228 = vst [vmem:[#allocation95_spill] sm:$0xff] %v11105_v28  ;;  %v11109_v55 = vpop.f32.mrb[43].mxu1 }
 0x2d1   : > { %14229 = vst [vmem:[#allocation96_spill] sm:$0xff] %v11109_v55  ;;  %v11114_v53 = vpop.f32.mrb[72].mxu0 }
 0x2d2   : > { %14230 = vst [vmem:[#allocation97_spill] sm:$0xff] %v11114_v53  ;;  %v11116_v62 = vpop.f32.mrb[73].mxu0 }
 0x2d3   : > { %14231 = vst [vmem:[#allocation98_spill] sm:$0xff] %v11116_v62  ;;  %v11118_v34 = vpop.f32.mrb[74].mxu0 }
 0x2d4   : > { %14232 = vst [vmem:[#allocation99_spill] sm:$0xff] %v11118_v34  ;;  %v11122_v3 = vpop.f32.mrb[75].mxu0 }
 0x2d5   : > { %v11124_v23 = vpop.f32.mrb[44].mxu1 }
 0x2d6   : > { %14233 = vst [vmem:[#allocation100_spill] sm:$0xff] %v11124_v23  ;;  %v11128_v43 = vpop.f32.mrb[45].mxu1  ;;  %8241 = vmatmul.mubr.msk.bf16.gmra.mrb[180].mxu0 %vm14235_vm9, %v14164_v18 }
 0x2d7   : > { %14234 = vst [vmem:[#allocation101_spill] sm:$0xff] %v11128_v43  ;;  %v11133_v33 = vpop.f32.mrb[46].mxu1  ;;  %1820 = vmatprep.mubr.bf16.mxu0 %v14158_v35 }
 0x2d8   : > { %14236 = vst [vmem:[#allocation102_spill] sm:$0xff] %v11133_v33  ;;  %v11137_v24 = vpop.f32.mrb[47].mxu1  ;;  %v14257_v33 = vpack.c.bf16 %v10698_v22, %v10694_v40 }
 0x2d9   : > { %14237 = vst [vmem:[#allocation103_spill] sm:$0xff] %v11137_v24  ;;  %v11142_v55 = vpop.f32.mrb[76].mxu0 }
 0x2da   : > { %14238 = vst [vmem:[#allocation104_spill] sm:$0xff] %v11142_v55  ;;  %v11144_v36 = vpop.f32.mrb[77].mxu0 }
 0x2db   : > { %14239 = vst [vmem:[#allocation105_spill] sm:$0xff] %v11144_v36  ;;  %v11146_v53 = vpop.f32.mrb[78].mxu0 }
 0x2dc   : > { %14240 = vst [vmem:[#allocation106_spill] sm:$0xff] %v11146_v53  ;;  %v11150_v34 = vpop.f32.mrb[79].mxu0 }
 0x2dd   : > { %v11152_v62 = vpop.f32.mrb[48].mxu1 }
 0x2de   : > { %14241 = vst [vmem:[#allocation107_spill] sm:$0xff] %v11152_v62  ;;  %v11156_v23 = vpop.f32.mrb[49].mxu1  ;;  %8243 = vmatmul.mubr.msk.bf16.gmra.mrb[184].mxu0 %vm14243_vm1, %v14164_v18 }
 0x2df   : > { %14242 = vst [vmem:[#allocation108_spill] sm:$0xff] %v11156_v23  ;;  %v11161_v41 = vpop.f32.mrb[50].mxu1  ;;  %1830 = vmatprep.mubr.bf16.mxu0 %v14158_v35 }
 0x2e0   : > { %14244 = vst [vmem:[#allocation109_spill] sm:$0xff] %v11161_v41  ;;  %v11165_v43 = vpop.f32.mrb[51].mxu1 }
 0x2e1   : > { %14245 = vst [vmem:[#allocation110_spill] sm:$0xff] %v11165_v43  ;;  %v11170_v24 = vpop.f32.mrb[80].mxu0 }
 0x2e2   : > { %14246 = vst [vmem:[#allocation111_spill] sm:$0xff] %v11170_v24  ;;  %v11172_v28 = vpop.f32.mrb[81].mxu0  ;;  %v9187_v24 = vld [vmem:[#allocation5 + $0x134] ss:$8 sps:$4 sm:$0xff]  }
 0x2e3   : > { %v11174_v55 = vpop.f32.mrb[82].mxu0 }
 0x2e4   : > { %v11178_v53 = vpop.f32.mrb[83].mxu0 }
 0x2e5   : > { %v11180_v36 = vpop.f32.mrb[52].mxu1 }
 0x2e6   : > { %14247 = vst [vmem:[#allocation112_spill] sm:$0xff] %v11180_v36  ;;  %v11184_v62 = vpop.f32.mrb[53].mxu1  ;;  %8245 = vmatmul.mubr.msk.bf16.gmra.mrb[188].mxu0 %vm14249_vm4, %v14164_v18  ;;  %v9176_v18 = vld [vmem:[#allocation5 + $0x100] ss:$8 sps:$4 sm:$0xff]  }
 0x2e7   : > { %14248 = vst [vmem:[#allocation113_spill] sm:$0xff] %v11184_v62  ;;  %v11189_v51 = vpop.f32.mrb[54].mxu1  ;;  %2557 = vmatprep.mubr.bf16.mxu0 %v14251_v38  ;;  %v14259_v62 = vpack.c.bf16 %v10716_v32, %v10712_v29  ;;  %v9188_v29 = vld [vmem:[#allocation5 + $0x140] ss:$8 sps:$4 sm:$0xff]  }
 0x2e8   : > { %14250 = vst [vmem:[#allocation114_spill] sm:$0xff] %v11189_v51  ;;  %v11196_v23 = vpop.f32.mrb[55].mxu1 }
 0x2e9   : > { %14252 = vst [vmem:[#allocation115_spill] sm:$0xff] %v11196_v23  ;;  %v11200_v43 = vpop.f32.mrb[84].mxu0 }
 0x2ea   : > { %14253 = vst [vmem:[#allocation116_spill] sm:$0xff] %v11200_v43  ;;  %v11202_v35 = vpop.f32.mrb[85].mxu0  ;;  %v9179_v43 = vld [vmem:[#allocation5 + $0x110] ss:$8 sps:$4 sm:$0xff]  }
 0x2eb   : > { %v11204_v13 = vpop.f32.mrb[86].mxu0 }
 0x2ec   : > { %14254 = vst [vmem:[#allocation117_spill] sm:$0xff] %v11204_v13  ;;  %v11208_v41 = vpop.f32.mrb[87].mxu0  ;;  %v9184_v13 = vld [vmem:[#allocation5 + $0x124] ss:$8 sps:$4 sm:$0xff]  }
 0x2ed   : > { %v11210_v36 = vpop.f32.mrb[56].mxu1 }
 0x2ee   : > { %14255 = vst [vmem:[#allocation118_spill] sm:$0xff] %v11210_v36  ;;  %v11214_v38 = vpop.f32.mrb[57].mxu1  ;;  %2558 = vmatmul.mubr.bf16.vlgmr.msra.gmra.mrb[192].mxu0 %v14257_v33  ;;  %v14263_v36 = vpack.c.bf16 %v10714_v30, %v10710_v27 }
 0x2ef   : > { %14256 = vst [vmem:[#allocation119_spill] sm:$0xff] %v11214_v38  ;;  %v11219_v51 = vpop.f32.mrb[58].mxu1  ;;  %2879 = vmatpush1.bf16.msra.mxu0 %v9176_v18  ;;  %2567 = vmatprep.mubr.bf16.mxu0 %v14259_v62  ;;  %v9182_v18 = vld [vmem:[#allocation5 + $0x120] ss:$8 sps:$4 sm:$0xff]   ;;  %v9185_v38 = vld [vmem:[#allocation5 + $0x130] ss:$8 sps:$4 sm:$0xff]  }
 0x2f0   : > { %14258 = vst [vmem:[#allocation120_spill] sm:$0xff] %v11219_v51  ;;  %v11226_v23 = vpop.f32.mrb[59].mxu1  ;;  %2880 = vmatprep.subr.bf16.mxu0 %v9181_v21  ;;  %v14265_v51 = vpack.c.bf16 %v10732_v48, %v10728_v42  ;;  %v14268_v21 = vpack.c.bf16 %v10748_v49, %v10744_v44  ;;  %v9199_v44 = vld [vmem:[#allocation5 + $0x174] ss:$8 sps:$4 sm:$0xff]   ;;  %v9200_v49 = vld [vmem:[#allocation5 + $0x180] ss:$8 sps:$4 sm:$0xff]  }
 0x2f1   : > { %14260 = vst [vmem:[#allocation121_spill] sm:$0xff] %v11226_v23  ;;  %v11230_v40 = vpop.f32.mrb[88].mxu0  ;;  %v9190_v23 = vld [vmem:[#allocation5 + $0x144] ss:$8 sps:$4 sm:$0xff]  }
 0x2f2   : > { %v11232_v22 = vpop.f32.mrb[89].mxu0 }
 0x2f3   : > { %v11234_v33 = vpop.f32.mrb[90].mxu0  ;;  %2881 = vmatpush1.bf16.msra.mxu0 %v9179_v43 }
 0x2f4   : > { %v11238_v32 = vpop.f32.mrb[91].mxu0  ;;  %2882 = vmatprep.subr.bf16.mxu0 %v9184_v13 }
 0x2f5   : > { %v11240_v62 = vpop.f32.mrb[60].mxu1 }
 0x2f6   : > { %14261 = vst [vmem:[#allocation122_spill] sm:$0xff] %v11240_v62  ;;  %v11244_v25 = vpop.f32.mrb[61].mxu1  ;;  %2568 = vmatmul.mubr.bf16.gmra.mrb[196].mxu0 %v14263_v36  ;;  %v9196_v62 = vld [vmem:[#allocation5 + $0x164] ss:$8 sps:$4 sm:$0xff]  }
 0x2f7   : > { %14262 = vst [vmem:[#allocation123_spill] sm:$0xff] %v11244_v25  ;;  %v11249_v43 = vpop.f32.mrb[62].mxu1  ;;  %2577 = vmatprep.mubr.bf16.mxu0 %v14265_v51  ;;  %2883 = vmatpush1.bf16.msra.mxu0 %v9182_v18  ;;  %v9193_v51 = vld [vmem:[#allocation5 + $0x154] ss:$8 sps:$4 sm:$0xff]   ;;  %v9194_v18 = vld [vmem:[#allocation5 + $0x160] ss:$8 sps:$4 sm:$0xff]  }
 0x2f8   : > { %14264 = vst [vmem:[#allocation124_spill] sm:$0xff] %v11249_v43  ;;  %v11256_v13 = vpop.f32.mrb[63].mxu1  ;;  %2884 = vmatprep.subr.bf16.mxu0 %v9187_v24  ;;  %v14267_v24 = vpack.c.bf16 %v10730_v47, %v10726_v37 }
 0x2f9   : > { %14266 = vst [vmem:[#allocation125_spill] sm:$0xff] %v11256_v13  ;;  %v11260_v27 = vpop.f32.mrb[92].mxu0 }
 0x2fa   : > { %v11262_v30 = vpop.f32.mrb[93].mxu0 }
 0x2fb   : > { %v11264_v36 = vpop.f32.mrb[94].mxu0  ;;  %2885 = vmatpush1.bf16.msra.mxu0 %v9185_v38  ;;  %v9191_v38 = vld [vmem:[#allocation5 + $0x150] ss:$8 sps:$4 sm:$0xff]  }
 0x2fc   : > { %v11268_v48 = vpop.f32.mrb[95].mxu0  ;;  %2886 = vmatprep.subr.bf16.mxu0 %v9190_v23 }
 0x2fe   : > { %2578 = vmatmul.mubr.bf16.gmra.mrb[200].mxu0 %v14267_v24  ;;  %v9202_v24 = vld [vmem:[#allocation5 + $0x184] ss:$8 sps:$4 sm:$0xff]  }
 0x2ff   : > { %2587 = vmatprep.mubr.bf16.mxu0 %v14268_v21  ;;  %2887 = vmatpush1.bf16.msra.mxu0 %v9188_v29  ;;  %v14269_v29 = vpack.c.bf16 %v10746_v45, %v10742_v39  ;;  %v14270_v21 = vpack.c.bf16 %v10764_v60, %v10760_v57  ;;  %v9205_v57 = vld [vmem:[#allocation5 + $0x194] ss:$8 sps:$4 sm:$0xff]   ;;  %v9206_v60 = vld [vmem:[#allocation5 + $0x1a0] ss:$8 sps:$4 sm:$0xff]  }
 0x300   : > { %2888 = vmatprep.subr.bf16.mxu0 %v9193_v51  ;;  %v9197_v51 = vld [vmem:[#allocation5 + $0x170] ss:$8 sps:$4 sm:$0xff]  }
 0x301   : > { %v11278_v42 = vpop.f32.mrb[96].mxu0 }
 0x302   : > { %v11280_v43 = vpop.f32.mrb[97].mxu0 }
 0x303   : > { %v11282_v23 = vpop.f32.mrb[98].mxu0  ;;  %2889 = vmatpush1.bf16.msra.mxu0 %v9191_v38 }
 0x304   : > { %v11286_v47 = vpop.f32.mrb[99].mxu0  ;;  %2890 = vmatprep.subr.bf16.mxu0 %v9196_v62 }
 0x306   : > { %2588 = vmatmul.mubr.bf16.gmra.mrb[204].mxu0 %v14269_v29  ;;  %v9203_v29 = vld [vmem:[#allocation5 + $0x190] ss:$8 sps:$4 sm:$0xff]  }
 0x307   : > { %2597 = vmatprep.mubr.bf16.mxu0 %v14270_v21  ;;  %2891 = vmatpush1.bf16.msra.mxu0 %v9194_v18  ;;  %v14271_v18 = vpack.c.bf16 %v10762_v58, %v10758_v54  ;;  %v9208_v21 = vld [vmem:[#allocation5 + $0x1a4] ss:$8 sps:$4 sm:$0xff]  }
 0x308   : > { %2892 = vmatprep.subr.bf16.mxu0 %v9199_v44  ;;  %v14272_v44 = vpack.c.bf16 %v10780_v6, %v10776_v2  ;;  %v14273_v6 = vpack.c.bf16 %v10778_v4, %v10774_v1  ;;  %v9209_v4 = vld [vmem:[#allocation5 + $0x1b0] ss:$8 sps:$4 sm:$0xff]  }
 0x309   : > { %v11296_v38 = vpop.f32.mrb[100].mxu0 }
 0x30a   : > { %v11298_v37 = vpop.f32.mrb[101].mxu0 }
 0x30b   : > { %v11300_v62 = vpop.f32.mrb[102].mxu0  ;;  %2893 = vmatpush1.bf16.msra.mxu0 %v9197_v51 }
 0x30c   : > { %v11304_v45 = vpop.f32.mrb[103].mxu0  ;;  %2894 = vmatprep.subr.bf16.mxu0 %v9202_v24 }
 0x30e   : > { %2598 = vmatmul.mubr.bf16.gmra.mrb[208].mxu0 %v14271_v18 }
 0x30f   : > { %2607 = vmatprep.mubr.bf16.mxu0 %v14272_v44  ;;  %2895 = vmatpush1.bf16.msra.mxu0 %v9200_v49  ;;  %v14274_v49 = vpack.c.bf16 %v10796_v19, %v10792_v16  ;;  %v14275_v16 = vpack.c.bf16 %v10794_v17, %v10790_v15  ;;  %v14276_v19 = vpack.c.bf16 %v10812_v63, %v10808_v12 }
 0x310   : > { %2896 = vmatprep.subr.bf16.mxu0 %v9205_v57  ;;  %v14277_v63 = vpack.c.bf16 %v10810_v10, %v10806_v9  ;;  %v14278_v17 = vpack.c.bf16 %v10840_v50, %v10836_v56  ;;  %v9212_v9 = vld [vmem:[#allocation5 + $0x1c0] ss:$8 sps:$4 sm:$0xff]   ;;  %v9214_v10 = vld [vmem:[#allocation5 + $0x1c4] ss:$8 sps:$4 sm:$0xff]   ;;  %v14279_v50 = vpack.c.bf16 %v10838_v31, %v10834_v52  ;;  %v14284_v31 = vld [vmem:[#allocation38_spill] sm:$0xff] }
 0x311   : > { %v11314_v51 = vpop.f32.mrb[104].mxu0  ;;  %v14280_v56 = vld [vmem:[#allocation37_spill] sm:$0xff] }
 0x312   : > { %v11316_v39 = vpop.f32.mrb[105].mxu0 }
 0x313   : > { %v11318_v24 = vpop.f32.mrb[106].mxu0  ;;  %2897 = vmatpush1.bf16.msra.mxu0 %v9203_v29 }
 0x314   : > { %v11322_v58 = vpop.f32.mrb[107].mxu0  ;;  %2898 = vmatprep.subr.bf16.mxu0 %v9208_v21 }
 0x316   : > { %2608 = vmatmul.mubr.bf16.gmra.mrb[212].mxu0 %v14273_v6  ;;  %v9211_v6 = vld [vmem:[#allocation5 + $0x1b4] ss:$8 sps:$4 sm:$0xff]  }
 0x317   : > { %2617 = vmatprep.mubr.bf16.mxu0 %v14274_v49  ;;  %2899 = vmatpush1.bf16.msra.mxu0 %v9206_v60 }
 0x318   : > { %2900 = vmatprep.subr.bf16.mxu0 %v9211_v6 }
 0x319   : > { %v11332_v57 = vpop.f32.mrb[108].mxu0 }
 0x31a   : > { %v11334_v18 = vpop.f32.mrb[109].mxu0 }
 0x31b   : > { %v11336_v44 = vpop.f32.mrb[110].mxu0  ;;  %2901 = vmatpush1.bf16.msra.mxu0 %v9209_v4 }
 0x31c   : > { %v11340_v21 = vpop.f32.mrb[111].mxu0  ;;  %2902 = vmatprep.subr.bf16.mxu0 %v9214_v10 }
 0x31e   : > { %2618 = vmatmul.mubr.bf16.gmra.mrb[216].mxu0 %v14275_v16 }
 0x31f   : > { %2627 = vmatprep.mubr.bf16.mxu0 %v14276_v19  ;;  %2903 = vmatpush1.bf16.msra.mxu0 %v9212_v9  ;;  %v14287_v9 = vld [vmem:[#allocation44_spill] sm:$0xff] }
 0x320   : > { %v14288_v10 = vpack.c.bf16 %v10896_v0, %v14287_v9  ;;  %v14296_v9 = vld [vmem:[#allocation51_spill] sm:$0xff] }
 0x321   : > { %v11350_v60 = vpop.f32.mrb[112].mxu0 }
 0x322   : > { %v11352_v49 = vpop.f32.mrb[113].mxu0 }
 0x323   : > { %v11354_v29 = vpop.f32.mrb[114].mxu0 }
 0x324   : > { %v11358_v54 = vpop.f32.mrb[115].mxu0 }
 0x326   : > { %2628 = vmatmul.mubr.bf16.gmra.mrb[220].mxu0 %v14277_v63  ;;  %v14281_v63 = vpack.c.bf16 %v10868_v26, %v14280_v56 }
 0x327   : > { %2637 = vmatprep.mubr.bf16.mxu0 %v14278_v17 }
 0x329   : > { %v11368_v12 = vpop.f32.mrb[116].mxu0 }
 0x32a   : > { %v11370_v4 = vpop.f32.mrb[117].mxu0 }
 0x32b   : > { %v11372_v6 = vpop.f32.mrb[118].mxu0 }
 0x32c   : > { %v11376_v19 = vpop.f32.mrb[119].mxu0 }
 0x32e   : > { %2638 = vmatmul.mubr.bf16.gmra.mrb[224].mxu0 %v14279_v50  ;;  %v14285_v50 = vld [vmem:[#allocation36_spill] sm:$0xff] }
 0x32f   : > { %2647 = vmatprep.mubr.bf16.mxu0 %v14281_v63  ;;  %v14286_v26 = vpack.c.bf16 %v14284_v31, %v14285_v50  ;;  %v9215_v31 = vld [vmem:[#allocation5 + $0x1d0] ss:$8 sps:$4 sm:$0xff]   ;;  %v9217_v50 = vld [vmem:[#allocation5 + $0x1d4] ss:$8 sps:$4 sm:$0xff]  }
 0x330   : > { %2904 = vmatprep.subr.bf16.mxu0 %v9217_v50 }
 0x331   : > { %v11386_v17 = vpop.f32.mrb[120].mxu0  ;;  %2905 = vmatpush1.bf16.msra.mxu0 %v9215_v31  ;;  %v14302_v31 = vld [vmem:[#allocation58_spill] sm:$0xff] }
 0x332   : > { %14282 = vst [vmem:[#allocation37_spill] sm:$0xff] %v11386_v17  ;;  %v11388_v16 = vpop.f32.mrb[121].mxu0  ;;  %v14294_v17 = vld [vmem:[#allocation43_spill] sm:$0xff]  ;;  %v14303_v50 = vpack.c.bf16 %v10952_v11, %v14302_v31  ;;  %v14309_v31 = vpack.c.bf16 %v10980_v8, %v10976_v14  ;;  %v14314_v8 = vld [vmem:[#allocation69_spill] sm:$0xff] }
 0x333   : > { %v11390_v15 = vpop.f32.mrb[122].mxu0  ;;  %v14306_v11 = vld [vmem:[#allocation59_spill] sm:$0xff]  ;;  %v14315_v14 = vpack.c.bf16 %v11008_v20, %v14314_v8  ;;  %v14320_v20 = vld [vmem:[#allocation68_spill] sm:$0xff]  ;;  %v14322_v8 = vld [vmem:[#allocation78_spill] sm:$0xff] }
 0x334   : > { %14283 = vst [vmem:[#allocation126_spill] sm:$0xff] %v11390_v15  ;;  %v11394_v2 = vpop.f32.mrb[123].mxu0 }
 0x336   : > { %2648 = vmatmul.mubr.bf16.gmra.mrb[228].mxu0 %v14286_v26  ;;  %v14293_v26 = vld [vmem:[#allocation45_spill] sm:$0xff] }
 0x337   : > { %2657 = vmatprep.mubr.bf16.mxu0 %v14288_v10  ;;  %v14295_v0 = vpack.c.bf16 %v14293_v26, %v14294_v17  ;;  %v14297_v10 = vpack.c.bf16 %v10924_v5, %v14296_v9  ;;  %v14299_v26 = vld [vmem:[#allocation52_spill] sm:$0xff] }
 0x338   : > { %v9218_v9 = vld [vmem:[#allocation5 + $0x1e0] ss:$8 sps:$4 sm:$0xff]  }
 0x339   : > { %v11404_v56 = vpop.f32.mrb[124].mxu0 }
 0x33a   : > { %14289 = vst [vmem:[#allocation38_spill] sm:$0xff] %v11404_v56  ;;  %v11406_v63 = vpop.f32.mrb[125].mxu0 }
 0x33b   : > { %14290 = vst [vmem:[#allocation36_spill] sm:$0xff] %v11406_v63  ;;  %v11408_v25 = vpop.f32.mrb[126].mxu0 }
 0x33c   : > { %14291 = vst [vmem:[#allocation44_spill] sm:$0xff] %v11408_v25  ;;  %v11412_v13 = vpop.f32.mrb[127].mxu0 }
 0x33d   : > { %14292 = vst [vmem:[#allocation127_spill] sm:$0xff] %v11412_v13 }
 0x33e   : > { %2658 = vmatmul.mubr.bf16.gmra.mrb[232].mxu0 %v14295_v0  ;;  %v14300_v0 = vld [vmem:[#allocation50_spill] sm:$0xff] }
 0x33f   : > { %2667 = vmatprep.mubr.bf16.mxu0 %v14297_v10  ;;  %v14301_v5 = vpack.c.bf16 %v14299_v26, %v14300_v0  ;;  %v9220_v10 = vld [vmem:[#allocation5 + $0x1e4] ss:$8 sps:$4 sm:$0xff]  }
 0x340   : > { %2906 = vmatprep.subr.bf16.mxu0 %v9220_v10  ;;  %v14307_v0 = vld [vmem:[#allocation57_spill] sm:$0xff] }
 0x341   : > { %v11422_v15 = vpop.f32.mrb[128].mxu0  ;;  %2907 = vmatpush1.bf16.msra.mxu0 %v9218_v9 }
 0x342   : > { %14298 = vst [vmem:[#allocation45_spill] sm:$0xff] %v11422_v15  ;;  %v11424_v1 = vpop.f32.mrb[129].mxu0 }
 0x343   : > { %v11426_v56 = vpop.f32.mrb[130].mxu0 }
 0x344   : > { %v11430_v25 = vpop.f32.mrb[131].mxu0 }
 0x346   : > { %2668 = vmatmul.mubr.bf16.gmra.mrb[236].mxu0 %v14301_v5  ;;  %v14308_v5 = vpack.c.bf16 %v14306_v11, %v14307_v0  ;;  %v14313_v11 = vpack.c.bf16 %v10978_v46, %v10974_v7  ;;  %v9221_v0 = vld [vmem:[#allocation5 + $0x1f0] ss:$8 sps:$4 sm:$0xff]  }
 0x347   : > { %2677 = vmatprep.mubr.bf16.mxu0 %v14303_v50  ;;  %v14319_v7 = vld [vmem:[#allocation70_spill] sm:$0xff] }
 0x349   : > { %v11440_v63 = vpop.f32.mrb[132].mxu0 }
 0x34a   : > { %14304 = vst [vmem:[#allocation43_spill] sm:$0xff] %v11440_v63  ;;  %v11442_v13 = vpop.f32.mrb[133].mxu0 }
 0x34b   : > { %v11444_v52 = vpop.f32.mrb[134].mxu0 }
 0x34c   : > { %14305 = vst [vmem:[#allocation51_spill] sm:$0xff] %v11444_v52  ;;  %v11448_v15 = vpop.f32.mrb[135].mxu0 }
 0x34e   : > { %2678 = vmatmul.mubr.bf16.gmra.mrb[240].mxu0 %v14308_v5  ;;  %v9223_v5 = vld [vmem:[#allocation5 + $0x1f4] ss:$8 sps:$4 sm:$0xff]  }
 0x34f   : > { %2687 = vmatprep.mubr.bf16.mxu0 %v14309_v31  ;;  %2908 = vmatprep.subr.bf16.mxu0 %v9223_v5 }
 0x350   : > { %2909 = vmatpush1.bf16.msra.mxu0 %v9221_v0 }
 0x351   : > { %v11458_v50 = vpop.f32.mrb[136].mxu0 }
 0x352   : > { %14310 = vst [vmem:[#allocation52_spill] sm:$0xff] %v11458_v50  ;;  %v11460_v9 = vpop.f32.mrb[137].mxu0 }
 0x353   : > { %14311 = vst [vmem:[#allocation50_spill] sm:$0xff] %v11460_v9  ;;  %v11462_v10 = vpop.f32.mrb[138].mxu0 }
 0x354   : > { %14312 = vst [vmem:[#allocation58_spill] sm:$0xff] %v11462_v10  ;;  %v11466_v63 = vpop.f32.mrb[139].mxu0 }
 0x356   : > { %2688 = vmatmul.mubr.bf16.gmra.mrb[244].mxu0 %v14313_v11  ;;  %v14321_v11 = vpack.c.bf16 %v14319_v7, %v14320_v20  ;;  %v14328_v7 = vld [vmem:[#allocation77_spill] sm:$0xff]  ;;  %v14329_v20 = vld [vmem:[#allocation75_spill] sm:$0xff] }
 0x357   : > { %2697 = vmatprep.mubr.bf16.mxu0 %v14315_v14  ;;  %v14323_v14 = vld [vmem:[#allocation76_spill] sm:$0xff] }
 0x358   : > { %v14324_v5 = vpack.c.bf16 %v14322_v8, %v14323_v14  ;;  %v14331_v8 = vld [vmem:[#allocation84_spill] sm:$0xff] }
 0x359   : > { %v11476_v31 = vpop.f32.mrb[140].mxu0  ;;  %v14332_v14 = vpack.c.bf16 %v11066_v61, %v14331_v8  ;;  %v14339_v61 = vld [vmem:[#allocation91_spill] sm:$0xff] }
 0x35a   : > { %14316 = vst [vmem:[#allocation59_spill] sm:$0xff] %v11476_v31  ;;  %v11478_v52 = vpop.f32.mrb[141].mxu0  ;;  %v14340_v8 = vpack.c.bf16 %v11094_v59, %v14339_v61  ;;  %v14347_v59 = vld [vmem:[#allocation98_spill] sm:$0xff] }
 0x35b   : > { %14317 = vst [vmem:[#allocation57_spill] sm:$0xff] %v11478_v52  ;;  %v11480_v17 = vpop.f32.mrb[142].mxu0  ;;  %v14348_v61 = vpack.c.bf16 %v11122_v3, %v14347_v59  ;;  %v14354_v3 = vld [vmem:[#allocation105_spill] sm:$0xff] }
 0x35c   : > { %14318 = vst [vmem:[#allocation69_spill] sm:$0xff] %v11480_v17  ;;  %v11484_v50 = vpop.f32.mrb[143].mxu0  ;;  %v14355_v59 = vpack.c.bf16 %v11150_v34, %v14354_v3  ;;  %v14360_v34 = vpack.c.bf16 %v11178_v53, %v11172_v28  ;;  %v14365_v53 = vpack.c.bf16 %v11208_v41, %v11202_v35  ;;  %v14370_v35 = vpack.c.bf16 %v11238_v32, %v11232_v22 }
 0x35d   : > { %v14372_v22 = vpack.c.bf16 %v11268_v48, %v11262_v30 }
 0x35e   : > { %2698 = vmatmul.mubr.bf16.gmra.mrb[248].mxu0 %v14321_v11  ;;  %v14330_v11 = vpack.c.bf16 %v14328_v7, %v14329_v20  ;;  %v14336_v7 = vld [vmem:[#allocation85_spill] sm:$0xff]  ;;  %v14337_v20 = vld [vmem:[#allocation83_spill] sm:$0xff] }
 0x35f   : > { %2707 = vmatprep.mubr.bf16.mxu0 %v14324_v5 }
 0x361   : > { %v11494_v10 = vpop.f32.mrb[144].mxu0 }
 0x362   : > { %14325 = vst [vmem:[#allocation70_spill] sm:$0xff] %v11494_v10  ;;  %v11496_v0 = vpop.f32.mrb[145].mxu0 }
 0x363   : > { %14326 = vst [vmem:[#allocation68_spill] sm:$0xff] %v11496_v0  ;;  %v11498_v9 = vpop.f32.mrb[146].mxu0 }
 0x364   : > { %14327 = vst [vmem:[#allocation78_spill] sm:$0xff] %v11498_v9  ;;  %v11502_v31 = vpop.f32.mrb[147].mxu0 }
 0x366   : > { %2708 = vmatmul.mubr.bf16.gmra.mrb[252].mxu0 %v14330_v11  ;;  %v14338_v11 = vpack.c.bf16 %v14336_v7, %v14337_v20  ;;  %v14344_v7 = vld [vmem:[#allocation92_spill] sm:$0xff]  ;;  %v14345_v20 = vld [vmem:[#allocation90_spill] sm:$0xff] }
 0x367   : > { %2717 = vmatprep.mubr.bf16.mxu0 %v14332_v14 }
 0x369   : > { %v11512_v5 = vpop.f32.mrb[148].mxu0 }
 0x36a   : > { %14333 = vst [vmem:[#allocation76_spill] sm:$0xff] %v11512_v5  ;;  %v11514_v17 = vpop.f32.mrb[149].mxu0 }
 0x36b   : > { %14334 = vst [vmem:[#allocation77_spill] sm:$0xff] %v11514_v17  ;;  %v11516_v52 = vpop.f32.mrb[150].mxu0 }
 0x36c   : > { %14335 = vst [vmem:[#allocation75_spill] sm:$0xff] %v11516_v52  ;;  %v11520_v10 = vpop.f32.mrb[151].mxu0 }
 0x36e   : > { %2718 = vmatmul.mubr.bf16.gmra.mrb[0].mxu0 %v14338_v11  ;;  %v14346_v11 = vpack.c.bf16 %v14344_v7, %v14345_v20  ;;  %v14351_v7 = vld [vmem:[#allocation99_spill] sm:$0xff]  ;;  %v14352_v20 = vld [vmem:[#allocation97_spill] sm:$0xff] }
 0x36f   : > { %2727 = vmatprep.mubr.bf16.mxu0 %v14340_v8 }
 0x371   : > { %v11530_v14 = vpop.f32.mrb[152].mxu0 }
 0x372   : > { %14341 = vst [vmem:[#allocation84_spill] sm:$0xff] %v11530_v14  ;;  %v11532_v9 = vpop.f32.mrb[153].mxu0 }
 0x373   : > { %14342 = vst [vmem:[#allocation85_spill] sm:$0xff] %v11532_v9  ;;  %v11534_v0 = vpop.f32.mrb[154].mxu0 }
 0x374   : > { %14343 = vst [vmem:[#allocation83_spill] sm:$0xff] %v11534_v0  ;;  %v11538_v5 = vpop.f32.mrb[155].mxu0 }
 0x376   : > { %2728 = vmatmul.mubr.bf16.gmra.mrb[4].mxu0 %v14346_v11  ;;  %v14353_v11 = vpack.c.bf16 %v14351_v7, %v14352_v20  ;;  %v14357_v7 = vld [vmem:[#allocation106_spill] sm:$0xff]  ;;  %v14358_v20 = vld [vmem:[#allocation104_spill] sm:$0xff] }
 0x377   : > { %2737 = vmatprep.mubr.bf16.mxu0 %v14348_v61 }
 0x379   : > { %v11548_v8 = vpop.f32.mrb[156].mxu0 }
 0x37a   : > { %14349 = vst [vmem:[#allocation91_spill] sm:$0xff] %v11548_v8  ;;  %v11550_v52 = vpop.f32.mrb[157].mxu0 }
 0x37b   : > { %v11552_v17 = vpop.f32.mrb[158].mxu0 }
 0x37c   : > { %14350 = vst [vmem:[#allocation92_spill] sm:$0xff] %v11552_v17  ;;  %v11556_v14 = vpop.f32.mrb[159].mxu0 }
 0x37e   : > { %2738 = vmatmul.mubr.bf16.gmra.mrb[8].mxu0 %v14353_v11  ;;  %v14359_v11 = vpack.c.bf16 %v14357_v7, %v14358_v20  ;;  %v14363_v7 = vld [vmem:[#allocation111_spill] sm:$0xff] }
 0x37f   : > { %2747 = vmatprep.mubr.bf16.mxu0 %v14355_v59  ;;  %v14364_v20 = vpack.c.bf16 %v11174_v55, %v14363_v7  ;;  %v14367_v55 = vld [vmem:[#allocation117_spill] sm:$0xff]  ;;  %v14368_v7 = vld [vmem:[#allocation116_spill] sm:$0xff] }
 0x381   : > { %v11566_v61 = vpop.f32.mrb[160].mxu0 }
 0x382   : > { %14356 = vst [vmem:[#allocation90_spill] sm:$0xff] %v11566_v61  ;;  %v11568_v0 = vpop.f32.mrb[161].mxu0 }
 0x383   : > { %v11570_v9 = vpop.f32.mrb[162].mxu0 }
 0x384   : > { %v11574_v8 = vpop.f32.mrb[163].mxu0 }
 0x386   : > { %2748 = vmatmul.mubr.bf16.gmra.mrb[12].mxu0 %v14359_v11 }
 0x387   : > { %2757 = vmatprep.mubr.bf16.mxu0 %v14360_v34 }
 0x389   : > { %v11584_v3 = vpop.f32.mrb[164].mxu0 }
 0x38a   : > { %14361 = vst [vmem:[#allocation98_spill] sm:$0xff] %v11584_v3  ;;  %v11586_v59 = vpop.f32.mrb[165].mxu0 }
 0x38b   : > { %v11588_v17 = vpop.f32.mrb[166].mxu0 }
 0x38c   : > { %14362 = vst [vmem:[#allocation99_spill] sm:$0xff] %v11588_v17  ;;  %v11592_v61 = vpop.f32.mrb[167].mxu0 }
 0x38e   : > { %2758 = vmatmul.mubr.bf16.gmra.mrb[16].mxu0 %v14364_v20  ;;  %v14369_v20 = vpack.c.bf16 %v14367_v55, %v14368_v7  ;;  %v14371_v55 = vpack.c.bf16 %v11234_v33, %v11230_v40  ;;  %v14373_v40 = vpack.c.bf16 %v11264_v36, %v11260_v27  ;;  %v14374_v33 = vpack.c.bf16 %v11286_v47, %v11280_v43 }
 0x38f   : > { %2767 = vmatprep.mubr.bf16.mxu0 %v14365_v53  ;;  %v14375_v27 = vpack.c.bf16 %v11282_v23, %v11278_v42  ;;  %v14376_v43 = vpack.c.bf16 %v11304_v45, %v11298_v37  ;;  %v14377_v42 = vpack.c.bf16 %v11300_v62, %v11296_v38  ;;  %v14378_v23 = vpack.c.bf16 %v11322_v58, %v11316_v39 }
 0x390   : > { %v14379_v38 = vpack.c.bf16 %v11318_v24, %v11314_v51  ;;  %v14380_v62 = vpack.c.bf16 %v11340_v21, %v11334_v18  ;;  %v14381_v39 = vpack.c.bf16 %v11336_v44, %v11332_v57  ;;  %v14382_v58 = vpack.c.bf16 %v11358_v54, %v11352_v49  ;;  %v9225_v18 = vld [vmem:[#allocation7 + $0x8] sm:$0xff]   ;;  %v9226_v44 = vld [vmem:[#allocation7 + $0x10] sm:$0xff]   ;;  %v14391_v49 = vld [vmem:[#allocation127_spill] sm:$0xff] }
 0x391   : > { %v11602_v28 = vpop.f32.mrb[168].mxu0  ;;  %v14384_v51 = vpack.c.bf16 %v11354_v29, %v11350_v60  ;;  %v14385_v24 = vpack.c.bf16 %v11376_v19, %v11370_v4  ;;  %v14386_v54 = vpack.c.bf16 %v11372_v6, %v11368_v12  ;;  %v14387_v57 = vpack.c.bf16 %v11394_v2, %v11388_v16  ;;  %v14388_v29 = vld [vmem:[#allocation126_spill] sm:$0xff]  ;;  %v14389_v21 = vld [vmem:[#allocation37_spill] sm:$0xff]  ;;  %v14392_v4 = vld [vmem:[#allocation36_spill] sm:$0xff] }
 0x392   : > { %14366 = vst [vmem:[#allocation97_spill] sm:$0xff] %v11602_v28  ;;  %v11604_v11 = vpop.f32.mrb[169].mxu0  ;;  %v14390_v60 = vpack.c.bf16 %v14388_v29, %v14389_v21  ;;  %v14393_v19 = vpack.c.bf16 %v14391_v49, %v14392_v4  ;;  %v14394_v12 = vld [vmem:[#allocation44_spill] sm:$0xff]  ;;  %v14395_v6 = vld [vmem:[#allocation38_spill] sm:$0xff]  ;;  %v14397_v16 = vpack.c.bf16 %v11430_v25, %v11424_v1  ;;  %v9231_v21 = vld [vmem:[#allocation7 + $0x38] sm:$0xff]  }
 0x393   : > { %v11606_v34 = vpop.f32.mrb[170].mxu0  ;;  %v14396_v2 = vpack.c.bf16 %v14394_v12, %v14395_v6  ;;  %v14404_v1 = vld [vmem:[#allocation50_spill] sm:$0xff]  ;;  %v14412_v49 = vld [vmem:[#allocation59_spill] sm:$0xff]  ;;  %v14414_v4 = vld [vmem:[#allocation68_spill] sm:$0xff] }
 0x394   : > { %v11610_v3 = vpop.f32.mrb[171].mxu0  ;;  %v14416_v12 = vld [vmem:[#allocation78_spill] sm:$0xff] }
 0x395   : > { %v14417_v6 = vld [vmem:[#allocation70_spill] sm:$0xff] }
 0x396   : > { %2768 = vmatmul.mubr.bf16.gmra.mrb[20].mxu0 %v14369_v20 }
 0x397   : > { %2777 = vmatprep.mubr.bf16.mxu0 %v14370_v35 }
 0x399   : > { %v11620_v41 = vpop.f32.mrb[172].mxu0 }
 0x39a   : > { %v11622_v53 = vpop.f32.mrb[173].mxu0 }
 0x39b   : > { %v11624_v17 = vpop.f32.mrb[174].mxu0 }
 0x39c   : > { %v11628_v28 = vpop.f32.mrb[175].mxu0 }
 0x39e   : > { %2778 = vmatmul.mubr.bf16.gmra.mrb[24].mxu0 %v14371_v55 }
 0x39f   : > { %2787 = vmatprep.mubr.bf16.mxu0 %v14372_v22 }
 0x3a1   : > { %v11638_v32 = vpop.f32.mrb[176].mxu0 }
 0x3a2   : > { %v11640_v7 = vpop.f32.mrb[177].mxu0 }
 0x3a3   : > { %v11642_v20 = vpop.f32.mrb[178].mxu0 }
 0x3a4   : > { %v11646_v26 = vpop.f32.mrb[179].mxu0 }
 0x3a6   : > { %2788 = vmatmul.mubr.bf16.gmra.mrb[28].mxu0 %v14373_v40 }
 0x3a7   : > { %2797 = vmatprep.mubr.bf16.mxu0 %v14374_v33 }
 0x3a9   : > { %v11656_v30 = vpop.f32.mrb[180].mxu0 }
 0x3aa   : > { %v11658_v48 = vpop.f32.mrb[181].mxu0 }
 0x3ab   : > { %v11660_v55 = vpop.f32.mrb[182].mxu0 }
 0x3ac   : > { %v11664_v35 = vpop.f32.mrb[183].mxu0 }
 0x3ae   : > { %2798 = vmatmul.mubr.bf16.gmra.mrb[32].mxu0 %v14375_v27 }
 0x3af   : > { %2807 = vmatprep.mubr.bf16.mxu0 %v14376_v43 }
 0x3b1   : > { %v11674_v36 = vpop.f32.mrb[184].mxu0 }
 0x3b2   : > { %v11676_v47 = vpop.f32.mrb[185].mxu0 }
 0x3b3   : > { %v11678_v40 = vpop.f32.mrb[186].mxu0 }
 0x3b4   : > { %v11682_v22 = vpop.f32.mrb[187].mxu0 }
 0x3b6   : > { %2808 = vmatmul.mubr.bf16.gmra.mrb[36].mxu0 %v14377_v42  ;;  %v9224_v42 = vld [vmem:[#allocation7] sm:$0xff]  }
 0x3b7   : > { %2817 = vmatprep.mubr.bf16.mxu0 %v14378_v23  ;;  %3559 = vmatpush1.bf16.msra.mxu1 %v9224_v42  ;;  %v14383_v23 = vmov 0   ;;  %v14400_v42 = vpack.c.bf16 %v11448_v15, %v11442_v13  ;;  %v14409_v15 = vld [vmem:[#allocation57_spill] sm:$0xff] }
 0x3b8   : > { %3560 = vmatprep.subr.bf16.mxu1 %v14383_v23  ;;  %v14410_v29 = vpack.c.bf16 %v11484_v50, %v14409_v15  ;;  %v14418_v50 = vpack.c.bf16 %v14416_v12, %v14417_v6  ;;  %v14434_v15 = vld [vmem:[#allocation90_spill] sm:$0xff]  ;;  %v14472_v6 = vld [vmem:[#allocation48_spill] sm:$0xff] }
 0x3b9   : > { %v11692_v37 = vpop.f32.mrb[188].mxu0 }
 0x3ba   : > { %v11694_v45 = vpop.f32.mrb[189].mxu0 }
 0x3bb   : > { %v11696_v27 = vpop.f32.mrb[190].mxu0  ;;  %3561 = vmatpush1.bf16.msra.mxu1 %v9225_v18  ;;  %v14402_v18 = vld [vmem:[#allocation43_spill] sm:$0xff] }
 0x3bc   : > { %v2063_v43 = vpack.c.bf16 %v11696_v27, %v11692_v37  ;;  %v11700_v33 = vpop.f32.mrb[191].mxu0  ;;  %3562 = vmatprep.subr.bf16.mxu1 %v14383_v23  ;;  %v14466_v37 = vld [vmem:[#allocation41_spill] sm:$0xff] }
 0x3bd   : > { %v2064_v46 = vpack.c.bf16 %v11700_v33, %v11694_v45  ;;  %v14467_v45 = vld [vmem:[#allocation39_spill] sm:$0xff] }
 0x3be   : > { %2818 = vmatmul.mubr.bf16.gmra.mrb[40].mxu0 %v14379_v38  ;;  %v9227_v38 = vld [vmem:[#allocation7 + $0x18] sm:$0xff]   ;;  %v14468_v27 = vpack.c.bf16 %v14466_v37, %v14467_v45 }
 0x3bf   : > { %2827 = vmatprep.mubr.bf16.mxu0 %v14380_v62  ;;  %3563 = vmatpush1.bf16.msra.mxu1 %v9226_v44  ;;  %v9228_v62 = vld [vmem:[#allocation7 + $0x20] sm:$0xff]  }
 0x3c0   : > { %3564 = vmatprep.subr.bf16.mxu1 %v14383_v23  ;;  %v14407_v44 = vld [vmem:[#allocation52_spill] sm:$0xff] }
 0x3c3   : > { %3565 = vmatpush1.bf16.msra.mxu1 %v9227_v38  ;;  %v9232_v38 = vld [vmem:[#allocation7 + $0x40] sm:$0xff]  }
 0x3c4   : > { %3566 = vmatprep.subr.bf16.mxu1 %v14383_v23 }
 0x3c6   : > { %2828 = vmatmul.mubr.bf16.gmra.mrb[44].mxu0 %v14381_v39  ;;  %v14398_v39 = vld [vmem:[#allocation45_spill] sm:$0xff] }
 0x3c7   : > { %2837 = vmatprep.mubr.bf16.mxu0 %v14382_v58  ;;  %3567 = vmatpush1.bf16.msra.mxu1 %v9228_v62  ;;  %v14399_v58 = vpack.c.bf16 %v11426_v56, %v14398_v39  ;;  %v14406_v56 = vld [vmem:[#allocation58_spill] sm:$0xff]  ;;  %v9233_v62 = vld [vmem:[#allocation7 + $0x48] sm:$0xff]   ;;  %v14421_v39 = vld [vmem:[#allocation75_spill] sm:$0xff] }
 0x3c8   : > { %3568 = vmatprep.subr.bf16.mxu1 %v14383_v23  ;;  %v14408_v13 = vpack.c.bf16 %v14406_v56, %v14407_v44  ;;  %v14431_v56 = vld [vmem:[#allocation91_spill] sm:$0xff]  ;;  %v14433_v44 = vpack.c.bf16 %v11574_v8, %v11568_v0  ;;  %v14440_v8 = vpack.c.bf16 %v11610_v3, %v11604_v11  ;;  %v14445_v3 = vpack.c.bf16 %v11646_v26, %v11640_v7  ;;  %v14454_v7 = vld [vmem:[#allocation30_spill] sm:$0xff] }
 0x3c9   : > { %v9239_v11 = vld [vmem:[#allocation7 + $0x78] sm:$0xff]   ;;  %v14449_v26 = vpack.c.bf16 %v11682_v22, %v11676_v47  ;;  %v14460_v22 = vld [vmem:[#allocation34_spill] sm:$0xff] }
 0x3ce   : > { %2838 = vmatmul.mubr.bf16.gmra.mrb[48].mxu0 %v14384_v51  ;;  %v9229_v51 = vld [vmem:[#allocation7 + $0x28] sm:$0xff]  }
 0x3cf   : > { %2847 = vmatprep.mubr.bf16.mxu0 %v14385_v24  ;;  %3569 = vmatpush1.bf16.msra.mxu1 %v9229_v51  ;;  %v14401_v24 = vld [vmem:[#allocation51_spill] sm:$0xff] }
 0x3d0   : > { %3570 = vmatprep.subr.bf16.mxu1 %v14383_v23  ;;  %v14403_v25 = vpack.c.bf16 %v14401_v24, %v14402_v18  ;;  %v9234_v24 = vld [vmem:[#allocation7 + $0x50] sm:$0xff]   ;;  %v14426_v18 = vld [vmem:[#allocation83_spill] sm:$0xff] }
 0x3d6   : > { %2848 = vmatmul.mubr.bf16.gmra.mrb[52].mxu0 %v14386_v54  ;;  %v14405_v54 = vpack.c.bf16 %v11466_v63, %v14404_v1  ;;  %v14429_v1 = vpack.c.bf16 %v11556_v14, %v11550_v52  ;;  %v14435_v52 = vpack.c.bf16 %v11570_v9, %v14434_v15  ;;  %v14436_v14 = vpack.c.bf16 %v11592_v61, %v11586_v59  ;;  %v14441_v9 = vld [vmem:[#allocation97_spill] sm:$0xff]  ;;  %v14493_v15 = vld [vmem:[#allocation74_spill] sm:$0xff] }
 0x3d7   : > { %2857 = vmatprep.mubr.bf16.mxu0 %v14387_v57  ;;  %v9230_v57 = vld [vmem:[#allocation7 + $0x30] sm:$0xff]   ;;  %v14442_v61 = vpack.c.bf16 %v11606_v34, %v14441_v9  ;;  %v14443_v59 = vpack.c.bf16 %v11628_v28, %v11622_v53  ;;  %v9242_v34 = vld [vmem:[#allocation8 + $0x4] ss:$8 sps:$4 sm:$0xff]   ;;  %v14450_v28 = vpack.c.bf16 %v11678_v40, %v11674_v36 }
 0x3d8   : > { %3571 = vmatpush1.bf16.msra.mxu1 %v9230_v57  ;;  %v14430_v57 = vld [vmem:[#allocation92_spill] sm:$0xff]  ;;  %v14452_v53 = vld [vmem:[#allocation29_spill] sm:$0xff] }
 0x3d9   : > { %3572 = vmatprep.subr.bf16.mxu1 %v14383_v23  ;;  %v14461_v36 = vld [vmem:[#allocation32_spill] sm:$0xff]  ;;  %v14502_v9 = vld [vmem:[#allocation81_spill] sm:$0xff] }
 0x3da   : > { %v14462_v47 = vpack.c.bf16 %v14460_v22, %v14461_v36  ;;  %v14464_v40 = vld [vmem:[#allocation40_spill] sm:$0xff]  ;;  %v14518_v22 = vld [vmem:[#allocation103_spill] sm:$0xff]  ;;  %v14519_v36 = vld [vmem:[#allocation101_spill] sm:$0xff] }
 0x3dc   : > { %3573 = vmatpush1.bf16.msra.mxu1 %v9231_v21  ;;  %v14437_v21 = vld [vmem:[#allocation99_spill] sm:$0xff] }
 0x3dd   : > { %3574 = vmatprep.subr.bf16.mxu1 %v14383_v23 }
 0x3de   : > { %2858 = vmatmul.mubr.bf16.gmra.mrb[56].mxu0 %v14390_v60  ;;  %v14411_v60 = vld [vmem:[#allocation69_spill] sm:$0xff] }
 0x3df   : > { %2867 = vmatprep.mubr.bf16.mxu0 %v14393_v19  ;;  %v14413_v63 = vpack.c.bf16 %v14411_v60, %v14412_v49  ;;  %v14415_v19 = vpack.c.bf16 %v11502_v31, %v14414_v4  ;;  %v14438_v60 = vld [vmem:[#allocation98_spill] sm:$0xff]  ;;  %v14446_v4 = vpack.c.bf16 %v11642_v20, %v11638_v32  ;;  %v14455_v20 = vld [vmem:[#allocation28_spill] sm:$0xff] }
 0x3e0   : > { %3575 = vmatpush1.bf16.msra.mxu1 %v9232_v38  ;;  %v14439_v0 = vpack.c.bf16 %v14437_v21, %v14438_v60  ;;  %v9238_v49 = vld [vmem:[#allocation7 + $0x70] sm:$0xff]   ;;  %v14470_v38 = vld [vmem:[#allocation47_spill] sm:$0xff] }
 0x3e1   : > { %3576 = vmatprep.subr.bf16.mxu1 %v14383_v23  ;;  %v14497_v21 = vld [vmem:[#allocation71_spill] sm:$0xff] }
 0x3e4   : > { %3577 = vmatpush1.bf16.msra.mxu1 %v9233_v62  ;;  %v14476_v62 = vld [vmem:[#allocation54_spill] sm:$0xff] }
 0x3e5   : > { %3578 = vmatprep.subr.bf16.mxu1 %v14383_v23 }
 0x3e6   : > { %2868 = vmatmul.mubr.bf16.gmra.mrb[60].mxu0 %v14396_v2  ;;  %v14419_v2 = vld [vmem:[#allocation77_spill] sm:$0xff] }
 0x3e7   : > { %2910 = vmatprep.mubr.bf16.mxu0 %v14397_v16  ;;  %v14420_v16 = vpack.c.bf16 %v11520_v10, %v14419_v2 }
 0x3e8   : > { %3579 = vmatpush1.bf16.msra.mxu1 %v9234_v24  ;;  %v14482_v24 = vld [vmem:[#allocation61_spill] sm:$0xff] }
 0x3e9   : > { %3580 = vmatprep.subr.bf16.mxu1 %v14383_v23 }
 0x3ee   : > { %2911 = vmatmul.mubr.bf16.vlgmr.msra.gmra.mrb[192].mxu0 %v14399_v58  ;;  %v14422_v58 = vld [vmem:[#allocation76_spill] sm:$0xff] }
 0x3ef   : > { %2920 = vmatprep.mubr.bf16.mxu0 %v14400_v42  ;;  %v14423_v31 = vpack.c.bf16 %v14421_v39, %v14422_v58  ;;  %v14424_v42 = vld [vmem:[#allocation85_spill] sm:$0xff]  ;;  %v14478_v58 = vld [vmem:[#allocation55_spill] sm:$0xff] }
 0x3f0   : > { %v14425_v51 = vpack.c.bf16 %v11538_v5, %v14424_v42  ;;  %v14432_v5 = vpack.c.bf16 %v14430_v57, %v14431_v56  ;;  %v14488_v57 = vld [vmem:[#allocation65_spill] sm:$0xff] }
 0x3f6   : > { %2921 = vmatmul.mubr.bf16.gmra.mrb[196].mxu0 %v14403_v25  ;;  %v14427_v25 = vld [vmem:[#allocation84_spill] sm:$0xff] }
 0x3f7   : > { %2930 = vmatprep.mubr.bf16.mxu0 %v14405_v54  ;;  %v14428_v10 = vpack.c.bf16 %v14426_v18, %v14427_v25  ;;  %v9235_v54 = vld [vmem:[#allocation7 + $0x58] sm:$0xff]   ;;  %v14484_v25 = vld [vmem:[#allocation62_spill] sm:$0xff] }
 0x3f8   : > { %3581 = vmatpush1.bf16.msra.mxu1 %v9235_v54  ;;  %v14487_v54 = vld [vmem:[#allocation67_spill] sm:$0xff] }
 0x3f9   : > { %3582 = vmatprep.subr.bf16.mxu1 %v14383_v23  ;;  %v14489_v56 = vpack.c.bf16 %v14487_v54, %v14488_v57  ;;  %v9245_v57 = vld [vmem:[#allocation8 + $0x14] ss:$8 sps:$4 sm:$0xff]  }
 0x3fe   : > { %2931 = vmatmul.mubr.bf16.gmra.mrb[200].mxu0 %v14408_v13  ;;  %v9236_v13 = vld [vmem:[#allocation7 + $0x60] sm:$0xff]  }
 0x3ff   : > { %2940 = vmatprep.mubr.bf16.mxu0 %v14410_v29  ;;  %3583 = vmatpush1.bf16.msra.mxu1 %v9236_v13  ;;  %v9237_v29 = vld [vmem:[#allocation7 + $0x68] sm:$0xff]  }
 0x400   : > { %3584 = vmatprep.subr.bf16.mxu1 %v14383_v23 }
 0x403   : > { %3585 = vmatpush1.bf16.msra.mxu1 %v9237_v29  ;;  %v14496_v29 = vld [vmem:[#allocation73_spill] sm:$0xff] }
 0x404   : > { %3586 = vmatprep.subr.bf16.mxu1 %v14383_v23  ;;  %v14498_v60 = vpack.c.bf16 %v14496_v29, %v14497_v21  ;;  %v14527_v21 = vld [vmem:[#allocation109_spill] sm:$0xff] }
 0x406   : > { %2941 = vmatmul.mubr.bf16.gmra.mrb[204].mxu0 %v14413_v63  ;;  %v14444_v63 = vpack.c.bf16 %v11624_v17, %v11620_v41  ;;  %v14448_v17 = vpack.c.bf16 %v11660_v55, %v11656_v30  ;;  %v14451_v41 = vld [vmem:[#allocation31_spill] sm:$0xff] }
 0x407   : > { %2950 = vmatprep.mubr.bf16.mxu0 %v14415_v19  ;;  %3587 = vmatpush1.bf16.msra.mxu1 %v9238_v49  ;;  %v14447_v19 = vpack.c.bf16 %v11664_v35, %v11658_v48  ;;  %v14453_v32 = vpack.c.bf16 %v14451_v41, %v14452_v53  ;;  %v14456_v35 = vpack.c.bf16 %v14454_v7, %v14455_v20  ;;  %v14457_v30 = vld [vmem:[#allocation35_spill] sm:$0xff]  ;;  %v14458_v48 = vld [vmem:[#allocation33_spill] sm:$0xff]  ;;  %v14513_v41 = vld [vmem:[#allocation94_spill] sm:$0xff] }
 0x408   : > { %3588 = vmatprep.subr.bf16.mxu1 %v14383_v23  ;;  %v14459_v55 = vpack.c.bf16 %v14457_v30, %v14458_v48  ;;  %v2193_v7 = vld [vmem:[%s13876_s4] sm:$0x3]  ;;  %v14516_v30 = vld [vmem:[#allocation93_spill] sm:$0xff] }
 0x40b   : > { %3589 = vmatpush1.bf16.msra.mxu1 %v9239_v11 }
 0x40c   : > { %4051 = vmatprep.subr.bf16.mxu1 %v9242_v34 }
 0x40e   : > { %2951 = vmatmul.mubr.bf16.gmra.mrb[208].mxu0 %v14418_v50  ;;  %v14473_v50 = vld [vmem:[#allocation46_spill] sm:$0xff] }
 0x40f   : > { %2960 = vmatprep.mubr.bf16.mxu0 %v14420_v16  ;;  %v14474_v2 = vpack.c.bf16 %v14472_v6, %v14473_v50  ;;  %v14475_v16 = vld [vmem:[#allocation56_spill] sm:$0xff] }
 0x410   : > { %v14477_v39 = vpack.c.bf16 %v14475_v16, %v14476_v62  ;;  %v14522_v16 = vld [vmem:[#allocation100_spill] sm:$0xff] }
 0x416   : > { %2961 = vmatmul.mubr.bf16.gmra.mrb[212].mxu0 %v14423_v31  ;;  %v14479_v31 = vld [vmem:[#allocation53_spill] sm:$0xff] }
 0x417   : > { %2970 = vmatprep.mubr.bf16.mxu0 %v14425_v51  ;;  %v14480_v42 = vpack.c.bf16 %v14478_v58, %v14479_v31  ;;  %v14481_v51 = vld [vmem:[#allocation63_spill] sm:$0xff]  ;;  %v14524_v31 = vld [vmem:[#allocation110_spill] sm:$0xff] }
 0x418   : > { %v14483_v18 = vpack.c.bf16 %v14481_v51, %v14482_v24 }
 0x41e   : > { %2971 = vmatmul.mubr.bf16.gmra.mrb[216].mxu0 %v14428_v10  ;;  %v14485_v10 = vld [vmem:[#allocation60_spill] sm:$0xff] }
 0x41f   : > { %2980 = vmatprep.mubr.bf16.mxu0 %v14429_v1  ;;  %v14486_v1 = vpack.c.bf16 %v14484_v25, %v14485_v10  ;;  %v9240_v10 = vld [vmem:[#allocation8] ss:$8 sps:$4 sm:$0xff]  }
 0x426   : > { %2981 = vmatmul.mubr.bf16.gmra.mrb[220].mxu0 %v14432_v5  ;;  %v14490_v5 = vld [vmem:[#allocation66_spill] sm:$0xff] }
 0x427   : > { %2990 = vmatprep.mubr.bf16.mxu0 %v14433_v44  ;;  %v14491_v44 = vld [vmem:[#allocation64_spill] sm:$0xff] }
 0x428   : > { %v14492_v13 = vpack.c.bf16 %v14490_v5, %v14491_v44 }
 0x42e   : > { %2991 = vmatmul.mubr.bf16.gmra.mrb[224].mxu0 %v14435_v52  ;;  %v14494_v52 = vld [vmem:[#allocation72_spill] sm:$0xff] }
 0x42f   : > { %3000 = vmatprep.mubr.bf16.mxu0 %v14436_v14  ;;  %v14495_v14 = vpack.c.bf16 %v14493_v15, %v14494_v52  ;;  %v9243_v52 = vld [vmem:[#allocation8 + $0x10] ss:$8 sps:$4 sm:$0xff]  }
 0x436   : > { %3001 = vmatmul.mubr.bf16.gmra.mrb[228].mxu0 %v14439_v0  ;;  %v14499_v0 = vld [vmem:[#allocation82_spill] sm:$0xff] }
 0x437   : > { %3010 = vmatprep.mubr.bf16.mxu0 %v14440_v8  ;;  %v14500_v8 = vld [vmem:[#allocation80_spill] sm:$0xff] }
 0x438   : > { %v14501_v49 = vpack.c.bf16 %v14499_v0, %v14500_v8  ;;  %v9248_v8 = vld [vmem:[#allocation8 + $0x24] ss:$8 sps:$4 sm:$0xff]  }
 0x43e   : > { %3011 = vmatmul.mubr.bf16.gmra.mrb[232].mxu0 %v14442_v61  ;;  %v14503_v61 = vld [vmem:[#allocation79_spill] sm:$0xff] }
 0x43f   : > { %3020 = vmatprep.mubr.bf16.mxu0 %v14443_v59  ;;  %v14504_v59 = vpack.c.bf16 %v14502_v9, %v14503_v61  ;;  %v14530_v61 = vld [vmem:[#allocation115_spill] sm:$0xff] }
 0x446   : > { %3021 = vmatmul.mubr.bf16.gmra.mrb[236].mxu0 %v14444_v63  ;;  %v14505_v63 = vld [vmem:[#allocation89_spill] sm:$0xff] }
 0x447   : > { %3030 = vmatprep.mubr.bf16.mxu0 %v14445_v3  ;;  %v14506_v3 = vld [vmem:[#allocation87_spill] sm:$0xff] }
 0x448   : > { %v14507_v11 = vpack.c.bf16 %v14505_v63, %v14506_v3 }
 0x44e   : > { %3031 = vmatmul.mubr.bf16.gmra.mrb[240].mxu0 %v14446_v4  ;;  %v14508_v4 = vlaneseq }
 0x44f   : > { %3040 = vmatprep.mubr.bf16.mxu0 %v14447_v19  ;;  %v14509_v19 = vld [vmem:[#allocation88_spill] sm:$0xff] }
 0x450   : > { %v11906_v34 = vshrl.u32 %v14508_v4, 7 }
 0x452   : > { %v11921_v20 = vsub.s32 1, %v11906_v34 }
 0x456   : > { %3041 = vmatmul.mubr.bf16.gmra.mrb[244].mxu0 %v14448_v17  ;;  %v14510_v17 = vld [vmem:[#allocation86_spill] sm:$0xff] }
 0x457   : > { %3050 = vmatprep.mubr.bf16.mxu0 %v14449_v26  ;;  %v14511_v26 = vpack.c.bf16 %v14509_v19, %v14510_v17  ;;  %v9246_v19 = vld [vmem:[#allocation8 + $0x20] ss:$8 sps:$4 sm:$0xff]  }
 0x45e   : > { %3051 = vmatmul.mubr.bf16.gmra.mrb[248].mxu0 %v14450_v28  ;;  %v14512_v28 = vld [vmem:[#allocation96_spill] sm:$0xff] }
 0x45f   : > { %3060 = vmatprep.mubr.bf16.mxu0 %v2064_v46  ;;  %v14463_v46 = vld [vmem:[#allocation42_spill] sm:$0xff]  ;;  %v14514_v53 = vpack.c.bf16 %v14512_v28, %v14513_v41 }
 0x460   : > { %v14465_v33 = vpack.c.bf16 %v14463_v46, %v14464_v40  ;;  %v11933_v46 = vrot.slane %v2193_v7, %v11921_v20  ;;  %v9251_v28 = vld [vmem:[#allocation8 + $0x34] ss:$8 sps:$4 sm:$0xff]  }
 0x466   : > { %3061 = vmatmul.mubr.bf16.gmra.mrb[252].mxu0 %v2063_v43  ;;  %v14469_v43 = vld [vmem:[#allocation49_spill] sm:$0xff] }
 0x467   : > { %3070 = vmatprep.mubr.bf16.mxu0 %v14453_v32  ;;  %v14471_v12 = vpack.c.bf16 %v14469_v43, %v14470_v38  ;;  %v11915_v32 = vsub.s32 0, %v11906_v34 }
 0x46e   : > { %3071 = vmatmul.mubr.bf16.gmra.mrb[0].mxu0 %v14456_v35  ;;  %v14515_v35 = vld [vmem:[#allocation95_spill] sm:$0xff] }
 0x46f   : > { %3080 = vmatprep.mubr.bf16.mxu0 %v14459_v55  ;;  %v14517_v48 = vpack.c.bf16 %v14515_v35, %v14516_v30  ;;  %v11927_v55 = vrot.slane %v2193_v7, %v11915_v32 }
 0x476   : > { %3081 = vmatmul.mubr.bf16.gmra.mrb[4].mxu0 %v14462_v47  ;;  %v14520_v47 = vpack.c.bf16 %v14518_v22, %v14519_v36 }
 0x477   : > { %3090 = vmatprep.mubr.bf16.mxu0 %v14465_v33 }
 0x47e   : > { %3091 = vmatmul.mubr.bf16.gmra.mrb[8].mxu0 %v14468_v27 }
 0x47f   : > { %3100 = vmatprep.mubr.bf16.mxu0 %v14471_v12 }
 0x486   : > { %3101 = vmatmul.mubr.bf16.gmra.mrb[12].mxu0 %v14474_v2  ;;  %v14521_v2 = vld [vmem:[#allocation102_spill] sm:$0xff] }
 0x487   : > { %3110 = vmatprep.mubr.bf16.mxu0 %v14477_v39  ;;  %v14523_v62 = vpack.c.bf16 %v14521_v2, %v14522_v16  ;;  %v9252_v16 = vld [vmem:[#allocation8 + $0x40] ss:$8 sps:$4 sm:$0xff]  }
 0x48e   : > { %3111 = vmatmul.mubr.bf16.gmra.mrb[16].mxu0 %v14480_v42  ;;  %v14525_v42 = vld [vmem:[#allocation108_spill] sm:$0xff] }
 0x48f   : > { %3120 = vmatprep.mubr.bf16.mxu0 %v14483_v18  ;;  %v14526_v51 = vpack.c.bf16 %v14524_v31, %v14525_v42 }
 0x496   : > { %3121 = vmatmul.mubr.bf16.gmra.mrb[20].mxu0 %v14486_v1 }
 0x497   : > { %3130 = vmatprep.mubr.bf16.mxu0 %v14489_v56 }
 0x49e   : > { %3131 = vmatmul.mubr.bf16.gmra.mrb[24].mxu0 %v14492_v13 }
 0x49f   : > { %3140 = vmatprep.mubr.bf16.mxu0 %v14495_v14 }
 0x4a6   : > { %3141 = vmatmul.mubr.bf16.gmra.mrb[28].mxu0 %v14498_v60  ;;  %v14528_v60 = vld [vmem:[#allocation107_spill] sm:$0xff] }
 0x4a7   : > { %3150 = vmatprep.mubr.bf16.mxu0 %v14501_v49  ;;  %v14529_v0 = vpack.c.bf16 %v14527_v21, %v14528_v60 }
 0x4ae   : > { %3151 = vmatmul.mubr.bf16.gmra.mrb[32].mxu0 %v14504_v59  ;;  %v14531_v59 = vld [vmem:[#allocation113_spill] sm:$0xff] }
 0x4af   : > { %3160 = vmatprep.mubr.bf16.mxu0 %v14507_v11  ;;  %v14532_v63 = vpack.c.bf16 %v14530_v61, %v14531_v59 }
 0x4b6   : > { %3161 = vmatmul.mubr.bf16.gmra.mrb[36].mxu0 %v14511_v26 }
 0x4b7   : > { %3170 = vmatprep.mubr.bf16.mxu0 %v14514_v53 }
 0x4be   : > { %3171 = vmatmul.mubr.bf16.gmra.mrb[40].mxu0 %v14517_v48  ;;  %v9249_v48 = vld [vmem:[#allocation8 + $0x30] ss:$8 sps:$4 sm:$0xff]  }
 0x4bf   : > { %3180 = vmatprep.mubr.bf16.mxu0 %v14520_v47  ;;  %v14533_v47 = vld [vmem:[#allocation114_spill] sm:$0xff] }
 0x4c1   : > { %v2912_v40 = vpop.f32.mrb[192].mxu0 }
 0x4c2   : > { %v8510_v33 = vadd.f32 %v2912_v40, %v11927_v55  ;;  %v2914_v37 = vpop.f32.mrb[193].mxu0  ;;  %v14534_v40 = vld [vmem:[#allocation112_spill] sm:$0xff] }
 0x4c3   : > { %v8511_v45 = vadd.f32 %v2914_v37, %v11933_v46  ;;  %v2916_v27 = vpop.f32.mrb[194].mxu0  ;;  %v9254_v37 = vld [vmem:[#allocation8 + $0x44] ss:$8 sps:$4 sm:$0xff]  }
 0x4c4   : > { %v8512_v43 = vadd.f32 %v2916_v27, %v11927_v55  ;;  %v2918_v38 = vpop.f32.mrb[195].mxu0  ;;  %v3231_v6 = vmax.f32 %v8510_v33, 0.0  ;;  %v14535_v33 = vpack.c.bf16 %v14533_v47, %v14534_v40  ;;  %v9255_v40 = vld [vmem:[#allocation8 + $0x50] ss:$8 sps:$4 sm:$0xff]  }
 0x4c5   : > { %v8513_v12 = vadd.f32 %v2918_v38, %v11933_v46  ;;  %v3232_v39 = vmax.f32 %v8511_v45, 0.0  ;;  %v14537_v38 = vld [vmem:[#allocation119_spill] sm:$0xff] }
 0x4c6   : > { %v3233_v50 = vmax.f32 %v8512_v43, 0.0  ;;  %3181 = vmatmul.mubr.bf16.gmra.mrb[44].mxu0 %v14523_v62  ;;  %v14536_v43 = vld [vmem:[#allocation121_spill] sm:$0xff] }
 0x4c7   : > { %v3234_v58 = vmax.f32 %v8513_v12, 0.0  ;;  %3190 = vmatprep.mubr.bf16.mxu0 %v14526_v51  ;;  %v14538_v12 = vpack.c.bf16 %v14536_v43, %v14537_v38 }
 0x4c8   : > { %v3359_v24 = vpack.c.bf16 %v3233_v50, %v3231_v6 }
 0x4c9   : > { %v2922_v18 = vpop.f32.mrb[196].mxu0  ;;  %v3360_v25 = vpack.c.bf16 %v3234_v58, %v3232_v39 }
 0x4ca   : > { %v8514_v1 = vadd.f32 %v2922_v18, %v11927_v55  ;;  %v2924_v54 = vpop.f32.mrb[197].mxu0 }
 0x4cb   : > { %v8515_v56 = vadd.f32 %v2924_v54, %v11933_v46  ;;  %v2926_v5 = vpop.f32.mrb[198].mxu0  ;;  %3590 = vmatprep.mubr.bf16.mxu1 %v3360_v25 }
 0x4cc   : > { %v8516_v44 = vadd.f32 %v2926_v5, %v11927_v55  ;;  %v2928_v13 = vpop.f32.mrb[199].mxu0  ;;  %3591 = vmatmul.mubr.bf16.vlgmr.msra.gmra.mrb[64].mxu1 %v3359_v24  ;;  %v3235_v14 = vmax.f32 %v8514_v1, 0.0  ;;  %v14540_v1 = vld [vmem:[#allocation118_spill] sm:$0xff]  ;;  %v14542_v5 = vld [vmem:[#allocation125_spill] sm:$0xff] }
 0x4cd   : > { %v8517_v15 = vadd.f32 %v2928_v13, %v11933_v46  ;;  %4052 = vmatpush1.bf16.msra.mxu1 %v9240_v10  ;;  %v3236_v49 = vmax.f32 %v8515_v56, 0.0  ;;  %v14539_v10 = vld [vmem:[#allocation120_spill] sm:$0xff] }
 0x4ce   : > { %v3237_v29 = vmax.f32 %v8516_v44, 0.0  ;;  %3191 = vmatmul.mubr.bf16.gmra.mrb[48].mxu0 %v14529_v0  ;;  %4053 = vmatprep.subr.bf16.mxu1 %v9245_v57  ;;  %v14541_v54 = vpack.c.bf16 %v14539_v10, %v14540_v1  ;;  %v14543_v44 = vld [vmem:[#allocation123_spill] sm:$0xff] }
 0x4cf   : > { %v3238_v9 = vmax.f32 %v8517_v15, 0.0  ;;  %3200 = vmatprep.mubr.bf16.mxu0 %v14532_v63  ;;  %v14544_v13 = vpack.c.bf16 %v14542_v5, %v14543_v44  ;;  %v14545_v63 = vld [vmem:[#allocation124_spill] sm:$0xff] }
 0x4d0   : > { %v3361_v3 = vpack.c.bf16 %v3237_v29, %v3235_v14 }
 0x4d1   : > { %v2932_v11 = vpop.f32.mrb[200].mxu0  ;;  %v3362_v4 = vpack.c.bf16 %v3238_v9, %v3236_v49  ;;  %4054 = vmatpush1.bf16.msra.mxu1 %v9243_v52 }
 0x4d2   : > { %v8518_v17 = vadd.f32 %v2932_v11, %v11927_v55  ;;  %v2934_v26 = vpop.f32.mrb[201].mxu0  ;;  %4055 = vmatprep.subr.bf16.mxu1 %v9248_v8 }
 0x4d3   : > { %v8519_v41 = vadd.f32 %v2934_v26, %v11933_v46  ;;  %v2936_v53 = vpop.f32.mrb[202].mxu0  ;;  %3598 = vmatprep.mubr.bf16.mxu1 %v3362_v4 }
 0x4d4   : > { %v8520_v7 = vadd.f32 %v2936_v53, %v11927_v55  ;;  %v2938_v35 = vpop.f32.mrb[203].mxu0  ;;  %3599 = vmatmul.mubr.bf16.gmra.mrb[68].mxu1 %v3361_v3  ;;  %v3239_v22 = vmax.f32 %v8518_v17, 0.0  ;;  %v14546_v3 = vld [vmem:[#allocation122_spill] sm:$0xff] }
 0x4d5   : > { %v8521_v30 = vadd.f32 %v2938_v35, %v11933_v46  ;;  %4056 = vmatpush1.bf16.msra.mxu1 %v9246_v19  ;;  %v3240_v45 = vmax.f32 %v8519_v41, 0.0  ;;  %v14547_v11 = vpack.c.bf16 %v14545_v63, %v14546_v3 }
 0x4d6   : > { %v3241_v36 = vmax.f32 %v8520_v7, 0.0  ;;  %3201 = vmatmul.mubr.bf16.gmra.mrb[52].mxu0 %v14535_v33  ;;  %4057 = vmatprep.subr.bf16.mxu1 %v9251_v28  ;;  %v9257_v33 = vld [vmem:[#allocation8 + $0x54] ss:$8 sps:$4 sm:$0xff]  }
 0x4d7   : > { %v3242_v27 = vmax.f32 %v8521_v30, 0.0  ;;  %3210 = vmatprep.mubr.bf16.mxu0 %v14538_v12 }
 0x4d8   : > { %v3363_v6 = vpack.c.bf16 %v3241_v36, %v3239_v22 }
 0x4d9   : > { %v2942_v50 = vpop.f32.mrb[204].mxu0  ;;  %v3364_v2 = vpack.c.bf16 %v3242_v27, %v3240_v45  ;;  %4058 = vmatpush1.bf16.msra.mxu1 %v9249_v48 }
 0x4da   : > { %v8522_v62 = vadd.f32 %v2942_v50, %v11927_v55  ;;  %v2944_v39 = vpop.f32.mrb[205].mxu0  ;;  %4059 = vmatprep.subr.bf16.mxu1 %v9254_v37 }
 0x4db   : > { %v8523_v58 = vadd.f32 %v2944_v39, %v11933_v46  ;;  %v2946_v31 = vpop.f32.mrb[206].mxu0  ;;  %3606 = vmatprep.mubr.bf16.mxu1 %v3364_v2 }
 0x4dc   : > { %v8524_v42 = vadd.f32 %v2946_v31, %v11927_v55  ;;  %v2948_v51 = vpop.f32.mrb[207].mxu0  ;;  %3607 = vmatmul.mubr.bf16.gmra.mrb[72].mxu1 %v3363_v6  ;;  %v3243_v18 = vmax.f32 %v8522_v62, 0.0 }
 0x4dd   : > { %v8525_v24 = vadd.f32 %v2948_v51, %v11933_v46  ;;  %4060 = vmatpush1.bf16.msra.mxu1 %v9252_v16  ;;  %v3244_v57 = vmax.f32 %v8523_v58, 0.0 }
 0x4de   : > { %v3245_v25 = vmax.f32 %v8524_v42, 0.0  ;;  %3211 = vmatmul.mubr.bf16.gmra.mrb[56].mxu0 %v14541_v54  ;;  %4061 = vmatprep.subr.bf16.mxu1 %v9257_v33  ;;  %v9260_v33 = vld [vmem:[#allocation8 + $0x64] ss:$8 sps:$4 sm:$0xff]  }
 0x4df   : > { %v3246_v56 = vmax.f32 %v8525_v24, 0.0  ;;  %3220 = vmatprep.mubr.bf16.mxu0 %v14544_v13 }
 0x4e0   : > { %v3365_v15 = vpack.c.bf16 %v3245_v25, %v3243_v18 }
 0x4e1   : > { %v2952_v52 = vpop.f32.mrb[208].mxu0  ;;  %v3366_v14 = vpack.c.bf16 %v3246_v56, %v3244_v57  ;;  %4062 = vmatpush1.bf16.msra.mxu1 %v9255_v40  ;;  %v9258_v40 = vld [vmem:[#allocation8 + $0x60] ss:$8 sps:$4 sm:$0xff]  }
 0x4e2   : > { %v8526_v29 = vadd.f32 %v2952_v52, %v11927_v55  ;;  %v2954_v21 = vpop.f32.mrb[209].mxu0  ;;  %4063 = vmatprep.subr.bf16.mxu1 %v9260_v33  ;;  %v9263_v33 = vld [vmem:[#allocation8 + $0x74] ss:$8 sps:$4 sm:$0xff]  }
 0x4e3   : > { %v8527_v60 = vadd.f32 %v2954_v21, %v11933_v46  ;;  %v2956_v0 = vpop.f32.mrb[210].mxu0  ;;  %3614 = vmatprep.mubr.bf16.mxu1 %v3366_v14 }
 0x4e4   : > { %v8528_v8 = vadd.f32 %v2956_v0, %v11927_v55  ;;  %v2958_v49 = vpop.f32.mrb[211].mxu0  ;;  %3615 = vmatmul.mubr.bf16.gmra.mrb[76].mxu1 %v3365_v15  ;;  %v3247_v61 = vmax.f32 %v8526_v29, 0.0 }
 0x4e5   : > { %v8529_v9 = vadd.f32 %v2958_v49, %v11933_v46  ;;  %v3248_v4 = vmax.f32 %v8527_v60, 0.0  ;;  %4064 = vmatpush1.bf16.msra.mxu1 %v9258_v40  ;;  %v9261_v40 = vld [vmem:[#allocation8 + $0x70] ss:$8 sps:$4 sm:$0xff]  }
 0x4e6   : > { %v3249_v59 = vmax.f32 %v8528_v8, 0.0  ;;  %3221 = vmatmul.mubr.bf16.gmra.mrb[60].mxu0 %v14547_v11  ;;  %4065 = vmatprep.subr.bf16.mxu1 %v9263_v33 }
 0x4e7   : > { %v3250_v19 = vmax.f32 %v8529_v9, 0.0  ;;  %4960 = vmatprep.mubr.bf16.mxu0 %v14383_v23 }
 0x4e8   : > { %v3367_v17 = vpack.c.bf16 %v3249_v59, %v3247_v61 }
 0x4e9   : > { %v2962_v26 = vpop.f32.mrb[212].mxu0  ;;  %v3368_v28 = vpack.c.bf16 %v3250_v19, %v3248_v4  ;;  %4066 = vmatpush1.bf16.msra.mxu1 %v9261_v40 }
 0x4ea   : > { %v8530_v41 = vadd.f32 %v2962_v26, %v11927_v55  ;;  %v2964_v53 = vpop.f32.mrb[213].mxu0 }
 0x4eb   : > { %v8531_v7 = vadd.f32 %v2964_v53, %v11933_v46  ;;  %v2966_v35 = vpop.f32.mrb[214].mxu0  ;;  %3622 = vmatprep.mubr.bf16.mxu1 %v3368_v28 }
 0x4ec   : > { %v8532_v30 = vadd.f32 %v2966_v35, %v11927_v55  ;;  %v2968_v48 = vpop.f32.mrb[215].mxu0  ;;  %3623 = vmatmul.mubr.bf16.gmra.mrb[80].mxu1 %v3367_v17  ;;  %v3251_v36 = vmax.f32 %v8530_v41, 0.0 }
 0x4ed   : > { %v8533_v22 = vadd.f32 %v2968_v48, %v11933_v46  ;;  %v3252_v37 = vmax.f32 %v8531_v7, 0.0 }
 0x4ee   : > { %v3253_v47 = vmax.f32 %v8532_v30, 0.0 }
 0x4ef   : > { %v3254_v45 = vmax.f32 %v8533_v22, 0.0 }
 0x4f0   : > { %v3369_v27 = vpack.c.bf16 %v3253_v47, %v3251_v36 }
 0x4f1   : > { %v2972_v43 = vpop.f32.mrb[216].mxu0  ;;  %v3370_v38 = vpack.c.bf16 %v3254_v45, %v3252_v37 }
 0x4f2   : > { %v8534_v12 = vadd.f32 %v2972_v43, %v11927_v55  ;;  %v2974_v6 = vpop.f32.mrb[217].mxu0 }
 0x4f3   : > { %v8535_v50 = vadd.f32 %v2974_v6, %v11933_v46  ;;  %v2976_v2 = vpop.f32.mrb[218].mxu0  ;;  %3630 = vmatprep.mubr.bf16.mxu1 %v3370_v38 }
 0x4f4   : > { %v8536_v16 = vadd.f32 %v2976_v2, %v11927_v55  ;;  %v2978_v62 = vpop.f32.mrb[219].mxu0  ;;  %3631 = vmatmul.mubr.bf16.gmra.mrb[84].mxu1 %v3369_v27  ;;  %v3255_v58 = vmax.f32 %v8534_v12, 0.0 }
 0x4f5   : > { %v8537_v39 = vadd.f32 %v2978_v62, %v11933_v46  ;;  %v3256_v42 = vmax.f32 %v8535_v50, 0.0 }
 0x4f6   : > { %v3257_v31 = vmax.f32 %v8536_v16, 0.0 }
 0x4f7   : > { %v3258_v51 = vmax.f32 %v8537_v39, 0.0 }
 0x4f8   : > { %v3371_v24 = vpack.c.bf16 %v3257_v31, %v3255_v58 }
 0x4f9   : > { %v2982_v18 = vpop.f32.mrb[220].mxu0  ;;  %v3372_v25 = vpack.c.bf16 %v3258_v51, %v3256_v42 }
 0x4fa   : > { %v8538_v10 = vadd.f32 %v2982_v18, %v11927_v55  ;;  %v2984_v1 = vpop.f32.mrb[221].mxu0 }
 0x4fb   : > { %v8539_v54 = vadd.f32 %v2984_v1, %v11933_v46  ;;  %v2986_v57 = vpop.f32.mrb[222].mxu0  ;;  %3638 = vmatprep.mubr.bf16.mxu1 %v3372_v25 }
 0x4fc   : > { %v8540_v56 = vadd.f32 %v2986_v57, %v11927_v55  ;;  %v2988_v5 = vpop.f32.mrb[223].mxu0  ;;  %3639 = vmatmul.mubr.bf16.gmra.mrb[88].mxu1 %v3371_v24  ;;  %v3259_v13 = vmax.f32 %v8538_v10, 0.0 }
 0x4fd   : > { %v8541_v44 = vadd.f32 %v2988_v5, %v11933_v46  ;;  %v3260_v52 = vmax.f32 %v8539_v54, 0.0 }
 0x4fe   : > { %v3261_v15 = vmax.f32 %v8540_v56, 0.0 }
 0x4ff   : > { %v3262_v14 = vmax.f32 %v8541_v44, 0.0 }
 0x500   : > { %v3373_v29 = vpack.c.bf16 %v3261_v15, %v3259_v13 }
 0x501   : > { %v2992_v21 = vpop.f32.mrb[224].mxu0  ;;  %v3374_v60 = vpack.c.bf16 %v3262_v14, %v3260_v52 }
 0x502   : > { %v8542_v0 = vadd.f32 %v2992_v21, %v11927_v55  ;;  %v2994_v8 = vpop.f32.mrb[225].mxu0 }
 0x503   : > { %v8543_v49 = vadd.f32 %v2994_v8, %v11933_v46  ;;  %v2996_v9 = vpop.f32.mrb[226].mxu0  ;;  %3646 = vmatprep.mubr.bf16.mxu1 %v3374_v60 }
 0x504   : > { %v8544_v61 = vadd.f32 %v2996_v9, %v11927_v55  ;;  %v2998_v59 = vpop.f32.mrb[227].mxu0  ;;  %3647 = vmatmul.mubr.bf16.gmra.mrb[92].mxu1 %v3373_v29  ;;  %v3263_v3 = vmax.f32 %v8542_v0, 0.0 }
 0x505   : > { %v8545_v63 = vadd.f32 %v2998_v59, %v11933_v46  ;;  %v3264_v4 = vmax.f32 %v8543_v49, 0.0 }
 0x506   : > { %v3265_v11 = vmax.f32 %v8544_v61, 0.0 }
 0x507   : > { %v3266_v19 = vmax.f32 %v8545_v63, 0.0 }
 0x508   : > { %v3375_v17 = vpack.c.bf16 %v3265_v11, %v3263_v3 }
 0x509   : > { %v3002_v26 = vpop.f32.mrb[228].mxu0  ;;  %v3376_v28 = vpack.c.bf16 %v3266_v19, %v3264_v4 }
 0x50a   : > { %v8546_v41 = vadd.f32 %v3002_v26, %v11927_v55  ;;  %v3004_v53 = vpop.f32.mrb[229].mxu0 }
 0x50b   : > { %v8547_v7 = vadd.f32 %v3004_v53, %v11933_v46  ;;  %v3006_v35 = vpop.f32.mrb[230].mxu0  ;;  %3654 = vmatprep.mubr.bf16.mxu1 %v3376_v28 }
 0x50c   : > { %v8548_v30 = vadd.f32 %v3006_v35, %v11927_v55  ;;  %v3008_v48 = vpop.f32.mrb[231].mxu0  ;;  %3655 = vmatmul.mubr.bf16.gmra.mrb[96].mxu1 %v3375_v17  ;;  %v3267_v36 = vmax.f32 %v8546_v41, 0.0 }
 0x50d   : > { %v8549_v22 = vadd.f32 %v3008_v48, %v11933_v46  ;;  %v3268_v37 = vmax.f32 %v8547_v7, 0.0 }
 0x50e   : > { %v3269_v47 = vmax.f32 %v8548_v30, 0.0 }
 0x50f   : > { %v3270_v45 = vmax.f32 %v8549_v22, 0.0 }
 0x510   : > { %v3377_v27 = vpack.c.bf16 %v3269_v47, %v3267_v36 }
 0x511   : > { %v3012_v43 = vpop.f32.mrb[232].mxu0  ;;  %v3378_v38 = vpack.c.bf16 %v3270_v45, %v3268_v37 }
 0x512   : > { %v8550_v12 = vadd.f32 %v3012_v43, %v11927_v55  ;;  %v3014_v6 = vpop.f32.mrb[233].mxu0 }
 0x513   : > { %v8551_v50 = vadd.f32 %v3014_v6, %v11933_v46  ;;  %v3016_v2 = vpop.f32.mrb[234].mxu0  ;;  %3662 = vmatprep.mubr.bf16.mxu1 %v3378_v38 }
 0x514   : > { %v8552_v16 = vadd.f32 %v3016_v2, %v11927_v55  ;;  %v3018_v62 = vpop.f32.mrb[235].mxu0  ;;  %3663 = vmatmul.mubr.bf16.gmra.mrb[100].mxu1 %v3377_v27  ;;  %v3271_v58 = vmax.f32 %v8550_v12, 0.0 }
 0x515   : > { %v8553_v39 = vadd.f32 %v3018_v62, %v11933_v46  ;;  %v3272_v42 = vmax.f32 %v8551_v50, 0.0 }
 0x516   : > { %v3273_v31 = vmax.f32 %v8552_v16, 0.0 }
 0x517   : > { %v3274_v51 = vmax.f32 %v8553_v39, 0.0 }
 0x518   : > { %v3379_v24 = vpack.c.bf16 %v3273_v31, %v3271_v58 }
 0x519   : > { %v3022_v18 = vpop.f32.mrb[236].mxu0  ;;  %v3380_v25 = vpack.c.bf16 %v3274_v51, %v3272_v42 }
 0x51a   : > { %v8554_v10 = vadd.f32 %v3022_v18, %v11927_v55  ;;  %v3024_v1 = vpop.f32.mrb[237].mxu0 }
 0x51b   : > { %v8555_v54 = vadd.f32 %v3024_v1, %v11933_v46  ;;  %v3026_v57 = vpop.f32.mrb[238].mxu0  ;;  %3670 = vmatprep.mubr.bf16.mxu1 %v3380_v25 }
 0x51c   : > { %v8556_v56 = vadd.f32 %v3026_v57, %v11927_v55  ;;  %v3028_v5 = vpop.f32.mrb[239].mxu0  ;;  %3671 = vmatmul.mubr.bf16.gmra.mrb[104].mxu1 %v3379_v24  ;;  %v3275_v13 = vmax.f32 %v8554_v10, 0.0 }
 0x51d   : > { %v8557_v44 = vadd.f32 %v3028_v5, %v11933_v46  ;;  %v3276_v52 = vmax.f32 %v8555_v54, 0.0 }
 0x51e   : > { %v3277_v15 = vmax.f32 %v8556_v56, 0.0 }
 0x51f   : > { %v3278_v14 = vmax.f32 %v8557_v44, 0.0  ;;  %v9264_v44 = vld [vmem:[#allocation10] ss:$8 sps:$4 sm:$0xff]  }
 0x520   : > { %v3381_v29 = vpack.c.bf16 %v3277_v15, %v3275_v13  ;;  %v9266_v13 = vld [vmem:[#allocation10 + $0x4] ss:$8 sps:$4 sm:$0xff]  }
 0x521   : > { %v3032_v21 = vpop.f32.mrb[240].mxu0  ;;  %v3382_v60 = vpack.c.bf16 %v3278_v14, %v3276_v52  ;;  %4928 = vmatprep.subr.bf16.mxu0 %v9266_v13  ;;  %v9269_v13 = vld [vmem:[#allocation10 + $0x14] ss:$8 sps:$4 sm:$0xff]  }
 0x522   : > { %v8558_v0 = vadd.f32 %v3032_v21, %v11927_v55  ;;  %v3034_v8 = vpop.f32.mrb[241].mxu0  ;;  %4929 = vmatpush1.bf16.msra.mxu0 %v9264_v44  ;;  %v9267_v44 = vld [vmem:[#allocation10 + $0x10] ss:$8 sps:$4 sm:$0xff]  }
 0x523   : > { %v8559_v49 = vadd.f32 %v3034_v8, %v11933_v46  ;;  %v3036_v9 = vpop.f32.mrb[242].mxu0  ;;  %3678 = vmatprep.mubr.bf16.mxu1 %v3382_v60  ;;  %4930 = vmatprep.subr.bf16.mxu0 %v9269_v13  ;;  %v9272_v13 = vld [vmem:[#allocation10 + $0x24] ss:$8 sps:$4 sm:$0xff]  }
 0x524   : > { %v8560_v61 = vadd.f32 %v3036_v9, %v11927_v55  ;;  %v3038_v59 = vpop.f32.mrb[243].mxu0  ;;  %3679 = vmatmul.mubr.bf16.gmra.mrb[108].mxu1 %v3381_v29  ;;  %v3279_v3 = vmax.f32 %v8558_v0, 0.0 }
 0x525   : > { %v8561_v63 = vadd.f32 %v3038_v59, %v11933_v46  ;;  %v3280_v4 = vmax.f32 %v8559_v49, 0.0 }
 0x526   : > { %v3281_v11 = vmax.f32 %v8560_v61, 0.0  ;;  %4931 = vmatpush1.bf16.msra.mxu0 %v9267_v44  ;;  %v9270_v44 = vld [vmem:[#allocation10 + $0x20] ss:$8 sps:$4 sm:$0xff]  }
 0x527   : > { %v3282_v19 = vmax.f32 %v8561_v63, 0.0  ;;  %4932 = vmatprep.subr.bf16.mxu0 %v9272_v13  ;;  %v9275_v13 = vld [vmem:[#allocation10 + $0x34] ss:$8 sps:$4 sm:$0xff]  }
 0x528   : > { %v3383_v17 = vpack.c.bf16 %v3281_v11, %v3279_v3 }
 0x529   : > { %v3042_v26 = vpop.f32.mrb[244].mxu0  ;;  %v3384_v28 = vpack.c.bf16 %v3282_v19, %v3280_v4 }
 0x52a   : > { %v8562_v41 = vadd.f32 %v3042_v26, %v11927_v55  ;;  %v3044_v53 = vpop.f32.mrb[245].mxu0  ;;  %4933 = vmatpush1.bf16.msra.mxu0 %v9270_v44  ;;  %v9273_v44 = vld [vmem:[#allocation10 + $0x30] ss:$8 sps:$4 sm:$0xff]  }
 0x52b   : > { %v8563_v7 = vadd.f32 %v3044_v53, %v11933_v46  ;;  %v3046_v35 = vpop.f32.mrb[246].mxu0  ;;  %3686 = vmatprep.mubr.bf16.mxu1 %v3384_v28  ;;  %4934 = vmatprep.subr.bf16.mxu0 %v9275_v13 }
 0x52c   : > { %v8564_v30 = vadd.f32 %v3046_v35, %v11927_v55  ;;  %v3048_v48 = vpop.f32.mrb[247].mxu0  ;;  %3687 = vmatmul.mubr.bf16.gmra.mrb[112].mxu1 %v3383_v17  ;;  %v3283_v36 = vmax.f32 %v8562_v41, 0.0 }
 0x52d   : > { %v8565_v22 = vadd.f32 %v3048_v48, %v11933_v46  ;;  %v3284_v37 = vmax.f32 %v8563_v7, 0.0 }
 0x52e   : > { %v3285_v47 = vmax.f32 %v8564_v30, 0.0  ;;  %4935 = vmatpush1.bf16.msra.mxu0 %v9273_v44 }
 0x52f   : > { %v3286_v45 = vmax.f32 %v8565_v22, 0.0 }
 0x530   : > { %v3385_v27 = vpack.c.bf16 %v3285_v47, %v3283_v36 }
 0x531   : > { %v3052_v43 = vpop.f32.mrb[248].mxu0  ;;  %v3386_v38 = vpack.c.bf16 %v3286_v45, %v3284_v37 }
 0x532   : > { %v8566_v12 = vadd.f32 %v3052_v43, %v11927_v55  ;;  %v3054_v6 = vpop.f32.mrb[249].mxu0 }
 0x533   : > { %v8567_v50 = vadd.f32 %v3054_v6, %v11933_v46  ;;  %v3056_v2 = vpop.f32.mrb[250].mxu0  ;;  %3694 = vmatprep.mubr.bf16.mxu1 %v3386_v38 }
 0x534   : > { %v8568_v16 = vadd.f32 %v3056_v2, %v11927_v55  ;;  %v3058_v62 = vpop.f32.mrb[251].mxu0  ;;  %3695 = vmatmul.mubr.bf16.gmra.mrb[116].mxu1 %v3385_v27  ;;  %v3287_v58 = vmax.f32 %v8566_v12, 0.0 }
 0x535   : > { %v8569_v39 = vadd.f32 %v3058_v62, %v11933_v46  ;;  %v3288_v42 = vmax.f32 %v8567_v50, 0.0 }
 0x536   : > { %v3289_v31 = vmax.f32 %v8568_v16, 0.0 }
 0x537   : > { %v3290_v51 = vmax.f32 %v8569_v39, 0.0 }
 0x538   : > { %v3387_v24 = vpack.c.bf16 %v3289_v31, %v3287_v58 }
 0x539   : > { %v3062_v18 = vpop.f32.mrb[252].mxu0  ;;  %v3388_v25 = vpack.c.bf16 %v3290_v51, %v3288_v42 }
 0x53a   : > { %v8570_v10 = vadd.f32 %v3062_v18, %v11927_v55  ;;  %v3064_v1 = vpop.f32.mrb[253].mxu0 }
 0x53b   : > { %v8571_v54 = vadd.f32 %v3064_v1, %v11933_v46  ;;  %v3066_v57 = vpop.f32.mrb[254].mxu0  ;;  %3702 = vmatprep.mubr.bf16.mxu1 %v3388_v25 }
 0x53c   : > { %v8572_v56 = vadd.f32 %v3066_v57, %v11927_v55  ;;  %v3068_v5 = vpop.f32.mrb[255].mxu0  ;;  %3703 = vmatmul.mubr.bf16.gmra.mrb[120].mxu1 %v3387_v24  ;;  %v3291_v52 = vmax.f32 %v8570_v10, 0.0 }
 0x53d   : > { %v8573_v15 = vadd.f32 %v3068_v5, %v11933_v46  ;;  %v3292_v29 = vmax.f32 %v8571_v54, 0.0 }
 0x53e   : > { %v3293_v14 = vmax.f32 %v8572_v56, 0.0 }
 0x53f   : > { %v3294_v21 = vmax.f32 %v8573_v15, 0.0 }
 0x540   : > { %v3389_v60 = vpack.c.bf16 %v3293_v14, %v3291_v52 }
 0x541   : > { %v3072_v0 = vpop.f32.mrb[0].mxu0  ;;  %v3390_v8 = vpack.c.bf16 %v3294_v21, %v3292_v29 }
 0x542   : > { %v8574_v49 = vadd.f32 %v3072_v0, %v11927_v55  ;;  %v3074_v9 = vpop.f32.mrb[1].mxu0 }
 0x543   : > { %v8575_v61 = vadd.f32 %v3074_v9, %v11933_v46  ;;  %v3076_v59 = vpop.f32.mrb[2].mxu0  ;;  %3710 = vmatprep.mubr.bf16.mxu1 %v3390_v8 }
 0x544   : > { %v8576_v63 = vadd.f32 %v3076_v59, %v11927_v55  ;;  %v3078_v3 = vpop.f32.mrb[3].mxu0  ;;  %3711 = vmatmul.mubr.bf16.gmra.mrb[124].mxu1 %v3389_v60  ;;  %v3295_v4 = vmax.f32 %v8574_v49, 0.0 }
 0x545   : > { %v8577_v11 = vadd.f32 %v3078_v3, %v11933_v46  ;;  %v3296_v17 = vmax.f32 %v8575_v61, 0.0 }
 0x546   : > { %v3297_v19 = vmax.f32 %v8576_v63, 0.0 }
 0x547   : > { %v3298_v26 = vmax.f32 %v8577_v11, 0.0 }
 0x548   : > { %v3391_v28 = vpack.c.bf16 %v3297_v19, %v3295_v4 }
 0x549   : > { %v3082_v41 = vpop.f32.mrb[4].mxu0  ;;  %v3392_v53 = vpack.c.bf16 %v3298_v26, %v3296_v17 }
 0x54a   : > { %v8578_v7 = vadd.f32 %v3082_v41, %v11927_v55  ;;  %v3084_v35 = vpop.f32.mrb[5].mxu0 }
 0x54b   : > { %v8579_v30 = vadd.f32 %v3084_v35, %v11933_v46  ;;  %v3086_v48 = vpop.f32.mrb[6].mxu0  ;;  %3718 = vmatprep.mubr.bf16.mxu1 %v3392_v53 }
 0x54c   : > { %v8580_v22 = vadd.f32 %v3086_v48, %v11927_v55  ;;  %v3088_v36 = vpop.f32.mrb[7].mxu0  ;;  %3719 = vmatmul.mubr.bf16.gmra.mrb[128].mxu1 %v3391_v28  ;;  %v3299_v40 = vmax.f32 %v8578_v7, 0.0 }
 0x54d   : > { %v8581_v47 = vadd.f32 %v3088_v36, %v11933_v46  ;;  %v3300_v37 = vmax.f32 %v8579_v30, 0.0 }
 0x54e   : > { %v3301_v33 = vmax.f32 %v8580_v22, 0.0 }
 0x54f   : > { %v3302_v45 = vmax.f32 %v8581_v47, 0.0 }
 0x550   : > { %v3393_v27 = vpack.c.bf16 %v3301_v33, %v3299_v40 }
 0x551   : > { %v3092_v43 = vpop.f32.mrb[8].mxu0  ;;  %v3394_v38 = vpack.c.bf16 %v3302_v45, %v3300_v37 }
 0x552   : > { %v8582_v12 = vadd.f32 %v3092_v43, %v11927_v55  ;;  %v3094_v6 = vpop.f32.mrb[9].mxu0 }
 0x553   : > { %v8583_v50 = vadd.f32 %v3094_v6, %v11933_v46  ;;  %v3096_v2 = vpop.f32.mrb[10].mxu0  ;;  %3726 = vmatprep.mubr.bf16.mxu1 %v3394_v38 }
 0x554   : > { %v8584_v16 = vadd.f32 %v3096_v2, %v11927_v55  ;;  %v3098_v62 = vpop.f32.mrb[11].mxu0  ;;  %3727 = vmatmul.mubr.bf16.gmra.mrb[132].mxu1 %v3393_v27  ;;  %v3303_v58 = vmax.f32 %v8582_v12, 0.0 }
 0x555   : > { %v8585_v39 = vadd.f32 %v3098_v62, %v11933_v46  ;;  %v3304_v42 = vmax.f32 %v8583_v50, 0.0 }
 0x556   : > { %v3305_v31 = vmax.f32 %v8584_v16, 0.0 }
 0x557   : > { %v3306_v51 = vmax.f32 %v8585_v39, 0.0 }
 0x558   : > { %v3395_v24 = vpack.c.bf16 %v3305_v31, %v3303_v58 }
 0x559   : > { %v3102_v18 = vpop.f32.mrb[12].mxu0  ;;  %v3396_v25 = vpack.c.bf16 %v3306_v51, %v3304_v42 }
 0x55a   : > { %v8586_v10 = vadd.f32 %v3102_v18, %v11927_v55  ;;  %v3104_v1 = vpop.f32.mrb[13].mxu0 }
 0x55b   : > { %v8587_v54 = vadd.f32 %v3104_v1, %v11933_v46  ;;  %v3106_v57 = vpop.f32.mrb[14].mxu0  ;;  %3734 = vmatprep.mubr.bf16.mxu1 %v3396_v25 }
 0x55c   : > { %v8588_v56 = vadd.f32 %v3106_v57, %v11927_v55  ;;  %v3108_v5 = vpop.f32.mrb[15].mxu0  ;;  %3735 = vmatmul.mubr.bf16.gmra.mrb[136].mxu1 %v3395_v24  ;;  %v3307_v52 = vmax.f32 %v8586_v10, 0.0 }
 0x55d   : > { %v8589_v15 = vadd.f32 %v3108_v5, %v11933_v46  ;;  %v3308_v29 = vmax.f32 %v8587_v54, 0.0 }
 0x55e   : > { %v3309_v14 = vmax.f32 %v8588_v56, 0.0 }
 0x55f   : > { %v3310_v21 = vmax.f32 %v8589_v15, 0.0 }
 0x560   : > { %v3397_v60 = vpack.c.bf16 %v3309_v14, %v3307_v52 }
 0x561   : > { %v3112_v0 = vpop.f32.mrb[16].mxu0  ;;  %v3398_v8 = vpack.c.bf16 %v3310_v21, %v3308_v29 }
 0x562   : > { %v8590_v49 = vadd.f32 %v3112_v0, %v11927_v55  ;;  %v3114_v9 = vpop.f32.mrb[17].mxu0 }
 0x563   : > { %v8591_v61 = vadd.f32 %v3114_v9, %v11933_v46  ;;  %v3116_v59 = vpop.f32.mrb[18].mxu0  ;;  %3742 = vmatprep.mubr.bf16.mxu1 %v3398_v8 }
 0x564   : > { %v8592_v63 = vadd.f32 %v3116_v59, %v11927_v55  ;;  %v3118_v3 = vpop.f32.mrb[19].mxu0  ;;  %3743 = vmatmul.mubr.bf16.gmra.mrb[140].mxu1 %v3397_v60  ;;  %v3311_v4 = vmax.f32 %v8590_v49, 0.0 }
 0x565   : > { %v8593_v11 = vadd.f32 %v3118_v3, %v11933_v46  ;;  %v3312_v17 = vmax.f32 %v8591_v61, 0.0 }
 0x566   : > { %v3313_v19 = vmax.f32 %v8592_v63, 0.0 }
 0x567   : > { %v3314_v26 = vmax.f32 %v8593_v11, 0.0 }
 0x568   : > { %v3399_v28 = vpack.c.bf16 %v3313_v19, %v3311_v4 }
 0x569   : > { %v3122_v41 = vpop.f32.mrb[20].mxu0  ;;  %v3400_v53 = vpack.c.bf16 %v3314_v26, %v3312_v17 }
 0x56a   : > { %v8594_v7 = vadd.f32 %v3122_v41, %v11927_v55  ;;  %v3124_v35 = vpop.f32.mrb[21].mxu0 }
 0x56b   : > { %v8595_v30 = vadd.f32 %v3124_v35, %v11933_v46  ;;  %v3126_v48 = vpop.f32.mrb[22].mxu0  ;;  %3750 = vmatprep.mubr.bf16.mxu1 %v3400_v53 }
 0x56c   : > { %v8596_v22 = vadd.f32 %v3126_v48, %v11927_v55  ;;  %v3128_v36 = vpop.f32.mrb[23].mxu0  ;;  %3751 = vmatmul.mubr.bf16.gmra.mrb[144].mxu1 %v3399_v28  ;;  %v3315_v40 = vmax.f32 %v8594_v7, 0.0 }
 0x56d   : > { %v8597_v47 = vadd.f32 %v3128_v36, %v11933_v46  ;;  %v3316_v37 = vmax.f32 %v8595_v30, 0.0 }
 0x56e   : > { %v3317_v33 = vmax.f32 %v8596_v22, 0.0 }
 0x56f   : > { %v3318_v45 = vmax.f32 %v8597_v47, 0.0 }
 0x570   : > { %v3401_v27 = vpack.c.bf16 %v3317_v33, %v3315_v40 }
 0x571   : > { %v3132_v43 = vpop.f32.mrb[24].mxu0  ;;  %v3402_v38 = vpack.c.bf16 %v3318_v45, %v3316_v37 }
 0x572   : > { %v8598_v12 = vadd.f32 %v3132_v43, %v11927_v55  ;;  %v3134_v6 = vpop.f32.mrb[25].mxu0 }
 0x573   : > { %v8599_v50 = vadd.f32 %v3134_v6, %v11933_v46  ;;  %v3136_v2 = vpop.f32.mrb[26].mxu0  ;;  %3758 = vmatprep.mubr.bf16.mxu1 %v3402_v38 }
 0x574   : > { %v8600_v16 = vadd.f32 %v3136_v2, %v11927_v55  ;;  %v3138_v62 = vpop.f32.mrb[27].mxu0  ;;  %3759 = vmatmul.mubr.bf16.gmra.mrb[148].mxu1 %v3401_v27  ;;  %v3319_v58 = vmax.f32 %v8598_v12, 0.0 }
 0x575   : > { %v8601_v39 = vadd.f32 %v3138_v62, %v11933_v46  ;;  %v3320_v42 = vmax.f32 %v8599_v50, 0.0 }
 0x576   : > { %v3321_v31 = vmax.f32 %v8600_v16, 0.0 }
 0x577   : > { %v3322_v51 = vmax.f32 %v8601_v39, 0.0 }
 0x578   : > { %v3403_v24 = vpack.c.bf16 %v3321_v31, %v3319_v58 }
 0x579   : > { %v3142_v18 = vpop.f32.mrb[28].mxu0  ;;  %v3404_v25 = vpack.c.bf16 %v3322_v51, %v3320_v42 }
 0x57a   : > { %v8602_v10 = vadd.f32 %v3142_v18, %v11927_v55  ;;  %v3144_v1 = vpop.f32.mrb[29].mxu0 }
 0x57b   : > { %v8603_v54 = vadd.f32 %v3144_v1, %v11933_v46  ;;  %v3146_v57 = vpop.f32.mrb[30].mxu0  ;;  %3766 = vmatprep.mubr.bf16.mxu1 %v3404_v25 }
 0x57c   : > { %v8604_v56 = vadd.f32 %v3146_v57, %v11927_v55  ;;  %v3148_v5 = vpop.f32.mrb[31].mxu0  ;;  %3767 = vmatmul.mubr.bf16.gmra.mrb[152].mxu1 %v3403_v24  ;;  %v3323_v52 = vmax.f32 %v8602_v10, 0.0 }
 0x57d   : > { %v8605_v15 = vadd.f32 %v3148_v5, %v11933_v46  ;;  %v3324_v29 = vmax.f32 %v8603_v54, 0.0 }
 0x57e   : > { %v3325_v14 = vmax.f32 %v8604_v56, 0.0 }
 0x57f   : > { %v3326_v21 = vmax.f32 %v8605_v15, 0.0 }
 0x580   : > { %v3405_v60 = vpack.c.bf16 %v3325_v14, %v3323_v52  ;;  %v12078_v52 = vld [vmem:[%s13878_s6] ss:$0 sm:$0xff] }
 0x581   : > { %v3152_v0 = vpop.f32.mrb[32].mxu0  ;;  %v3406_v8 = vpack.c.bf16 %v3326_v21, %v3324_v29 }
 0x582   : > { %v8606_v49 = vadd.f32 %v3152_v0, %v11927_v55  ;;  %v3154_v9 = vpop.f32.mrb[33].mxu0 }
 0x583   : > { %v8607_v61 = vadd.f32 %v3154_v9, %v11933_v46  ;;  %v3156_v59 = vpop.f32.mrb[34].mxu0  ;;  %3774 = vmatprep.mubr.bf16.mxu1 %v3406_v8 }
 0x584   : > { %v8608_v63 = vadd.f32 %v3156_v59, %v11927_v55  ;;  %v3158_v3 = vpop.f32.mrb[35].mxu0  ;;  %3775 = vmatmul.mubr.bf16.gmra.mrb[156].mxu1 %v3405_v60  ;;  %v3327_v4 = vmax.f32 %v8606_v49, 0.0 }
 0x585   : > { %v8609_v11 = vadd.f32 %v3158_v3, %v11933_v46  ;;  %v3328_v17 = vmax.f32 %v8607_v61, 0.0 }
 0x586   : > { %v3329_v19 = vmax.f32 %v8608_v63, 0.0 }
 0x587   : > { %v3330_v26 = vmax.f32 %v8609_v11, 0.0 }
 0x588   : > { %v3407_v28 = vpack.c.bf16 %v3329_v19, %v3327_v4 }
 0x589   : > { %v3162_v41 = vpop.f32.mrb[36].mxu0  ;;  %v3408_v53 = vpack.c.bf16 %v3330_v26, %v3328_v17 }
 0x58a   : > { %v8610_v7 = vadd.f32 %v3162_v41, %v11927_v55  ;;  %v3164_v35 = vpop.f32.mrb[37].mxu0 }
 0x58b   : > { %v8611_v30 = vadd.f32 %v3164_v35, %v11933_v46  ;;  %v3166_v48 = vpop.f32.mrb[38].mxu0  ;;  %3782 = vmatprep.mubr.bf16.mxu1 %v3408_v53 }
 0x58c   : > { %v8612_v22 = vadd.f32 %v3166_v48, %v11927_v55  ;;  %v3168_v36 = vpop.f32.mrb[39].mxu0  ;;  %3783 = vmatmul.mubr.bf16.gmra.mrb[160].mxu1 %v3407_v28  ;;  %v3331_v40 = vmax.f32 %v8610_v7, 0.0 }
 0x58d   : > { %v8613_v47 = vadd.f32 %v3168_v36, %v11933_v46  ;;  %v3332_v37 = vmax.f32 %v8611_v30, 0.0 }
 0x58e   : > { %v3333_v33 = vmax.f32 %v8612_v22, 0.0 }
 0x58f   : > { %v3334_v45 = vmax.f32 %v8613_v47, 0.0 }
 0x590   : > { %v3409_v27 = vpack.c.bf16 %v3333_v33, %v3331_v40 }
 0x591   : > { %v3172_v43 = vpop.f32.mrb[40].mxu0  ;;  %v3410_v38 = vpack.c.bf16 %v3334_v45, %v3332_v37 }
 0x592   : > { %v8614_v12 = vadd.f32 %v3172_v43, %v11927_v55  ;;  %v3174_v6 = vpop.f32.mrb[41].mxu0 }
 0x593   : > { %v8615_v50 = vadd.f32 %v3174_v6, %v11933_v46  ;;  %v3176_v2 = vpop.f32.mrb[42].mxu0  ;;  %3790 = vmatprep.mubr.bf16.mxu1 %v3410_v38 }
 0x594   : > { %v8616_v16 = vadd.f32 %v3176_v2, %v11927_v55  ;;  %v3178_v62 = vpop.f32.mrb[43].mxu0  ;;  %3791 = vmatmul.mubr.bf16.gmra.mrb[164].mxu1 %v3409_v27  ;;  %v3335_v58 = vmax.f32 %v8614_v12, 0.0 }
 0x595   : > { %v8617_v39 = vadd.f32 %v3178_v62, %v11933_v46  ;;  %v3336_v42 = vmax.f32 %v8615_v50, 0.0 }
 0x596   : > { %v3337_v31 = vmax.f32 %v8616_v16, 0.0 }
 0x597   : > { %v3338_v51 = vmax.f32 %v8617_v39, 0.0 }
 0x598   : > { %v3411_v24 = vpack.c.bf16 %v3337_v31, %v3335_v58 }
 0x599   : > { %v3182_v18 = vpop.f32.mrb[44].mxu0  ;;  %v3412_v25 = vpack.c.bf16 %v3338_v51, %v3336_v42 }
 0x59a   : > { %v8618_v10 = vadd.f32 %v3182_v18, %v11927_v55  ;;  %v3184_v1 = vpop.f32.mrb[45].mxu0 }
 0x59b   : > { %v8619_v54 = vadd.f32 %v3184_v1, %v11933_v46  ;;  %v3186_v57 = vpop.f32.mrb[46].mxu0  ;;  %3798 = vmatprep.mubr.bf16.mxu1 %v3412_v25 }
 0x59c   : > { %v8620_v56 = vadd.f32 %v3186_v57, %v11927_v55  ;;  %v3188_v5 = vpop.f32.mrb[47].mxu0  ;;  %3799 = vmatmul.mubr.bf16.gmra.mrb[168].mxu1 %v3411_v24  ;;  %v3339_v14 = vmax.f32 %v8618_v10, 0.0 }
 0x59d   : > { %v8621_v15 = vadd.f32 %v3188_v5, %v11933_v46  ;;  %v3340_v21 = vmax.f32 %v8619_v54, 0.0 }
 0x59e   : > { %v3341_v29 = vmax.f32 %v8620_v56, 0.0 }
 0x59f   : > { %v3342_v60 = vmax.f32 %v8621_v15, 0.0  ;;  %v3592_v0 = vpop.f32.mrb[64].mxu1 }
 0x5a0   : > { %v3593_v8 = vadd.f32 %v12078_v52, %v3592_v0  ;;  %v3594_v49 = vpop.f32.mrb[65].mxu1  ;;  %v3413_v9 = vpack.c.bf16 %v3341_v29, %v3339_v14 }
 0x5a1   : > { %v3192_v61 = vpop.f32.mrb[48].mxu0  ;;  %v3595_v59 = vpop.f32.mrb[66].mxu1  ;;  %v3414_v63 = vpack.c.bf16 %v3342_v60, %v3340_v21 }
 0x5a2   : > { %v8622_v3 = vadd.f32 %v3192_v61, %v11927_v55  ;;  %v3596_v11 = vadd.f32 %v12078_v52, %v3595_v59  ;;  %v3194_v4 = vpop.f32.mrb[49].mxu0  ;;  %v3597_v19 = vpop.f32.mrb[67].mxu1  ;;  %v3847_v28 = vmax.f32 %v3593_v8, 0.0 }
 0x5a3   : > { %v8623_v17 = vadd.f32 %v3194_v4, %v11933_v46  ;;  %v3196_v26 = vpop.f32.mrb[50].mxu0  ;;  %3806 = vmatprep.mubr.bf16.mxu1 %v3414_v63 }
 0x5a4   : > { %v3848_v41 = vmax.f32 %v3596_v11, 0.0  ;;  %v8624_v53 = vadd.f32 %v3196_v26, %v11927_v55  ;;  %v3198_v7 = vpop.f32.mrb[51].mxu0  ;;  %3807 = vmatmul.mubr.bf16.gmra.mrb[172].mxu1 %v3413_v9  ;;  %v3343_v30 = vmax.f32 %v8622_v3, 0.0 }
 0x5a5   : > { %v8625_v35 = vadd.f32 %v3198_v7, %v11933_v46  ;;  %v3344_v36 = vmax.f32 %v8623_v17, 0.0 }
 0x5a6   : > { %v12086_v48 = vpack.c.bf16 %v3848_v41, %v3847_v28  ;;  %v3345_v22 = vmax.f32 %v8624_v53, 0.0 }
 0x5a7   : > { %v3346_v47 = vmax.f32 %v8625_v35, 0.0  ;;  %v3600_v40 = vpop.f32.mrb[68].mxu1 }
 0x5a8   : > { %v3601_v33 = vadd.f32 %v12078_v52, %v3600_v40  ;;  %v3602_v37 = vpop.f32.mrb[69].mxu1  ;;  %v3415_v45 = vpack.c.bf16 %v3345_v22, %v3343_v30 }
 0x5a9   : > { %v3202_v27 = vpop.f32.mrb[52].mxu0  ;;  %v3603_v43 = vpop.f32.mrb[70].mxu1  ;;  %v3416_v38 = vpack.c.bf16 %v3346_v47, %v3344_v36 }
 0x5aa   : > { %v8626_v12 = vadd.f32 %v3202_v27, %v11927_v55  ;;  %v3604_v6 = vadd.f32 %v12078_v52, %v3603_v43  ;;  %v3204_v50 = vpop.f32.mrb[53].mxu0  ;;  %v3605_v2 = vpop.f32.mrb[71].mxu1  ;;  %v3849_v39 = vmax.f32 %v3601_v33, 0.0 }
 0x5ab   : > { %v8627_v16 = vadd.f32 %v3204_v50, %v11933_v46  ;;  %v3206_v62 = vpop.f32.mrb[54].mxu0  ;;  %3814 = vmatprep.mubr.bf16.mxu1 %v3416_v38 }
 0x5ac   : > { %v3850_v58 = vmax.f32 %v3604_v6, 0.0  ;;  %v8628_v31 = vadd.f32 %v3206_v62, %v11927_v55  ;;  %v3208_v42 = vpop.f32.mrb[55].mxu0  ;;  %3815 = vmatmul.mubr.bf16.gmra.mrb[176].mxu1 %v3415_v45  ;;  %v3347_v24 = vmax.f32 %v8626_v12, 0.0  ;;  %v9278_v62 = vld [vmem:[#allocation10 + $0x44] ss:$8 sps:$4 sm:$0xff]  }
 0x5ad   : > { %v8629_v51 = vadd.f32 %v3208_v42, %v11933_v46  ;;  %v3348_v10 = vmax.f32 %v8627_v16, 0.0  ;;  %v9276_v16 = vld [vmem:[#allocation10 + $0x40] ss:$8 sps:$4 sm:$0xff]   ;;  %4936 = vmatprep.subr.bf16.mxu0 %v9278_v62 }
 0x5ae   : > { %v3349_v18 = vmax.f32 %v8628_v31, 0.0  ;;  %v12094_v25 = vpack.c.bf16 %v3850_v58, %v3849_v39  ;;  %4937 = vmatpush1.bf16.msra.mxu0 %v9276_v16 }
 0x5af   : > { %v3350_v1 = vmax.f32 %v8629_v51, 0.0  ;;  %v3608_v54 = vpop.f32.mrb[72].mxu1 }
 0x5b0   : > { %v3609_v57 = vadd.f32 %v12078_v52, %v3608_v54  ;;  %v3610_v56 = vpop.f32.mrb[73].mxu1  ;;  %v3417_v5 = vpack.c.bf16 %v3349_v18, %v3347_v24 }
 0x5b1   : > { %v3212_v44 = vpop.f32.mrb[56].mxu0  ;;  %v3611_v13 = vpop.f32.mrb[74].mxu1  ;;  %v3418_v15 = vpack.c.bf16 %v3350_v1, %v3348_v10 }
 0x5b2   : > { %v8630_v14 = vadd.f32 %v3212_v44, %v11927_v55  ;;  %v3612_v29 = vadd.f32 %v12078_v52, %v3611_v13  ;;  %v3214_v21 = vpop.f32.mrb[57].mxu0  ;;  %v3613_v60 = vpop.f32.mrb[75].mxu1  ;;  %v3851_v49 = vmax.f32 %v3609_v57, 0.0 }
 0x5b3   : > { %v8631_v0 = vadd.f32 %v3214_v21, %v11933_v46  ;;  %v3216_v8 = vpop.f32.mrb[58].mxu0  ;;  %3822 = vmatprep.mubr.bf16.mxu1 %v3418_v15 }
 0x5b4   : > { %v3852_v9 = vmax.f32 %v3612_v29, 0.0  ;;  %v8632_v61 = vadd.f32 %v3216_v8, %v11927_v55  ;;  %v3218_v59 = vpop.f32.mrb[59].mxu0  ;;  %3823 = vmatmul.mubr.bf16.gmra.mrb[180].mxu1 %v3417_v5  ;;  %v3351_v3 = vmax.f32 %v8630_v14, 0.0 }
 0x5b5   : > { %v8633_v63 = vadd.f32 %v3218_v59, %v11933_v46  ;;  %v3352_v19 = vmax.f32 %v8631_v0, 0.0 }
 0x5b6   : > { %v3353_v11 = vmax.f32 %v8632_v61, 0.0  ;;  %v12102_v4 = vpack.c.bf16 %v3852_v9, %v3851_v49 }
 0x5b7   : > { %v3354_v17 = vmax.f32 %v8633_v63, 0.0  ;;  %v3616_v26 = vpop.f32.mrb[76].mxu1 }
 0x5b8   : > { %v3617_v28 = vadd.f32 %v12078_v52, %v3616_v26  ;;  %v3618_v41 = vpop.f32.mrb[77].mxu1  ;;  %v3419_v53 = vpack.c.bf16 %v3353_v11, %v3351_v3 }
 0x5b9   : > { %v3222_v7 = vpop.f32.mrb[60].mxu0  ;;  %v3619_v35 = vpop.f32.mrb[78].mxu1  ;;  %v3420_v30 = vpack.c.bf16 %v3354_v17, %v3352_v19 }
 0x5ba   : > { %v8634_v22 = vadd.f32 %v3222_v7, %v11927_v55  ;;  %v3620_v36 = vadd.f32 %v12078_v52, %v3619_v35  ;;  %v3224_v47 = vpop.f32.mrb[61].mxu0  ;;  %v3621_v40 = vpop.f32.mrb[79].mxu1  ;;  %v3853_v45 = vmax.f32 %v3617_v28, 0.0 }
 0x5bb   : > { %v8635_v33 = vadd.f32 %v3224_v47, %v11933_v46  ;;  %v3226_v37 = vpop.f32.mrb[62].mxu0  ;;  %3830 = vmatprep.mubr.bf16.mxu1 %v3420_v30  ;;  %v9279_v30 = vld [vmem:[#allocation10 + $0x50] ss:$8 sps:$4 sm:$0xff]  }
 0x5bc   : > { %v3854_v27 = vmax.f32 %v3620_v36, 0.0  ;;  %v8636_v43 = vadd.f32 %v3226_v37, %v11927_v55  ;;  %v3228_v38 = vpop.f32.mrb[63].mxu0  ;;  %3831 = vmatmul.mubr.bf16.gmra.mrb[184].mxu1 %v3419_v53  ;;  %v3355_v6 = vmax.f32 %v8634_v22, 0.0 }
 0x5bd   : > { %v8637_v12 = vadd.f32 %v3228_v38, %v11933_v46  ;;  %v3356_v39 = vmax.f32 %v8635_v33, 0.0 }
 0x5be   : > { %v3357_v50 = vmax.f32 %v8636_v43, 0.0  ;;  %v12110_v2 = vpack.c.bf16 %v3854_v27, %v3853_v45 }
 0x5bf   : > { %v3358_v58 = vmax.f32 %v8637_v12, 0.0  ;;  %v3624_v31 = vpop.f32.mrb[80].mxu1 }
 0x5c0   : > { %v3625_v42 = vadd.f32 %v12078_v52, %v3624_v31  ;;  %v3626_v51 = vpop.f32.mrb[81].mxu1  ;;  %v3421_v24 = vpack.c.bf16 %v3357_v50, %v3355_v6 }
 0x5c1   : > { %v3627_v18 = vpop.f32.mrb[82].mxu1  ;;  %v3422_v55 = vpack.c.bf16 %v3358_v58, %v3356_v39 }
 0x5c2   : > { %v3628_v10 = vadd.f32 %v12078_v52, %v3627_v18  ;;  %v3629_v46 = vpop.f32.mrb[83].mxu1  ;;  %v3855_v1 = vmax.f32 %v3625_v42, 0.0 }
 0x5c3   : > { %3838 = vmatprep.mubr.bf16.mxu1 %v3422_v55 }
 0x5c4   : > { %v3856_v54 = vmax.f32 %v3628_v10, 0.0  ;;  %3839 = vmatmul.mubr.bf16.gmra.mrb[188].mxu1 %v3421_v24 }
 0x5c5   : > { %4083 = vmatprep.mubr.bf16.mxu1 %v14383_v23 }
 0x5c6   : > { %v3915_v57 = vpack.c.bf16 %v3856_v54, %v3855_v1 }
 0x5c7   : > { %v3632_v56 = vpop.f32.mrb[84].mxu1 }
 0x5c8   : > { %v3633_v5 = vadd.f32 %v12078_v52, %v3632_v56  ;;  %v3634_v44 = vpop.f32.mrb[85].mxu1 }
 0x5c9   : > { %v3635_v13 = vpop.f32.mrb[86].mxu1 }
 0x5ca   : > { %v3636_v15 = vadd.f32 %v12078_v52, %v3635_v13  ;;  %v3637_v14 = vpop.f32.mrb[87].mxu1  ;;  %v3857_v29 = vmax.f32 %v3633_v5, 0.0 }
 0x5cc   : > { %v3858_v21 = vmax.f32 %v3636_v15, 0.0  ;;  %4084 = vmatmul.mubr.bf16.vlgmr.msra.gmra.mrb[192].mxu1 %v12086_v48 }
 0x5cd   : > { %4093 = vmatprep.mubr.bf16.mxu1 %v14383_v23 }
 0x5ce   : > { %v3916_v60 = vpack.c.bf16 %v3858_v21, %v3857_v29  ;;  %v9282_v29 = vld [vmem:[#allocation10 + $0x60] ss:$8 sps:$4 sm:$0xff]   ;;  %v9284_v21 = vld [vmem:[#allocation10 + $0x64] ss:$8 sps:$4 sm:$0xff]  }
 0x5cf   : > { %v3640_v0 = vpop.f32.mrb[88].mxu1 }
 0x5d0   : > { %v3641_v8 = vadd.f32 %v12078_v52, %v3640_v0  ;;  %v3642_v49 = vpop.f32.mrb[89].mxu1 }
 0x5d1   : > { %v3643_v9 = vpop.f32.mrb[90].mxu1 }
 0x5d2   : > { %v3644_v61 = vadd.f32 %v12078_v52, %v3643_v9  ;;  %v3645_v59 = vpop.f32.mrb[91].mxu1  ;;  %v3859_v63 = vmax.f32 %v3641_v8, 0.0 }
 0x5d4   : > { %v3860_v3 = vmax.f32 %v3644_v61, 0.0  ;;  %4094 = vmatmul.mubr.bf16.gmra.mrb[196].mxu1 %v12094_v25  ;;  %v9281_v25 = vld [vmem:[#allocation10 + $0x54] ss:$8 sps:$4 sm:$0xff]  }
 0x5d5   : > { %4103 = vmatprep.mubr.bf16.mxu1 %v14383_v23  ;;  %4938 = vmatprep.subr.bf16.mxu0 %v9281_v25 }
 0x5d6   : > { %v3917_v11 = vpack.c.bf16 %v3860_v3, %v3859_v63  ;;  %4939 = vmatpush1.bf16.msra.mxu0 %v9279_v30 }
 0x5d7   : > { %v3648_v19 = vpop.f32.mrb[92].mxu1  ;;  %4940 = vmatprep.subr.bf16.mxu0 %v9284_v21 }
 0x5d8   : > { %v3649_v48 = vadd.f32 %v12078_v52, %v3648_v19  ;;  %v3650_v17 = vpop.f32.mrb[93].mxu1 }
 0x5d9   : > { %v3651_v26 = vpop.f32.mrb[94].mxu1 }
 0x5da   : > { %v3652_v28 = vadd.f32 %v12078_v52, %v3651_v26  ;;  %v3653_v41 = vpop.f32.mrb[95].mxu1  ;;  %v3861_v53 = vmax.f32 %v3649_v48, 0.0  ;;  %4941 = vmatpush1.bf16.msra.mxu0 %v9282_v29 }
 0x5dc   : > { %v3862_v7 = vmax.f32 %v3652_v28, 0.0  ;;  %4104 = vmatmul.mubr.bf16.gmra.mrb[200].mxu1 %v12102_v4 }
 0x5dd   : > { %4113 = vmatprep.mubr.bf16.mxu1 %v14383_v23 }
 0x5de   : > { %v3918_v35 = vpack.c.bf16 %v3862_v7, %v3861_v53 }
 0x5df   : > { %v3656_v22 = vpop.f32.mrb[96].mxu1 }
 0x5e0   : > { %v3657_v36 = vadd.f32 %v12078_v52, %v3656_v22  ;;  %v3658_v47 = vpop.f32.mrb[97].mxu1 }
 0x5e1   : > { %v3659_v40 = vpop.f32.mrb[98].mxu1 }
 0x5e2   : > { %v3660_v33 = vadd.f32 %v12078_v52, %v3659_v40  ;;  %v3661_v37 = vpop.f32.mrb[99].mxu1  ;;  %v3863_v45 = vmax.f32 %v3657_v36, 0.0 }
 0x5e4   : > { %v3864_v27 = vmax.f32 %v3660_v33, 0.0  ;;  %4114 = vmatmul.mubr.bf16.gmra.mrb[204].mxu1 %v12110_v2 }
 0x5e5   : > { %4123 = vmatprep.mubr.bf16.mxu1 %v14383_v23 }
 0x5e6   : > { %v3919_v4 = vpack.c.bf16 %v3864_v27, %v3863_v45 }
 0x5e7   : > { %v3664_v43 = vpop.f32.mrb[100].mxu1 }
 0x5e8   : > { %v3665_v38 = vadd.f32 %v12078_v52, %v3664_v43  ;;  %v3666_v12 = vpop.f32.mrb[101].mxu1 }
 0x5e9   : > { %v3667_v6 = vpop.f32.mrb[102].mxu1 }
 0x5ea   : > { %v3668_v50 = vadd.f32 %v12078_v52, %v3667_v6  ;;  %v3669_v16 = vpop.f32.mrb[103].mxu1  ;;  %v3865_v62 = vmax.f32 %v3665_v38, 0.0  ;;  %v9285_v6 = vld [vmem:[#allocation11] ss:$16 sps:$4 sm:$0xff]  }
 0x5ec   : > { %v3866_v39 = vmax.f32 %v3668_v50, 0.0  ;;  %4124 = vmatmul.mubr.bf16.gmra.mrb[208].mxu1 %v3915_v57  ;;  %v9287_v50 = vld [vmem:[#allocation11 + $0x4] ss:$16 sps:$4 sm:$0xff]  }
 0x5ed   : > { %4133 = vmatprep.mubr.bf16.mxu1 %v14383_v23  ;;  %5879 = vmatprep.subr.bf16.mxu1 %v9287_v50 }
 0x5ee   : > { %v3920_v58 = vpack.c.bf16 %v3866_v39, %v3865_v62  ;;  %5880 = vmatpush1.bf16.msra.mxu1 %v9285_v6 }
 0x5ef   : > { %v3672_v31 = vpop.f32.mrb[104].mxu1 }
 0x5f0   : > { %v3673_v2 = vadd.f32 %v12078_v52, %v3672_v31  ;;  %v3674_v42 = vpop.f32.mrb[105].mxu1  ;;  %v9290_v31 = vld [vmem:[#allocation10 + $0x74] ss:$8 sps:$4 sm:$0xff]  }
 0x5f1   : > { %v3675_v51 = vpop.f32.mrb[106].mxu1  ;;  %4942 = vmatprep.subr.bf16.mxu0 %v9290_v31 }
 0x5f2   : > { %v3676_v24 = vadd.f32 %v12078_v52, %v3675_v51  ;;  %v3677_v18 = vpop.f32.mrb[107].mxu1  ;;  %v3867_v55 = vmax.f32 %v3673_v2, 0.0 }
 0x5f4   : > { %v3868_v10 = vmax.f32 %v3676_v24, 0.0  ;;  %4134 = vmatmul.mubr.bf16.gmra.mrb[212].mxu1 %v3916_v60 }
 0x5f5   : > { %4143 = vmatprep.mubr.bf16.mxu1 %v14383_v23 }
 0x5f6   : > { %v3921_v46 = vpack.c.bf16 %v3868_v10, %v3867_v55 }
 0x5f7   : > { %v3680_v1 = vpop.f32.mrb[108].mxu1 }
 0x5f8   : > { %v3681_v54 = vadd.f32 %v12078_v52, %v3680_v1  ;;  %v3682_v57 = vpop.f32.mrb[109].mxu1 }
 0x5f9   : > { %v3683_v56 = vpop.f32.mrb[110].mxu1 }
 0x5fa   : > { %v3684_v5 = vadd.f32 %v12078_v52, %v3683_v56  ;;  %v3685_v44 = vpop.f32.mrb[111].mxu1  ;;  %v3869_v13 = vmax.f32 %v3681_v54, 0.0 }
 0x5fc   : > { %v3870_v15 = vmax.f32 %v3684_v5, 0.0  ;;  %4144 = vmatmul.mubr.bf16.gmra.mrb[216].mxu1 %v3917_v11 }
 0x5fd   : > { %4153 = vmatprep.mubr.bf16.mxu1 %v14383_v23 }
 0x5fe   : > { %v12140_v14 = vpack.c.bf16 %v3870_v15, %v3869_v13 }
 0x5ff   : > { %v3688_v60 = vpop.f32.mrb[112].mxu1 }
 0x600   : > { %v3689_v0 = vadd.f32 %v12078_v52, %v3688_v60  ;;  %v3690_v8 = vpop.f32.mrb[113].mxu1 }
 0x601   : > { %v3691_v49 = vpop.f32.mrb[114].mxu1 }
 0x602   : > { %v3692_v9 = vadd.f32 %v12078_v52, %v3691_v49  ;;  %v3693_v61 = vpop.f32.mrb[115].mxu1  ;;  %v3871_v59 = vmax.f32 %v3689_v0, 0.0 }
 0x604   : > { %v3872_v63 = vmax.f32 %v3692_v9, 0.0  ;;  %4154 = vmatmul.mubr.bf16.gmra.mrb[220].mxu1 %v3918_v35 }
 0x605   : > { %4163 = vmatprep.mubr.bf16.mxu1 %v14383_v23 }
 0x606   : > { %v3923_v3 = vpack.c.bf16 %v3872_v63, %v3871_v59 }
 0x607   : > { %v3696_v11 = vpop.f32.mrb[116].mxu1 }
 0x608   : > { %v3697_v19 = vadd.f32 %v12078_v52, %v3696_v11  ;;  %v3698_v48 = vpop.f32.mrb[117].mxu1 }
 0x609   : > { %v3699_v17 = vpop.f32.mrb[118].mxu1  ;;  %v9291_v48 = vld [vmem:[#allocation11 + $0x20] ss:$16 sps:$4 sm:$0xff]  }
 0x60a   : > { %v3700_v26 = vadd.f32 %v12078_v52, %v3699_v17  ;;  %v3701_v28 = vpop.f32.mrb[119].mxu1  ;;  %v3873_v41 = vmax.f32 %v3697_v19, 0.0  ;;  %v9293_v17 = vld [vmem:[#allocation11 + $0x24] ss:$16 sps:$4 sm:$0xff]  }
 0x60b   : > { %5881 = vmatprep.subr.bf16.mxu1 %v9293_v17  ;;  %v9300_v17 = vld [vmem:[#allocation11 + $0x80] ss:$16 sps:$4 sm:$0xff]  }
 0x60c   : > { %v3874_v53 = vmax.f32 %v3700_v26, 0.0  ;;  %4164 = vmatmul.mubr.bf16.gmra.mrb[224].mxu1 %v3919_v4 }
 0x60d   : > { %4173 = vmatprep.mubr.bf16.mxu1 %v14383_v23  ;;  %5882 = vmatpush1.bf16.msra.mxu1 %v9291_v48 }
 0x60e   : > { %v3924_v7 = vpack.c.bf16 %v3874_v53, %v3873_v41 }
 0x60f   : > { %v3704_v30 = vpop.f32.mrb[120].mxu1 }
 0x610   : > { %v3705_v35 = vadd.f32 %v12078_v52, %v3704_v30  ;;  %v3706_v25 = vpop.f32.mrb[121].mxu1 }
 0x611   : > { %v3707_v22 = vpop.f32.mrb[122].mxu1 }
 0x612   : > { %v3708_v36 = vadd.f32 %v12078_v52, %v3707_v22  ;;  %v3709_v47 = vpop.f32.mrb[123].mxu1  ;;  %v3875_v40 = vmax.f32 %v3705_v35, 0.0 }
 0x614   : > { %v3876_v33 = vmax.f32 %v3708_v36, 0.0  ;;  %4174 = vmatmul.mubr.bf16.gmra.mrb[228].mxu1 %v3920_v58  ;;  %v9288_v58 = vld [vmem:[#allocation10 + $0x70] ss:$8 sps:$4 sm:$0xff]  }
 0x615   : > { %4183 = vmatprep.mubr.bf16.mxu1 %v14383_v23  ;;  %4943 = vmatpush1.bf16.msra.mxu0 %v9288_v58 }
 0x616   : > { %v12151_v37 = vpack.c.bf16 %v3876_v33, %v3875_v40 }
 0x617   : > { %v3712_v45 = vpop.f32.mrb[124].mxu1 }
 0x618   : > { %v3713_v27 = vadd.f32 %v12078_v52, %v3712_v45  ;;  %v3714_v4 = vpop.f32.mrb[125].mxu1 }
 0x619   : > { %v3715_v43 = vpop.f32.mrb[126].mxu1 }
 0x61a   : > { %v3716_v38 = vadd.f32 %v12078_v52, %v3715_v43  ;;  %v3717_v12 = vpop.f32.mrb[127].mxu1  ;;  %v3877_v16 = vmax.f32 %v3713_v27, 0.0 }
 0x61b   : > { %v9296_v12 = vld [vmem:[#allocation11 + $0x44] ss:$16 sps:$4 sm:$0xff]  }
 0x61c   : > { %v3878_v62 = vmax.f32 %v3716_v38, 0.0  ;;  %4184 = vmatmul.mubr.bf16.gmra.mrb[232].mxu1 %v3921_v46  ;;  %v9294_v38 = vld [vmem:[#allocation11 + $0x40] ss:$16 sps:$4 sm:$0xff]   ;;  %5883 = vmatprep.subr.bf16.mxu1 %v9296_v12 }
 0x61d   : > { %4193 = vmatprep.mubr.bf16.mxu1 %v14383_v23  ;;  %5884 = vmatpush1.bf16.msra.mxu1 %v9294_v38  ;;  %v9303_v12 = vld [vmem:[#allocation11 + $0xa0] ss:$16 sps:$4 sm:$0xff]  }
 0x61e   : > { %v3926_v39 = vpack.c.bf16 %v3878_v62, %v3877_v16 }
 0x61f   : > { %v3720_v2 = vpop.f32.mrb[128].mxu1 }
 0x620   : > { %v3721_v42 = vadd.f32 %v12078_v52, %v3720_v2  ;;  %v3722_v51 = vpop.f32.mrb[129].mxu1 }
 0x621   : > { %v3723_v24 = vpop.f32.mrb[130].mxu1 }
 0x622   : > { %v3724_v18 = vadd.f32 %v12078_v52, %v3723_v24  ;;  %v3725_v55 = vpop.f32.mrb[131].mxu1  ;;  %v3879_v10 = vmax.f32 %v3721_v42, 0.0 }
 0x624   : > { %v3880_v1 = vmax.f32 %v3724_v18, 0.0  ;;  %4194 = vmatmul.mubr.bf16.gmra.mrb[236].mxu1 %v12140_v14 }
 0x625   : > { %4203 = vmatprep.mubr.bf16.mxu1 %v14383_v23 }
 0x626   : > { %v3927_v46 = vpack.c.bf16 %v3880_v1, %v3879_v10 }
 0x627   : > { %v3728_v54 = vpop.f32.mrb[132].mxu1 }
 0x628   : > { %v3729_v57 = vadd.f32 %v12078_v52, %v3728_v54  ;;  %v3730_v56 = vpop.f32.mrb[133].mxu1 }
 0x629   : > { %v3731_v5 = vpop.f32.mrb[134].mxu1  ;;  %v9297_v56 = vld [vmem:[#allocation11 + $0x60] ss:$16 sps:$4 sm:$0xff]  }
 0x62a   : > { %v3732_v44 = vadd.f32 %v12078_v52, %v3731_v5  ;;  %v3733_v13 = vpop.f32.mrb[135].mxu1  ;;  %v3881_v15 = vmax.f32 %v3729_v57, 0.0  ;;  %v9299_v5 = vld [vmem:[#allocation11 + $0x64] ss:$16 sps:$4 sm:$0xff]  }
 0x62b   : > { %5885 = vmatprep.subr.bf16.mxu1 %v9299_v5  ;;  %v9306_v5 = vld [vmem:[#allocation11 + $0xc0] ss:$16 sps:$4 sm:$0xff]  }
 0x62c   : > { %v3882_v29 = vmax.f32 %v3732_v44, 0.0  ;;  %4204 = vmatmul.mubr.bf16.gmra.mrb[240].mxu1 %v3923_v3 }
 0x62d   : > { %4213 = vmatprep.mubr.bf16.mxu1 %v14383_v23  ;;  %5886 = vmatpush1.bf16.msra.mxu1 %v9297_v56 }
 0x62e   : > { %v3928_v21 = vpack.c.bf16 %v3882_v29, %v3881_v15 }
 0x62f   : > { %v3736_v60 = vpop.f32.mrb[136].mxu1 }
 0x630   : > { %v3737_v14 = vadd.f32 %v12078_v52, %v3736_v60  ;;  %v3738_v0 = vpop.f32.mrb[137].mxu1 }
 0x631   : > { %v3739_v8 = vpop.f32.mrb[138].mxu1 }
 0x632   : > { %v3740_v49 = vadd.f32 %v12078_v52, %v3739_v8  ;;  %v3741_v9 = vpop.f32.mrb[139].mxu1  ;;  %v3883_v61 = vmax.f32 %v3737_v14, 0.0 }
 0x634   : > { %v3884_v59 = vmax.f32 %v3740_v49, 0.0  ;;  %4214 = vmatmul.mubr.bf16.gmra.mrb[244].mxu1 %v3924_v7 }
 0x635   : > { %4223 = vmatprep.mubr.bf16.mxu1 %v14383_v23 }
 0x636   : > { %v12166_v63 = vpack.c.bf16 %v3884_v59, %v3883_v61 }
 0x637   : > { %v3744_v11 = vpop.f32.mrb[140].mxu1 }
 0x638   : > { %v3745_v3 = vadd.f32 %v12078_v52, %v3744_v11  ;;  %v3746_v19 = vpop.f32.mrb[141].mxu1 }
 0x639   : > { %v3747_v26 = vpop.f32.mrb[142].mxu1 }
 0x63a   : > { %v3748_v28 = vadd.f32 %v12078_v52, %v3747_v26  ;;  %v3749_v41 = vpop.f32.mrb[143].mxu1  ;;  %v3885_v53 = vmax.f32 %v3745_v3, 0.0  ;;  %v9302_v26 = vld [vmem:[#allocation11 + $0x84] ss:$16 sps:$4 sm:$0xff]  }
 0x63b   : > { %5887 = vmatprep.subr.bf16.mxu1 %v9302_v26  ;;  %v9309_v26 = vld [vmem:[#allocation11 + $0xe0] ss:$16 sps:$4 sm:$0xff]  }
 0x63c   : > { %v3886_v30 = vmax.f32 %v3748_v28, 0.0  ;;  %4224 = vmatmul.mubr.bf16.gmra.mrb[248].mxu1 %v12151_v37 }
 0x63d   : > { %4233 = vmatprep.mubr.bf16.mxu1 %v14383_v23  ;;  %5888 = vmatpush1.bf16.msra.mxu1 %v9300_v17 }
 0x63e   : > { %v3930_v7 = vpack.c.bf16 %v3886_v30, %v3885_v53 }
 0x63f   : > { %v3752_v35 = vpop.f32.mrb[144].mxu1 }
 0x640   : > { %v3753_v25 = vadd.f32 %v12078_v52, %v3752_v35  ;;  %v3754_v22 = vpop.f32.mrb[145].mxu1 }
 0x641   : > { %v3755_v36 = vpop.f32.mrb[146].mxu1 }
 0x642   : > { %v3756_v47 = vadd.f32 %v12078_v52, %v3755_v36  ;;  %v3757_v40 = vpop.f32.mrb[147].mxu1  ;;  %v3887_v33 = vmax.f32 %v3753_v25, 0.0 }
 0x644   : > { %v3888_v45 = vmax.f32 %v3756_v47, 0.0  ;;  %4234 = vmatmul.mubr.bf16.gmra.mrb[252].mxu1 %v3926_v39 }
 0x645   : > { %4243 = vmatprep.mubr.bf16.mxu1 %v14383_v23 }
 0x646   : > { %v12175_v27 = vpack.c.bf16 %v3888_v45, %v3887_v33 }
 0x647   : > { %v3760_v4 = vpop.f32.mrb[148].mxu1 }
 0x648   : > { %v3761_v37 = vadd.f32 %v12078_v52, %v3760_v4  ;;  %v3762_v43 = vpop.f32.mrb[149].mxu1 }
 0x649   : > { %v3763_v6 = vpop.f32.mrb[150].mxu1 }
 0x64a   : > { %v3764_v50 = vadd.f32 %v12078_v52, %v3763_v6  ;;  %v3765_v16 = vpop.f32.mrb[151].mxu1  ;;  %v3889_v62 = vmax.f32 %v3761_v37, 0.0  ;;  %v9305_v6 = vld [vmem:[#allocation11 + $0xa4] ss:$16 sps:$4 sm:$0xff]  }
 0x64b   : > { %5889 = vmatprep.subr.bf16.mxu1 %v9305_v6 }
 0x64c   : > { %v3890_v58 = vmax.f32 %v3764_v50, 0.0  ;;  %4244 = vmatmul.mubr.bf16.gmra.mrb[0].mxu1 %v3927_v46 }
 0x64d   : > { %4253 = vmatprep.mubr.bf16.mxu1 %v14383_v23  ;;  %5890 = vmatpush1.bf16.msra.mxu1 %v9303_v12 }
 0x64e   : > { %v3932_v39 = vpack.c.bf16 %v3890_v58, %v3889_v62 }
 0x64f   : > { %v3768_v31 = vpop.f32.mrb[152].mxu1 }
 0x650   : > { %v3769_v2 = vadd.f32 %v12078_v52, %v3768_v31  ;;  %v3770_v42 = vpop.f32.mrb[153].mxu1 }
 0x651   : > { %v3771_v51 = vpop.f32.mrb[154].mxu1 }
 0x652   : > { %v3772_v24 = vadd.f32 %v12078_v52, %v3771_v51  ;;  %v3773_v18 = vpop.f32.mrb[155].mxu1  ;;  %v3891_v55 = vmax.f32 %v3769_v2, 0.0 }
 0x654   : > { %v3892_v10 = vmax.f32 %v3772_v24, 0.0  ;;  %4254 = vmatmul.mubr.bf16.gmra.mrb[4].mxu1 %v3928_v21 }
 0x655   : > { %4263 = vmatprep.mubr.bf16.mxu1 %v14383_v23 }
 0x656   : > { %v12183_v1 = vpack.c.bf16 %v3892_v10, %v3891_v55 }
 0x657   : > { %v3776_v54 = vpop.f32.mrb[156].mxu1 }
 0x658   : > { %v3777_v46 = vadd.f32 %v12078_v52, %v3776_v54  ;;  %v3778_v57 = vpop.f32.mrb[157].mxu1 }
 0x659   : > { %v3779_v44 = vpop.f32.mrb[158].mxu1 }
 0x65a   : > { %v3780_v13 = vadd.f32 %v12078_v52, %v3779_v44  ;;  %v3781_v15 = vpop.f32.mrb[159].mxu1  ;;  %v3893_v29 = vmax.f32 %v3777_v46, 0.0  ;;  %v9308_v44 = vld [vmem:[#allocation11 + $0xc4] ss:$16 sps:$4 sm:$0xff]  }
 0x65b   : > { %5891 = vmatprep.subr.bf16.mxu1 %v9308_v44 }
 0x65c   : > { %v3894_v60 = vmax.f32 %v3780_v13, 0.0  ;;  %4264 = vmatmul.mubr.bf16.gmra.mrb[8].mxu1 %v12166_v63 }
 0x65d   : > { %4273 = vmatprep.mubr.bf16.mxu1 %v14383_v23  ;;  %5892 = vmatpush1.bf16.msra.mxu1 %v9306_v5 }
 0x65e   : > { %v3934_v21 = vpack.c.bf16 %v3894_v60, %v3893_v29 }
 0x65f   : > { %v3784_v14 = vpop.f32.mrb[160].mxu1 }
 0x660   : > { %v3785_v0 = vadd.f32 %v12078_v52, %v3784_v14  ;;  %v3786_v8 = vpop.f32.mrb[161].mxu1 }
 0x661   : > { %v3787_v49 = vpop.f32.mrb[162].mxu1 }
 0x662   : > { %v3788_v9 = vadd.f32 %v12078_v52, %v3787_v49  ;;  %v3789_v61 = vpop.f32.mrb[163].mxu1  ;;  %v3895_v59 = vmax.f32 %v3785_v0, 0.0 }
 0x664   : > { %v3896_v11 = vmax.f32 %v3788_v9, 0.0  ;;  %4274 = vmatmul.mubr.bf16.gmra.mrb[12].mxu1 %v3930_v7 }
 0x665   : > { %4283 = vmatprep.mubr.bf16.mxu1 %v14383_v23 }
 0x666   : > { %v12192_v3 = vpack.c.bf16 %v3896_v11, %v3895_v59 }
 0x667   : > { %v3792_v19 = vpop.f32.mrb[164].mxu1 }
 0x668   : > { %v3793_v63 = vadd.f32 %v12078_v52, %v3792_v19  ;;  %v3794_v48 = vpop.f32.mrb[165].mxu1 }
 0x669   : > { %v3795_v28 = vpop.f32.mrb[166].mxu1 }
 0x66a   : > { %v3796_v41 = vadd.f32 %v12078_v52, %v3795_v28  ;;  %v3797_v53 = vpop.f32.mrb[167].mxu1  ;;  %v3897_v30 = vmax.f32 %v3793_v63, 0.0  ;;  %v9311_v28 = vld [vmem:[#allocation11 + $0xe4] ss:$16 sps:$4 sm:$0xff]  }
 0x66b   : > { %5893 = vmatprep.subr.bf16.mxu1 %v9311_v28 }
 0x66c   : > { %v3898_v35 = vmax.f32 %v3796_v41, 0.0  ;;  %4284 = vmatmul.mubr.bf16.gmra.mrb[16].mxu1 %v12175_v27 }
 0x66d   : > { %4293 = vmatprep.mubr.bf16.mxu1 %v14383_v23  ;;  %5894 = vmatpush1.bf16.msra.mxu1 %v9309_v26  ;;  %v9317_v26 = vld [vmem:[#allocation11 + $0x124] ss:$16 sps:$4 sm:$0xff]  }
 0x66e   : > { %v3936_v7 = vpack.c.bf16 %v3898_v35, %v3897_v30  ;;  %v3959_v35 = vld [vmem:[%s13880_s8] sm:$0x3] }
 0x66f   : > { %v3800_v25 = vpop.f32.mrb[168].mxu1 }
 0x670   : > { %v3801_v22 = vadd.f32 %v12078_v52, %v3800_v25  ;;  %v3802_v36 = vpop.f32.mrb[169].mxu1 }
 0x671   : > { %v3803_v47 = vpop.f32.mrb[170].mxu1 }
 0x672   : > { %v3804_v40 = vadd.f32 %v12078_v52, %v3803_v47  ;;  %v3805_v33 = vpop.f32.mrb[171].mxu1  ;;  %v3899_v45 = vmax.f32 %v3801_v22, 0.0  ;;  %v12230_v22 = vrot.slane %v3959_v35, %v11921_v20 }
 0x674   : > { %v3900_v4 = vmax.f32 %v3804_v40, 0.0  ;;  %4294 = vmatmul.mubr.bf16.gmra.mrb[20].mxu1 %v3932_v39 }
 0x675   : > { %4303 = vmatprep.mubr.bf16.mxu1 %v14383_v23 }
 0x676   : > { %v12201_v37 = vpack.c.bf16 %v3900_v4, %v3899_v45 }
 0x677   : > { %v3808_v43 = vpop.f32.mrb[172].mxu1 }
 0x678   : > { %v3809_v27 = vadd.f32 %v12078_v52, %v3808_v43  ;;  %v3810_v38 = vpop.f32.mrb[173].mxu1 }
 0x679   : > { %v3811_v50 = vpop.f32.mrb[174].mxu1 }
 0x67a   : > { %v3812_v16 = vadd.f32 %v12078_v52, %v3811_v50  ;;  %v3813_v62 = vpop.f32.mrb[175].mxu1  ;;  %v3901_v58 = vmax.f32 %v3809_v27, 0.0  ;;  %v9312_v50 = vld [vmem:[#allocation11 + $0x100] ss:$16 sps:$4 sm:$0xff]  }
 0x67c   : > { %v3902_v31 = vmax.f32 %v3812_v16, 0.0  ;;  %4304 = vmatmul.mubr.bf16.gmra.mrb[24].mxu1 %v12183_v1  ;;  %v9314_v16 = vld [vmem:[#allocation11 + $0x104] ss:$16 sps:$4 sm:$0xff]  }
 0x67d   : > { %4313 = vmatprep.mubr.bf16.mxu1 %v14383_v23  ;;  %5895 = vmatprep.subr.bf16.mxu1 %v9314_v16 }
 0x67e   : > { %v3938_v39 = vpack.c.bf16 %v3902_v31, %v3901_v58  ;;  %5896 = vmatpush1.bf16.msra.mxu1 %v9312_v50 }
 0x67f   : > { %v3816_v2 = vpop.f32.mrb[176].mxu1  ;;  %5897 = vmatprep.subr.bf16.mxu1 %v9317_v26 }
 0x680   : > { %v3817_v42 = vadd.f32 %v12078_v52, %v3816_v2  ;;  %v3818_v51 = vpop.f32.mrb[177].mxu1 }
 0x681   : > { %v3819_v24 = vpop.f32.mrb[178].mxu1 }
 0x682   : > { %v3820_v18 = vadd.f32 %v12078_v52, %v3819_v24  ;;  %v3821_v55 = vpop.f32.mrb[179].mxu1  ;;  %v3903_v10 = vmax.f32 %v3817_v42, 0.0  ;;  %v12250_v24 = vrot.slane %v3959_v35, %v11915_v32 }
 0x684   : > { %v3904_v54 = vmax.f32 %v3820_v18, 0.0  ;;  %4314 = vmatmul.mubr.bf16.gmra.mrb[28].mxu1 %v3934_v21  ;;  %v4596_v18 = vld [vmem:[%s12245_s15] sm:$0xff] }
 0x685   : > { %4323 = vmatprep.mubr.bf16.mxu1 %v14383_v23 }
 0x686   : > { %v12210_v46 = vpack.c.bf16 %v3904_v54, %v3903_v10 }
 0x687   : > { %v3824_v57 = vpop.f32.mrb[180].mxu1 }
 0x688   : > { %v3825_v1 = vadd.f32 %v12078_v52, %v3824_v57  ;;  %v3826_v56 = vpop.f32.mrb[181].mxu1 }
 0x689   : > { %v3827_v13 = vpop.f32.mrb[182].mxu1 }
 0x68a   : > { %v3828_v15 = vadd.f32 %v12078_v52, %v3827_v13  ;;  %v3829_v29 = vpop.f32.mrb[183].mxu1  ;;  %v3905_v60 = vmax.f32 %v3825_v1, 0.0  ;;  %v4597_v1 = vld [vmem:[%s12245_s15 + $0x8] sm:$0xff] }
 0x68c   : > { %v3906_v14 = vmax.f32 %v3828_v15, 0.0  ;;  %4324 = vmatmul.mubr.bf16.gmra.mrb[32].mxu1 %v12192_v3 }
 0x68d   : > { %4333 = vmatprep.mubr.bf16.mxu1 %v14383_v23 }
 0x68e   : > { %v12216_v21 = vpack.c.bf16 %v3906_v14, %v3905_v60 }
 0x68f   : > { %v3832_v0 = vpop.f32.mrb[184].mxu1 }
 0x690   : > { %v3833_v8 = vadd.f32 %v12078_v52, %v3832_v0  ;;  %v3834_v49 = vpop.f32.mrb[185].mxu1 }
 0x691   : > { %v3835_v9 = vpop.f32.mrb[186].mxu1 }
 0x692   : > { %v3836_v61 = vadd.f32 %v12078_v52, %v3835_v9  ;;  %v3837_v59 = vpop.f32.mrb[187].mxu1  ;;  %v3907_v11 = vmax.f32 %v3833_v8, 0.0 }
 0x693   : > { %v4598_v59 = vld [vmem:[%s12245_s15 + $0x10] sm:$0xff] }
 0x694   : > { %v3908_v19 = vmax.f32 %v3836_v61, 0.0  ;;  %4334 = vmatmul.mubr.bf16.gmra.mrb[36].mxu1 %v3936_v7 }
 0x695   : > { %4343 = vmatprep.mubr.bf16.mxu1 %v14383_v23 }
 0x696   : > { %v12221_v63 = vpack.c.bf16 %v3908_v19, %v3907_v11 }
 0x697   : > { %v3840_v3 = vpop.f32.mrb[188].mxu1 }
 0x698   : > { %v3841_v48 = vadd.f32 %v12078_v52, %v3840_v3  ;;  %v3842_v17 = vpop.f32.mrb[189].mxu1 }
 0x699   : > { %v3843_v41 = vpop.f32.mrb[190].mxu1  ;;  %v9315_v17 = vld [vmem:[#allocation11 + $0x120] ss:$16 sps:$4 sm:$0xff]  }
 0x69a   : > { %v3844_v53 = vadd.f32 %v12078_v52, %v3843_v41  ;;  %v3845_v30 = vpop.f32.mrb[191].mxu1  ;;  %v3909_v7 = vmax.f32 %v3841_v48, 0.0  ;;  %v4599_v41 = vld [vmem:[%s12245_s15 + $0x18] sm:$0xff]  ;;  %5898 = vmatpush1.bf16.msra.mxu1 %v9315_v17 }
 0x69c   : > { %v3910_v25 = vmax.f32 %v3844_v53, 0.0  ;;  %4344 = vmatmul.mubr.bf16.gmra.mrb[40].mxu1 %v12201_v37 }
 0x69d   : > { %4353 = vmatprep.mubr.bf16.mxu1 %v14383_v23 }
 0x69e   : > { %v12233_v36 = vpack.c.bf16 %v3910_v25, %v3909_v7 }
 0x69f   : > { %v4085_v47 = vpop.f32.mrb[192].mxu1 }
 0x6a0   : > { %v4087_v52 = vpop.f32.mrb[193].mxu1  ;;  %v4086_v5 = vadd.f32 %v4085_v47, %v12250_v24 }
 0x6a1   : > { %v4088_v40 = vadd.f32 %v4087_v52, %v12230_v22  ;;  %v4089_v33 = vpop.f32.mrb[194].mxu1 }
 0x6a2   : > { %v4091_v45 = vpop.f32.mrb[195].mxu1  ;;  %v4090_v0 = vadd.f32 %v4089_v33, %v12250_v24 }
 0x6a3   : > { %v4404_v4 = vmul.f32 0.5, %v4088_v40  ;;  %v4092_v43 = vadd.f32 %v4091_v45, %v12230_v22 }
 0x6a4   : > { %4354 = vmatmul.mubr.bf16.gmra.mrb[44].mxu1 %v3938_v39 }
 0x6a5   : > { %v4468_v27 = vmul.f32 1.442695, %v4404_v4  ;;  %v4405_v38 = vmul.f32 0.5, %v4092_v43  ;;  %4363 = vmatprep.mubr.bf16.mxu1 %v14383_v23 }
 0x6a7   : > { %9416 = vpow2.f32 %v4468_v27  ;;  %v4470_v37 = vmul.f32 1.442695, %v4405_v38  ;;  %v4095_v12 = vpop.f32.mrb[196].mxu1  ;;  %v4600_v38 = vld [vmem:[%s12245_s15 + $0x20] sm:$0xff] }
 0x6a8   : > { %v4097_v6 = vpop.f32.mrb[197].mxu1  ;;  %v4096_v30 = vadd.f32 %v4095_v12, %v12250_v24 }
 0x6a9   : > { %9418 = vpow2.f32 %v4470_v37  ;;  %v4098_v62 = vadd.f32 %v4097_v6, %v12230_v22  ;;  %v4099_v58 = vpop.f32.mrb[198].mxu1 }
 0x6aa   : > { %v4101_v31 = vpop.f32.mrb[199].mxu1  ;;  %v4100_v33 = vadd.f32 %v4099_v58, %v12250_v24 }
 0x6ab   : > { %v4406_v2 = vmul.f32 0.5, %v4098_v62  ;;  %v4102_v39 = vadd.f32 %v4101_v31, %v12230_v22  ;;  %v4601_v62 = vld [vmem:[%s12245_s15 + $0x28] sm:$0xff] }
 0x6ac   : > { %4364 = vmatmul.mubr.bf16.gmra.mrb[48].mxu1 %v12210_v46 }
 0x6ad   : > { %v4472_v42 = vmul.f32 1.442695, %v4406_v2  ;;  %v4407_v51 = vmul.f32 0.5, %v4102_v39  ;;  %4373 = vmatprep.mubr.bf16.mxu1 %v14383_v23 }
 0x6af   : > { %9420 = vpow2.f32 %v4472_v42  ;;  %v4474_v55 = vmul.f32 1.442695, %v4407_v51  ;;  %v12253_v10 = vpop.f32.mrb[200].mxu1 }
 0x6b0   : > { %v4107_v54 = vpop.f32.mrb[201].mxu1 }
 0x6b1   : > { %v9417_v57 = vpop.eup %9416  ;;  %9422 = vpow2.f32 %v4474_v55  ;;  %v4108_v56 = vadd.f32 %v4107_v54, %v12230_v22  ;;  %v12257_v46 = vpop.f32.mrb[202].mxu1 }
 0x6b2   : > { %v4660_v44 = vmul.f32 %v9417_v57, %v4596_v18  ;;  %v4111_v13 = vpop.f32.mrb[203].mxu1  ;;  %v4110_v54 = vadd.f32 %v12257_v46, %v12250_v24 }
 0x6b3   : > { %v9419_v15 = vpop.eup %9418  ;;  %v4408_v29 = vmul.f32 0.5, %v4108_v56  ;;  %v4112_v60 = vadd.f32 %v4111_v13, %v12230_v22 }
 0x6b4   : > { %v4724_v14 = vadd.f32 %v4660_v44, %v4086_v5  ;;  %v4661_v8 = vmul.f32 %v9419_v15, %v4597_v1  ;;  %4374 = vmatmul.mubr.bf16.gmra.mrb[52].mxu1 %v12216_v21  ;;  %v4602_v5 = vld [vmem:[%s12245_s15 + $0x30] sm:$0xff] }
 0x6b5   : > { %v4476_v49 = vmul.f32 1.442695, %v4408_v29  ;;  %v4409_v9 = vmul.f32 0.5, %v4112_v60  ;;  %4383 = vmatprep.mubr.bf16.mxu1 %v14383_v23  ;;  %v9318_v60 = vld [vmem:[#allocation11 + $0x140] ss:$16 sps:$4 sm:$0xff]  }
 0x6b6   : > { %v4725_v61 = vadd.f32 %v4661_v8, %v4090_v0  ;;  %v4603_v8 = vld [vmem:[%s12245_s15 + $0x38] sm:$0xff] }
 0x6b7   : > { %9424 = vpow2.f32 %v4476_v49  ;;  %v4478_v11 = vmul.f32 1.442695, %v4409_v9  ;;  %v12265_v19 = vpop.f32.mrb[204].mxu1 }
 0x6b8   : > { %v4788_v3 = vpack.c.bf16 %v4725_v61, %v4724_v14  ;;  %v4117_v48 = vpop.f32.mrb[205].mxu1  ;;  %v9320_v14 = vld [vmem:[#allocation11 + $0x144] ss:$16 sps:$4 sm:$0xff]  }
 0x6b9   : > { %v9421_v28 = vpop.eup %9420  ;;  %9426 = vpow2.f32 %v4478_v11  ;;  %v4118_v53 = vadd.f32 %v4117_v48, %v12230_v22  ;;  %v12269_v21 = vpop.f32.mrb[206].mxu1  ;;  %5899 = vmatprep.subr.bf16.mxu1 %v9320_v14 }
 0x6ba   : > { %v4662_v35 = vmul.f32 %v9421_v28, %v4598_v59  ;;  %v4121_v7 = vpop.f32.mrb[207].mxu1  ;;  %4961 = vmatmul.mubr.bf16.vlgmr.msra.gmra.mrb[64].mxu0 %v4788_v3  ;;  %5900 = vmatpush1.bf16.msra.mxu1 %v9318_v60  ;;  %v4120_v17 = vadd.f32 %v12269_v21, %v12250_v24 }
 0x6bb   : > { %v9423_v25 = vpop.eup %9422  ;;  %v4410_v47 = vmul.f32 0.5, %v4118_v53  ;;  %v4122_v52 = vadd.f32 %v4121_v7, %v12230_v22  ;;  %4970 = vmatprep.mubr.bf16.mxu0 %v14383_v23  ;;  %v4604_v53 = vld [vmem:[%s12245_s15 + $0x40] sm:$0xff] }
 0x6bc   : > { %v4726_v40 = vadd.f32 %v4662_v35, %v4096_v30  ;;  %v4663_v45 = vmul.f32 %v9423_v25, %v4599_v41  ;;  %4384 = vmatmul.mubr.bf16.gmra.mrb[56].mxu1 %v12221_v63  ;;  %v4106_v63 = vadd.f32 %v12253_v10, %v12250_v24 }
 0x6bd   : > { %v4480_v4 = vmul.f32 1.442695, %v4410_v47  ;;  %v4411_v43 = vmul.f32 0.5, %v4122_v52  ;;  %4393 = vmatprep.mubr.bf16.mxu1 %v14383_v23  ;;  %v4605_v52 = vld [vmem:[%s12245_s15 + $0x48] sm:$0xff] }
 0x6be   : > { %v4727_v27 = vadd.f32 %v4663_v45, %v4100_v33 }
 0x6bf   : > { %9428 = vpow2.f32 %v4480_v4  ;;  %v4482_v37 = vmul.f32 1.442695, %v4411_v43  ;;  %v12278_v12 = vpop.f32.mrb[208].mxu1 }
 0x6c0   : > { %v4789_v6 = vpack.c.bf16 %v4727_v27, %v4726_v40  ;;  %v4127_v50 = vpop.f32.mrb[209].mxu1  ;;  %v4126_v21 = vadd.f32 %v12278_v12, %v12250_v24 }
 0x6c1   : > { %v9425_v16 = vpop.eup %9424  ;;  %9430 = vpow2.f32 %v4482_v37  ;;  %v4128_v58 = vadd.f32 %v4127_v50, %v12230_v22  ;;  %v12282_v31 = vpop.f32.mrb[210].mxu1 }
 0x6c2   : > { %v4664_v2 = vmul.f32 %v9425_v16, %v4600_v38  ;;  %v4131_v39 = vpop.f32.mrb[211].mxu1  ;;  %4971 = vmatmul.mubr.bf16.gmra.mrb[68].mxu0 %v4789_v6  ;;  %v4130_v6 = vadd.f32 %v12282_v31, %v12250_v24 }
 0x6c3   : > { %v9427_v42 = vpop.eup %9426  ;;  %v4412_v51 = vmul.f32 0.5, %v4128_v58  ;;  %v4132_v18 = vadd.f32 %v4131_v39, %v12230_v22  ;;  %4980 = vmatprep.mubr.bf16.mxu0 %v14383_v23 }
 0x6c4   : > { %v4728_v55 = vadd.f32 %v4664_v2, %v4106_v63  ;;  %v4665_v57 = vmul.f32 %v9427_v42, %v4601_v62  ;;  %4394 = vmatmul.mubr.bf16.gmra.mrb[60].mxu1 %v12233_v36  ;;  %v4116_v36 = vadd.f32 %v12265_v19, %v12250_v24  ;;  %v4606_v63 = vld [vmem:[%s12245_s15 + $0x50] sm:$0xff] }
 0x6c5   : > { %v4484_v1 = vmul.f32 1.442695, %v4412_v51  ;;  %v4413_v56 = vmul.f32 0.5, %v4132_v18  ;;  %v9321_v51 = vld [vmem:[#allocation11 + $0x160] ss:$16 sps:$4 sm:$0xff]  }
 0x6c6   : > { %v4729_v10 = vadd.f32 %v4665_v57, %v4110_v54  ;;  %v9323_v18 = vld [vmem:[#allocation11 + $0x164] ss:$16 sps:$4 sm:$0xff]   ;;  %v4607_v54 = vld [vmem:[%s12245_s15 + $0x58] sm:$0xff] }
 0x6c7   : > { %9432 = vpow2.f32 %v4484_v1  ;;  %v4486_v44 = vmul.f32 1.442695, %v4413_v56  ;;  %v12292_v13 = vpop.f32.mrb[212].mxu1  ;;  %5901 = vmatprep.subr.bf16.mxu1 %v9323_v18 }
 0x6c8   : > { %v4790_v15 = vpack.c.bf16 %v4729_v10, %v4728_v55  ;;  %v4137_v29 = vpop.f32.mrb[213].mxu1  ;;  %v4136_v31 = vadd.f32 %v12292_v13, %v12250_v24  ;;  %5902 = vmatpush1.bf16.msra.mxu1 %v9321_v51 }
 0x6c9   : > { %v9429_v0 = vpop.eup %9428  ;;  %9434 = vpow2.f32 %v4486_v44  ;;  %v4138_v46 = vadd.f32 %v4137_v29, %v12230_v22  ;;  %v12296_v49 = vpop.f32.mrb[214].mxu1 }
 0x6ca   : > { %v4666_v9 = vmul.f32 %v9429_v0, %v4602_v5  ;;  %v4141_v61 = vpop.f32.mrb[215].mxu1  ;;  %4981 = vmatmul.mubr.bf16.gmra.mrb[72].mxu0 %v4790_v15  ;;  %v4140_v60 = vadd.f32 %v12296_v49, %v12250_v24 }
 0x6cb   : > { %v9431_v59 = vpop.eup %9430  ;;  %v4414_v11 = vmul.f32 0.5, %v4138_v46  ;;  %v4142_v3 = vadd.f32 %v4141_v61, %v12230_v22  ;;  %4990 = vmatprep.mubr.bf16.mxu0 %v14383_v23  ;;  %v4608_v46 = vld [vmem:[%s12245_s15 + $0x60] sm:$0xff] }
 0x6cc   : > { %v4730_v48 = vadd.f32 %v4666_v9, %v4116_v36  ;;  %v4667_v26 = vmul.f32 %v9431_v59, %v4603_v8 }
 0x6cd   : > { %v4488_v28 = vmul.f32 1.442695, %v4414_v11  ;;  %v4415_v19 = vmul.f32 0.5, %v4142_v3  ;;  %v4609_v3 = vld [vmem:[%s12245_s15 + $0x68] sm:$0xff] }
 0x6ce   : > { %v4731_v41 = vadd.f32 %v4667_v26, %v4120_v17 }
 0x6cf   : > { %9436 = vpow2.f32 %v4488_v28  ;;  %v4490_v30 = vmul.f32 1.442695, %v4415_v19  ;;  %v4145_v35 = vpop.f32.mrb[216].mxu1 }
 0x6d0   : > { %v4791_v7 = vpack.c.bf16 %v4731_v41, %v4730_v48  ;;  %v4147_v25 = vpop.f32.mrb[217].mxu1  ;;  %v4146_v49 = vadd.f32 %v4145_v35, %v12250_v24 }
 0x6d1   : > { %v9433_v47 = vpop.eup %9432  ;;  %9438 = vpow2.f32 %v4490_v30  ;;  %v4148_v40 = vadd.f32 %v4147_v25, %v12230_v22  ;;  %v12307_v33 = vpop.f32.mrb[218].mxu1 }
 0x6d2   : > { %v4668_v45 = vmul.f32 %v9433_v47, %v4604_v53  ;;  %v4151_v4 = vpop.f32.mrb[219].mxu1  ;;  %4991 = vmatmul.mubr.bf16.gmra.mrb[76].mxu0 %v4791_v7  ;;  %v4150_v7 = vadd.f32 %v12307_v33, %v12250_v24 }
 0x6d3   : > { %v9435_v43 = vpop.eup %9434  ;;  %v4416_v27 = vmul.f32 0.5, %v4148_v40  ;;  %v4152_v38 = vadd.f32 %v4151_v4, %v12230_v22  ;;  %5000 = vmatprep.mubr.bf16.mxu0 %v14383_v23 }
 0x6d4   : > { %v4732_v37 = vadd.f32 %v4668_v45, %v4126_v21  ;;  %v4669_v50 = vmul.f32 %v9435_v43, %v4605_v52  ;;  %v4610_v21 = vld [vmem:[%s12245_s15 + $0x70] sm:$0xff] }
 0x6d5   : > { %v4492_v16 = vmul.f32 1.442695, %v4416_v27  ;;  %v4417_v62 = vmul.f32 0.5, %v4152_v38  ;;  %v9324_v27 = vld [vmem:[#allocation11 + $0x180] ss:$16 sps:$4 sm:$0xff]  }
 0x6d6   : > { %v4733_v58 = vadd.f32 %v4669_v50, %v4130_v6  ;;  %v9326_v38 = vld [vmem:[#allocation11 + $0x184] ss:$16 sps:$4 sm:$0xff]   ;;  %v4611_v6 = vld [vmem:[%s12245_s15 + $0x78] sm:$0xff] }
 0x6d7   : > { %9440 = vpow2.f32 %v4492_v16  ;;  %v4494_v12 = vmul.f32 1.442695, %v4417_v62  ;;  %v12316_v2 = vpop.f32.mrb[220].mxu1  ;;  %5903 = vmatprep.subr.bf16.mxu1 %v9326_v38 }
 0x6d8   : > { %v4792_v39 = vpack.c.bf16 %v4733_v58, %v4732_v37  ;;  %v4157_v42 = vpop.f32.mrb[221].mxu1  ;;  %v4156_v33 = vadd.f32 %v12316_v2, %v12250_v24  ;;  %5904 = vmatpush1.bf16.msra.mxu1 %v9324_v27 }
 0x6d9   : > { %v9437_v55 = vpop.eup %9436  ;;  %9442 = vpow2.f32 %v4494_v12  ;;  %v4158_v57 = vadd.f32 %v4157_v42, %v12230_v22  ;;  %v12320_v1 = vpop.f32.mrb[222].mxu1 }
 0x6da   : > { %v4670_v56 = vmul.f32 %v9437_v55, %v4606_v63  ;;  %v4161_v10 = vpop.f32.mrb[223].mxu1  ;;  %5001 = vmatmul.mubr.bf16.gmra.mrb[80].mxu0 %v4792_v39  ;;  %v4160_v51 = vadd.f32 %v12320_v1, %v12250_v24 }
 0x6db   : > { %v9439_v5 = vpop.eup %9438  ;;  %v4418_v44 = vmul.f32 0.5, %v4158_v57  ;;  %v4162_v15 = vadd.f32 %v4161_v10, %v12230_v22  ;;  %5010 = vmatprep.mubr.bf16.mxu0 %v14383_v23  ;;  %v4612_v57 = vld [vmem:[%s12245_s15 + $0x80] sm:$0xff] }
 0x6dc   : > { %v4734_v29 = vadd.f32 %v4670_v56, %v4136_v31  ;;  %v4671_v14 = vmul.f32 %v9439_v5, %v4607_v54 }
 0x6dd   : > { %v4496_v0 = vmul.f32 1.442695, %v4418_v44  ;;  %v4419_v13 = vmul.f32 0.5, %v4162_v15  ;;  %v4613_v15 = vld [vmem:[%s12245_s15 + $0x88] sm:$0xff] }
 0x6de   : > { %v4735_v8 = vadd.f32 %v4671_v14, %v4140_v60 }
 0x6df   : > { %9444 = vpow2.f32 %v4496_v0  ;;  %v4498_v36 = vmul.f32 1.442695, %v4419_v13  ;;  %v4165_v9 = vpop.f32.mrb[224].mxu1 }
 0x6e0   : > { %v4793_v61 = vpack.c.bf16 %v4735_v8, %v4734_v29  ;;  %v4167_v59 = vpop.f32.mrb[225].mxu1  ;;  %v4166_v1 = vadd.f32 %v4165_v9, %v12250_v24 }
 0x6e1   : > { %v9441_v11 = vpop.eup %9440  ;;  %9446 = vpow2.f32 %v4498_v36  ;;  %v4168_v48 = vadd.f32 %v4167_v59, %v12230_v22  ;;  %v12331_v17 = vpop.f32.mrb[226].mxu1 }
 0x6e2   : > { %v4672_v26 = vmul.f32 %v9441_v11, %v4608_v46  ;;  %v4171_v28 = vpop.f32.mrb[227].mxu1  ;;  %5011 = vmatmul.mubr.bf16.gmra.mrb[84].mxu0 %v4793_v61  ;;  %v4170_v61 = vadd.f32 %v12331_v17, %v12250_v24  ;;  %v9333_v17 = vld [vmem:[#allocation11 + $0x8] ss:$16 sps:$4 sm:$0xff]  }
 0x6e3   : > { %v9443_v19 = vpop.eup %9442  ;;  %v4420_v41 = vmul.f32 0.5, %v4168_v48  ;;  %v4172_v53 = vadd.f32 %v4171_v28, %v12230_v22  ;;  %5020 = vmatprep.mubr.bf16.mxu0 %v14383_v23 }
 0x6e4   : > { %v4736_v30 = vadd.f32 %v4672_v26, %v4146_v49  ;;  %v4673_v25 = vmul.f32 %v9443_v19, %v4609_v3  ;;  %v4614_v49 = vld [vmem:[%s12245_s15 + $0x90] sm:$0xff] }
 0x6e5   : > { %v4500_v47 = vmul.f32 1.442695, %v4420_v41  ;;  %v4421_v52 = vmul.f32 0.5, %v4172_v53  ;;  %v9327_v41 = vld [vmem:[#allocation11 + $0x1a0] ss:$16 sps:$4 sm:$0xff]  }
 0x6e6   : > { %v4737_v40 = vadd.f32 %v4673_v25, %v4150_v7  ;;  %v9329_v53 = vld [vmem:[#allocation11 + $0x1a4] ss:$16 sps:$4 sm:$0xff]   ;;  %v4615_v7 = vld [vmem:[%s12245_s15 + $0x98] sm:$0xff] }
 0x6e7   : > { %9448 = vpow2.f32 %v4500_v47  ;;  %v4502_v35 = vmul.f32 1.442695, %v4421_v52  ;;  %v12339_v45 = vpop.f32.mrb[228].mxu1  ;;  %v9335_v52 = vld [vmem:[#allocation11 + $0xc] ss:$16 sps:$4 sm:$0xff]   ;;  %5905 = vmatprep.subr.bf16.mxu1 %v9329_v53 }
 0x6e8   : > { %v4794_v4 = vpack.c.bf16 %v4737_v40, %v4736_v30  ;;  %v4177_v43 = vpop.f32.mrb[229].mxu1  ;;  %v4176_v40 = vadd.f32 %v12339_v45, %v12250_v24  ;;  %5906 = vmatpush1.bf16.msra.mxu1 %v9327_v41  ;;  %6232 = vmatprep.subr.bf16.mxu0 %v9335_v52  ;;  %v9338_v45 = vld [vmem:[#allocation11 + $0x2c] ss:$16 sps:$4 sm:$0xff]   ;;  %v9348_v53 = vld [vmem:[#allocation11 + $0x88] ss:$16 sps:$4 sm:$0xff]  }
 0x6e9   : > { %v9445_v37 = vpop.eup %9444  ;;  %9450 = vpow2.f32 %v4502_v35  ;;  %v4178_v50 = vadd.f32 %v4177_v43, %v12230_v22  ;;  %v12343_v16 = vpop.f32.mrb[230].mxu1  ;;  %6233 = vmatpush1.bf16.msra.mxu0 %v9333_v17 }
 0x6ea   : > { %v4674_v62 = vmul.f32 %v9445_v37, %v4610_v21  ;;  %v4181_v58 = vpop.f32.mrb[231].mxu1  ;;  %5021 = vmatmul.mubr.bf16.gmra.mrb[88].mxu0 %v4794_v4  ;;  %v4180_v37 = vadd.f32 %v12343_v16, %v12250_v24  ;;  %6234 = vmatprep.subr.bf16.mxu0 %v9338_v45  ;;  %v4617_v16 = vld [vmem:[%s12245_s15 + $0xa8] sm:$0xff]  ;;  %v4620_v45 = vld [vmem:[%s12245_s15 + $0xc0] sm:$0xff] }
 0x6eb   : > { %v9447_v63 = vpop.eup %9446  ;;  %v4422_v12 = vmul.f32 0.5, %v4178_v50  ;;  %v4182_v39 = vadd.f32 %v4181_v58, %v12230_v22  ;;  %5030 = vmatprep.mubr.bf16.mxu0 %v14383_v23 }
 0x6ec   : > { %v4738_v42 = vadd.f32 %v4674_v62, %v4156_v33  ;;  %v4675_v18 = vmul.f32 %v9447_v63, %v4611_v6  ;;  %v9336_v62 = vld [vmem:[#allocation11 + $0x28] ss:$16 sps:$4 sm:$0xff]   ;;  %v4616_v63 = vld [vmem:[%s12245_s15 + $0xa0] sm:$0xff] }
 0x6ed   : > { %v4504_v55 = vmul.f32 1.442695, %v4422_v12  ;;  %v4423_v2 = vmul.f32 0.5, %v4182_v39  ;;  %6235 = vmatpush1.bf16.msra.mxu0 %v9336_v62 }
 0x6ee   : > { %v4739_v54 = vadd.f32 %v4675_v18, %v4160_v51  ;;  %v9341_v18 = vld [vmem:[#allocation11 + $0x4c] ss:$16 sps:$4 sm:$0xff]  }
 0x6ef   : > { %9452 = vpow2.f32 %v4504_v55  ;;  %v4506_v31 = vmul.f32 1.442695, %v4423_v2  ;;  %v12352_v56 = vpop.f32.mrb[232].mxu1  ;;  %6236 = vmatprep.subr.bf16.mxu0 %v9341_v18  ;;  %v9354_v18 = vld [vmem:[#allocation11 + $0xc8] ss:$16 sps:$4 sm:$0xff]  }
 0x6f0   : > { %v4795_v10 = vpack.c.bf16 %v4739_v54, %v4738_v42  ;;  %v4187_v5 = vpop.f32.mrb[233].mxu1 }
 0x6f1   : > { %v9449_v44 = vpop.eup %9448  ;;  %9454 = vpow2.f32 %v4506_v31  ;;  %v4188_v29 = vadd.f32 %v4187_v5, %v12230_v22  ;;  %v12356_v60 = vpop.f32.mrb[234].mxu1  ;;  %v4186_v31 = vadd.f32 %v12352_v56, %v12250_v24 }
 0x6f2   : > { %v4676_v14 = vmul.f32 %v9449_v44, %v4612_v57  ;;  %v4191_v0 = vpop.f32.mrb[235].mxu1  ;;  %5031 = vmatmul.mubr.bf16.gmra.mrb[92].mxu0 %v4795_v10  ;;  %v9339_v57 = vld [vmem:[#allocation11 + $0x48] ss:$16 sps:$4 sm:$0xff]  }
 0x6f3   : > { %v9451_v13 = vpop.eup %9450  ;;  %v4424_v8 = vmul.f32 0.5, %v4188_v29  ;;  %v4192_v46 = vadd.f32 %v4191_v0, %v12230_v22  ;;  %5040 = vmatprep.mubr.bf16.mxu0 %v14383_v23  ;;  %6237 = vmatpush1.bf16.msra.mxu0 %v9339_v57  ;;  %v9347_v57 = vld [vmem:[#allocation11 + $0x1e4] ss:$16 sps:$4 sm:$0xff]  }
 0x6f4   : > { %v4740_v36 = vadd.f32 %v4676_v14, %v4166_v1  ;;  %v4677_v59 = vmul.f32 %v9451_v13, %v4613_v15  ;;  %v4190_v14 = vadd.f32 %v12356_v60, %v12250_v24  ;;  %v9344_v13 = vld [vmem:[#allocation11 + $0x6c] ss:$16 sps:$4 sm:$0xff]  }
 0x6f5   : > { %v4508_v11 = vmul.f32 1.442695, %v4424_v8  ;;  %v4425_v3 = vmul.f32 0.5, %v4192_v46  ;;  %v9342_v46 = vld [vmem:[#allocation11 + $0x68] ss:$16 sps:$4 sm:$0xff]   ;;  %6238 = vmatprep.subr.bf16.mxu0 %v9344_v13 }
 0x6f6   : > { %v4741_v48 = vadd.f32 %v4677_v59, %v4170_v61  ;;  %v4618_v61 = vld [vmem:[%s12245_s15 + $0xb0] sm:$0xff]  ;;  %v4619_v60 = vld [vmem:[%s12245_s15 + $0xb8] sm:$0xff] }
 0x6f7   : > { %9456 = vpow2.f32 %v4508_v11  ;;  %v4510_v9 = vmul.f32 1.442695, %v4425_v3  ;;  %v12364_v26 = vpop.f32.mrb[236].mxu1  ;;  %6239 = vmatpush1.bf16.msra.mxu0 %v9342_v46  ;;  %v9357_v13 = vld [vmem:[#allocation11 + $0xe8] ss:$16 sps:$4 sm:$0xff]  }
 0x6f8   : > { %v4796_v28 = vpack.c.bf16 %v4741_v48, %v4740_v36  ;;  %v4197_v19 = vpop.f32.mrb[237].mxu1 }
 0x6f9   : > { %v9453_v30 = vpop.eup %9452  ;;  %9458 = vpow2.f32 %v4510_v9  ;;  %v4198_v25 = vadd.f32 %v4197_v19, %v12230_v22  ;;  %v12368_v47 = vpop.f32.mrb[238].mxu1  ;;  %v9332_v9 = vld [vmem:[#allocation11 + $0x1c4] ss:$16 sps:$4 sm:$0xff]  }
 0x6fa   : > { %v4678_v21 = vmul.f32 %v9453_v30, %v4614_v49  ;;  %v4201_v35 = vpop.f32.mrb[239].mxu1  ;;  %5041 = vmatmul.mubr.bf16.gmra.mrb[96].mxu0 %v4796_v28  ;;  %v9330_v49 = vld [vmem:[#allocation11 + $0x1c0] ss:$16 sps:$4 sm:$0xff]   ;;  %v9350_v30 = vld [vmem:[#allocation11 + $0x8c] ss:$16 sps:$4 sm:$0xff]   ;;  %5907 = vmatprep.subr.bf16.mxu1 %v9332_v9 }
 0x6fb   : > { %v9455_v4 = vpop.eup %9454  ;;  %v4426_v43 = vmul.f32 0.5, %v4198_v25  ;;  %v4202_v27 = vadd.f32 %v4201_v35, %v12230_v22  ;;  %5050 = vmatprep.mubr.bf16.mxu0 %v14383_v23  ;;  %5908 = vmatpush1.bf16.msra.mxu1 %v9330_v49 }
 0x6fc   : > { %v4742_v38 = vadd.f32 %v4678_v21, %v4176_v40  ;;  %v4679_v6 = vmul.f32 %v9455_v4, %v4615_v7  ;;  %v4196_v7 = vadd.f32 %v12364_v26, %v12250_v24  ;;  %v4200_v4 = vadd.f32 %v12368_v47, %v12250_v24  ;;  %6240 = vmatprep.subr.bf16.mxu0 %v9350_v30  ;;  %v9353_v26 = vld [vmem:[#allocation11 + $0xac] ss:$16 sps:$4 sm:$0xff]  }
 0x6fd   : > { %v4512_v50 = vmul.f32 1.442695, %v4426_v43  ;;  %v4427_v33 = vmul.f32 0.5, %v4202_v27  ;;  %6241 = vmatpush1.bf16.msra.mxu0 %v9348_v53  ;;  %v4621_v47 = vld [vmem:[%s12245_s15 + $0xc8] sm:$0xff]  ;;  %5909 = vmatprep.subr.bf16.mxu1 %v9347_v57 }
 0x6fe   : > { %v4743_v58 = vadd.f32 %v4679_v6, %v4180_v37  ;;  %v9351_v37 = vld [vmem:[#allocation11 + $0xa8] ss:$16 sps:$4 sm:$0xff]   ;;  %6242 = vmatprep.subr.bf16.mxu0 %v9353_v26  ;;  %v4624_v26 = vld [vmem:[%s12245_s15 + $0xe0] sm:$0xff] }
 0x6ff   : > { %9460 = vpow2.f32 %v4512_v50  ;;  %v4514_v12 = vmul.f32 1.442695, %v4427_v33  ;;  %v12377_v39 = vpop.f32.mrb[240].mxu1 }
 0x700   : > { %v4797_v42 = vpack.c.bf16 %v4743_v58, %v4742_v38  ;;  %v4207_v51 = vpop.f32.mrb[241].mxu1 }
 0x701   : > { %v9457_v55 = vpop.eup %9456  ;;  %9462 = vpow2.f32 %v4514_v12  ;;  %v4208_v2 = vadd.f32 %v4207_v51, %v12230_v22  ;;  %v12381_v54 = vpop.f32.mrb[242].mxu1  ;;  %6243 = vmatpush1.bf16.msra.mxu0 %v9351_v37 }
 0x702   : > { %v4680_v10 = vmul.f32 %v9457_v55, %v4616_v63  ;;  %v4211_v5 = vpop.f32.mrb[243].mxu1  ;;  %5051 = vmatmul.mubr.bf16.gmra.mrb[100].mxu0 %v4797_v42  ;;  %v9356_v63 = vld [vmem:[#allocation11 + $0xcc] ss:$16 sps:$4 sm:$0xff]   ;;  %v4206_v55 = vadd.f32 %v12377_v39, %v12250_v24 }
 0x703   : > { %v9459_v44 = vpop.eup %9458  ;;  %v4428_v15 = vmul.f32 0.5, %v4208_v2  ;;  %v4212_v29 = vadd.f32 %v4211_v5, %v12230_v22  ;;  %5060 = vmatprep.mubr.bf16.mxu0 %v14383_v23  ;;  %6244 = vmatprep.subr.bf16.mxu0 %v9356_v63  ;;  %v9359_v39 = vld [vmem:[#allocation11 + $0xec] ss:$16 sps:$4 sm:$0xff]   ;;  %v9367_v63 = vld [vmem:[#allocation11 + $0x148] ss:$16 sps:$4 sm:$0xff]  }
 0x704   : > { %v4744_v1 = vadd.f32 %v4680_v10, %v4186_v31  ;;  %v4681_v0 = vmul.f32 %v9459_v44, %v4617_v16  ;;  %v9345_v44 = vld [vmem:[#allocation11 + $0x1e0] ss:$16 sps:$4 sm:$0xff]  }
 0x705   : > { %v4516_v8 = vmul.f32 1.442695, %v4428_v15  ;;  %v4429_v56 = vmul.f32 0.5, %v4212_v29  ;;  %v4210_v29 = vadd.f32 %v12381_v54, %v12250_v24  ;;  %5910 = vmatpush1.bf16.msra.mxu1 %v9345_v44  ;;  %6245 = vmatpush1.bf16.msra.mxu0 %v9354_v18  ;;  %v9370_v44 = vld [vmem:[#allocation11 + $0x168] ss:$16 sps:$4 sm:$0xff]  }
 0x706   : > { %v4745_v36 = vadd.f32 %v4681_v0, %v4190_v14  ;;  %6246 = vmatprep.subr.bf16.mxu0 %v9359_v39  ;;  %7232 = vmatprep.subr.bf16.mxu1 %v14383_v23 }
 0x707   : > { %9464 = vpow2.f32 %v4516_v8  ;;  %v4518_v59 = vmul.f32 1.442695, %v4429_v56  ;;  %v12390_v11 = vpop.f32.mrb[244].mxu1  ;;  %v4622_v56 = vld [vmem:[%s12245_s15 + $0xd0] sm:$0xff] }
 0x708   : > { %v4798_v3 = vpack.c.bf16 %v4745_v36, %v4744_v1  ;;  %v4217_v48 = vpop.f32.mrb[245].mxu1 }
 0x709   : > { %v9461_v28 = vpop.eup %9460  ;;  %9466 = vpow2.f32 %v4518_v59  ;;  %v4218_v19 = vadd.f32 %v4217_v48, %v12230_v22  ;;  %v12394_v41 = vpop.f32.mrb[246].mxu1  ;;  %v9363_v59 = vld [vmem:[#allocation11 + $0x10c] ss:$16 sps:$4 sm:$0xff]   ;;  %6247 = vmatpush1.bf16.msra.mxu0 %v9357_v13 }
 0x70a   : > { %v4682_v25 = vmul.f32 %v9461_v28, %v4618_v61  ;;  %v4221_v17 = vpop.f32.mrb[247].mxu1  ;;  %5061 = vmatmul.mubr.bf16.gmra.mrb[104].mxu0 %v4798_v3  ;;  %v4623_v48 = vld [vmem:[%s12245_s15 + $0xd8] sm:$0xff]  ;;  %6248 = vmatprep.subr.bf16.mxu0 %v9363_v59 }
 0x70b   : > { %v9463_v52 = vpop.eup %9462  ;;  %v4430_v40 = vmul.f32 0.5, %v4218_v19  ;;  %v4222_v21 = vadd.f32 %v4221_v17, %v12230_v22  ;;  %5070 = vmatprep.mubr.bf16.mxu0 %v14383_v23  ;;  %v9361_v28 = vld [vmem:[#allocation11 + $0x108] ss:$16 sps:$4 sm:$0xff]   ;;  %v9376_v13 = vld [vmem:[#allocation11 + $0x18c] ss:$16 sps:$4 sm:$0xff]  }
 0x70c   : > { %v4746_v35 = vadd.f32 %v4682_v25, %v4196_v7  ;;  %v4683_v43 = vmul.f32 %v9463_v52, %v4619_v60  ;;  %v4216_v60 = vadd.f32 %v12390_v11, %v12250_v24  ;;  %v4220_v52 = vadd.f32 %v12394_v41, %v12250_v24 }
 0x70d   : > { %v4520_v27 = vmul.f32 1.442695, %v4430_v40  ;;  %v4431_v38 = vmul.f32 0.5, %v4222_v21  ;;  %v9366_v21 = vld [vmem:[#allocation11 + $0x12c] ss:$16 sps:$4 sm:$0xff]   ;;  %6249 = vmatpush1.bf16.msra.mxu0 %v9361_v28 }
 0x70e   : > { %v4747_v6 = vadd.f32 %v4683_v43, %v4200_v4  ;;  %v9364_v4 = vld [vmem:[#allocation11 + $0x128] ss:$16 sps:$4 sm:$0xff]   ;;  %6250 = vmatprep.subr.bf16.mxu0 %v9366_v21 }
 0x70f   : > { %9468 = vpow2.f32 %v4520_v27  ;;  %v4522_v50 = vmul.f32 1.442695, %v4431_v38  ;;  %v12403_v33 = vpop.f32.mrb[248].mxu1 }
 0x710   : > { %v4799_v62 = vpack.c.bf16 %v4747_v6, %v4746_v35  ;;  %v4227_v58 = vpop.f32.mrb[249].mxu1 }
 0x711   : > { %v9465_v12 = vpop.eup %9464  ;;  %9470 = vpow2.f32 %v4522_v50  ;;  %v4228_v42 = vadd.f32 %v4227_v58, %v12230_v22  ;;  %v12407_v51 = vpop.f32.mrb[250].mxu1  ;;  %6251 = vmatpush1.bf16.msra.mxu0 %v9364_v4  ;;  %v9382_v4 = vld [vmem:[#allocation11 + $0x1cc] ss:$16 sps:$4 sm:$0xff]  }
 0x712   : > { %v4684_v16 = vmul.f32 %v9465_v12, %v4620_v45  ;;  %v4231_v2 = vpop.f32.mrb[251].mxu1  ;;  %5071 = vmatmul.mubr.bf16.gmra.mrb[108].mxu0 %v4799_v62  ;;  %v9369_v45 = vld [vmem:[#allocation11 + $0x14c] ss:$16 sps:$4 sm:$0xff]   ;;  %v4226_v12 = vadd.f32 %v12403_v33, %v12250_v24  ;;  %v4230_v57 = vadd.f32 %v12407_v51, %v12250_v24 }
 0x713   : > { %v9467_v31 = vpop.eup %9466  ;;  %v4432_v10 = vmul.f32 0.5, %v4228_v42  ;;  %v4232_v5 = vadd.f32 %v4231_v2, %v12230_v22  ;;  %5080 = vmatprep.mubr.bf16.mxu0 %v14383_v23  ;;  %v4625_v62 = vld [vmem:[%s12245_s15 + $0xe8] sm:$0xff]  ;;  %6252 = vmatprep.subr.bf16.mxu0 %v9369_v45 }
 0x714   : > { %v4748_v15 = vadd.f32 %v4684_v16, %v4206_v55  ;;  %v4685_v1 = vmul.f32 %v9467_v31, %v4621_v47 }
 0x715   : > { %v4524_v14 = vmul.f32 1.442695, %v4432_v10  ;;  %v4433_v0 = vmul.f32 0.5, %v4232_v5  ;;  %v9372_v10 = vld [vmem:[#allocation11 + $0x16c] ss:$16 sps:$4 sm:$0xff]   ;;  %6253 = vmatpush1.bf16.msra.mxu0 %v9367_v63 }
 0x716   : > { %v4749_v8 = vadd.f32 %v4685_v1, %v4210_v29  ;;  %6254 = vmatprep.subr.bf16.mxu0 %v9372_v10  ;;  %v4626_v29 = vld [vmem:[%s12245_s15 + $0xf0] sm:$0xff] }
 0x717   : > { %9472 = vpow2.f32 %v4524_v14  ;;  %v4526_v46 = vmul.f32 1.442695, %v4433_v0  ;;  %v12417_v36 = vpop.f32.mrb[252].mxu1 }
 0x718   : > { %v4800_v61 = vpack.c.bf16 %v4749_v8, %v4748_v15  ;;  %v4237_v54 = vpop.f32.mrb[253].mxu1 }
 0x719   : > { %v9469_v3 = vpop.eup %9468  ;;  %9474 = vpow2.f32 %v4526_v46  ;;  %v4238_v49 = vadd.f32 %v4237_v54, %v12230_v22  ;;  %v12421_v9 = vpop.f32.mrb[254].mxu1  ;;  %6255 = vmatpush1.bf16.msra.mxu0 %v9370_v44  ;;  %v4236_v54 = vadd.f32 %v12417_v36, %v12250_v24 }
 0x71a   : > { %v4686_v19 = vmul.f32 %v9469_v3, %v4622_v56  ;;  %v4241_v53 = vpop.f32.mrb[255].mxu1  ;;  %5081 = vmatmul.mubr.bf16.gmra.mrb[112].mxu0 %v4800_v61  ;;  %v4627_v56 = vld [vmem:[%s12245_s15 + $0xf8] sm:$0xff]  ;;  %6256 = vmatprep.subr.bf16.mxu0 %v9376_v13 }
 0x71b   : > { %v9471_v30 = vpop.eup %9470  ;;  %v4434_v7 = vmul.f32 0.5, %v4238_v49  ;;  %v4242_v25 = vadd.f32 %v4241_v53, %v12230_v22  ;;  %5090 = vmatprep.mubr.bf16.mxu0 %v14383_v23  ;;  %v9374_v61 = vld [vmem:[#allocation11 + $0x188] ss:$16 sps:$4 sm:$0xff]  }
 0x71c   : > { %v4750_v17 = vadd.f32 %v4686_v19, %v4216_v60  ;;  %v4687_v40 = vmul.f32 %v9471_v30, %v4623_v48  ;;  %v4240_v19 = vadd.f32 %v12421_v9, %v12250_v24  ;;  %v9379_v30 = vld [vmem:[#allocation11 + $0x1ac] ss:$16 sps:$4 sm:$0xff]  }
 0x71d   : > { %v4528_v35 = vmul.f32 1.442695, %v4434_v7  ;;  %v4435_v11 = vmul.f32 0.5, %v4242_v25  ;;  %6257 = vmatpush1.bf16.msra.mxu0 %v9374_v61  ;;  %v9377_v25 = vld [vmem:[#allocation11 + $0x1a8] ss:$16 sps:$4 sm:$0xff]  }
 0x71e   : > { %v4751_v43 = vadd.f32 %v4687_v40, %v4220_v52  ;;  %6258 = vmatprep.subr.bf16.mxu0 %v9379_v30  ;;  %v4628_v52 = vld [vmem:[%s12245_s15 + $0x100] sm:$0xff]  ;;  %v4633_v30 = vld [vmem:[%s12245_s15 + $0x128] sm:$0xff] }
 0x71f   : > { %9476 = vpow2.f32 %v4528_v35  ;;  %v4530_v27 = vmul.f32 1.442695, %v4435_v11  ;;  %v12430_v38 = vpop.f32.mrb[0].mxu1 }
 0x720   : > { %v4801_v37 = vpack.c.bf16 %v4751_v43, %v4750_v17  ;;  %v4247_v6 = vpop.f32.mrb[1].mxu1 }
 0x721   : > { %v9473_v50 = vpop.eup %9472  ;;  %9478 = vpow2.f32 %v4530_v27  ;;  %v4248_v41 = vadd.f32 %v4247_v6, %v12230_v22  ;;  %v12434_v58 = vpop.f32.mrb[2].mxu1  ;;  %6259 = vmatpush1.bf16.msra.mxu0 %v9377_v25  ;;  %v4246_v6 = vadd.f32 %v12430_v38, %v12250_v24 }
 0x722   : > { %v4688_v47 = vmul.f32 %v9473_v50, %v4624_v26  ;;  %v4251_v42 = vpop.f32.mrb[3].mxu1  ;;  %5091 = vmatmul.mubr.bf16.gmra.mrb[116].mxu0 %v4801_v37  ;;  %v4629_v26 = vld [vmem:[%s12245_s15 + $0x108] sm:$0xff]  ;;  %6260 = vmatprep.subr.bf16.mxu0 %v9382_v4 }
 0x723   : > { %v9475_v18 = vpop.eup %9474  ;;  %v4436_v55 = vmul.f32 0.5, %v4248_v41  ;;  %v4252_v16 = vadd.f32 %v4251_v42, %v12230_v22  ;;  %5100 = vmatprep.mubr.bf16.mxu0 %v14383_v23  ;;  %v9380_v37 = vld [vmem:[#allocation11 + $0x1c8] ss:$16 sps:$4 sm:$0xff]  }
 0x724   : > { %v4752_v2 = vadd.f32 %v4688_v47, %v4226_v12  ;;  %v4689_v31 = vmul.f32 %v9475_v18, %v4625_v62  ;;  %v4250_v47 = vadd.f32 %v12434_v58, %v12250_v24  ;;  %v9385_v18 = vld [vmem:[#allocation11 + $0x1ec] ss:$16 sps:$4 sm:$0xff]  }
 0x725   : > { %v4532_v5 = vmul.f32 1.442695, %v4436_v55  ;;  %v4437_v33 = vmul.f32 0.5, %v4252_v16  ;;  %6261 = vmatpush1.bf16.msra.mxu0 %v9380_v37  ;;  %v9383_v16 = vld [vmem:[#allocation11 + $0x1e8] ss:$16 sps:$4 sm:$0xff]  }
 0x726   : > { %v4753_v15 = vadd.f32 %v4689_v31, %v4230_v57  ;;  %6262 = vmatprep.subr.bf16.mxu0 %v9385_v18  ;;  %v4630_v57 = vld [vmem:[%s12245_s15 + $0x110] sm:$0xff] }
 0x727   : > { %9480 = vpow2.f32 %v4532_v5  ;;  %v4534_v1 = vmul.f32 1.442695, %v4437_v33  ;;  %v12443_v39 = vpop.f32.mrb[4].mxu1 }
 0x728   : > { %v4802_v14 = vpack.c.bf16 %v4753_v15, %v4752_v2  ;;  %v4257_v0 = vpop.f32.mrb[5].mxu1  ;;  %v4631_v15 = vld [vmem:[%s12245_s15 + $0x118] sm:$0xff] }
 0x729   : > { %v9477_v8 = vpop.eup %9476  ;;  %9482 = vpow2.f32 %v4534_v1  ;;  %v4258_v51 = vadd.f32 %v4257_v0, %v12230_v22  ;;  %v12447_v46 = vpop.f32.mrb[6].mxu1  ;;  %6263 = vmatpush1.bf16.msra.mxu0 %v9383_v16  ;;  %v4256_v1 = vadd.f32 %v12443_v39, %v12250_v24 }
 0x72a   : > { %v4690_v59 = vmul.f32 %v9477_v8, %v4626_v29  ;;  %v4261_v3 = vpop.f32.mrb[7].mxu1  ;;  %5101 = vmatmul.mubr.bf16.gmra.mrb[120].mxu0 %v4802_v14  ;;  %v4260_v61 = vadd.f32 %v12447_v46, %v12250_v24 }
 0x72b   : > { %v9479_v48 = vpop.eup %9478  ;;  %v4438_v49 = vmul.f32 0.5, %v4258_v51  ;;  %v4262_v28 = vadd.f32 %v4261_v3, %v12230_v22  ;;  %5110 = vmatprep.mubr.bf16.mxu0 %v14383_v23 }
 0x72c   : > { %v4754_v60 = vadd.f32 %v4690_v59, %v4236_v54  ;;  %v4691_v53 = vmul.f32 %v9479_v48, %v4627_v56 }
 0x72d   : > { %v4536_v7 = vmul.f32 1.442695, %v4438_v49  ;;  %v4439_v36 = vmul.f32 0.5, %v4262_v28  ;;  %v4632_v49 = vld [vmem:[%s12245_s15 + $0x120] sm:$0xff] }
 0x72e   : > { %v4755_v17 = vadd.f32 %v4691_v53, %v4240_v19 }
 0x72f   : > { %9484 = vpow2.f32 %v4536_v7  ;;  %v4538_v40 = vmul.f32 1.442695, %v4439_v36  ;;  %v12456_v21 = vpop.f32.mrb[8].mxu1 }
 0x730   : > { %v4803_v35 = vpack.c.bf16 %v4755_v17, %v4754_v60  ;;  %v4267_v11 = vpop.f32.mrb[9].mxu1  ;;  %v4266_v46 = vadd.f32 %v12456_v21, %v12250_v24 }
 0x731   : > { %v9481_v43 = vpop.eup %9480  ;;  %9486 = vpow2.f32 %v4538_v40  ;;  %v4268_v9 = vadd.f32 %v4267_v11, %v12230_v22  ;;  %v12460_v27 = vpop.f32.mrb[10].mxu1 }
 0x732   : > { %v4692_v45 = vmul.f32 %v9481_v43, %v4628_v52  ;;  %v4271_v50 = vpop.f32.mrb[11].mxu1  ;;  %5111 = vmatmul.mubr.bf16.gmra.mrb[124].mxu0 %v4803_v35  ;;  %v4270_v4 = vadd.f32 %v12460_v27, %v12250_v24 }
 0x733   : > { %v9483_v62 = vpop.eup %9482  ;;  %v4440_v41 = vmul.f32 0.5, %v4268_v9  ;;  %v4272_v63 = vadd.f32 %v4271_v50, %v12230_v22  ;;  %5120 = vmatprep.mubr.bf16.mxu0 %v14383_v23 }
 0x734   : > { %v4756_v12 = vadd.f32 %v4692_v45, %v4246_v6  ;;  %v4693_v42 = vmul.f32 %v9483_v62, %v4629_v26  ;;  %v4634_v6 = vld [vmem:[%s12245_s15 + $0x130] sm:$0xff] }
 0x735   : > { %v4540_v55 = vmul.f32 1.442695, %v4440_v41  ;;  %v4441_v38 = vmul.f32 0.5, %v4272_v63  ;;  %v4635_v63 = vld [vmem:[%s12245_s15 + $0x138] sm:$0xff] }
 0x736   : > { %v4757_v2 = vadd.f32 %v4693_v42, %v4250_v47 }
 0x737   : > { %9488 = vpow2.f32 %v4540_v55  ;;  %v4542_v31 = vmul.f32 1.442695, %v4441_v38  ;;  %v4275_v10 = vpop.f32.mrb[12].mxu1 }
 0x738   : > { %v4804_v5 = vpack.c.bf16 %v4757_v2, %v4756_v12  ;;  %v4277_v33 = vpop.f32.mrb[13].mxu1  ;;  %v4276_v42 = vadd.f32 %v4275_v10, %v12250_v24 }
 0x739   : > { %v9485_v44 = vpop.eup %9484  ;;  %9490 = vpow2.f32 %v4542_v31  ;;  %v4278_v58 = vadd.f32 %v4277_v33, %v12230_v22  ;;  %v4279_v29 = vpop.f32.mrb[14].mxu1 }
 0x73a   : > { %v4694_v14 = vmul.f32 %v9485_v44, %v4630_v57  ;;  %v4281_v0 = vpop.f32.mrb[15].mxu1  ;;  %5121 = vmatmul.mubr.bf16.gmra.mrb[128].mxu0 %v4804_v5  ;;  %v4280_v57 = vadd.f32 %v4279_v29, %v12250_v24 }
 0x73b   : > { %v9487_v13 = vpop.eup %9486  ;;  %v4442_v8 = vmul.f32 0.5, %v4278_v58  ;;  %v4282_v56 = vadd.f32 %v4281_v0, %v12230_v22  ;;  %5130 = vmatprep.mubr.bf16.mxu0 %v14383_v23 }
 0x73c   : > { %v4758_v51 = vadd.f32 %v4694_v14, %v4256_v1  ;;  %v4695_v54 = vmul.f32 %v9487_v13, %v4631_v15  ;;  %v4636_v15 = vld [vmem:[%s12245_s15 + $0x140] sm:$0xff]  ;;  %v4637_v13 = vld [vmem:[%s12245_s15 + $0x148] sm:$0xff] }
 0x73d   : > { %v4544_v59 = vmul.f32 1.442695, %v4442_v8  ;;  %v4443_v3 = vmul.f32 0.5, %v4282_v56 }
 0x73e   : > { %v4759_v48 = vadd.f32 %v4695_v54, %v4260_v61 }
 0x73f   : > { %9492 = vpow2.f32 %v4544_v59  ;;  %v4546_v39 = vmul.f32 1.442695, %v4443_v3  ;;  %v4285_v28 = vpop.f32.mrb[16].mxu1 }
 0x740   : > { %v4805_v60 = vpack.c.bf16 %v4759_v48, %v4758_v51  ;;  %v4287_v19 = vpop.f32.mrb[17].mxu1  ;;  %v4286_v51 = vadd.f32 %v4285_v28, %v12250_v24 }
 0x741   : > { %v9489_v53 = vpop.eup %9488  ;;  %9494 = vpow2.f32 %v4546_v39  ;;  %v4288_v7 = vadd.f32 %v4287_v19, %v12230_v22  ;;  %v4289_v36 = vpop.f32.mrb[18].mxu1 }
 0x742   : > { %v4696_v25 = vmul.f32 %v9489_v53, %v4632_v49  ;;  %v4291_v17 = vpop.f32.mrb[19].mxu1  ;;  %5131 = vmatmul.mubr.bf16.gmra.mrb[132].mxu0 %v4805_v60  ;;  %v4290_v49 = vadd.f32 %v4289_v36, %v12250_v24 }
 0x743   : > { %v9491_v52 = vpop.eup %9490  ;;  %v4444_v40 = vmul.f32 0.5, %v4288_v7  ;;  %v4292_v35 = vadd.f32 %v4291_v17, %v12230_v22  ;;  %5140 = vmatprep.mubr.bf16.mxu0 %v14383_v23 }
 0x744   : > { %v4760_v11 = vadd.f32 %v4696_v25, %v4266_v46  ;;  %v4697_v43 = vmul.f32 %v9491_v52, %v4633_v30  ;;  %v4638_v30 = vld [vmem:[%s12245_s15 + $0x150] sm:$0xff]  ;;  %v4639_v52 = vld [vmem:[%s12245_s15 + $0x158] sm:$0xff] }
 0x745   : > { %v4548_v26 = vmul.f32 1.442695, %v4444_v40  ;;  %v4445_v9 = vmul.f32 0.5, %v4292_v35 }
 0x746   : > { %v4761_v37 = vadd.f32 %v4697_v43, %v4270_v4 }
 0x747   : > { %9496 = vpow2.f32 %v4548_v26  ;;  %v4550_v21 = vmul.f32 1.442695, %v4445_v9  ;;  %v4295_v45 = vpop.f32.mrb[20].mxu1 }
 0x748   : > { %v4806_v50 = vpack.c.bf16 %v4761_v37, %v4760_v11  ;;  %v4297_v62 = vpop.f32.mrb[21].mxu1  ;;  %v4296_v11 = vadd.f32 %v4295_v45, %v12250_v24 }
 0x749   : > { %v9493_v41 = vpop.eup %9492  ;;  %9498 = vpow2.f32 %v4550_v21  ;;  %v4298_v12 = vadd.f32 %v4297_v62, %v12230_v22  ;;  %v4299_v47 = vpop.f32.mrb[22].mxu1 }
 0x74a   : > { %v4698_v27 = vmul.f32 %v9493_v41, %v4634_v6  ;;  %v4301_v18 = vpop.f32.mrb[23].mxu1  ;;  %5141 = vmatmul.mubr.bf16.gmra.mrb[136].mxu0 %v4806_v50  ;;  %v4300_v6 = vadd.f32 %v4299_v47, %v12250_v24 }
 0x74b   : > { %v9495_v55 = vpop.eup %9494  ;;  %v4446_v38 = vmul.f32 0.5, %v4298_v12  ;;  %v4302_v16 = vadd.f32 %v4301_v18, %v12230_v22  ;;  %5150 = vmatprep.mubr.bf16.mxu0 %v14383_v23 }
 0x74c   : > { %v4762_v2 = vadd.f32 %v4698_v27, %v4276_v42  ;;  %v4699_v31 = vmul.f32 %v9495_v55, %v4635_v63  ;;  %v4640_v63 = vld [vmem:[%s12245_s15 + $0x160] sm:$0xff]  ;;  %v4641_v55 = vld [vmem:[%s12245_s15 + $0x168] sm:$0xff] }
 0x74d   : > { %v4552_v5 = vmul.f32 1.442695, %v4446_v38  ;;  %v4447_v33 = vmul.f32 0.5, %v4302_v16 }
 0x74e   : > { %v4763_v44 = vadd.f32 %v4699_v31, %v4280_v57 }
 0x74f   : > { %9500 = vpow2.f32 %v4552_v5  ;;  %v4554_v10 = vmul.f32 1.442695, %v4447_v33  ;;  %v4305_v58 = vpop.f32.mrb[24].mxu1 }
 0x750   : > { %v4807_v1 = vpack.c.bf16 %v4763_v44, %v4762_v2  ;;  %v4307_v14 = vpop.f32.mrb[25].mxu1  ;;  %v4306_v2 = vadd.f32 %v4305_v58, %v12250_v24 }
 0x751   : > { %v9497_v0 = vpop.eup %9496  ;;  %9502 = vpow2.f32 %v4554_v10  ;;  %v4308_v8 = vadd.f32 %v4307_v14, %v12230_v22  ;;  %v4309_v56 = vpop.f32.mrb[26].mxu1 }
 0x752   : > { %v4700_v29 = vmul.f32 %v9497_v0, %v4636_v15  ;;  %v4311_v61 = vpop.f32.mrb[27].mxu1  ;;  %5151 = vmatmul.mubr.bf16.gmra.mrb[140].mxu0 %v4807_v1  ;;  %v4310_v15 = vadd.f32 %v4309_v56, %v12250_v24 }
 0x753   : > { %v9499_v54 = vpop.eup %9498  ;;  %v4448_v59 = vmul.f32 0.5, %v4308_v8  ;;  %v4312_v3 = vadd.f32 %v4311_v61, %v12230_v22  ;;  %5160 = vmatprep.mubr.bf16.mxu0 %v14383_v23 }
 0x754   : > { %v4764_v48 = vadd.f32 %v4700_v29, %v4286_v51  ;;  %v4701_v39 = vmul.f32 %v9499_v54, %v4637_v13  ;;  %v4642_v13 = vld [vmem:[%s12245_s15 + $0x170] sm:$0xff]  ;;  %v4643_v54 = vld [vmem:[%s12245_s15 + $0x178] sm:$0xff] }
 0x755   : > { %v4556_v60 = vmul.f32 1.442695, %v4448_v59  ;;  %v4449_v19 = vmul.f32 0.5, %v4312_v3 }
 0x756   : > { %v4765_v53 = vadd.f32 %v4701_v39, %v4290_v49 }
 0x757   : > { %9504 = vpow2.f32 %v4556_v60  ;;  %v4558_v28 = vmul.f32 1.442695, %v4449_v19  ;;  %v4315_v7 = vpop.f32.mrb[28].mxu1 }
 0x758   : > { %v4808_v46 = vpack.c.bf16 %v4765_v53, %v4764_v48  ;;  %v4317_v25 = vpop.f32.mrb[29].mxu1  ;;  %v4316_v48 = vadd.f32 %v4315_v7, %v12250_v24 }
 0x759   : > { %v9501_v17 = vpop.eup %9500  ;;  %9506 = vpow2.f32 %v4558_v28  ;;  %v4318_v40 = vadd.f32 %v4317_v25, %v12230_v22  ;;  %v4319_v35 = vpop.f32.mrb[30].mxu1 }
 0x75a   : > { %v4702_v36 = vmul.f32 %v9501_v17, %v4638_v30  ;;  %v4321_v4 = vpop.f32.mrb[31].mxu1  ;;  %5161 = vmatmul.mubr.bf16.gmra.mrb[144].mxu0 %v4808_v46  ;;  %v4320_v30 = vadd.f32 %v4319_v35, %v12250_v24 }
 0x75b   : > { %v9503_v43 = vpop.eup %9502  ;;  %v4450_v26 = vmul.f32 0.5, %v4318_v40  ;;  %v4322_v9 = vadd.f32 %v4321_v4, %v12230_v22  ;;  %5170 = vmatprep.mubr.bf16.mxu0 %v14383_v23 }
 0x75c   : > { %v4766_v37 = vadd.f32 %v4702_v36, %v4296_v11  ;;  %v4703_v21 = vmul.f32 %v9503_v43, %v4639_v52  ;;  %v4644_v52 = vld [vmem:[%s12245_s15 + $0x180] sm:$0xff]  ;;  %v4645_v43 = vld [vmem:[%s12245_s15 + $0x188] sm:$0xff] }
 0x75d   : > { %v4560_v50 = vmul.f32 1.442695, %v4450_v26  ;;  %v4451_v62 = vmul.f32 0.5, %v4322_v9 }
 0x75e   : > { %v4767_v41 = vadd.f32 %v4703_v21, %v4300_v6 }
 0x75f   : > { %9508 = vpow2.f32 %v4560_v50  ;;  %v4562_v45 = vmul.f32 1.442695, %v4451_v62  ;;  %v4325_v12 = vpop.f32.mrb[32].mxu1 }
 0x760   : > { %v4809_v42 = vpack.c.bf16 %v4767_v41, %v4766_v37  ;;  %v4327_v27 = vpop.f32.mrb[33].mxu1  ;;  %v4326_v37 = vadd.f32 %v4325_v12, %v12250_v24 }
 0x761   : > { %v9505_v18 = vpop.eup %9504  ;;  %9510 = vpow2.f32 %v4562_v45  ;;  %v4328_v38 = vadd.f32 %v4327_v27, %v12230_v22  ;;  %v4329_v16 = vpop.f32.mrb[34].mxu1 }
 0x762   : > { %v4704_v47 = vmul.f32 %v9505_v18, %v4640_v63  ;;  %v4331_v57 = vpop.f32.mrb[35].mxu1  ;;  %5171 = vmatmul.mubr.bf16.gmra.mrb[148].mxu0 %v4809_v42  ;;  %v4330_v63 = vadd.f32 %v4329_v16, %v12250_v24 }
 0x763   : > { %v9507_v31 = vpop.eup %9506  ;;  %v4452_v5 = vmul.f32 0.5, %v4328_v38  ;;  %v4332_v33 = vadd.f32 %v4331_v57, %v12230_v22  ;;  %5180 = vmatprep.mubr.bf16.mxu0 %v14383_v23 }
 0x764   : > { %v4768_v44 = vadd.f32 %v4704_v47, %v4306_v2  ;;  %v4705_v10 = vmul.f32 %v9507_v31, %v4641_v55  ;;  %v4646_v55 = vld [vmem:[%s12245_s15 + $0x190] sm:$0xff]  ;;  %v4647_v31 = vld [vmem:[%s12245_s15 + $0x198] sm:$0xff] }
 0x765   : > { %v4564_v1 = vmul.f32 1.442695, %v4452_v5  ;;  %v4453_v14 = vmul.f32 0.5, %v4332_v33 }
 0x766   : > { %v4769_v0 = vadd.f32 %v4705_v10, %v4310_v15 }
 0x767   : > { %9512 = vpow2.f32 %v4564_v1  ;;  %v4566_v58 = vmul.f32 1.442695, %v4453_v14  ;;  %v4335_v8 = vpop.f32.mrb[36].mxu1 }
 0x768   : > { %v4810_v51 = vpack.c.bf16 %v4769_v0, %v4768_v44  ;;  %v4337_v29 = vpop.f32.mrb[37].mxu1  ;;  %v4336_v16 = vadd.f32 %v4335_v8, %v12250_v24 }
 0x769   : > { %v9509_v61 = vpop.eup %9508  ;;  %9514 = vpow2.f32 %v4566_v58  ;;  %v4338_v59 = vadd.f32 %v4337_v29, %v12230_v22  ;;  %v4339_v3 = vpop.f32.mrb[38].mxu1 }
 0x76a   : > { %v4706_v56 = vmul.f32 %v9509_v61, %v4642_v13  ;;  %v4341_v49 = vpop.f32.mrb[39].mxu1  ;;  %5181 = vmatmul.mubr.bf16.gmra.mrb[152].mxu0 %v4810_v51  ;;  %v4340_v13 = vadd.f32 %v4339_v3, %v12250_v24 }
 0x76b   : > { %v9511_v39 = vpop.eup %9510  ;;  %v4454_v60 = vmul.f32 0.5, %v4338_v59  ;;  %v4342_v19 = vadd.f32 %v4341_v49, %v12230_v22  ;;  %5190 = vmatprep.mubr.bf16.mxu0 %v14383_v23 }
 0x76c   : > { %v4770_v53 = vadd.f32 %v4706_v56, %v4316_v48  ;;  %v4707_v28 = vmul.f32 %v9511_v39, %v4643_v54  ;;  %v4648_v54 = vld [vmem:[%s12245_s15 + $0x1a0] sm:$0xff]  ;;  %v4649_v39 = vld [vmem:[%s12245_s15 + $0x1a8] sm:$0xff] }
 0x76d   : > { %v4568_v46 = vmul.f32 1.442695, %v4454_v60  ;;  %v4455_v25 = vmul.f32 0.5, %v4342_v19 }
 0x76e   : > { %v4771_v17 = vadd.f32 %v4707_v28, %v4320_v30 }
 0x76f   : > { %9516 = vpow2.f32 %v4568_v46  ;;  %v4570_v7 = vmul.f32 1.442695, %v4455_v25  ;;  %v4345_v40 = vpop.f32.mrb[40].mxu1 }
 0x770   : > { %v4811_v11 = vpack.c.bf16 %v4771_v17, %v4770_v53  ;;  %v4347_v36 = vpop.f32.mrb[41].mxu1  ;;  %v4346_v3 = vadd.f32 %v4345_v40, %v12250_v24 }
 0x771   : > { %v9513_v4 = vpop.eup %9512  ;;  %9518 = vpow2.f32 %v4570_v7  ;;  %v4348_v26 = vadd.f32 %v4347_v36, %v12230_v22  ;;  %v4349_v9 = vpop.f32.mrb[42].mxu1 }
 0x772   : > { %v4708_v35 = vmul.f32 %v9513_v4, %v4644_v52  ;;  %v4351_v6 = vpop.f32.mrb[43].mxu1  ;;  %5191 = vmatmul.mubr.bf16.gmra.mrb[156].mxu0 %v4811_v11  ;;  %v4350_v52 = vadd.f32 %v4349_v9, %v12250_v24 }
 0x773   : > { %v9515_v21 = vpop.eup %9514  ;;  %v4456_v50 = vmul.f32 0.5, %v4348_v26  ;;  %v4352_v62 = vadd.f32 %v4351_v6, %v12230_v22  ;;  %5200 = vmatprep.mubr.bf16.mxu0 %v14383_v23 }
 0x774   : > { %v4772_v41 = vadd.f32 %v4708_v35, %v4326_v37  ;;  %v4709_v45 = vmul.f32 %v9515_v21, %v4645_v43  ;;  %v4650_v43 = vld [vmem:[%s12245_s15 + $0x1b0] sm:$0xff]  ;;  %v4836_v37 = vld [vmem:[%s13882_s10] sm:$0x3] }
 0x775   : > { %v4572_v42 = vmul.f32 1.442695, %v4456_v50  ;;  %v4457_v27 = vmul.f32 0.5, %v4352_v62  ;;  %v4651_v50 = vld [vmem:[%s12245_s15 + $0x1b8] sm:$0xff] }
 0x776   : > { %v4773_v18 = vadd.f32 %v4709_v45, %v4330_v63 }
 0x777   : > { %9520 = vpow2.f32 %v4572_v42  ;;  %v4574_v12 = vmul.f32 1.442695, %v4457_v27  ;;  %v4355_v38 = vpop.f32.mrb[44].mxu1  ;;  %v12560_v42 = vrot.slane %v4836_v37, %v11915_v32 }
 0x778   : > { %v4812_v2 = vpack.c.bf16 %v4773_v18, %v4772_v41  ;;  %v4357_v47 = vpop.f32.mrb[45].mxu1  ;;  %v4356_v41 = vadd.f32 %v4355_v38, %v12250_v24 }
 0x779   : > { %v9517_v57 = vpop.eup %9516  ;;  %9522 = vpow2.f32 %v4574_v12  ;;  %v4358_v5 = vadd.f32 %v4357_v47, %v12230_v22  ;;  %v12531_v33 = vpop.f32.mrb[46].mxu1  ;;  %v12564_v12 = vrot.slane %v4836_v37, %v11921_v20  ;;  %v9360_v37 = vld [vmem:[#allocation13] sm:$0xff]  }
 0x77a   : > { %v4710_v44 = vmul.f32 %v9517_v57, %v4646_v55  ;;  %v4361_v15 = vpop.f32.mrb[47].mxu1  ;;  %5201 = vmatmul.mubr.bf16.gmra.mrb[160].mxu0 %v4812_v2  ;;  %v4360_v38 = vadd.f32 %v12531_v33, %v12250_v24 }
 0x77b   : > { %v9519_v10 = vpop.eup %9518  ;;  %v4458_v1 = vmul.f32 0.5, %v4358_v5  ;;  %v4362_v14 = vadd.f32 %v4361_v15, %v12230_v22  ;;  %5210 = vmatprep.mubr.bf16.mxu0 %v14383_v23 }
 0x77c   : > { %v4774_v0 = vadd.f32 %v4710_v44, %v4336_v16  ;;  %v4711_v58 = vmul.f32 %v9519_v10, %v4647_v31  ;;  %v4652_v10 = vld [vmem:[%s12245_s15 + $0x1c0] sm:$0xff] }
 0x77d   : > { %v4576_v51 = vmul.f32 1.442695, %v4458_v1  ;;  %v4459_v29 = vmul.f32 0.5, %v4362_v14 }
 0x77e   : > { %v4775_v61 = vadd.f32 %v4711_v58, %v4340_v13 }
 0x77f   : > { %9524 = vpow2.f32 %v4576_v51  ;;  %v4578_v8 = vmul.f32 1.442695, %v4459_v29  ;;  %v12538_v59 = vpop.f32.mrb[48].mxu1 }
 0x780   : > { %v4813_v48 = vpack.c.bf16 %v4775_v61, %v4774_v0  ;;  %v4367_v56 = vpop.f32.mrb[49].mxu1 }
 0x781   : > { %v9521_v49 = vpop.eup %9520  ;;  %9526 = vpow2.f32 %v4578_v8  ;;  %v4368_v60 = vadd.f32 %v4367_v56, %v12230_v22  ;;  %v12542_v19 = vpop.f32.mrb[50].mxu1 }
 0x782   : > { %v4712_v53 = vmul.f32 %v9521_v49, %v4648_v54  ;;  %v4371_v30 = vpop.f32.mrb[51].mxu1  ;;  %5211 = vmatmul.mubr.bf16.gmra.mrb[164].mxu0 %v4813_v48  ;;  %v4653_v54 = vld [vmem:[%s12245_s15 + $0x1c8] sm:$0xff]  ;;  %v4366_v49 = vadd.f32 %v12538_v59, %v12250_v24 }
 0x783   : > { %v9523_v28 = vpop.eup %9522  ;;  %v4460_v46 = vmul.f32 0.5, %v4368_v60  ;;  %v4372_v25 = vadd.f32 %v4371_v30, %v12230_v22  ;;  %5220 = vmatprep.mubr.bf16.mxu0 %v14383_v23 }
 0x784   : > { %v4776_v17 = vadd.f32 %v4712_v53, %v4346_v3  ;;  %v4713_v7 = vmul.f32 %v9523_v28, %v4649_v39 }
 0x785   : > { %v4580_v11 = vmul.f32 1.442695, %v4460_v46  ;;  %v4461_v36 = vmul.f32 0.5, %v4372_v25 }
 0x786   : > { %v4777_v4 = vadd.f32 %v4713_v7, %v4350_v52  ;;  %v4370_v7 = vadd.f32 %v12542_v19, %v12250_v24 }
 0x787   : > { %9528 = vpow2.f32 %v4580_v11  ;;  %v4582_v40 = vmul.f32 1.442695, %v4461_v36  ;;  %v12549_v26 = vpop.f32.mrb[52].mxu1 }
 0x788   : > { %v4814_v35 = vpack.c.bf16 %v4777_v4, %v4776_v17  ;;  %v4377_v6 = vpop.f32.mrb[53].mxu1 }
 0x789   : > { %v9525_v21 = vpop.eup %9524  ;;  %9530 = vpow2.f32 %v4582_v40  ;;  %v4378_v9 = vadd.f32 %v4377_v6, %v12230_v22  ;;  %v12556_v62 = vpop.f32.mrb[54].mxu1 }
 0x78a   : > { %v4714_v63 = vmul.f32 %v9525_v21, %v4650_v43  ;;  %v4381_v45 = vpop.f32.mrb[55].mxu1  ;;  %5221 = vmatmul.mubr.bf16.gmra.mrb[168].mxu0 %v4814_v35 }
 0x78b   : > { %v9527_v27 = vpop.eup %9526  ;;  %v4462_v18 = vmul.f32 0.5, %v4378_v9  ;;  %v4382_v55 = vadd.f32 %v4381_v45, %v12230_v22  ;;  %5230 = vmatprep.mubr.bf16.mxu0 %v14383_v23 }
 0x78c   : > { %v4778_v2 = vadd.f32 %v4714_v63, %v4356_v41  ;;  %v4715_v47 = vmul.f32 %v9527_v27, %v4651_v50  ;;  %v4654_v50 = vld [vmem:[%s12245_s15 + $0x1d0] sm:$0xff] }
 0x78d   : > { %v4584_v57 = vmul.f32 1.442695, %v4462_v18  ;;  %v4463_v31 = vmul.f32 0.5, %v4382_v55  ;;  %v4962_v5 = vpop.f32.mrb[64].mxu0 }
 0x78e   : > { %v4779_v16 = vadd.f32 %v4715_v47, %v4360_v38  ;;  %v4963_v44 = vadd.f32 %v4962_v5, %v12560_v42  ;;  %v4964_v15 = vpop.f32.mrb[65].mxu0  ;;  %v4655_v38 = vld [vmem:[%s12245_s15 + $0x1d8] sm:$0xff]  ;;  %v9373_v5 = vld [vmem:[#allocation13 + $0x8] sm:$0xff]  }
 0x78f   : > { %9532 = vpow2.f32 %v4584_v57  ;;  %v4586_v1 = vmul.f32 1.442695, %v4463_v31  ;;  %v4965_v14 = vadd.f32 %v4964_v15, %v12564_v12  ;;  %v12572_v0 = vpop.f32.mrb[56].mxu1  ;;  %v4966_v13 = vpop.f32.mrb[66].mxu0 }
 0x790   : > { %v4815_v58 = vpack.c.bf16 %v4779_v16, %v4778_v2  ;;  %v4967_v33 = vadd.f32 %v4966_v13, %v12560_v42  ;;  %v4387_v51 = vpop.f32.mrb[57].mxu1  ;;  %v4968_v29 = vpop.f32.mrb[67].mxu0  ;;  %v5281_v60 = vmax.f32 %v4963_v44, 0.0  ;;  %v4376_v16 = vadd.f32 %v12549_v26, %v12250_v24 }
 0x791   : > { %v9529_v61 = vpop.eup %9528  ;;  %9534 = vpow2.f32 %v4586_v1  ;;  %v4388_v8 = vadd.f32 %v4387_v51, %v12230_v22  ;;  %v4969_v48 = vadd.f32 %v4968_v29, %v12564_v12  ;;  %v12578_v56 = vpop.f32.mrb[58].mxu1  ;;  %v5282_v28 = vmax.f32 %v4965_v14, 0.0 }
 0x792   : > { %v4716_v39 = vmul.f32 %v9529_v61, %v4652_v10  ;;  %v5283_v3 = vmax.f32 %v4967_v33, 0.0  ;;  %v4391_v53 = vpop.f32.mrb[59].mxu1  ;;  %5231 = vmatmul.mubr.bf16.gmra.mrb[172].mxu0 %v4815_v58  ;;  %v4380_v26 = vadd.f32 %v12556_v62, %v12250_v24 }
 0x793   : > { %v9531_v30 = vpop.eup %9530  ;;  %v4464_v46 = vmul.f32 0.5, %v4388_v8  ;;  %v5284_v25 = vmax.f32 %v4969_v48, 0.0  ;;  %v4392_v17 = vadd.f32 %v4391_v53, %v12230_v22  ;;  %5240 = vmatprep.mubr.bf16.mxu0 %v14383_v23 }
 0x794   : > { %v4780_v52 = vadd.f32 %v4716_v39, %v4366_v49  ;;  %v4717_v11 = vmul.f32 %v9531_v30, %v4653_v54  ;;  %v12586_v59 = vpack.c.bf16 %v5283_v3, %v5281_v60  ;;  %v9386_v60 = vld [vmem:[#allocation13 + $0x10] sm:$0xff]   ;;  %v4656_v30 = vld [vmem:[%s12245_s15 + $0x1e0] sm:$0xff] }
 0x795   : > { %v4588_v36 = vmul.f32 1.442695, %v4464_v46  ;;  %v12588_v4 = vpack.c.bf16 %v5284_v25, %v5282_v28  ;;  %v4465_v43 = vmul.f32 0.5, %v4392_v17  ;;  %v4972_v40 = vpop.f32.mrb[68].mxu0 }
 0x796   : > { %v4781_v35 = vadd.f32 %v4717_v11, %v4370_v7  ;;  %v4973_v6 = vadd.f32 %v4972_v40, %v12560_v42  ;;  %v4974_v21 = vpop.f32.mrb[69].mxu0  ;;  %v4657_v11 = vld [vmem:[%s12245_s15 + $0x1e8] sm:$0xff]  ;;  %v4386_v40 = vadd.f32 %v12572_v0, %v12250_v24 }
 0x797   : > { %9536 = vpow2.f32 %v4588_v36  ;;  %v4590_v9 = vmul.f32 1.442695, %v4465_v43  ;;  %v4975_v41 = vadd.f32 %v4974_v21, %v12564_v12  ;;  %v12593_v19 = vpop.f32.mrb[60].mxu1  ;;  %v4976_v63 = vpop.f32.mrb[70].mxu0  ;;  %5911 = vmatprep.mubr.bf16.mxu1 %v12588_v4  ;;  %v9387_v43 = vld [vmem:[#allocation13 + $0x18] sm:$0xff]  }
 0x798   : > { %v4816_v45 = vpack.c.bf16 %v4781_v35, %v4780_v52  ;;  %v4977_v27 = vadd.f32 %v4976_v63, %v12560_v42  ;;  %v4397_v18 = vpop.f32.mrb[61].mxu1  ;;  %v4978_v55 = vpop.f32.mrb[71].mxu0  ;;  %5912 = vmatmul.mubr.bf16.vlgmr.msra.gmra.mrb[64].mxu1 %v12586_v59  ;;  %v5285_v15 = vmax.f32 %v4973_v6, 0.0  ;;  %v4390_v63 = vadd.f32 %v12578_v56, %v12250_v24 }
 0x799   : > { %v9533_v2 = vpop.eup %9532  ;;  %9538 = vpow2.f32 %v4590_v9  ;;  %v4398_v47 = vadd.f32 %v4397_v18, %v12230_v22  ;;  %v4979_v57 = vadd.f32 %v4978_v55, %v12564_v12  ;;  %7233 = vmatpush1.bf16.msra.mxu1 %v9360_v37  ;;  %v12601_v31 = vpop.f32.mrb[62].mxu1  ;;  %v5286_v13 = vmax.f32 %v4975_v41, 0.0  ;;  %v9388_v55 = vld [vmem:[#allocation13 + $0x20] sm:$0xff]  }
 0x79a   : > { %v4718_v44 = vmul.f32 %v9533_v2, %v4654_v50  ;;  %v5287_v10 = vmax.f32 %v4977_v27, 0.0  ;;  %v4401_v1 = vpop.f32.mrb[63].mxu1  ;;  %5241 = vmatmul.mubr.bf16.gmra.mrb[176].mxu0 %v4816_v45  ;;  %7234 = vmatprep.subr.bf16.mxu1 %v14383_v23 }
 0x79b   : > { %v9535_v14 = vpop.eup %9534  ;;  %v4466_v58 = vmul.f32 0.5, %v4398_v47  ;;  %v5288_v33 = vmax.f32 %v4979_v57, 0.0  ;;  %v4402_v51 = vadd.f32 %v4401_v1, %v12230_v22  ;;  %5250 = vmatprep.mubr.bf16.mxu0 %v14383_v23  ;;  %v4658_v57 = vld [vmem:[%s12245_s15 + $0x1f0] sm:$0xff]  ;;  %v4659_v1 = vld [vmem:[%s12245_s15 + $0x1f8] sm:$0xff]  ;;  %s9740_s15 = scalar_lea.vmem %s13824_s7, 8192 }
 0x79c   : > { %v4782_v29 = vadd.f32 %v4718_v44, %v4376_v16  ;;  %v4719_v61 = vmul.f32 %v9535_v14, %v4655_v38  ;;  %v12610_v54 = vpack.c.bf16 %v5287_v10, %v5285_v15  ;;  %p9741_p4 = scmp.ne.s32.totalorder %s13824_s7, %s9740_s15  ;;  %p9748_p0 = scmp.lt.s32.totalorder %s9746_s25, %s9740_s15 }
 0x79d   : > { %v4592_v8 = vmul.f32 1.442695, %v4466_v58  ;;  %v12612_v48 = vpack.c.bf16 %v5288_v33, %v5286_v13  ;;  %v4467_v49 = vmul.f32 0.5, %v4402_v51  ;;  %v4982_v39 = vpop.f32.mrb[72].mxu0  ;;  %7235 = vmatpush1.bf16.msra.mxu1 %v9373_v5  ;;  %v9389_v13 = vld [vmem:[#allocation13 + $0x28] sm:$0xff]   ;;  %v4396_v58 = vadd.f32 %v12593_v19, %v12250_v24 }
 0x79e   : > { %v4783_v3 = vadd.f32 %v4719_v61, %v4380_v26  ;;  %v4983_v22 = vadd.f32 %v4982_v39, %v12560_v42  ;;  %v4984_v53 = vpop.f32.mrb[73].mxu0  ;;  %7236 = vmatprep.subr.bf16.mxu1 %v14383_v23  ;;  %v4400_v39 = vadd.f32 %v12601_v31, %v12250_v24  ;;  %p9742_p8 = pnand %p9741_p4, %p14594_p7  ;;  %p9749_p6 = por %p9748_p0, %p9747_p5 }
 0x79f   : > { %9540 = vpow2.f32 %v4592_v8  ;;  %v4594_v62 = vmul.f32 1.442695, %v4467_v49  ;;  %v4985_v28 = vadd.f32 %v4984_v53, %v12564_v12  ;;  %v4986_v46 = vpop.f32.mrb[74].mxu0  ;;  %5921 = vmatprep.mubr.bf16.mxu1 %v12612_v48  ;;  %v9390_v53 = vld [vmem:[#allocation13 + $0x30] sm:$0xff]  }
 0x7a0   : > { %v4817_v25 = vpack.c.bf16 %v4783_v3, %v4782_v29  ;;  %v4987_v17 = vadd.f32 %v4986_v46, %v12560_v42  ;;  %v4988_v52 = vpop.f32.mrb[75].mxu0  ;;  %5922 = vmatmul.mubr.bf16.gmra.mrb[68].mxu1 %v12610_v54  ;;  %v5289_v35 = vmax.f32 %v4983_v22, 0.0  ;;  %p9743_p11 = pneg %p9742_p8 }
 0x7a1   : > { %v9537_v7 = vpop.eup %9536  ;;  %9542 = vpow2.f32 %v4594_v62  ;;  %v4989_v36 = vadd.f32 %v4988_v52, %v12564_v12  ;;  %7237 = vmatpush1.bf16.msra.mxu1 %v9386_v60  ;;  %v5290_v50 = vmax.f32 %v4985_v28, 0.0 }
 0x7a2   : > { %v4720_v37 = vmul.f32 %v9537_v7, %v4656_v30  ;;  %v5291_v6 = vmax.f32 %v4987_v17, 0.0  ;;  %5251 = vmatmul.mubr.bf16.gmra.mrb[180].mxu0 %v4817_v25  ;;  %7238 = vmatprep.subr.bf16.mxu1 %v14383_v23  ;;  %v9391_v7 = vld [vmem:[#allocation13 + $0x38] sm:$0xff]   ;;  %p9750_p9 = pnand %p9749_p6, %p9743_p11 }
 0x7a3   : > { %v9539_v21 = vpop.eup %9538  ;;  %v5292_v9 = vmax.f32 %v4989_v36, 0.0  ;;  %5260 = vmatprep.mubr.bf16.mxu0 %v14383_v23 }
 0x7a4   : > { %v4784_v41 = vadd.f32 %v4720_v37, %v4386_v40  ;;  %v4721_v45 = vmul.f32 %v9539_v21, %v4657_v11  ;;  %v12629_v27 = vpack.c.bf16 %v5291_v6, %v5289_v35  ;;  %v9392_v21 = vld [vmem:[#allocation13 + $0x40] sm:$0xff]  }
 0x7a5   : > { %v12631_v0 = vpack.c.bf16 %v5292_v9, %v5290_v50  ;;  %v4992_v18 = vpop.f32.mrb[76].mxu0  ;;  %7239 = vmatpush1.bf16.msra.mxu1 %v9387_v43 }
 0x7a6   : > { %v4785_v2 = vadd.f32 %v4721_v45, %v4390_v63  ;;  %v4993_v38 = vadd.f32 %v4992_v18, %v12560_v42  ;;  %v4994_v47 = vpop.f32.mrb[77].mxu0  ;;  %7240 = vmatprep.subr.bf16.mxu1 %v14383_v23 }
 0x7a7   : > { %v4995_v5 = vadd.f32 %v4994_v47, %v12564_v12  ;;  %v4996_v16 = vpop.f32.mrb[78].mxu0  ;;  %5931 = vmatprep.mubr.bf16.mxu1 %v12631_v0 }
 0x7a8   : > { %v4818_v56 = vpack.c.bf16 %v4785_v2, %v4784_v41  ;;  %v4997_v44 = vadd.f32 %v4996_v16, %v12560_v42  ;;  %v4998_v15 = vpop.f32.mrb[79].mxu0  ;;  %5932 = vmatmul.mubr.bf16.gmra.mrb[72].mxu1 %v12629_v27  ;;  %v5293_v51 = vmax.f32 %v4993_v38, 0.0 }
 0x7a9   : > { %v9541_v10 = vpop.eup %9540  ;;  %v4999_v14 = vadd.f32 %v4998_v15, %v12564_v12  ;;  %7241 = vmatpush1.bf16.msra.mxu1 %v9388_v55  ;;  %v5294_v61 = vmax.f32 %v4995_v5, 0.0  ;;  %v9393_v55 = vld [vmem:[#allocation13 + $0x48] sm:$0xff]  }
 0x7aa   : > { %v4722_v33 = vmul.f32 %v9541_v10, %v4658_v57  ;;  %v5295_v29 = vmax.f32 %v4997_v44, 0.0  ;;  %5261 = vmatmul.mubr.bf16.gmra.mrb[184].mxu0 %v4818_v56  ;;  %7242 = vmatprep.subr.bf16.mxu1 %v14383_v23  ;;  %v9394_v44 = vld [vmem:[#allocation13 + $0x50] sm:$0xff]  }
 0x7ab   : > { %v9543_v26 = vpop.eup %9542  ;;  %v5296_v8 = vmax.f32 %v4999_v14, 0.0  ;;  %5270 = vmatprep.mubr.bf16.mxu0 %v14383_v23 }
 0x7ac   : > { %v4786_v49 = vadd.f32 %v4722_v33, %v4396_v58  ;;  %v4723_v60 = vmul.f32 %v9543_v26, %v4659_v1  ;;  %v12648_v3 = vpack.c.bf16 %v5295_v29, %v5293_v51 }
 0x7ad   : > { %v12650_v22 = vpack.c.bf16 %v5296_v8, %v5294_v61  ;;  %v5002_v19 = vpop.f32.mrb[80].mxu0  ;;  %7243 = vmatpush1.bf16.msra.mxu1 %v9389_v13 }
 0x7ae   : > { %v4787_v30 = vadd.f32 %v4723_v60, %v4400_v39  ;;  %v5003_v62 = vadd.f32 %v5002_v19, %v12560_v42  ;;  %v5004_v28 = vpop.f32.mrb[81].mxu0  ;;  %7244 = vmatprep.subr.bf16.mxu1 %v14383_v23 }
 0x7af   : > { %v5005_v46 = vadd.f32 %v5004_v28, %v12564_v12  ;;  %v5006_v25 = vpop.f32.mrb[82].mxu0  ;;  %5941 = vmatprep.mubr.bf16.mxu1 %v12650_v22 }
 0x7b0   : > { %v4819_v24 = vpack.c.bf16 %v4787_v30, %v4786_v49  ;;  %v5007_v31 = vadd.f32 %v5006_v25, %v12560_v42  ;;  %v5008_v17 = vpop.f32.mrb[83].mxu0  ;;  %5942 = vmatmul.mubr.bf16.gmra.mrb[76].mxu1 %v12648_v3  ;;  %v5297_v11 = vmax.f32 %v5003_v62, 0.0 }
 0x7b1   : > { %v5009_v52 = vadd.f32 %v5008_v17, %v12564_v12  ;;  %7245 = vmatpush1.bf16.msra.mxu1 %v9390_v53  ;;  %v5298_v43 = vmax.f32 %v5005_v46, 0.0  ;;  %v9395_v17 = vld [vmem:[#allocation13 + $0x58] sm:$0xff]  }
 0x7b2   : > { %v5299_v36 = vmax.f32 %v5007_v31, 0.0  ;;  %5271 = vmatmul.mubr.bf16.gmra.mrb[188].mxu0 %v4819_v24  ;;  %7246 = vmatprep.subr.bf16.mxu1 %v14383_v23 }
 0x7b3   : > { %v5300_v40 = vmax.f32 %v5009_v52, 0.0  ;;  %6264 = vmatprep.mubr.bf16.mxu0 %v12588_v4 }
 0x7b4   : > { %v12661_v37 = vpack.c.bf16 %v5299_v36, %v5297_v11 }
 0x7b5   : > { %v12663_v35 = vpack.c.bf16 %v5300_v40, %v5298_v43  ;;  %v5012_v6 = vpop.f32.mrb[84].mxu0  ;;  %7247 = vmatpush1.bf16.msra.mxu1 %v9391_v7 }
 0x7b6   : > { %v5013_v50 = vadd.f32 %v5012_v6, %v12560_v42  ;;  %v5014_v9 = vpop.f32.mrb[85].mxu0  ;;  %7248 = vmatprep.subr.bf16.mxu1 %v14383_v23 }
 0x7b7   : > { %v5015_v41 = vadd.f32 %v5014_v9, %v12564_v12  ;;  %v5016_v63 = vpop.f32.mrb[86].mxu0  ;;  %5951 = vmatprep.mubr.bf16.mxu1 %v12663_v35 }
 0x7b8   : > { %v5017_v45 = vadd.f32 %v5016_v63, %v12560_v42  ;;  %v5018_v4 = vpop.f32.mrb[87].mxu0  ;;  %5952 = vmatmul.mubr.bf16.gmra.mrb[80].mxu1 %v12661_v37  ;;  %v5301_v2 = vmax.f32 %v5013_v50, 0.0 }
 0x7b9   : > { %v5019_v18 = vadd.f32 %v5018_v4, %v12564_v12  ;;  %7249 = vmatpush1.bf16.msra.mxu1 %v9392_v21  ;;  %v5302_v47 = vmax.f32 %v5015_v41, 0.0 }
 0x7ba   : > { %v5303_v38 = vmax.f32 %v5017_v45, 0.0  ;;  %6265 = vmatmul.mubr.bf16.vlgmr.msra.gmra.mrb[192].mxu0 %v12586_v59  ;;  %7250 = vmatprep.subr.bf16.mxu1 %v14383_v23 }
 0x7bb   : > { %v5304_v57 = vmax.f32 %v5019_v18, 0.0  ;;  %6274 = vmatprep.mubr.bf16.mxu0 %v12612_v48 }
 0x7bc   : > { %v12675_v5 = vpack.c.bf16 %v5303_v38, %v5301_v2 }
 0x7bd   : > { %v12677_v16 = vpack.c.bf16 %v5304_v57, %v5302_v47  ;;  %v5022_v56 = vpop.f32.mrb[88].mxu0  ;;  %7251 = vmatpush1.bf16.msra.mxu1 %v9393_v55 }
 0x7be   : > { %v5023_v15 = vadd.f32 %v5022_v56, %v12560_v42  ;;  %v5024_v10 = vpop.f32.mrb[89].mxu0  ;;  %7252 = vmatprep.subr.bf16.mxu1 %v14383_v23 }
 0x7bf   : > { %v5025_v59 = vadd.f32 %v5024_v10, %v12564_v12  ;;  %v5026_v1 = vpop.f32.mrb[90].mxu0  ;;  %5961 = vmatprep.mubr.bf16.mxu1 %v12677_v16 }
 0x7c0   : > { %v5027_v14 = vadd.f32 %v5026_v1, %v12560_v42  ;;  %v5028_v48 = vpop.f32.mrb[91].mxu0  ;;  %5962 = vmatmul.mubr.bf16.gmra.mrb[84].mxu1 %v12675_v5  ;;  %v5305_v58 = vmax.f32 %v5023_v15, 0.0 }
 0x7c1   : > { %v5029_v13 = vadd.f32 %v5028_v48, %v12564_v12  ;;  %7253 = vmatpush1.bf16.msra.mxu1 %v9394_v44  ;;  %v5306_v51 = vmax.f32 %v5025_v59, 0.0  ;;  %v9396_v59 = vld [vmem:[#allocation13 + $0x60] sm:$0xff]  }
 0x7c2   : > { %v5307_v33 = vmax.f32 %v5027_v14, 0.0  ;;  %6275 = vmatmul.mubr.bf16.gmra.mrb[196].mxu0 %v12610_v54  ;;  %7254 = vmatprep.subr.bf16.mxu1 %v14383_v23 }
 0x7c3   : > { %v5308_v29 = vmax.f32 %v5029_v13, 0.0  ;;  %6284 = vmatprep.mubr.bf16.mxu0 %v12631_v0 }
 0x7c4   : > { %v12689_v26 = vpack.c.bf16 %v5307_v33, %v5305_v58 }
 0x7c5   : > { %v12691_v61 = vpack.c.bf16 %v5308_v29, %v5306_v51  ;;  %v5032_v8 = vpop.f32.mrb[92].mxu0  ;;  %7255 = vmatpush1.bf16.msra.mxu1 %v9395_v17 }
 0x7c6   : > { %v5033_v49 = vadd.f32 %v5032_v8, %v12560_v42  ;;  %v5034_v39 = vpop.f32.mrb[93].mxu0  ;;  %7256 = vmatprep.subr.bf16.mxu1 %v14383_v23 }
 0x7c7   : > { %v5035_v60 = vadd.f32 %v5034_v39, %v12564_v12  ;;  %v5036_v19 = vpop.f32.mrb[94].mxu0  ;;  %5971 = vmatprep.mubr.bf16.mxu1 %v12691_v61 }
 0x7c8   : > { %v5037_v54 = vadd.f32 %v5036_v19, %v12560_v42  ;;  %v5038_v53 = vpop.f32.mrb[95].mxu0  ;;  %5972 = vmatmul.mubr.bf16.gmra.mrb[88].mxu1 %v12689_v26  ;;  %v5309_v30 = vmax.f32 %v5033_v49, 0.0 }
 0x7c9   : > { %v5039_v0 = vadd.f32 %v5038_v53, %v12564_v12  ;;  %v5310_v28 = vmax.f32 %v5035_v60, 0.0  ;;  %7257 = vmatpush1.bf16.msra.mxu1 %v9396_v59 }
 0x7ca   : > { %v5311_v62 = vmax.f32 %v5037_v54, 0.0  ;;  %6285 = vmatmul.mubr.bf16.gmra.mrb[200].mxu0 %v12629_v27  ;;  %7258 = vmatprep.subr.bf16.mxu1 %v14383_v23 }
 0x7cb   : > { %v5312_v46 = vmax.f32 %v5039_v0, 0.0  ;;  %6294 = vmatprep.mubr.bf16.mxu0 %v12650_v22 }
 0x7cc   : > { %v12701_v25 = vpack.c.bf16 %v5311_v62, %v5309_v30 }
 0x7cd   : > { %v12703_v24 = vpack.c.bf16 %v5312_v46, %v5310_v28  ;;  %v5042_v31 = vpop.f32.mrb[96].mxu0 }
 0x7ce   : > { %v5043_v52 = vadd.f32 %v5042_v31, %v12560_v42  ;;  %v5044_v7 = vpop.f32.mrb[97].mxu0 }
 0x7cf   : > { %v5045_v11 = vadd.f32 %v5044_v7, %v12564_v12  ;;  %v5046_v36 = vpop.f32.mrb[98].mxu0  ;;  %5981 = vmatprep.mubr.bf16.mxu1 %v12703_v24 }
 0x7d0   : > { %v5047_v27 = vadd.f32 %v5046_v36, %v12560_v42  ;;  %v5048_v43 = vpop.f32.mrb[99].mxu0  ;;  %5982 = vmatmul.mubr.bf16.gmra.mrb[92].mxu1 %v12701_v25  ;;  %v5313_v40 = vmax.f32 %v5043_v52, 0.0 }
 0x7d1   : > { %v5049_v22 = vadd.f32 %v5048_v43, %v12564_v12  ;;  %v5314_v21 = vmax.f32 %v5045_v11, 0.0  ;;  %v9397_v11 = vld [vmem:[#allocation13 + $0x68] sm:$0xff]  }
 0x7d2   : > { %v5315_v6 = vmax.f32 %v5047_v27, 0.0  ;;  %6295 = vmatmul.mubr.bf16.gmra.mrb[204].mxu0 %v12648_v3  ;;  %7259 = vmatpush1.bf16.msra.mxu1 %v9397_v11 }
 0x7d3   : > { %v5316_v50 = vmax.f32 %v5049_v22, 0.0  ;;  %6304 = vmatprep.mubr.bf16.mxu0 %v12663_v35  ;;  %7260 = vmatprep.subr.bf16.mxu1 %v14383_v23 }
 0x7d4   : > { %v12714_v9 = vpack.c.bf16 %v5315_v6, %v5313_v40 }
 0x7d5   : > { %v12716_v41 = vpack.c.bf16 %v5316_v50, %v5314_v21  ;;  %v5052_v63 = vpop.f32.mrb[100].mxu0 }
 0x7d6   : > { %v5053_v45 = vadd.f32 %v5052_v63, %v12560_v42  ;;  %v5054_v4 = vpop.f32.mrb[101].mxu0 }
 0x7d7   : > { %v5055_v18 = vadd.f32 %v5054_v4, %v12564_v12  ;;  %v5056_v55 = vpop.f32.mrb[102].mxu0  ;;  %5991 = vmatprep.mubr.bf16.mxu1 %v12716_v41 }
 0x7d8   : > { %v5057_v2 = vadd.f32 %v5056_v55, %v12560_v42  ;;  %v5058_v3 = vpop.f32.mrb[103].mxu0  ;;  %5992 = vmatmul.mubr.bf16.gmra.mrb[96].mxu1 %v12714_v9  ;;  %v5317_v38 = vmax.f32 %v5053_v45, 0.0 }
 0x7d9   : > { %v5059_v35 = vadd.f32 %v5058_v3, %v12564_v12  ;;  %v5318_v57 = vmax.f32 %v5055_v18, 0.0 }
 0x7da   : > { %v5319_v47 = vmax.f32 %v5057_v2, 0.0  ;;  %6305 = vmatmul.mubr.bf16.gmra.mrb[208].mxu0 %v12661_v37 }
 0x7db   : > { %v5320_v56 = vmax.f32 %v5059_v35, 0.0  ;;  %6314 = vmatprep.mubr.bf16.mxu0 %v12677_v16 }
 0x7dc   : > { %v12726_v44 = vpack.c.bf16 %v5319_v47, %v5317_v38 }
 0x7dd   : > { %v12728_v15 = vpack.c.bf16 %v5320_v56, %v5318_v57  ;;  %v5062_v10 = vpop.f32.mrb[104].mxu0 }
 0x7de   : > { %v5063_v1 = vadd.f32 %v5062_v10, %v12560_v42  ;;  %v5064_v14 = vpop.f32.mrb[105].mxu0 }
 0x7df   : > { %v5065_v48 = vadd.f32 %v5064_v14, %v12564_v12  ;;  %v5066_v13 = vpop.f32.mrb[106].mxu0  ;;  %6001 = vmatprep.mubr.bf16.mxu1 %v12728_v15 }
 0x7e0   : > { %v5067_v37 = vadd.f32 %v5066_v13, %v12560_v42  ;;  %v5068_v58 = vpop.f32.mrb[107].mxu0  ;;  %6002 = vmatmul.mubr.bf16.gmra.mrb[100].mxu1 %v12726_v44  ;;  %v5321_v33 = vmax.f32 %v5063_v1, 0.0 }
 0x7e1   : > { %v5069_v16 = vadd.f32 %v5068_v58, %v12564_v12  ;;  %v5322_v29 = vmax.f32 %v5065_v48, 0.0  ;;  %v9398_v48 = vld [vmem:[#allocation13 + $0x70] sm:$0xff]  }
 0x7e2   : > { %v5323_v51 = vmax.f32 %v5067_v37, 0.0  ;;  %6315 = vmatmul.mubr.bf16.gmra.mrb[212].mxu0 %v12675_v5  ;;  %7261 = vmatpush1.bf16.msra.mxu1 %v9398_v48 }
 0x7e3   : > { %v5324_v8 = vmax.f32 %v5069_v16, 0.0  ;;  %6324 = vmatprep.mubr.bf16.mxu0 %v12691_v61  ;;  %7262 = vmatprep.subr.bf16.mxu1 %v14383_v23 }
 0x7e4   : > { %v12739_v49 = vpack.c.bf16 %v5323_v51, %v5321_v33 }
 0x7e5   : > { %v12741_v39 = vpack.c.bf16 %v5324_v8, %v5322_v29  ;;  %v5072_v60 = vpop.f32.mrb[108].mxu0 }
 0x7e6   : > { %v5073_v19 = vadd.f32 %v5072_v60, %v12560_v42  ;;  %v5074_v54 = vpop.f32.mrb[109].mxu0 }
 0x7e7   : > { %v5075_v53 = vadd.f32 %v5074_v54, %v12564_v12  ;;  %v5076_v0 = vpop.f32.mrb[110].mxu0  ;;  %6011 = vmatprep.mubr.bf16.mxu1 %v12741_v39 }
 0x7e8   : > { %v5077_v30 = vadd.f32 %v5076_v0, %v12560_v42  ;;  %v5078_v5 = vpop.f32.mrb[111].mxu0  ;;  %6012 = vmatmul.mubr.bf16.gmra.mrb[104].mxu1 %v12739_v49  ;;  %v5325_v62 = vmax.f32 %v5073_v19, 0.0 }
 0x7e9   : > { %v5079_v61 = vadd.f32 %v5078_v5, %v12564_v12  ;;  %v5326_v46 = vmax.f32 %v5075_v53, 0.0 }
 0x7ea   : > { %v5327_v28 = vmax.f32 %v5077_v30, 0.0  ;;  %6325 = vmatmul.mubr.bf16.gmra.mrb[216].mxu0 %v12689_v26 }
 0x7eb   : > { %v5328_v31 = vmax.f32 %v5079_v61, 0.0  ;;  %6334 = vmatprep.mubr.bf16.mxu0 %v12703_v24 }
 0x7ec   : > { %v12751_v17 = vpack.c.bf16 %v5327_v28, %v5325_v62 }
 0x7ed   : > { %v12753_v52 = vpack.c.bf16 %v5328_v31, %v5326_v46  ;;  %v5082_v7 = vpop.f32.mrb[112].mxu0 }
 0x7ee   : > { %v5083_v36 = vadd.f32 %v5082_v7, %v12560_v42  ;;  %v5084_v27 = vpop.f32.mrb[113].mxu0 }
 0x7ef   : > { %v5085_v43 = vadd.f32 %v5084_v27, %v12564_v12  ;;  %v5086_v22 = vpop.f32.mrb[114].mxu0  ;;  %6021 = vmatprep.mubr.bf16.mxu1 %v12753_v52 }
 0x7f0   : > { %v5087_v26 = vadd.f32 %v5086_v22, %v12560_v42  ;;  %v5088_v40 = vpop.f32.mrb[115].mxu0  ;;  %6022 = vmatmul.mubr.bf16.gmra.mrb[108].mxu1 %v12751_v17  ;;  %v5329_v6 = vmax.f32 %v5083_v36, 0.0 }
 0x7f1   : > { %v5089_v24 = vadd.f32 %v5088_v40, %v12564_v12  ;;  %v5330_v50 = vmax.f32 %v5085_v43, 0.0  ;;  %v9399_v43 = vld [vmem:[#allocation13 + $0x78] sm:$0xff]  }
 0x7f2   : > { %v5331_v21 = vmax.f32 %v5087_v26, 0.0  ;;  %6335 = vmatmul.mubr.bf16.gmra.mrb[220].mxu0 %v12701_v25  ;;  %7263 = vmatpush1.bf16.msra.mxu1 %v9399_v43 }
 0x7f3   : > { %v5332_v63 = vmax.f32 %v5089_v24, 0.0  ;;  %6344 = vmatprep.mubr.bf16.mxu0 %v12716_v41  ;;  %7521 = vmatprep.subr.bf16.mxu1 %v14383_v23 }
 0x7f4   : > { %v12764_v45 = vpack.c.bf16 %v5331_v21, %v5329_v6 }
 0x7f5   : > { %v12766_v4 = vpack.c.bf16 %v5332_v63, %v5330_v50  ;;  %v5092_v18 = vpop.f32.mrb[116].mxu0 }
 0x7f6   : > { %v5093_v55 = vadd.f32 %v5092_v18, %v12560_v42  ;;  %v5094_v2 = vpop.f32.mrb[117].mxu0 }
 0x7f7   : > { %v5095_v3 = vadd.f32 %v5094_v2, %v12564_v12  ;;  %v5096_v35 = vpop.f32.mrb[118].mxu0  ;;  %6031 = vmatprep.mubr.bf16.mxu1 %v12766_v4 }
 0x7f8   : > { %v5097_v38 = vadd.f32 %v5096_v35, %v12560_v42  ;;  %v5098_v25 = vpop.f32.mrb[119].mxu0  ;;  %6032 = vmatmul.mubr.bf16.gmra.mrb[112].mxu1 %v12764_v45  ;;  %v5333_v47 = vmax.f32 %v5093_v55, 0.0 }
 0x7f9   : > { %v5099_v41 = vadd.f32 %v5098_v25, %v12564_v12  ;;  %v5334_v56 = vmax.f32 %v5095_v3, 0.0 }
 0x7fa   : > { %v5335_v57 = vmax.f32 %v5097_v38, 0.0  ;;  %6345 = vmatmul.mubr.bf16.gmra.mrb[224].mxu0 %v12714_v9 }
 0x7fb   : > { %v5336_v10 = vmax.f32 %v5099_v41, 0.0  ;;  %6354 = vmatprep.mubr.bf16.mxu0 %v12728_v15 }
 0x7fc   : > { %v12776_v59 = vpack.c.bf16 %v5335_v57, %v5333_v47 }
 0x7fd   : > { %v12778_v1 = vpack.c.bf16 %v5336_v10, %v5334_v56  ;;  %v5102_v14 = vpop.f32.mrb[120].mxu0 }
 0x7fe   : > { %v5103_v13 = vadd.f32 %v5102_v14, %v12560_v42  ;;  %v5104_v37 = vpop.f32.mrb[121].mxu0 }
 0x7ff   : > { %v5105_v58 = vadd.f32 %v5104_v37, %v12564_v12  ;;  %v5106_v16 = vpop.f32.mrb[122].mxu0  ;;  %6041 = vmatprep.mubr.bf16.mxu1 %v12778_v1 }
 0x800   : > { %v5107_v9 = vadd.f32 %v5106_v16, %v12560_v42  ;;  %v5108_v33 = vpop.f32.mrb[123].mxu0  ;;  %6042 = vmatmul.mubr.bf16.gmra.mrb[116].mxu1 %v12776_v59  ;;  %v5337_v51 = vmax.f32 %v5103_v13, 0.0 }
 0x801   : > { %v5109_v15 = vadd.f32 %v5108_v33, %v12564_v12  ;;  %v5338_v8 = vmax.f32 %v5105_v58, 0.0 }
 0x802   : > { %v5339_v29 = vmax.f32 %v5107_v9, 0.0  ;;  %6355 = vmatmul.mubr.bf16.gmra.mrb[228].mxu0 %v12726_v44 }
 0x803   : > { %v5340_v60 = vmax.f32 %v5109_v15, 0.0  ;;  %6364 = vmatprep.mubr.bf16.mxu0 %v12741_v39 }
 0x804   : > { %v12789_v19 = vpack.c.bf16 %v5339_v29, %v5337_v51 }
 0x805   : > { %v12791_v54 = vpack.c.bf16 %v5340_v60, %v5338_v8  ;;  %v5112_v53 = vpop.f32.mrb[124].mxu0 }
 0x806   : > { %v5113_v0 = vadd.f32 %v5112_v53, %v12560_v42  ;;  %v5114_v30 = vpop.f32.mrb[125].mxu0 }
 0x807   : > { %v5115_v5 = vadd.f32 %v5114_v30, %v12564_v12  ;;  %v5116_v61 = vpop.f32.mrb[126].mxu0  ;;  %6051 = vmatprep.mubr.bf16.mxu1 %v12791_v54 }
 0x808   : > { %v5117_v62 = vadd.f32 %v5116_v61, %v12560_v42  ;;  %v5118_v44 = vpop.f32.mrb[127].mxu0  ;;  %6052 = vmatmul.mubr.bf16.gmra.mrb[120].mxu1 %v12789_v19  ;;  %v5341_v28 = vmax.f32 %v5113_v0, 0.0 }
 0x809   : > { %v5119_v39 = vadd.f32 %v5118_v44, %v12564_v12  ;;  %v5342_v31 = vmax.f32 %v5115_v5, 0.0 }
 0x80a   : > { %v5343_v46 = vmax.f32 %v5117_v62, 0.0  ;;  %6365 = vmatmul.mubr.bf16.gmra.mrb[232].mxu0 %v12739_v49 }
 0x80b   : > { %v5344_v7 = vmax.f32 %v5119_v39, 0.0  ;;  %6374 = vmatprep.mubr.bf16.mxu0 %v12753_v52 }
 0x80c   : > { %v12801_v11 = vpack.c.bf16 %v5343_v46, %v5341_v28 }
 0x80d   : > { %v12803_v36 = vpack.c.bf16 %v5344_v7, %v5342_v31  ;;  %v5122_v27 = vpop.f32.mrb[128].mxu0 }
 0x80e   : > { %v5123_v22 = vadd.f32 %v5122_v27, %v12560_v42  ;;  %v5124_v26 = vpop.f32.mrb[129].mxu0 }
 0x80f   : > { %v5125_v40 = vadd.f32 %v5124_v26, %v12564_v12  ;;  %v5126_v24 = vpop.f32.mrb[130].mxu0  ;;  %6061 = vmatprep.mubr.bf16.mxu1 %v12803_v36 }
 0x810   : > { %v5127_v49 = vadd.f32 %v5126_v24, %v12560_v42  ;;  %v5128_v6 = vpop.f32.mrb[131].mxu0  ;;  %6062 = vmatmul.mubr.bf16.gmra.mrb[124].mxu1 %v12801_v11  ;;  %v5345_v21 = vmax.f32 %v5123_v22, 0.0 }
 0x811   : > { %v5129_v52 = vadd.f32 %v5128_v6, %v12564_v12  ;;  %v5346_v63 = vmax.f32 %v5125_v40, 0.0 }
 0x812   : > { %v5347_v50 = vmax.f32 %v5127_v49, 0.0  ;;  %6375 = vmatmul.mubr.bf16.gmra.mrb[236].mxu0 %v12751_v17 }
 0x813   : > { %v5348_v18 = vmax.f32 %v5129_v52, 0.0  ;;  %6384 = vmatprep.mubr.bf16.mxu0 %v12766_v4 }
 0x814   : > { %v12814_v55 = vpack.c.bf16 %v5347_v50, %v5345_v21 }
 0x815   : > { %v12816_v2 = vpack.c.bf16 %v5348_v18, %v5346_v63  ;;  %v5132_v3 = vpop.f32.mrb[132].mxu0 }
 0x816   : > { %v5133_v35 = vadd.f32 %v5132_v3, %v12560_v42  ;;  %v5134_v38 = vpop.f32.mrb[133].mxu0 }
 0x817   : > { %v5135_v25 = vadd.f32 %v5134_v38, %v12564_v12  ;;  %v5136_v41 = vpop.f32.mrb[134].mxu0  ;;  %6071 = vmatprep.mubr.bf16.mxu1 %v12816_v2 }
 0x818   : > { %v5137_v47 = vadd.f32 %v5136_v41, %v12560_v42  ;;  %v5138_v17 = vpop.f32.mrb[135].mxu0  ;;  %6072 = vmatmul.mubr.bf16.gmra.mrb[128].mxu1 %v12814_v55  ;;  %v5349_v57 = vmax.f32 %v5133_v35, 0.0 }
 0x819   : > { %v5139_v4 = vadd.f32 %v5138_v17, %v12564_v12  ;;  %v5350_v10 = vmax.f32 %v5135_v25, 0.0 }
 0x81a   : > { %v5351_v56 = vmax.f32 %v5137_v47, 0.0  ;;  %6385 = vmatmul.mubr.bf16.gmra.mrb[240].mxu0 %v12764_v45 }
 0x81b   : > { %v5352_v14 = vmax.f32 %v5139_v4, 0.0  ;;  %6394 = vmatprep.mubr.bf16.mxu0 %v12778_v1 }
 0x81c   : > { %v12826_v48 = vpack.c.bf16 %v5351_v56, %v5349_v57 }
 0x81d   : > { %v12828_v13 = vpack.c.bf16 %v5352_v14, %v5350_v10  ;;  %v5142_v37 = vpop.f32.mrb[136].mxu0 }
 0x81e   : > { %v5143_v58 = vadd.f32 %v5142_v37, %v12560_v42  ;;  %v5144_v16 = vpop.f32.mrb[137].mxu0 }
 0x81f   : > { %v5145_v9 = vadd.f32 %v5144_v16, %v12564_v12  ;;  %v5146_v33 = vpop.f32.mrb[138].mxu0  ;;  %6081 = vmatprep.mubr.bf16.mxu1 %v12828_v13 }
 0x820   : > { %v5147_v15 = vadd.f32 %v5146_v33, %v12560_v42  ;;  %v5148_v45 = vpop.f32.mrb[139].mxu0  ;;  %6082 = vmatmul.mubr.bf16.gmra.mrb[132].mxu1 %v12826_v48  ;;  %v5353_v51 = vmax.f32 %v5143_v58, 0.0 }
 0x821   : > { %v5149_v1 = vadd.f32 %v5148_v45, %v12564_v12  ;;  %v5354_v8 = vmax.f32 %v5145_v9, 0.0 }
 0x822   : > { %v5355_v29 = vmax.f32 %v5147_v15, 0.0  ;;  %6395 = vmatmul.mubr.bf16.gmra.mrb[244].mxu0 %v12776_v59 }
 0x823   : > { %v5356_v60 = vmax.f32 %v5149_v1, 0.0  ;;  %6404 = vmatprep.mubr.bf16.mxu0 %v12791_v54 }
 0x824   : > { %v12838_v53 = vpack.c.bf16 %v5355_v29, %v5353_v51 }
 0x825   : > { %v12840_v0 = vpack.c.bf16 %v5356_v60, %v5354_v8  ;;  %v5152_v30 = vpop.f32.mrb[140].mxu0 }
 0x826   : > { %v5153_v5 = vadd.f32 %v5152_v30, %v12560_v42  ;;  %v5154_v61 = vpop.f32.mrb[141].mxu0 }
 0x827   : > { %v5155_v62 = vadd.f32 %v5154_v61, %v12564_v12  ;;  %v5156_v44 = vpop.f32.mrb[142].mxu0  ;;  %6091 = vmatprep.mubr.bf16.mxu1 %v12840_v0 }
 0x828   : > { %v5157_v39 = vadd.f32 %v5156_v44, %v12560_v42  ;;  %v5158_v59 = vpop.f32.mrb[143].mxu0  ;;  %6092 = vmatmul.mubr.bf16.gmra.mrb[136].mxu1 %v12838_v53  ;;  %v5357_v28 = vmax.f32 %v5153_v5, 0.0 }
 0x829   : > { %v5159_v54 = vadd.f32 %v5158_v59, %v12564_v12  ;;  %v5358_v31 = vmax.f32 %v5155_v62, 0.0 }
 0x82a   : > { %v5359_v46 = vmax.f32 %v5157_v39, 0.0  ;;  %6405 = vmatmul.mubr.bf16.gmra.mrb[248].mxu0 %v12789_v19 }
 0x82b   : > { %v5360_v7 = vmax.f32 %v5159_v54, 0.0  ;;  %6414 = vmatprep.mubr.bf16.mxu0 %v12803_v36 }
 0x82c   : > { %v12850_v27 = vpack.c.bf16 %v5359_v46, %v5357_v28 }
 0x82d   : > { %v12852_v43 = vpack.c.bf16 %v5360_v7, %v5358_v31  ;;  %v5162_v22 = vpop.f32.mrb[144].mxu0 }
 0x82e   : > { %v5163_v26 = vadd.f32 %v5162_v22, %v12560_v42  ;;  %v5164_v40 = vpop.f32.mrb[145].mxu0 }
 0x82f   : > { %v5165_v24 = vadd.f32 %v5164_v40, %v12564_v12  ;;  %v5166_v49 = vpop.f32.mrb[146].mxu0  ;;  %6101 = vmatprep.mubr.bf16.mxu1 %v12852_v43 }
 0x830   : > { %v5167_v6 = vadd.f32 %v5166_v49, %v12560_v42  ;;  %v5168_v19 = vpop.f32.mrb[147].mxu0  ;;  %6102 = vmatmul.mubr.bf16.gmra.mrb[140].mxu1 %v12850_v27  ;;  %v5361_v52 = vmax.f32 %v5163_v26, 0.0 }
 0x831   : > { %v5169_v36 = vadd.f32 %v5168_v19, %v12564_v12  ;;  %v5362_v50 = vmax.f32 %v5165_v24, 0.0 }
 0x832   : > { %v5363_v21 = vmax.f32 %v5167_v6, 0.0  ;;  %6415 = vmatmul.mubr.bf16.gmra.mrb[252].mxu0 %v12801_v11 }
 0x833   : > { %v5364_v63 = vmax.f32 %v5169_v36, 0.0  ;;  %6424 = vmatprep.mubr.bf16.mxu0 %v12816_v2 }
 0x834   : > { %v12862_v18 = vpack.c.bf16 %v5363_v21, %v5361_v52 }
 0x835   : > { %v12864_v3 = vpack.c.bf16 %v5364_v63, %v5362_v50  ;;  %v5172_v35 = vpop.f32.mrb[148].mxu0 }
 0x836   : > { %v5173_v38 = vadd.f32 %v5172_v35, %v12560_v42  ;;  %v5174_v25 = vpop.f32.mrb[149].mxu0 }
 0x837   : > { %v5175_v41 = vadd.f32 %v5174_v25, %v12564_v12  ;;  %v5176_v47 = vpop.f32.mrb[150].mxu0  ;;  %6111 = vmatprep.mubr.bf16.mxu1 %v12864_v3 }
 0x838   : > { %v5177_v17 = vadd.f32 %v5176_v47, %v12560_v42  ;;  %v5178_v11 = vpop.f32.mrb[151].mxu0  ;;  %6112 = vmatmul.mubr.bf16.gmra.mrb[144].mxu1 %v12862_v18  ;;  %v5365_v4 = vmax.f32 %v5173_v38, 0.0 }
 0x839   : > { %v5179_v2 = vadd.f32 %v5178_v11, %v12564_v12  ;;  %v5366_v56 = vmax.f32 %v5175_v41, 0.0 }
 0x83a   : > { %v5367_v57 = vmax.f32 %v5177_v17, 0.0  ;;  %6425 = vmatmul.mubr.bf16.gmra.mrb[0].mxu0 %v12814_v55 }
 0x83b   : > { %v5368_v10 = vmax.f32 %v5179_v2, 0.0  ;;  %6434 = vmatprep.mubr.bf16.mxu0 %v12828_v13 }
 0x83c   : > { %v12874_v14 = vpack.c.bf16 %v5367_v57, %v5365_v4 }
 0x83d   : > { %v12876_v37 = vpack.c.bf16 %v5368_v10, %v5366_v56  ;;  %v5182_v58 = vpop.f32.mrb[152].mxu0 }
 0x83e   : > { %v5183_v16 = vadd.f32 %v5182_v58, %v12560_v42  ;;  %v5184_v9 = vpop.f32.mrb[153].mxu0 }
 0x83f   : > { %v5185_v33 = vadd.f32 %v5184_v9, %v12564_v12  ;;  %v5186_v15 = vpop.f32.mrb[154].mxu0  ;;  %6121 = vmatprep.mubr.bf16.mxu1 %v12876_v37 }
 0x840   : > { %v5187_v45 = vadd.f32 %v5186_v15, %v12560_v42  ;;  %v5188_v55 = vpop.f32.mrb[155].mxu0  ;;  %6122 = vmatmul.mubr.bf16.gmra.mrb[148].mxu1 %v12874_v14  ;;  %v5369_v1 = vmax.f32 %v5183_v16, 0.0 }
 0x841   : > { %v5189_v13 = vadd.f32 %v5188_v55, %v12564_v12  ;;  %v5370_v29 = vmax.f32 %v5185_v33, 0.0 }
 0x842   : > { %v5371_v51 = vmax.f32 %v5187_v45, 0.0  ;;  %6435 = vmatmul.mubr.bf16.gmra.mrb[4].mxu0 %v12826_v48 }
 0x843   : > { %v5372_v8 = vmax.f32 %v5189_v13, 0.0  ;;  %6444 = vmatprep.mubr.bf16.mxu0 %v12840_v0 }
 0x844   : > { %v12886_v60 = vpack.c.bf16 %v5371_v51, %v5369_v1 }
 0x845   : > { %v12888_v30 = vpack.c.bf16 %v5372_v8, %v5370_v29  ;;  %v5192_v5 = vpop.f32.mrb[156].mxu0 }
 0x846   : > { %v5193_v61 = vadd.f32 %v5192_v5, %v12560_v42  ;;  %v5194_v62 = vpop.f32.mrb[157].mxu0 }
 0x847   : > { %v5195_v44 = vadd.f32 %v5194_v62, %v12564_v12  ;;  %v5196_v39 = vpop.f32.mrb[158].mxu0  ;;  %6131 = vmatprep.mubr.bf16.mxu1 %v12888_v30  ;;  %v12941_v62 = vld [vmem:[%s13884_s12] sm:$0xf] }
 0x848   : > { %v5197_v59 = vadd.f32 %v5196_v39, %v12560_v42  ;;  %v5198_v48 = vpop.f32.mrb[159].mxu0  ;;  %6132 = vmatmul.mubr.bf16.gmra.mrb[152].mxu1 %v12886_v60  ;;  %v5373_v54 = vmax.f32 %v5193_v61, 0.0 }
 0x849   : > { %v5199_v0 = vadd.f32 %v5198_v48, %v12564_v12  ;;  %v5374_v46 = vmax.f32 %v5195_v44, 0.0 }
 0x84a   : > { %v5375_v28 = vmax.f32 %v5197_v59, 0.0  ;;  %6445 = vmatmul.mubr.bf16.gmra.mrb[8].mxu0 %v12838_v53 }
 0x84b   : > { %v5376_v31 = vmax.f32 %v5199_v0, 0.0  ;;  %6454 = vmatprep.mubr.bf16.mxu0 %v12852_v43  ;;  %v12950_v0 = vrot.slane %v12941_v62, %v11915_v32 }
 0x84c   : > { %v12898_v7 = vpack.c.bf16 %v5375_v28, %v5373_v54  ;;  %v12955_v28 = vrot.slane %v12941_v62, %v11921_v20 }
 0x84d   : > { %v12900_v22 = vpack.c.bf16 %v5376_v31, %v5374_v46  ;;  %v5202_v26 = vpop.f32.mrb[160].mxu0 }
 0x84e   : > { %v5203_v40 = vadd.f32 %v5202_v26, %v12560_v42  ;;  %v5204_v24 = vpop.f32.mrb[161].mxu0 }
 0x84f   : > { %v5205_v49 = vadd.f32 %v5204_v24, %v12564_v12  ;;  %v5206_v6 = vpop.f32.mrb[162].mxu0  ;;  %6141 = vmatprep.mubr.bf16.mxu1 %v12900_v22 }
 0x850   : > { %v5207_v19 = vadd.f32 %v5206_v6, %v12560_v42  ;;  %v5208_v53 = vpop.f32.mrb[163].mxu0  ;;  %6142 = vmatmul.mubr.bf16.gmra.mrb[156].mxu1 %v12898_v7  ;;  %v5377_v36 = vmax.f32 %v5203_v40, 0.0 }
 0x851   : > { %v5209_v43 = vadd.f32 %v5208_v53, %v12564_v12  ;;  %v5378_v21 = vmax.f32 %v5205_v49, 0.0 }
 0x852   : > { %v5379_v52 = vmax.f32 %v5207_v19, 0.0  ;;  %6455 = vmatmul.mubr.bf16.gmra.mrb[12].mxu0 %v12850_v27 }
 0x853   : > { %v5380_v50 = vmax.f32 %v5209_v43, 0.0  ;;  %6464 = vmatprep.mubr.bf16.mxu0 %v12864_v3 }
 0x854   : > { %v12910_v63 = vpack.c.bf16 %v5379_v52, %v5377_v36 }
 0x855   : > { %v12912_v35 = vpack.c.bf16 %v5380_v50, %v5378_v21  ;;  %v5212_v38 = vpop.f32.mrb[164].mxu0 }
 0x856   : > { %v5213_v25 = vadd.f32 %v5212_v38, %v12560_v42  ;;  %v5214_v41 = vpop.f32.mrb[165].mxu0 }
 0x857   : > { %v5215_v47 = vadd.f32 %v5214_v41, %v12564_v12  ;;  %v5216_v17 = vpop.f32.mrb[166].mxu0  ;;  %6151 = vmatprep.mubr.bf16.mxu1 %v12912_v35 }
 0x858   : > { %v5217_v11 = vadd.f32 %v5216_v17, %v12560_v42  ;;  %v5218_v27 = vpop.f32.mrb[167].mxu0  ;;  %6152 = vmatmul.mubr.bf16.gmra.mrb[160].mxu1 %v12910_v63  ;;  %v5381_v2 = vmax.f32 %v5213_v25, 0.0 }
 0x859   : > { %v5219_v3 = vadd.f32 %v5218_v27, %v12564_v12  ;;  %v5382_v57 = vmax.f32 %v5215_v47, 0.0 }
 0x85a   : > { %v5383_v4 = vmax.f32 %v5217_v11, 0.0  ;;  %6465 = vmatmul.mubr.bf16.gmra.mrb[16].mxu0 %v12862_v18 }
 0x85b   : > { %v5384_v56 = vmax.f32 %v5219_v3, 0.0  ;;  %6474 = vmatprep.mubr.bf16.mxu0 %v12876_v37 }
 0x85c   : > { %v12922_v10 = vpack.c.bf16 %v5383_v4, %v5381_v2 }
 0x85d   : > { %v12924_v58 = vpack.c.bf16 %v5384_v56, %v5382_v57  ;;  %v5222_v16 = vpop.f32.mrb[168].mxu0 }
 0x85e   : > { %v5223_v9 = vadd.f32 %v5222_v16, %v12560_v42  ;;  %v5224_v33 = vpop.f32.mrb[169].mxu0 }
 0x85f   : > { %v5225_v15 = vadd.f32 %v5224_v33, %v12564_v12  ;;  %v5226_v45 = vpop.f32.mrb[170].mxu0  ;;  %6161 = vmatprep.mubr.bf16.mxu1 %v12924_v58 }
 0x860   : > { %v5227_v55 = vadd.f32 %v5226_v45, %v12560_v42  ;;  %v5228_v18 = vpop.f32.mrb[171].mxu0  ;;  %6162 = vmatmul.mubr.bf16.gmra.mrb[164].mxu1 %v12922_v10  ;;  %v5385_v13 = vmax.f32 %v5223_v9, 0.0 }
 0x861   : > { %v5229_v37 = vadd.f32 %v5228_v18, %v12564_v12  ;;  %v5386_v51 = vmax.f32 %v5225_v15, 0.0 }
 0x862   : > { %v5387_v1 = vmax.f32 %v5227_v55, 0.0  ;;  %6475 = vmatmul.mubr.bf16.gmra.mrb[20].mxu0 %v12874_v14 }
 0x863   : > { %v5388_v29 = vmax.f32 %v5229_v37, 0.0  ;;  %6484 = vmatprep.mubr.bf16.mxu0 %v12888_v30 }
 0x864   : > { %v12934_v8 = vpack.c.bf16 %v5387_v1, %v5385_v13 }
 0x865   : > { %v12936_v5 = vpack.c.bf16 %v5388_v29, %v5386_v51  ;;  %v5232_v61 = vpop.f32.mrb[172].mxu0 }
 0x866   : > { %v5233_v44 = vadd.f32 %v5232_v61, %v12560_v42  ;;  %v5234_v39 = vpop.f32.mrb[173].mxu0 }
 0x867   : > { %v5235_v59 = vadd.f32 %v5234_v39, %v12564_v12  ;;  %v5236_v14 = vpop.f32.mrb[174].mxu0  ;;  %6171 = vmatprep.mubr.bf16.mxu1 %v12936_v5 }
 0x868   : > { %v5237_v30 = vadd.f32 %v5236_v14, %v12560_v42  ;;  %v5238_v48 = vpop.f32.mrb[175].mxu0  ;;  %6172 = vmatmul.mubr.bf16.gmra.mrb[168].mxu1 %v12934_v8  ;;  %v5389_v46 = vmax.f32 %v5233_v44, 0.0 }
 0x869   : > { %v5239_v54 = vadd.f32 %v5238_v48, %v12564_v12  ;;  %v5390_v26 = vmax.f32 %v5235_v59, 0.0 }
 0x86a   : > { %v5391_v31 = vmax.f32 %v5237_v30, 0.0  ;;  %6485 = vmatmul.mubr.bf16.gmra.mrb[24].mxu0 %v12886_v60 }
 0x86b   : > { %v5392_v40 = vmax.f32 %v5239_v54, 0.0  ;;  %v5913_v24 = vpop.f32.mrb[64].mxu1  ;;  %6494 = vmatprep.mubr.bf16.mxu0 %v12900_v22 }
 0x86c   : > { %v12959_v49 = vpack.c.bf16 %v5391_v31, %v5389_v46  ;;  %v5914_v32 = vadd.f32 %v5913_v24, %v12950_v0  ;;  %v5915_v6 = vpop.f32.mrb[65].mxu1 }
 0x86d   : > { %v12962_v19 = vpack.c.bf16 %v5392_v40, %v5390_v26  ;;  %v5916_v53 = vadd.f32 %v5915_v6, %v12955_v28  ;;  %v5242_v20 = vpop.f32.mrb[176].mxu0  ;;  %v5917_v43 = vpop.f32.mrb[66].mxu1 }
 0x86e   : > { %v5243_v36 = vadd.f32 %v5242_v20, %v12560_v42  ;;  %v5918_v60 = vadd.f32 %v5917_v43, %v12950_v0  ;;  %v5244_v52 = vpop.f32.mrb[177].mxu0  ;;  %v5919_v21 = vpop.f32.mrb[67].mxu1  ;;  %v6585_v25 = vmax.f32 %v5914_v32, 0.0 }
 0x86f   : > { %v5245_v50 = vadd.f32 %v5244_v52, %v12564_v12  ;;  %v5920_v22 = vadd.f32 %v5919_v21, %v12955_v28  ;;  %v5246_v38 = vpop.f32.mrb[178].mxu0  ;;  %6181 = vmatprep.mubr.bf16.mxu1 %v12962_v19  ;;  %v6586_v11 = vmax.f32 %v5916_v53, 0.0 }
 0x870   : > { %v6589_v41 = vmax.f32 %v5918_v60, 0.0  ;;  %v5247_v47 = vadd.f32 %v5246_v38, %v12560_v42  ;;  %v5248_v17 = vpop.f32.mrb[179].mxu0  ;;  %6182 = vmatmul.mubr.bf16.gmra.mrb[172].mxu1 %v12959_v49  ;;  %v5393_v2 = vmax.f32 %v5243_v36, 0.0 }
 0x871   : > { %v6590_v27 = vmax.f32 %v5920_v22, 0.0  ;;  %v5249_v3 = vadd.f32 %v5248_v17, %v12564_v12  ;;  %v5394_v56 = vmax.f32 %v5245_v50, 0.0 }
 0x872   : > { %v12973_v4 = vpack.c.bf16 %v6589_v41, %v6585_v25  ;;  %v5395_v57 = vmax.f32 %v5247_v47, 0.0  ;;  %6495 = vmatmul.mubr.bf16.gmra.mrb[28].mxu0 %v12898_v7 }
 0x873   : > { %v12976_v16 = vpack.c.bf16 %v6590_v27, %v6586_v11  ;;  %v5396_v9 = vmax.f32 %v5249_v3, 0.0  ;;  %v5923_v33 = vpop.f32.mrb[68].mxu1  ;;  %6504 = vmatprep.mubr.bf16.mxu0 %v12912_v35 }
 0x874   : > { %v12979_v15 = vpack.c.bf16 %v5395_v57, %v5393_v2  ;;  %v5924_v45 = vadd.f32 %v5923_v33, %v12950_v0  ;;  %v5925_v55 = vpop.f32.mrb[69].mxu1 }
 0x875   : > { %v12982_v18 = vpack.c.bf16 %v5396_v9, %v5394_v56  ;;  %v5926_v37 = vadd.f32 %v5925_v55, %v12955_v28  ;;  %v5252_v13 = vpop.f32.mrb[180].mxu0  ;;  %v5927_v1 = vpop.f32.mrb[70].mxu1 }
 0x876   : > { %v5253_v7 = vadd.f32 %v5252_v13, %v12560_v42  ;;  %v5928_v51 = vadd.f32 %v5927_v1, %v12950_v0  ;;  %v5254_v29 = vpop.f32.mrb[181].mxu0  ;;  %v5929_v61 = vpop.f32.mrb[71].mxu1  ;;  %v6593_v59 = vmax.f32 %v5924_v45, 0.0 }
 0x877   : > { %v5255_v44 = vadd.f32 %v5254_v29, %v12564_v12  ;;  %v5930_v35 = vadd.f32 %v5929_v61, %v12955_v28  ;;  %v5256_v39 = vpop.f32.mrb[182].mxu0  ;;  %6191 = vmatprep.mubr.bf16.mxu1 %v12982_v18  ;;  %v6594_v54 = vmax.f32 %v5926_v37, 0.0 }
 0x878   : > { %v6597_v14 = vmax.f32 %v5928_v51, 0.0  ;;  %v5257_v30 = vadd.f32 %v5256_v39, %v12560_v42  ;;  %v5258_v48 = vpop.f32.mrb[183].mxu0  ;;  %6192 = vmatmul.mubr.bf16.gmra.mrb[176].mxu1 %v12979_v15  ;;  %v5397_v26 = vmax.f32 %v5253_v7, 0.0 }
 0x879   : > { %v6598_v46 = vmax.f32 %v5930_v35, 0.0  ;;  %v5259_v31 = vadd.f32 %v5258_v48, %v12564_v12  ;;  %v5398_v32 = vmax.f32 %v5255_v44, 0.0 }
 0x87a   : > { %v12993_v40 = vpack.c.bf16 %v6597_v14, %v6593_v59  ;;  %v5399_v24 = vmax.f32 %v5257_v30, 0.0  ;;  %6505 = vmatmul.mubr.bf16.gmra.mrb[32].mxu0 %v12910_v63 }
 0x87b   : > { %v12996_v6 = vpack.c.bf16 %v6598_v46, %v6594_v54  ;;  %v5400_v53 = vmax.f32 %v5259_v31, 0.0  ;;  %v5933_v20 = vpop.f32.mrb[72].mxu1  ;;  %6514 = vmatprep.mubr.bf16.mxu0 %v12924_v58 }
 0x87c   : > { %v12999_v43 = vpack.c.bf16 %v5399_v24, %v5397_v26  ;;  %v5934_v36 = vadd.f32 %v5933_v20, %v12950_v0  ;;  %v5935_v60 = vpop.f32.mrb[73].mxu1  ;;  %v5553_v26 = vsub.s32 3, %v11906_v34 }
 0x87d   : > { %v13002_v52 = vpack.c.bf16 %v5400_v53, %v5398_v32  ;;  %v5936_v21 = vadd.f32 %v5935_v60, %v12955_v28  ;;  %v5262_v50 = vpop.f32.mrb[184].mxu0  ;;  %v5937_v22 = vpop.f32.mrb[74].mxu1 }
 0x87e   : > { %v5263_v63 = vadd.f32 %v5262_v50, %v12560_v42  ;;  %v5938_v38 = vadd.f32 %v5937_v22, %v12950_v0  ;;  %v5264_v25 = vpop.f32.mrb[185].mxu0  ;;  %v5939_v41 = vpop.f32.mrb[75].mxu1  ;;  %v6601_v11 = vmax.f32 %v5934_v36, 0.0 }
 0x87f   : > { %v5265_v47 = vadd.f32 %v5264_v25, %v12564_v12  ;;  %v5940_v58 = vadd.f32 %v5939_v41, %v12955_v28  ;;  %v5266_v17 = vpop.f32.mrb[186].mxu0  ;;  %6201 = vmatprep.mubr.bf16.mxu1 %v13002_v52  ;;  %v6602_v57 = vmax.f32 %v5936_v21, 0.0 }
 0x880   : > { %v6605_v27 = vmax.f32 %v5938_v38, 0.0  ;;  %v5267_v3 = vadd.f32 %v5266_v17, %v12560_v42  ;;  %v5268_v2 = vpop.f32.mrb[187].mxu0  ;;  %6202 = vmatmul.mubr.bf16.gmra.mrb[180].mxu1 %v12999_v43  ;;  %v5401_v33 = vmax.f32 %v5263_v63, 0.0 }
 0x881   : > { %v6606_v56 = vmax.f32 %v5940_v58, 0.0  ;;  %v5269_v9 = vadd.f32 %v5268_v2, %v12564_v12  ;;  %v5402_v37 = vmax.f32 %v5265_v47, 0.0  ;;  %v13045_v47 = vrot.slane %v12941_v62, %v5553_v26 }
 0x882   : > { %v13013_v45 = vpack.c.bf16 %v6605_v27, %v6601_v11  ;;  %v5403_v55 = vmax.f32 %v5267_v3, 0.0  ;;  %6515 = vmatmul.mubr.bf16.gmra.mrb[36].mxu0 %v12922_v10  ;;  %v5549_v10 = vsub.s32 2, %v11906_v34 }
 0x883   : > { %v13016_v13 = vpack.c.bf16 %v6606_v56, %v6602_v57  ;;  %v5404_v1 = vmax.f32 %v5269_v9, 0.0  ;;  %v5943_v7 = vpop.f32.mrb[76].mxu1  ;;  %6524 = vmatprep.mubr.bf16.mxu0 %v12936_v5 }
 0x884   : > { %v13019_v51 = vpack.c.bf16 %v5403_v55, %v5401_v33  ;;  %v5944_v29 = vadd.f32 %v5943_v7, %v12950_v0  ;;  %v5945_v61 = vpop.f32.mrb[77].mxu1  ;;  %v13039_v38 = vrot.slane %v12941_v62, %v5549_v10 }
 0x885   : > { %v13022_v44 = vpack.c.bf16 %v5404_v1, %v5402_v37  ;;  %v5946_v35 = vadd.f32 %v5945_v61, %v12955_v28  ;;  %v5272_v39 = vpop.f32.mrb[188].mxu0  ;;  %v5947_v59 = vpop.f32.mrb[78].mxu1 }
 0x886   : > { %v5273_v14 = vadd.f32 %v5272_v39, %v12560_v42  ;;  %v5948_v30 = vadd.f32 %v5947_v59, %v12950_v0  ;;  %v5274_v48 = vpop.f32.mrb[189].mxu0  ;;  %v5949_v54 = vpop.f32.mrb[79].mxu1  ;;  %v6609_v24 = vmax.f32 %v5944_v29, 0.0 }
 0x887   : > { %v5275_v5 = vadd.f32 %v5274_v48, %v12564_v12  ;;  %v5950_v46 = vadd.f32 %v5949_v54, %v12955_v28  ;;  %v5276_v31 = vpop.f32.mrb[190].mxu0  ;;  %6211 = vmatprep.mubr.bf16.mxu1 %v13022_v44  ;;  %v6610_v36 = vmax.f32 %v5946_v35, 0.0 }
 0x888   : > { %v6613_v32 = vmax.f32 %v5948_v30, 0.0  ;;  %v5277_v53 = vadd.f32 %v5276_v31, %v12560_v42  ;;  %v5278_v20 = vpop.f32.mrb[191].mxu0  ;;  %6212 = vmatmul.mubr.bf16.gmra.mrb[184].mxu1 %v13019_v51  ;;  %v5405_v50 = vmax.f32 %v5273_v14, 0.0 }
 0x889   : > { %v6614_v60 = vmax.f32 %v5950_v46, 0.0  ;;  %v5279_v21 = vadd.f32 %v5278_v20, %v12564_v12  ;;  %v5406_v34 = vmax.f32 %v5275_v5, 0.0 }
 0x88a   : > { %v13035_v22 = vpack.c.bf16 %v6613_v32, %v6609_v24  ;;  %v5407_v63 = vmax.f32 %v5277_v53, 0.0  ;;  %6525 = vmatmul.mubr.bf16.gmra.mrb[40].mxu0 %v12934_v8  ;;  %v9400_v53 = vld [vmem:[#allocation13 + $0x80] sm:$0xff]  }
 0x88b   : > { %v13041_v25 = vpack.c.bf16 %v6614_v60, %v6610_v36  ;;  %v5408_v42 = vmax.f32 %v5279_v21, 0.0  ;;  %v5953_v41 = vpop.f32.mrb[80].mxu1  ;;  %6534 = vmatprep.mubr.bf16.mxu0 %v12962_v19 }
 0x88c   : > { %v13047_v12 = vpack.c.bf16 %v5407_v63, %v5405_v50  ;;  %v5954_v58 = vadd.f32 %v5953_v41, %v12950_v0  ;;  %v5955_v17 = vpop.f32.mrb[81].mxu1 }
 0x88d   : > { %v13050_v11 = vpack.c.bf16 %v5408_v42, %v5406_v34  ;;  %v5956_v8 = vadd.f32 %v5955_v17, %v12955_v28  ;;  %v5957_v27 = vpop.f32.mrb[82].mxu1  ;;  %v6266_v3 = vpop.f32.mrb[192].mxu0 }
 0x88e   : > { %v5958_v2 = vadd.f32 %v5957_v27, %v12950_v0  ;;  %v6267_v57 = vadd.f32 %v6266_v3, %v13039_v38  ;;  %v5959_v56 = vpop.f32.mrb[83].mxu1  ;;  %v6268_v19 = vpop.f32.mrb[193].mxu0  ;;  %v6617_v55 = vmax.f32 %v5954_v58, 0.0  ;;  %v9401_v27 = vld [vmem:[#allocation13 + $0x88] sm:$0xff]  }
 0x88f   : > { %v5960_v62 = vadd.f32 %v5959_v56, %v12955_v28  ;;  %v6269_v9 = vadd.f32 %v6268_v19, %v13045_v47  ;;  %6221 = vmatprep.mubr.bf16.mxu1 %v13050_v11  ;;  %v6270_v33 = vpop.f32.mrb[194].mxu0  ;;  %v6618_v29 = vmax.f32 %v5956_v8, 0.0 }
 0x890   : > { %v6621_v37 = vmax.f32 %v5958_v2, 0.0  ;;  %v6271_v1 = vadd.f32 %v6270_v33, %v13039_v38  ;;  %6222 = vmatmul.mubr.bf16.gmra.mrb[188].mxu1 %v13047_v12  ;;  %v6272_v7 = vpop.f32.mrb[195].mxu0  ;;  %v6587_v59 = vmax.f32 %v6267_v57, 0.0 }
 0x891   : > { %v6622_v61 = vmax.f32 %v5960_v62, 0.0  ;;  %v6273_v35 = vadd.f32 %v6272_v7, %v13045_v47  ;;  %7264 = vmatprep.mubr.bf16.mxu1 %v12976_v16  ;;  %v6588_v30 = vmax.f32 %v6269_v9, 0.0  ;;  %v9402_v7 = vld [vmem:[#allocation13 + $0x90] sm:$0xff]  }
 0x892   : > { %v13062_v39 = vpack.c.bf16 %v6621_v37, %v6617_v55  ;;  %v6591_v10 = vmax.f32 %v6271_v1, 0.0  ;;  %6535 = vmatmul.mubr.bf16.gmra.mrb[44].mxu0 %v12959_v49 }
 0x893   : > { %v13065_v14 = vpack.c.bf16 %v6622_v61, %v6618_v29  ;;  %v6592_v48 = vmax.f32 %v6273_v35, 0.0  ;;  %v5963_v54 = vpop.f32.mrb[84].mxu1  ;;  %6544 = vmatprep.mubr.bf16.mxu0 %v12982_v18 }
 0x894   : > { %v13068_v5 = vpack.c.bf16 %v6591_v10, %v6587_v59  ;;  %v5964_v46 = vadd.f32 %v5963_v54, %v12950_v0  ;;  %v5965_v31 = vpop.f32.mrb[85].mxu1 }
 0x895   : > { %v13071_v26 = vpack.c.bf16 %v6592_v48, %v6588_v30  ;;  %v5966_v16 = vadd.f32 %v5965_v31, %v12955_v28  ;;  %v5967_v24 = vpop.f32.mrb[86].mxu1  ;;  %v6276_v32 = vpop.f32.mrb[196].mxu0 }
 0x896   : > { %v5968_v49 = vadd.f32 %v5967_v24, %v12950_v0  ;;  %v6277_v20 = vadd.f32 %v6276_v32, %v13039_v38  ;;  %v5969_v36 = vpop.f32.mrb[87].mxu1  ;;  %v6278_v60 = vpop.f32.mrb[197].mxu0  ;;  %v6625_v63 = vmax.f32 %v5964_v46, 0.0 }
 0x897   : > { %v5970_v18 = vadd.f32 %v5969_v36, %v12955_v28  ;;  %v6279_v21 = vadd.f32 %v6278_v60, %v13045_v47  ;;  %v6280_v50 = vpop.f32.mrb[198].mxu0  ;;  %v6626_v58 = vmax.f32 %v5966_v16, 0.0 }
 0x898   : > { %v6629_v34 = vmax.f32 %v5968_v49, 0.0  ;;  %v6281_v42 = vadd.f32 %v6280_v50, %v13039_v38  ;;  %v6282_v41 = vpop.f32.mrb[199].mxu0  ;;  %7265 = vmatmul.mubr.bf16.vlgmr.msra.gmra.mrb[192].mxu1 %v12973_v4  ;;  %v6595_v2 = vmax.f32 %v6277_v20, 0.0 }
 0x899   : > { %v6630_v17 = vmax.f32 %v5970_v18, 0.0  ;;  %v6283_v8 = vadd.f32 %v6282_v41, %v13045_v47  ;;  %7522 = vmatpush1.bf16.msra.mxu1 %v9400_v53  ;;  %7272 = vmatprep.mubr.bf16.mxu1 %v12996_v6  ;;  %v6596_v19 = vmax.f32 %v6279_v21, 0.0  ;;  %v9403_v53 = vld [vmem:[#allocation13 + $0x98] sm:$0xff]  }
 0x89a   : > { %v13082_v3 = vpack.c.bf16 %v6629_v34, %v6625_v63  ;;  %v6599_v57 = vmax.f32 %v6281_v42, 0.0  ;;  %6545 = vmatmul.mubr.bf16.gmra.mrb[48].mxu0 %v12979_v15  ;;  %7523 = vmatprep.subr.bf16.mxu1 %v14383_v23 }
 0x89b   : > { %v13086_v56 = vpack.c.bf16 %v6630_v17, %v6626_v58  ;;  %v6600_v4 = vmax.f32 %v6283_v8, 0.0  ;;  %v5973_v62 = vpop.f32.mrb[88].mxu1  ;;  %6554 = vmatprep.mubr.bf16.mxu0 %v13002_v52  ;;  %v9404_v58 = vld [vmem:[#allocation13 + $0xa0] sm:$0xff]  }
 0x89c   : > { %v13089_v9 = vpack.c.bf16 %v6599_v57, %v6595_v2  ;;  %v5974_v6 = vadd.f32 %v5973_v62, %v12950_v0  ;;  %v5975_v33 = vpop.f32.mrb[89].mxu1 }
 0x89d   : > { %v13092_v55 = vpack.c.bf16 %v6600_v4, %v6596_v19  ;;  %v5976_v37 = vadd.f32 %v5975_v33, %v12955_v28  ;;  %v5977_v1 = vpop.f32.mrb[90].mxu1  ;;  %v6286_v15 = vpop.f32.mrb[200].mxu0  ;;  %7524 = vmatpush1.bf16.msra.mxu1 %v9401_v27 }
 0x89e   : > { %v5978_v29 = vadd.f32 %v5977_v1, %v12950_v0  ;;  %v6287_v61 = vadd.f32 %v6286_v15, %v13039_v38  ;;  %v5979_v35 = vpop.f32.mrb[91].mxu1  ;;  %v6288_v59 = vpop.f32.mrb[201].mxu0  ;;  %7525 = vmatprep.subr.bf16.mxu1 %v14383_v23  ;;  %v6633_v48 = vmax.f32 %v5974_v6, 0.0 }
 0x89f   : > { %v5980_v52 = vadd.f32 %v5979_v35, %v12955_v28  ;;  %v6289_v10 = vadd.f32 %v6288_v59, %v13045_v47  ;;  %v6290_v30 = vpop.f32.mrb[202].mxu0  ;;  %v6634_v16 = vmax.f32 %v5976_v37, 0.0 }
 0x8a0   : > { %v6637_v54 = vmax.f32 %v5978_v29, 0.0  ;;  %v6291_v46 = vadd.f32 %v6290_v30, %v13039_v38  ;;  %v6292_v31 = vpop.f32.mrb[203].mxu0  ;;  %7273 = vmatmul.mubr.bf16.gmra.mrb[196].mxu1 %v12993_v40  ;;  %v6603_v20 = vmax.f32 %v6287_v61, 0.0 }
 0x8a1   : > { %v6638_v24 = vmax.f32 %v5980_v52, 0.0  ;;  %v6293_v32 = vadd.f32 %v6292_v31, %v13045_v47  ;;  %7280 = vmatprep.mubr.bf16.mxu1 %v13016_v13  ;;  %7526 = vmatpush1.bf16.msra.mxu1 %v9402_v7  ;;  %v6604_v18 = vmax.f32 %v6289_v10, 0.0  ;;  %v9405_v7 = vld [vmem:[#allocation13 + $0xa8] sm:$0xff]  }
 0x8a2   : > { %v13104_v49 = vpack.c.bf16 %v6637_v54, %v6633_v48  ;;  %v6607_v36 = vmax.f32 %v6291_v46, 0.0  ;;  %6555 = vmatmul.mubr.bf16.gmra.mrb[52].mxu0 %v12999_v43  ;;  %7527 = vmatprep.subr.bf16.mxu1 %v14383_v23 }
 0x8a3   : > { %v13108_v60 = vpack.c.bf16 %v6638_v24, %v6634_v16  ;;  %v6608_v40 = vmax.f32 %v6293_v32, 0.0  ;;  %v5983_v21 = vpop.f32.mrb[92].mxu1  ;;  %6564 = vmatprep.mubr.bf16.mxu0 %v13022_v44  ;;  %v9406_v16 = vld [vmem:[#allocation13 + $0xb0] sm:$0xff]  }
 0x8a4   : > { %v13111_v50 = vpack.c.bf16 %v6607_v36, %v6603_v20  ;;  %v5984_v13 = vadd.f32 %v5983_v21, %v12950_v0  ;;  %v5985_v63 = vpop.f32.mrb[93].mxu1 }
 0x8a5   : > { %v13114_v34 = vpack.c.bf16 %v6608_v40, %v6604_v18  ;;  %v5986_v42 = vadd.f32 %v5985_v63, %v12955_v28  ;;  %v5987_v41 = vpop.f32.mrb[94].mxu1  ;;  %v6296_v43 = vpop.f32.mrb[204].mxu0  ;;  %7528 = vmatpush1.bf16.msra.mxu1 %v9403_v53 }
 0x8a6   : > { %v5988_v17 = vadd.f32 %v5987_v41, %v12950_v0  ;;  %v6297_v8 = vadd.f32 %v6296_v43, %v13039_v38  ;;  %v5989_v27 = vpop.f32.mrb[95].mxu1  ;;  %v6298_v2 = vpop.f32.mrb[205].mxu0  ;;  %7529 = vmatprep.subr.bf16.mxu1 %v14383_v23  ;;  %v6641_v4 = vmax.f32 %v5984_v13, 0.0 }
 0x8a7   : > { %v5990_v44 = vadd.f32 %v5989_v27, %v12955_v28  ;;  %v6299_v57 = vadd.f32 %v6298_v2, %v13045_v47  ;;  %v6300_v19 = vpop.f32.mrb[206].mxu0  ;;  %v6642_v37 = vmax.f32 %v5986_v42, 0.0 }
 0x8a8   : > { %v6645_v62 = vmax.f32 %v5988_v17, 0.0  ;;  %v6301_v6 = vadd.f32 %v6300_v19, %v13039_v38  ;;  %v6302_v33 = vpop.f32.mrb[207].mxu0  ;;  %7281 = vmatmul.mubr.bf16.gmra.mrb[200].mxu1 %v13013_v45  ;;  %v6611_v61 = vmax.f32 %v6297_v8, 0.0 }
 0x8a9   : > { %v6646_v1 = vmax.f32 %v5990_v44, 0.0  ;;  %v6303_v15 = vadd.f32 %v6302_v33, %v13045_v47  ;;  %7288 = vmatprep.mubr.bf16.mxu1 %v13041_v25  ;;  %7530 = vmatpush1.bf16.msra.mxu1 %v9404_v58  ;;  %v6612_v52 = vmax.f32 %v6299_v57, 0.0  ;;  %v9407_v58 = vld [vmem:[#allocation13 + $0xb8] sm:$0xff]  }
 0x8aa   : > { %v13126_v29 = vpack.c.bf16 %v6645_v62, %v6641_v4  ;;  %v6615_v35 = vmax.f32 %v6301_v6, 0.0  ;;  %6565 = vmatmul.mubr.bf16.gmra.mrb[56].mxu0 %v13019_v51  ;;  %7531 = vmatprep.subr.bf16.mxu1 %v14383_v23 }
 0x8ab   : > { %v13130_v59 = vpack.c.bf16 %v6646_v1, %v6642_v37  ;;  %v6616_v45 = vmax.f32 %v6303_v15, 0.0  ;;  %v5993_v10 = vpop.f32.mrb[96].mxu1  ;;  %6574 = vmatprep.mubr.bf16.mxu0 %v13050_v11 }
 0x8ac   : > { %v13133_v30 = vpack.c.bf16 %v6615_v35, %v6611_v61  ;;  %v5994_v25 = vadd.f32 %v5993_v10, %v12950_v0  ;;  %v5995_v48 = vpop.f32.mrb[97].mxu1 }
 0x8ad   : > { %v13136_v54 = vpack.c.bf16 %v6616_v45, %v6612_v52  ;;  %v5996_v46 = vadd.f32 %v5995_v48, %v12955_v28  ;;  %v5997_v31 = vpop.f32.mrb[98].mxu1  ;;  %v6306_v51 = vpop.f32.mrb[208].mxu0  ;;  %7532 = vmatpush1.bf16.msra.mxu1 %v9405_v7 }
 0x8ae   : > { %v5998_v24 = vadd.f32 %v5997_v31, %v12950_v0  ;;  %v6307_v32 = vadd.f32 %v6306_v51, %v13039_v38  ;;  %v5999_v53 = vpop.f32.mrb[99].mxu1  ;;  %v6308_v20 = vpop.f32.mrb[209].mxu0  ;;  %7533 = vmatprep.subr.bf16.mxu1 %v14383_v23  ;;  %v6649_v40 = vmax.f32 %v5994_v25, 0.0 }
 0x8af   : > { %v6000_v11 = vadd.f32 %v5999_v53, %v12955_v28  ;;  %v6309_v36 = vadd.f32 %v6308_v20, %v13045_v47  ;;  %v6310_v18 = vpop.f32.mrb[210].mxu0  ;;  %v6650_v42 = vmax.f32 %v5996_v46, 0.0 }
 0x8b0   : > { %v6653_v21 = vmax.f32 %v5998_v24, 0.0  ;;  %v6311_v13 = vadd.f32 %v6310_v18, %v13039_v38  ;;  %v6312_v63 = vpop.f32.mrb[211].mxu0  ;;  %7289 = vmatmul.mubr.bf16.gmra.mrb[204].mxu1 %v13035_v22  ;;  %v6619_v8 = vmax.f32 %v6307_v32, 0.0  ;;  %v9409_v24 = vld [vmem:[#allocation13 + $0xc8] sm:$0xff]  }
 0x8b1   : > { %v6654_v41 = vmax.f32 %v6000_v11, 0.0  ;;  %v6313_v43 = vadd.f32 %v6312_v63, %v13045_v47  ;;  %7296 = vmatprep.mubr.bf16.mxu1 %v13065_v14  ;;  %7534 = vmatpush1.bf16.msra.mxu1 %v9406_v16  ;;  %v6620_v44 = vmax.f32 %v6309_v36, 0.0 }
 0x8b2   : > { %v13148_v17 = vpack.c.bf16 %v6653_v21, %v6649_v40  ;;  %v6623_v27 = vmax.f32 %v6311_v13, 0.0  ;;  %6575 = vmatmul.mubr.bf16.gmra.mrb[60].mxu0 %v13047_v12  ;;  %7535 = vmatprep.subr.bf16.mxu1 %v14383_v23  ;;  %v9408_v12 = vld [vmem:[#allocation13 + $0xc0] sm:$0xff]  }
 0x8b3   : > { %v13152_v2 = vpack.c.bf16 %v6654_v41, %v6650_v42  ;;  %v6624_v22 = vmax.f32 %v6313_v43, 0.0  ;;  %v6003_v57 = vpop.f32.mrb[100].mxu1  ;;  %v9410_v43 = vld [vmem:[#allocation13 + $0xd0] sm:$0xff]  }
 0x8b4   : > { %v13154_v19 = vpack.c.bf16 %v6623_v27, %v6619_v8  ;;  %v6004_v4 = vadd.f32 %v6003_v57, %v12950_v0  ;;  %v6005_v14 = vpop.f32.mrb[101].mxu1 }
 0x8b5   : > { %v13157_v62 = vpack.c.bf16 %v6624_v22, %v6620_v44  ;;  %v6006_v6 = vadd.f32 %v6005_v14, %v12955_v28  ;;  %v6007_v33 = vpop.f32.mrb[102].mxu1  ;;  %v6316_v37 = vpop.f32.mrb[212].mxu0  ;;  %7536 = vmatpush1.bf16.msra.mxu1 %v9407_v58 }
 0x8b6   : > { %v6008_v1 = vadd.f32 %v6007_v33, %v12950_v0  ;;  %v6317_v15 = vadd.f32 %v6316_v37, %v13039_v38  ;;  %v6009_v7 = vpop.f32.mrb[103].mxu1  ;;  %v6318_v61 = vpop.f32.mrb[213].mxu0  ;;  %7537 = vmatprep.subr.bf16.mxu1 %v14383_v23  ;;  %v6657_v10 = vmax.f32 %v6004_v4, 0.0 }
 0x8b7   : > { %v6010_v35 = vadd.f32 %v6009_v7, %v12955_v28  ;;  %v6319_v52 = vadd.f32 %v6318_v61, %v13045_v47  ;;  %v6320_v45 = vpop.f32.mrb[214].mxu0  ;;  %v6658_v31 = vmax.f32 %v6006_v6, 0.0 }
 0x8b8   : > { %v6661_v25 = vmax.f32 %v6008_v1, 0.0  ;;  %v6321_v48 = vadd.f32 %v6320_v45, %v13039_v38  ;;  %v6322_v46 = vpop.f32.mrb[215].mxu0  ;;  %7297 = vmatmul.mubr.bf16.gmra.mrb[208].mxu1 %v13062_v39  ;;  %v6627_v53 = vmax.f32 %v6317_v15, 0.0 }
 0x8b9   : > { %v6662_v51 = vmax.f32 %v6010_v35, 0.0  ;;  %v6323_v16 = vadd.f32 %v6322_v46, %v13045_v47  ;;  %7304 = vmatprep.mubr.bf16.mxu1 %v13086_v56  ;;  %7538 = vmatpush1.bf16.msra.mxu1 %v9408_v12  ;;  %v6628_v36 = vmax.f32 %v6319_v52, 0.0 }
 0x8ba   : > { %v13169_v32 = vpack.c.bf16 %v6661_v25, %v6657_v10  ;;  %v6631_v20 = vmax.f32 %v6321_v48, 0.0  ;;  %7539 = vmatprep.subr.bf16.mxu1 %v14383_v23 }
 0x8bb   : > { %v13172_v11 = vpack.c.bf16 %v6662_v51, %v6658_v31  ;;  %v6632_v18 = vmax.f32 %v6323_v16, 0.0  ;;  %v6013_v40 = vpop.f32.mrb[104].mxu1 }
 0x8bc   : > { %v13174_v39 = vpack.c.bf16 %v6631_v20, %v6627_v53  ;;  %v6014_v21 = vadd.f32 %v6013_v40, %v12950_v0  ;;  %v6015_v13 = vpop.f32.mrb[105].mxu1 }
 0x8bd   : > { %v13177_v63 = vpack.c.bf16 %v6632_v18, %v6628_v36  ;;  %v6016_v56 = vadd.f32 %v6015_v13, %v12955_v28  ;;  %v6017_v42 = vpop.f32.mrb[106].mxu1  ;;  %v6326_v41 = vpop.f32.mrb[216].mxu0  ;;  %7540 = vmatpush1.bf16.msra.mxu1 %v9409_v24 }
 0x8be   : > { %v6018_v58 = vadd.f32 %v6017_v42, %v12950_v0  ;;  %v6327_v8 = vadd.f32 %v6326_v41, %v13039_v38  ;;  %v6019_v27 = vpop.f32.mrb[107].mxu1  ;;  %v6328_v44 = vpop.f32.mrb[217].mxu0  ;;  %7541 = vmatprep.subr.bf16.mxu1 %v14383_v23  ;;  %v6665_v14 = vmax.f32 %v6014_v21, 0.0 }
 0x8bf   : > { %v6020_v22 = vadd.f32 %v6019_v27, %v12955_v28  ;;  %v6329_v57 = vadd.f32 %v6328_v44, %v13045_v47  ;;  %v6330_v4 = vpop.f32.mrb[218].mxu0  ;;  %v6666_v12 = vmax.f32 %v6016_v56, 0.0 }
 0x8c0   : > { %v6669_v6 = vmax.f32 %v6018_v58, 0.0  ;;  %v6331_v33 = vadd.f32 %v6330_v4, %v13039_v38  ;;  %v6332_v37 = vpop.f32.mrb[219].mxu0  ;;  %7305 = vmatmul.mubr.bf16.gmra.mrb[212].mxu1 %v13082_v3  ;;  %v6635_v61 = vmax.f32 %v6327_v8, 0.0 }
 0x8c1   : > { %v6670_v1 = vmax.f32 %v6020_v22, 0.0  ;;  %v6333_v15 = vadd.f32 %v6332_v37, %v13045_v47  ;;  %7312 = vmatprep.mubr.bf16.mxu1 %v13108_v60  ;;  %7542 = vmatpush1.bf16.msra.mxu1 %v9410_v43  ;;  %v6636_v45 = vmax.f32 %v6329_v57, 0.0 }
 0x8c2   : > { %v13189_v7 = vpack.c.bf16 %v6669_v6, %v6665_v14  ;;  %v6639_v35 = vmax.f32 %v6331_v33, 0.0  ;;  %7543 = vmatprep.subr.bf16.mxu1 %v14383_v23 }
 0x8c3   : > { %v13192_v52 = vpack.c.bf16 %v6670_v1, %v6666_v12  ;;  %v6640_v10 = vmax.f32 %v6333_v15, 0.0  ;;  %v6023_v25 = vpop.f32.mrb[108].mxu1 }
 0x8c4   : > { %v13194_v48 = vpack.c.bf16 %v6639_v35, %v6635_v61  ;;  %v6024_v3 = vadd.f32 %v6023_v25, %v12950_v0  ;;  %v6025_v46 = vpop.f32.mrb[109].mxu1  ;;  %v9411_v61 = vld [vmem:[#allocation13 + $0xd8] sm:$0xff]  }
 0x8c5   : > { %v13197_v31 = vpack.c.bf16 %v6640_v10, %v6636_v45  ;;  %v6026_v60 = vadd.f32 %v6025_v46, %v12955_v28  ;;  %v6027_v51 = vpop.f32.mrb[110].mxu1  ;;  %v6336_v16 = vpop.f32.mrb[220].mxu0  ;;  %7544 = vmatpush1.bf16.msra.mxu1 %v9411_v61 }
 0x8c6   : > { %v6028_v24 = vadd.f32 %v6027_v51, %v12950_v0  ;;  %v6337_v53 = vadd.f32 %v6336_v16, %v13039_v38  ;;  %v6029_v20 = vpop.f32.mrb[111].mxu1  ;;  %v6338_v36 = vpop.f32.mrb[221].mxu0  ;;  %v6673_v13 = vmax.f32 %v6024_v3, 0.0  ;;  %7545 = vmatprep.subr.bf16.mxu1 %v14383_v23 }
 0x8c7   : > { %v6030_v18 = vadd.f32 %v6029_v20, %v12955_v28  ;;  %v6339_v40 = vadd.f32 %v6338_v36, %v13045_v47  ;;  %v6340_v21 = vpop.f32.mrb[222].mxu0  ;;  %v6674_v43 = vmax.f32 %v6026_v60, 0.0 }
 0x8c8   : > { %v6677_v56 = vmax.f32 %v6028_v24, 0.0  ;;  %v6341_v42 = vadd.f32 %v6340_v21, %v13039_v38  ;;  %v6342_v41 = vpop.f32.mrb[223].mxu0  ;;  %7313 = vmatmul.mubr.bf16.gmra.mrb[216].mxu1 %v13104_v49  ;;  %v6643_v44 = vmax.f32 %v6337_v53, 0.0 }
 0x8c9   : > { %v6678_v58 = vmax.f32 %v6030_v18, 0.0  ;;  %v6343_v8 = vadd.f32 %v6342_v41, %v13045_v47  ;;  %7320 = vmatprep.mubr.bf16.mxu1 %v13130_v59  ;;  %v6644_v4 = vmax.f32 %v6339_v40, 0.0 }
 0x8ca   : > { %v13208_v27 = vpack.c.bf16 %v6677_v56, %v6673_v13  ;;  %v6647_v22 = vmax.f32 %v6341_v42, 0.0 }
 0x8cb   : > { %v13210_v57 = vpack.c.bf16 %v6678_v58, %v6674_v43  ;;  %v6648_v14 = vmax.f32 %v6343_v8, 0.0  ;;  %v6033_v6 = vpop.f32.mrb[112].mxu1 }
 0x8cc   : > { %v13212_v33 = vpack.c.bf16 %v6647_v22, %v6643_v44  ;;  %v6034_v37 = vadd.f32 %v6033_v6, %v12950_v0  ;;  %v6035_v49 = vpop.f32.mrb[113].mxu1 }
 0x8cd   : > { %v13215_v12 = vpack.c.bf16 %v6648_v14, %v6644_v4  ;;  %v6036_v1 = vadd.f32 %v6035_v49, %v12955_v28  ;;  %v6037_v15 = vpop.f32.mrb[114].mxu1  ;;  %v6346_v59 = vpop.f32.mrb[224].mxu0 }
 0x8ce   : > { %v6038_v35 = vadd.f32 %v6037_v15, %v12950_v0  ;;  %v6347_v45 = vadd.f32 %v6346_v59, %v13039_v38  ;;  %v6039_v10 = vpop.f32.mrb[115].mxu1  ;;  %v6348_v25 = vpop.f32.mrb[225].mxu0  ;;  %v6681_v51 = vmax.f32 %v6034_v37, 0.0 }
 0x8cf   : > { %v6040_v3 = vadd.f32 %v6039_v10, %v12955_v28  ;;  %v6349_v46 = vadd.f32 %v6348_v25, %v13045_v47  ;;  %v6350_v60 = vpop.f32.mrb[226].mxu0  ;;  %v6682_v20 = vmax.f32 %v6036_v1, 0.0 }
 0x8d0   : > { %v6685_v16 = vmax.f32 %v6038_v35, 0.0  ;;  %v6351_v24 = vadd.f32 %v6350_v60, %v13039_v38  ;;  %v6352_v53 = vpop.f32.mrb[227].mxu0  ;;  %7321 = vmatmul.mubr.bf16.gmra.mrb[220].mxu1 %v13126_v29  ;;  %v6651_v21 = vmax.f32 %v6347_v45, 0.0 }
 0x8d1   : > { %v6686_v36 = vmax.f32 %v6040_v3, 0.0  ;;  %v6353_v18 = vadd.f32 %v6352_v53, %v13045_v47  ;;  %7328 = vmatprep.mubr.bf16.mxu1 %v13152_v2  ;;  %v6652_v42 = vmax.f32 %v6349_v46, 0.0 }
 0x8d2   : > { %v13227_v40 = vpack.c.bf16 %v6685_v16, %v6681_v51  ;;  %v6655_v13 = vmax.f32 %v6351_v24, 0.0 }
 0x8d3   : > { %v13229_v56 = vpack.c.bf16 %v6686_v36, %v6682_v20  ;;  %v6656_v41 = vmax.f32 %v6353_v18, 0.0  ;;  %v6043_v43 = vpop.f32.mrb[116].mxu1 }
 0x8d4   : > { %v13231_v58 = vpack.c.bf16 %v6655_v13, %v6651_v21  ;;  %v6044_v29 = vadd.f32 %v6043_v43, %v12950_v0  ;;  %v6045_v8 = vpop.f32.mrb[117].mxu1  ;;  %v9412_v43 = vld [vmem:[#allocation13 + $0xe0] sm:$0xff]  }
 0x8d5   : > { %v13234_v44 = vpack.c.bf16 %v6656_v41, %v6652_v42  ;;  %v6046_v22 = vadd.f32 %v6045_v8, %v12955_v28  ;;  %v6047_v4 = vpop.f32.mrb[118].mxu1  ;;  %v6356_v2 = vpop.f32.mrb[228].mxu0  ;;  %7546 = vmatpush1.bf16.msra.mxu1 %v9412_v43 }
 0x8d6   : > { %v6048_v14 = vadd.f32 %v6047_v4, %v12950_v0  ;;  %v6357_v6 = vadd.f32 %v6356_v2, %v13039_v38  ;;  %v6049_v37 = vpop.f32.mrb[119].mxu1  ;;  %v6358_v49 = vpop.f32.mrb[229].mxu0  ;;  %v6689_v61 = vmax.f32 %v6044_v29, 0.0  ;;  %7547 = vmatprep.subr.bf16.mxu1 %v14383_v23 }
 0x8d7   : > { %v6050_v1 = vadd.f32 %v6049_v37, %v12955_v28  ;;  %v6359_v15 = vadd.f32 %v6358_v49, %v13045_v47  ;;  %v6360_v59 = vpop.f32.mrb[230].mxu0  ;;  %v6690_v25 = vmax.f32 %v6046_v22, 0.0 }
 0x8d8   : > { %v6693_v35 = vmax.f32 %v6048_v14, 0.0  ;;  %v6361_v45 = vadd.f32 %v6360_v59, %v13039_v38  ;;  %v6362_v10 = vpop.f32.mrb[231].mxu0  ;;  %7329 = vmatmul.mubr.bf16.gmra.mrb[224].mxu1 %v13148_v17  ;;  %v6659_v51 = vmax.f32 %v6357_v6, 0.0 }
 0x8d9   : > { %v6694_v3 = vmax.f32 %v6050_v1, 0.0  ;;  %v6363_v46 = vadd.f32 %v6362_v10, %v13045_v47  ;;  %7336 = vmatprep.mubr.bf16.mxu1 %v13172_v11  ;;  %v6660_v53 = vmax.f32 %v6359_v15, 0.0 }
 0x8da   : > { %v13245_v60 = vpack.c.bf16 %v6693_v35, %v6689_v61  ;;  %v6663_v16 = vmax.f32 %v6361_v45, 0.0 }
 0x8db   : > { %v13247_v24 = vpack.c.bf16 %v6694_v3, %v6690_v25  ;;  %v6664_v20 = vmax.f32 %v6363_v46, 0.0  ;;  %v6053_v36 = vpop.f32.mrb[120].mxu1 }
 0x8dc   : > { %v13249_v18 = vpack.c.bf16 %v6663_v16, %v6659_v51  ;;  %v6054_v21 = vadd.f32 %v6053_v36, %v12950_v0  ;;  %v6055_v17 = vpop.f32.mrb[121].mxu1 }
 0x8dd   : > { %v13252_v13 = vpack.c.bf16 %v6664_v20, %v6660_v53  ;;  %v6056_v42 = vadd.f32 %v6055_v17, %v12955_v28  ;;  %v6057_v41 = vpop.f32.mrb[122].mxu1  ;;  %v6366_v11 = vpop.f32.mrb[232].mxu0 }
 0x8de   : > { %v6058_v29 = vadd.f32 %v6057_v41, %v12950_v0  ;;  %v6367_v8 = vadd.f32 %v6366_v11, %v13039_v38  ;;  %v6059_v22 = vpop.f32.mrb[123].mxu1  ;;  %v6368_v4 = vpop.f32.mrb[233].mxu0  ;;  %v6697_v37 = vmax.f32 %v6054_v21, 0.0 }
 0x8df   : > { %v6060_v2 = vadd.f32 %v6059_v22, %v12955_v28  ;;  %v6369_v14 = vadd.f32 %v6368_v4, %v13045_v47  ;;  %v6370_v6 = vpop.f32.mrb[234].mxu0  ;;  %v6698_v59 = vmax.f32 %v6056_v42, 0.0 }
 0x8e0   : > { %v6701_v49 = vmax.f32 %v6058_v29, 0.0  ;;  %v6371_v1 = vadd.f32 %v6370_v6, %v13039_v38  ;;  %v6372_v15 = vpop.f32.mrb[235].mxu0  ;;  %7337 = vmatmul.mubr.bf16.gmra.mrb[228].mxu1 %v13169_v32  ;;  %v6667_v10 = vmax.f32 %v6367_v8, 0.0 }
 0x8e1   : > { %v6702_v61 = vmax.f32 %v6060_v2, 0.0  ;;  %v6373_v35 = vadd.f32 %v6372_v15, %v13045_v47  ;;  %7344 = vmatprep.mubr.bf16.mxu1 %v13192_v52  ;;  %v6668_v46 = vmax.f32 %v6369_v14, 0.0 }
 0x8e2   : > { %v13264_v45 = vpack.c.bf16 %v6701_v49, %v6697_v37  ;;  %v6671_v25 = vmax.f32 %v6371_v1, 0.0 }
 0x8e3   : > { %v13266_v3 = vpack.c.bf16 %v6702_v61, %v6698_v59  ;;  %v6672_v51 = vmax.f32 %v6373_v35, 0.0  ;;  %v6063_v16 = vpop.f32.mrb[124].mxu1 }
 0x8e4   : > { %v13268_v53 = vpack.c.bf16 %v6671_v25, %v6667_v10  ;;  %v6064_v32 = vadd.f32 %v6063_v16, %v12950_v0  ;;  %v6065_v20 = vpop.f32.mrb[125].mxu1 }
 0x8e5   : > { %v13271_v36 = vpack.c.bf16 %v6672_v51, %v6668_v46  ;;  %v6066_v21 = vadd.f32 %v6065_v20, %v12955_v28  ;;  %v6067_v17 = vpop.f32.mrb[126].mxu1  ;;  %v6376_v52 = vpop.f32.mrb[236].mxu0 }
 0x8e6   : > { %v6068_v42 = vadd.f32 %v6067_v17, %v12950_v0  ;;  %v6377_v41 = vadd.f32 %v6376_v52, %v13039_v38  ;;  %v6069_v11 = vpop.f32.mrb[127].mxu1  ;;  %v6378_v43 = vpop.f32.mrb[237].mxu0  ;;  %v6705_v4 = vmax.f32 %v6064_v32, 0.0  ;;  %v9413_v17 = vld [vmem:[#allocation13 + $0xe8] sm:$0xff]  }
 0x8e7   : > { %v6070_v29 = vadd.f32 %v6069_v11, %v12955_v28  ;;  %v6379_v8 = vadd.f32 %v6378_v43, %v13045_v47  ;;  %v6380_v22 = vpop.f32.mrb[238].mxu0  ;;  %v6706_v37 = vmax.f32 %v6066_v21, 0.0  ;;  %7548 = vmatpush1.bf16.msra.mxu1 %v9413_v17 }
 0x8e8   : > { %v6709_v2 = vmax.f32 %v6068_v42, 0.0  ;;  %v6381_v14 = vadd.f32 %v6380_v22, %v13039_v38  ;;  %v6382_v6 = vpop.f32.mrb[239].mxu0  ;;  %7345 = vmatmul.mubr.bf16.gmra.mrb[232].mxu1 %v13189_v7  ;;  %v6675_v59 = vmax.f32 %v6377_v41, 0.0  ;;  %7549 = vmatprep.subr.bf16.mxu1 %v14383_v23 }
 0x8e9   : > { %v6710_v49 = vmax.f32 %v6070_v29, 0.0  ;;  %v6383_v1 = vadd.f32 %v6382_v6, %v13045_v47  ;;  %7352 = vmatprep.mubr.bf16.mxu1 %v13210_v57  ;;  %v6676_v10 = vmax.f32 %v6379_v8, 0.0 }
 0x8ea   : > { %v13282_v15 = vpack.c.bf16 %v6709_v2, %v6705_v4  ;;  %v6679_v61 = vmax.f32 %v6381_v14, 0.0 }
 0x8eb   : > { %v13284_v35 = vpack.c.bf16 %v6710_v49, %v6706_v37  ;;  %v6680_v25 = vmax.f32 %v6383_v1, 0.0  ;;  %v6073_v46 = vpop.f32.mrb[128].mxu1 }
 0x8ec   : > { %v13286_v51 = vpack.c.bf16 %v6679_v61, %v6675_v59  ;;  %v6074_v16 = vadd.f32 %v6073_v46, %v12950_v0  ;;  %v6075_v7 = vpop.f32.mrb[129].mxu1 }
 0x8ed   : > { %v13289_v32 = vpack.c.bf16 %v6680_v25, %v6676_v10  ;;  %v6076_v20 = vadd.f32 %v6075_v7, %v12955_v28  ;;  %v6077_v21 = vpop.f32.mrb[130].mxu1  ;;  %v6386_v57 = vpop.f32.mrb[240].mxu0 }
 0x8ee   : > { %v6078_v52 = vadd.f32 %v6077_v21, %v12950_v0  ;;  %v6387_v42 = vadd.f32 %v6386_v57, %v13039_v38  ;;  %v6079_v41 = vpop.f32.mrb[131].mxu1  ;;  %v6388_v11 = vpop.f32.mrb[241].mxu0  ;;  %v6713_v22 = vmax.f32 %v6074_v16, 0.0 }
 0x8ef   : > { %v6080_v43 = vadd.f32 %v6079_v41, %v12955_v28  ;;  %v6389_v29 = vadd.f32 %v6388_v11, %v13045_v47  ;;  %v6390_v8 = vpop.f32.mrb[242].mxu0  ;;  %v6714_v6 = vmax.f32 %v6076_v20, 0.0 }
 0x8f0   : > { %v6717_v4 = vmax.f32 %v6078_v52, 0.0  ;;  %v6391_v2 = vadd.f32 %v6390_v8, %v13039_v38  ;;  %v6392_v14 = vpop.f32.mrb[243].mxu0  ;;  %7353 = vmatmul.mubr.bf16.gmra.mrb[236].mxu1 %v13208_v27  ;;  %v6683_v59 = vmax.f32 %v6387_v42, 0.0 }
 0x8f1   : > { %v6718_v37 = vmax.f32 %v6080_v43, 0.0  ;;  %v6393_v49 = vadd.f32 %v6392_v14, %v13045_v47  ;;  %7360 = vmatprep.mubr.bf16.mxu1 %v13229_v56  ;;  %v6684_v25 = vmax.f32 %v6389_v29, 0.0 }
 0x8f2   : > { %v13301_v1 = vpack.c.bf16 %v6717_v4, %v6713_v22  ;;  %v6687_v61 = vmax.f32 %v6391_v2, 0.0 }
 0x8f3   : > { %v13303_v10 = vpack.c.bf16 %v6718_v37, %v6714_v6  ;;  %v6688_v46 = vmax.f32 %v6393_v49, 0.0  ;;  %v6083_v16 = vpop.f32.mrb[132].mxu1 }
 0x8f4   : > { %v13305_v7 = vpack.c.bf16 %v6687_v61, %v6683_v59  ;;  %v6084_v27 = vadd.f32 %v6083_v16, %v12950_v0  ;;  %v6085_v21 = vpop.f32.mrb[133].mxu1 }
 0x8f5   : > { %v13308_v20 = vpack.c.bf16 %v6688_v46, %v6684_v25  ;;  %v6086_v57 = vadd.f32 %v6085_v21, %v12955_v28  ;;  %v6087_v17 = vpop.f32.mrb[134].mxu1  ;;  %v6396_v56 = vpop.f32.mrb[244].mxu0 }
 0x8f6   : > { %v6088_v52 = vadd.f32 %v6087_v17, %v12950_v0  ;;  %v6397_v42 = vadd.f32 %v6396_v56, %v13039_v38  ;;  %v6089_v41 = vpop.f32.mrb[135].mxu1  ;;  %v6398_v11 = vpop.f32.mrb[245].mxu0  ;;  %v6721_v22 = vmax.f32 %v6084_v27, 0.0 }
 0x8f7   : > { %v6090_v43 = vadd.f32 %v6089_v41, %v12955_v28  ;;  %v6399_v29 = vadd.f32 %v6398_v11, %v13045_v47  ;;  %v6400_v8 = vpop.f32.mrb[246].mxu0  ;;  %v6722_v6 = vmax.f32 %v6086_v57, 0.0  ;;  %v9414_v11 = vld [vmem:[#allocation13 + $0xf0] sm:$0xff]  }
 0x8f8   : > { %v6725_v4 = vmax.f32 %v6088_v52, 0.0  ;;  %v6401_v2 = vadd.f32 %v6400_v8, %v13039_v38  ;;  %v6402_v14 = vpop.f32.mrb[247].mxu0  ;;  %7361 = vmatmul.mubr.bf16.gmra.mrb[240].mxu1 %v13227_v40  ;;  %v6691_v61 = vmax.f32 %v6397_v42, 0.0 }
 0x8f9   : > { %v6726_v37 = vmax.f32 %v6090_v43, 0.0  ;;  %v6403_v49 = vadd.f32 %v6402_v14, %v13045_v47  ;;  %7368 = vmatprep.mubr.bf16.mxu1 %v13247_v24  ;;  %v6692_v16 = vmax.f32 %v6399_v29, 0.0  ;;  %7550 = vmatpush1.bf16.msra.mxu1 %v9414_v11 }
 0x8fa   : > { %v13319_v59 = vpack.c.bf16 %v6725_v4, %v6721_v22  ;;  %v6695_v25 = vmax.f32 %v6401_v2, 0.0  ;;  %7551 = vmatprep.subr.bf16.mxu1 %v14383_v23 }
 0x8fb   : > { %v13321_v46 = vpack.c.bf16 %v6726_v37, %v6722_v6  ;;  %v6696_v27 = vmax.f32 %v6403_v49, 0.0  ;;  %v6093_v21 = vpop.f32.mrb[136].mxu1 }
 0x8fc   : > { %v13323_v17 = vpack.c.bf16 %v6695_v25, %v6691_v61  ;;  %v6094_v56 = vadd.f32 %v6093_v21, %v12950_v0  ;;  %v6095_v40 = vpop.f32.mrb[137].mxu1 }
 0x8fd   : > { %v13326_v57 = vpack.c.bf16 %v6696_v27, %v6692_v16  ;;  %v6096_v52 = vadd.f32 %v6095_v40, %v12955_v28  ;;  %v6097_v41 = vpop.f32.mrb[138].mxu1  ;;  %v6406_v24 = vpop.f32.mrb[248].mxu0 }
 0x8fe   : > { %v6098_v42 = vadd.f32 %v6097_v41, %v12950_v0  ;;  %v6407_v43 = vadd.f32 %v6406_v24, %v13039_v38  ;;  %v6099_v8 = vpop.f32.mrb[139].mxu1  ;;  %v6408_v29 = vpop.f32.mrb[249].mxu0  ;;  %v6729_v14 = vmax.f32 %v6094_v56, 0.0 }
 0x8ff   : > { %v6100_v22 = vadd.f32 %v6099_v8, %v12955_v28  ;;  %v6409_v4 = vadd.f32 %v6408_v29, %v13045_v47  ;;  %v6410_v2 = vpop.f32.mrb[250].mxu0  ;;  %v6730_v61 = vmax.f32 %v6096_v52, 0.0 }
 0x900   : > { %v6733_v6 = vmax.f32 %v6098_v42, 0.0  ;;  %v6411_v37 = vadd.f32 %v6410_v2, %v13039_v38  ;;  %v6412_v49 = vpop.f32.mrb[251].mxu0  ;;  %7369 = vmatmul.mubr.bf16.gmra.mrb[244].mxu1 %v13245_v60  ;;  %v6699_v21 = vmax.f32 %v6407_v43, 0.0 }
 0x901   : > { %v6734_v25 = vmax.f32 %v6100_v22, 0.0  ;;  %v6413_v16 = vadd.f32 %v6412_v49, %v13045_v47  ;;  %7376 = vmatprep.mubr.bf16.mxu1 %v13266_v3  ;;  %v6700_v56 = vmax.f32 %v6409_v4, 0.0 }
 0x902   : > { %v13338_v27 = vpack.c.bf16 %v6733_v6, %v6729_v14  ;;  %v6703_v40 = vmax.f32 %v6411_v37, 0.0 }
 0x903   : > { %v13340_v41 = vpack.c.bf16 %v6734_v25, %v6730_v61  ;;  %v6704_v24 = vmax.f32 %v6413_v16, 0.0  ;;  %v6103_v11 = vpop.f32.mrb[140].mxu1 }
 0x904   : > { %v13342_v42 = vpack.c.bf16 %v6703_v40, %v6699_v21  ;;  %v6104_v60 = vadd.f32 %v6103_v11, %v12950_v0  ;;  %v6105_v23 = vpop.f32.mrb[141].mxu1 }
 0x905   : > { %v13345_v52 = vpack.c.bf16 %v6704_v24, %v6700_v56  ;;  %v6106_v8 = vadd.f32 %v6105_v23, %v12955_v28  ;;  %v6107_v29 = vpop.f32.mrb[142].mxu1  ;;  %v6416_v3 = vpop.f32.mrb[252].mxu0 }
 0x906   : > { %v6108_v22 = vadd.f32 %v6107_v29, %v12950_v0  ;;  %v6417_v43 = vadd.f32 %v6416_v3, %v13039_v38  ;;  %v6109_v2 = vpop.f32.mrb[143].mxu1  ;;  %v6418_v14 = vpop.f32.mrb[253].mxu0  ;;  %v6737_v49 = vmax.f32 %v6104_v60, 0.0 }
 0x907   : > { %v6110_v4 = vadd.f32 %v6109_v2, %v12955_v28  ;;  %v6419_v6 = vadd.f32 %v6418_v14, %v13045_v47  ;;  %v6420_v37 = vpop.f32.mrb[254].mxu0  ;;  %v6738_v21 = vmax.f32 %v6106_v8, 0.0 }
 0x908   : > { %v6741_v61 = vmax.f32 %v6108_v22, 0.0  ;;  %v6421_v25 = vadd.f32 %v6420_v37, %v13039_v38  ;;  %v6422_v16 = vpop.f32.mrb[255].mxu0  ;;  %7377 = vmatmul.mubr.bf16.gmra.mrb[248].mxu1 %v13264_v45  ;;  %v6707_v11 = vmax.f32 %v6417_v43, 0.0 }
 0x909   : > { %v6742_v40 = vmax.f32 %v6110_v4, 0.0  ;;  %v6423_v56 = vadd.f32 %v6422_v16, %v13045_v47  ;;  %7384 = vmatprep.mubr.bf16.mxu1 %v13284_v35  ;;  %v6708_v3 = vmax.f32 %v6419_v6, 0.0 }
 0x90a   : > { %v13356_v24 = vpack.c.bf16 %v6741_v61, %v6737_v49  ;;  %v6711_v23 = vmax.f32 %v6421_v25, 0.0  ;;  %v9415_v49 = vld [vmem:[#allocation13 + $0xf8] sm:$0xff]  }
 0x90b   : > { %v13358_v29 = vpack.c.bf16 %v6742_v40, %v6738_v21  ;;  %v6712_v60 = vmax.f32 %v6423_v56, 0.0  ;;  %v6113_v22 = vpop.f32.mrb[144].mxu1  ;;  %7552 = vmatpush1.bf16.msra.mxu1 %v9415_v49 }
 0x90c   : > { %v13360_v2 = vpack.c.bf16 %v6711_v23, %v6707_v11  ;;  %v6114_v14 = vadd.f32 %v6113_v22, %v12950_v0  ;;  %v6115_v45 = vpop.f32.mrb[145].mxu1 }
 0x90d   : > { %v13363_v8 = vpack.c.bf16 %v6712_v60, %v6708_v3  ;;  %v6116_v4 = vadd.f32 %v6115_v45, %v12955_v28  ;;  %v6117_v37 = vpop.f32.mrb[146].mxu1  ;;  %v6426_v35 = vpop.f32.mrb[0].mxu0 }
 0x90e   : > { %14548 = vst [vmem:[#allocation105_spill] sm:$0xff] %v13360_v2  ;;  %v6118_v43 = vadd.f32 %v6117_v37, %v12950_v0  ;;  %v6427_v61 = vadd.f32 %v6426_v35, %v13039_v38  ;;  %v6119_v25 = vpop.f32.mrb[147].mxu1  ;;  %v6428_v6 = vpop.f32.mrb[1].mxu0  ;;  %v6745_v56 = vmax.f32 %v6114_v14, 0.0 }
 0x90f   : > { %v6120_v16 = vadd.f32 %v6119_v25, %v12955_v28  ;;  %v6429_v21 = vadd.f32 %v6428_v6, %v13045_v47  ;;  %v6430_v40 = vpop.f32.mrb[2].mxu0  ;;  %v6746_v60 = vmax.f32 %v6116_v4, 0.0 }
 0x910   : > { %v6749_v11 = vmax.f32 %v6118_v43, 0.0  ;;  %v6431_v23 = vadd.f32 %v6430_v40, %v13039_v38  ;;  %v6432_v3 = vpop.f32.mrb[3].mxu0  ;;  %7385 = vmatmul.mubr.bf16.gmra.mrb[252].mxu1 %v13282_v15  ;;  %v6715_v35 = vmax.f32 %v6427_v61, 0.0 }
 0x911   : > { %v6750_v22 = vmax.f32 %v6120_v16, 0.0  ;;  %v6433_v45 = vadd.f32 %v6432_v3, %v13045_v47  ;;  %7392 = vmatprep.mubr.bf16.mxu1 %v13303_v10  ;;  %v6716_v49 = vmax.f32 %v6429_v21, 0.0 }
 0x912   : > { %v13374_v37 = vpack.c.bf16 %v6749_v11, %v6745_v56  ;;  %v6719_v25 = vmax.f32 %v6431_v23, 0.0 }
 0x913   : > { %v13376_v6 = vpack.c.bf16 %v6750_v22, %v6746_v60  ;;  %v6720_v14 = vmax.f32 %v6433_v45, 0.0  ;;  %v6123_v43 = vpop.f32.mrb[148].mxu1 }
 0x914   : > { %v13378_v2 = vpack.c.bf16 %v6719_v25, %v6715_v35  ;;  %v6124_v40 = vadd.f32 %v6123_v43, %v12950_v0  ;;  %v6125_v15 = vpop.f32.mrb[149].mxu1 }
 0x915   : > { %v13381_v4 = vpack.c.bf16 %v6720_v14, %v6716_v49  ;;  %v6126_v16 = vadd.f32 %v6125_v15, %v12955_v28  ;;  %v6127_v3 = vpop.f32.mrb[150].mxu1  ;;  %v6436_v10 = vpop.f32.mrb[4].mxu0 }
 0x916   : > { %14549 = vst [vmem:[#allocation106_spill] sm:$0xff] %v13378_v2  ;;  %v6128_v56 = vadd.f32 %v6127_v3, %v12950_v0  ;;  %v6437_v61 = vadd.f32 %v6436_v10, %v13039_v38  ;;  %v6129_v11 = vpop.f32.mrb[151].mxu1  ;;  %v6438_v23 = vpop.f32.mrb[5].mxu0  ;;  %v6753_v45 = vmax.f32 %v6124_v40, 0.0 }
 0x917   : > { %14550 = vst [vmem:[#allocation104_spill] sm:$0xff] %v13381_v4  ;;  %v6130_v21 = vadd.f32 %v6129_v11, %v12955_v28  ;;  %v6439_v60 = vadd.f32 %v6438_v23, %v13045_v47  ;;  %v6440_v22 = vpop.f32.mrb[6].mxu0  ;;  %v6754_v14 = vmax.f32 %v6126_v16, 0.0 }
 0x918   : > { %v6757_v35 = vmax.f32 %v6128_v56, 0.0  ;;  %v6441_v25 = vadd.f32 %v6440_v22, %v13039_v38  ;;  %v6442_v49 = vpop.f32.mrb[7].mxu0  ;;  %7393 = vmatmul.mubr.bf16.gmra.mrb[0].mxu1 %v13301_v1  ;;  %v6723_v10 = vmax.f32 %v6437_v61, 0.0 }
 0x919   : > { %v6758_v43 = vmax.f32 %v6130_v21, 0.0  ;;  %v6443_v15 = vadd.f32 %v6442_v49, %v13045_v47  ;;  %7400 = vmatprep.mubr.bf16.mxu1 %v13321_v46  ;;  %v6724_v23 = vmax.f32 %v6439_v60, 0.0 }
 0x91a   : > { %v13392_v3 = vpack.c.bf16 %v6757_v35, %v6753_v45  ;;  %v6727_v11 = vmax.f32 %v6441_v25, 0.0 }
 0x91b   : > { %v13394_v2 = vpack.c.bf16 %v6758_v43, %v6754_v14  ;;  %v6728_v40 = vmax.f32 %v6443_v15, 0.0  ;;  %v6133_v56 = vpop.f32.mrb[152].mxu1 }
 0x91c   : > { %v13396_v4 = vpack.c.bf16 %v6727_v11, %v6723_v10  ;;  %v6134_v22 = vadd.f32 %v6133_v56, %v12950_v0  ;;  %v6135_v1 = vpop.f32.mrb[153].mxu1 }
 0x91d   : > { %v13399_v16 = vpack.c.bf16 %v6728_v40, %v6724_v23  ;;  %v6136_v21 = vadd.f32 %v6135_v1, %v12955_v28  ;;  %v6137_v49 = vpop.f32.mrb[154].mxu1  ;;  %v6446_v46 = vpop.f32.mrb[8].mxu0 }
 0x91e   : > { %14551 = vst [vmem:[#allocation111_spill] sm:$0xff] %v13396_v4  ;;  %v6138_v45 = vadd.f32 %v6137_v49, %v12950_v0  ;;  %v6447_v61 = vadd.f32 %v6446_v46, %v13039_v38  ;;  %v6139_v35 = vpop.f32.mrb[155].mxu1  ;;  %v6448_v25 = vpop.f32.mrb[9].mxu0  ;;  %v6761_v15 = vmax.f32 %v6134_v22, 0.0 }
 0x91f   : > { %14552 = vst [vmem:[#allocation117_spill] sm:$0xff] %v13399_v16  ;;  %v6140_v60 = vadd.f32 %v6139_v35, %v12955_v28  ;;  %v6449_v14 = vadd.f32 %v6448_v25, %v13045_v47  ;;  %v6450_v43 = vpop.f32.mrb[10].mxu0  ;;  %v6762_v40 = vmax.f32 %v6136_v21, 0.0 }
 0x920   : > { %v6765_v10 = vmax.f32 %v6138_v45, 0.0  ;;  %v6451_v11 = vadd.f32 %v6450_v43, %v13039_v38  ;;  %v6452_v23 = vpop.f32.mrb[11].mxu0  ;;  %7401 = vmatmul.mubr.bf16.gmra.mrb[4].mxu1 %v13319_v59  ;;  %v6731_v46 = vmax.f32 %v6447_v61, 0.0 }
 0x921   : > { %v6766_v56 = vmax.f32 %v6140_v60, 0.0  ;;  %v6453_v1 = vadd.f32 %v6452_v23, %v13045_v47  ;;  %7408 = vmatprep.mubr.bf16.mxu1 %v13340_v41  ;;  %v6732_v25 = vmax.f32 %v6449_v14, 0.0 }
 0x922   : > { %v13410_v49 = vpack.c.bf16 %v6765_v10, %v6761_v15  ;;  %v6735_v35 = vmax.f32 %v6451_v11, 0.0 }
 0x923   : > { %v13412_v4 = vpack.c.bf16 %v6766_v56, %v6762_v40  ;;  %v6736_v22 = vmax.f32 %v6453_v1, 0.0  ;;  %v6143_v45 = vpop.f32.mrb[156].mxu1 }
 0x924   : > { %v13414_v16 = vpack.c.bf16 %v6735_v35, %v6731_v46  ;;  %v6144_v43 = vadd.f32 %v6143_v45, %v12950_v0  ;;  %v6145_v59 = vpop.f32.mrb[157].mxu1 }
 0x925   : > { %v13417_v21 = vpack.c.bf16 %v6736_v22, %v6732_v25  ;;  %v6146_v60 = vadd.f32 %v6145_v59, %v12955_v28  ;;  %v6147_v23 = vpop.f32.mrb[158].mxu1  ;;  %v6456_v41 = vpop.f32.mrb[12].mxu0 }
 0x926   : > { %14553 = vst [vmem:[#allocation116_spill] sm:$0xff] %v13414_v16  ;;  %v6148_v15 = vadd.f32 %v6147_v23, %v12950_v0  ;;  %v6457_v61 = vadd.f32 %v6456_v41, %v13039_v38  ;;  %v6149_v10 = vpop.f32.mrb[159].mxu1  ;;  %v6458_v11 = vpop.f32.mrb[13].mxu0  ;;  %v6769_v1 = vmax.f32 %v6144_v43, 0.0 }
 0x927   : > { %14554 = vst [vmem:[#allocation126_spill] sm:$0xff] %v13417_v21  ;;  %v6150_v14 = vadd.f32 %v6149_v10, %v12955_v28  ;;  %v6459_v40 = vadd.f32 %v6458_v11, %v13045_v47  ;;  %v6460_v56 = vpop.f32.mrb[14].mxu0  ;;  %v6770_v22 = vmax.f32 %v6146_v60, 0.0 }
 0x928   : > { %v6773_v46 = vmax.f32 %v6148_v15, 0.0  ;;  %v6461_v35 = vadd.f32 %v6460_v56, %v13039_v38  ;;  %v6462_v25 = vpop.f32.mrb[15].mxu0  ;;  %7409 = vmatmul.mubr.bf16.gmra.mrb[8].mxu1 %v13338_v27  ;;  %v6739_v41 = vmax.f32 %v6457_v61, 0.0 }
 0x929   : > { %v6774_v45 = vmax.f32 %v6150_v14, 0.0  ;;  %v6463_v59 = vadd.f32 %v6462_v25, %v13045_v47  ;;  %7416 = vmatprep.mubr.bf16.mxu1 %v13358_v29  ;;  %v6740_v11 = vmax.f32 %v6459_v40, 0.0 }
 0x92a   : > { %v13428_v23 = vpack.c.bf16 %v6773_v46, %v6769_v1  ;;  %v6743_v10 = vmax.f32 %v6461_v35, 0.0 }
 0x92b   : > { %v13430_v16 = vpack.c.bf16 %v6774_v45, %v6770_v22  ;;  %v6744_v43 = vmax.f32 %v6463_v59, 0.0  ;;  %v6153_v15 = vpop.f32.mrb[160].mxu1 }
 0x92c   : > { %v13432_v21 = vpack.c.bf16 %v6743_v10, %v6739_v41  ;;  %v6154_v56 = vadd.f32 %v6153_v15, %v12950_v0  ;;  %v6155_v27 = vpop.f32.mrb[161].mxu1 }
 0x92d   : > { %v13435_v60 = vpack.c.bf16 %v6744_v43, %v6740_v11  ;;  %v6156_v14 = vadd.f32 %v6155_v27, %v12955_v28  ;;  %v6157_v25 = vpop.f32.mrb[162].mxu1  ;;  %v6466_v29 = vpop.f32.mrb[16].mxu0 }
 0x92e   : > { %14555 = vst [vmem:[#allocation37_spill] sm:$0xff] %v13432_v21  ;;  %v6158_v1 = vadd.f32 %v6157_v25, %v12950_v0  ;;  %v6467_v61 = vadd.f32 %v6466_v29, %v13039_v38  ;;  %v6159_v46 = vpop.f32.mrb[163].mxu1  ;;  %v6468_v35 = vpop.f32.mrb[17].mxu0  ;;  %v6777_v59 = vmax.f32 %v6154_v56, 0.0 }
 0x92f   : > { %14556 = vst [vmem:[#allocation127_spill] sm:$0xff] %v13435_v60  ;;  %v6160_v40 = vadd.f32 %v6159_v46, %v12955_v28  ;;  %v6469_v22 = vadd.f32 %v6468_v35, %v13045_v47  ;;  %v6470_v45 = vpop.f32.mrb[18].mxu0  ;;  %v6778_v43 = vmax.f32 %v6156_v14, 0.0 }
 0x930   : > { %v6781_v41 = vmax.f32 %v6158_v1, 0.0  ;;  %v6471_v10 = vadd.f32 %v6470_v45, %v13039_v38  ;;  %v6472_v11 = vpop.f32.mrb[19].mxu0  ;;  %7417 = vmatmul.mubr.bf16.gmra.mrb[12].mxu1 %v13356_v24  ;;  %v6747_v29 = vmax.f32 %v6467_v61, 0.0 }
 0x931   : > { %v6782_v15 = vmax.f32 %v6160_v40, 0.0  ;;  %v6473_v27 = vadd.f32 %v6472_v11, %v13045_v47  ;;  %7424 = vmatprep.mubr.bf16.mxu1 %v13376_v6  ;;  %v6748_v35 = vmax.f32 %v6469_v22, 0.0 }
 0x932   : > { %v13446_v25 = vpack.c.bf16 %v6781_v41, %v6777_v59  ;;  %v6751_v46 = vmax.f32 %v6471_v10, 0.0 }
 0x933   : > { %v13448_v21 = vpack.c.bf16 %v6782_v15, %v6778_v43  ;;  %v6752_v56 = vmax.f32 %v6473_v27, 0.0  ;;  %v6163_v1 = vpop.f32.mrb[164].mxu1 }
 0x934   : > { %v13450_v60 = vpack.c.bf16 %v6751_v46, %v6747_v29  ;;  %v6164_v45 = vadd.f32 %v6163_v1, %v12950_v0  ;;  %v6165_v24 = vpop.f32.mrb[165].mxu1 }
 0x935   : > { %v13453_v14 = vpack.c.bf16 %v6752_v56, %v6748_v35  ;;  %v6166_v40 = vadd.f32 %v6165_v24, %v12955_v28  ;;  %v6167_v11 = vpop.f32.mrb[166].mxu1  ;;  %v6476_v6 = vpop.f32.mrb[20].mxu0 }
 0x936   : > { %14557 = vst [vmem:[#allocation36_spill] sm:$0xff] %v13450_v60  ;;  %v6168_v59 = vadd.f32 %v6167_v11, %v12950_v0  ;;  %v6477_v61 = vadd.f32 %v6476_v6, %v13039_v38  ;;  %v6169_v41 = vpop.f32.mrb[167].mxu1  ;;  %v6478_v10 = vpop.f32.mrb[21].mxu0  ;;  %v6785_v27 = vmax.f32 %v6164_v45, 0.0 }
 0x937   : > { %14558 = vst [vmem:[#allocation44_spill] sm:$0xff] %v13453_v14  ;;  %v6170_v22 = vadd.f32 %v6169_v41, %v12955_v28  ;;  %v6479_v43 = vadd.f32 %v6478_v10, %v13045_v47  ;;  %v6480_v15 = vpop.f32.mrb[22].mxu0  ;;  %v6786_v56 = vmax.f32 %v6166_v40, 0.0 }
 0x938   : > { %v6789_v29 = vmax.f32 %v6168_v59, 0.0  ;;  %v6481_v46 = vadd.f32 %v6480_v15, %v13039_v38  ;;  %v6482_v35 = vpop.f32.mrb[23].mxu0  ;;  %7425 = vmatmul.mubr.bf16.gmra.mrb[16].mxu1 %v13374_v37  ;;  %v6755_v6 = vmax.f32 %v6477_v61, 0.0 }
 0x939   : > { %v6790_v1 = vmax.f32 %v6170_v22, 0.0  ;;  %v6483_v24 = vadd.f32 %v6482_v35, %v13045_v47  ;;  %7432 = vmatprep.mubr.bf16.mxu1 %v13394_v2  ;;  %v6756_v10 = vmax.f32 %v6479_v43, 0.0 }
 0x93a   : > { %v13464_v11 = vpack.c.bf16 %v6789_v29, %v6785_v27  ;;  %v6759_v41 = vmax.f32 %v6481_v46, 0.0 }
 0x93b   : > { %v13466_v60 = vpack.c.bf16 %v6790_v1, %v6786_v56  ;;  %v6760_v45 = vmax.f32 %v6483_v24, 0.0  ;;  %v6173_v59 = vpop.f32.mrb[168].mxu1 }
 0x93c   : > { %v13468_v14 = vpack.c.bf16 %v6759_v41, %v6755_v6  ;;  %v6174_v15 = vadd.f32 %v6173_v59, %v12950_v0  ;;  %v6175_v37 = vpop.f32.mrb[169].mxu1 }
 0x93d   : > { %v13471_v40 = vpack.c.bf16 %v6760_v45, %v6756_v10  ;;  %v6176_v22 = vadd.f32 %v6175_v37, %v12955_v28  ;;  %v6177_v35 = vpop.f32.mrb[170].mxu1  ;;  %v6486_v2 = vpop.f32.mrb[24].mxu0 }
 0x93e   : > { %14559 = vst [vmem:[#allocation38_spill] sm:$0xff] %v13468_v14  ;;  %v6178_v27 = vadd.f32 %v6177_v35, %v12950_v0  ;;  %v6487_v61 = vadd.f32 %v6486_v2, %v13039_v38  ;;  %v6179_v29 = vpop.f32.mrb[171].mxu1  ;;  %v6488_v46 = vpop.f32.mrb[25].mxu0  ;;  %v6793_v24 = vmax.f32 %v6174_v15, 0.0 }
 0x93f   : > { %14560 = vst [vmem:[#allocation45_spill] sm:$0xff] %v13471_v40  ;;  %v6180_v43 = vadd.f32 %v6179_v29, %v12955_v28  ;;  %v6489_v56 = vadd.f32 %v6488_v46, %v13045_v47  ;;  %v6490_v1 = vpop.f32.mrb[26].mxu0  ;;  %v6794_v45 = vmax.f32 %v6176_v22, 0.0 }
 0x940   : > { %v6797_v6 = vmax.f32 %v6178_v27, 0.0  ;;  %v6491_v41 = vadd.f32 %v6490_v1, %v13039_v38  ;;  %v6492_v10 = vpop.f32.mrb[27].mxu0  ;;  %7433 = vmatmul.mubr.bf16.gmra.mrb[20].mxu1 %v13392_v3  ;;  %v6763_v2 = vmax.f32 %v6487_v61, 0.0 }
 0x941   : > { %v6798_v59 = vmax.f32 %v6180_v43, 0.0  ;;  %v6493_v37 = vadd.f32 %v6492_v10, %v13045_v47  ;;  %7440 = vmatprep.mubr.bf16.mxu1 %v13412_v4  ;;  %v6764_v46 = vmax.f32 %v6489_v56, 0.0 }
 0x942   : > { %v13482_v35 = vpack.c.bf16 %v6797_v6, %v6793_v24  ;;  %v6767_v29 = vmax.f32 %v6491_v41, 0.0 }
 0x943   : > { %v13484_v14 = vpack.c.bf16 %v6798_v59, %v6794_v45  ;;  %v6768_v15 = vmax.f32 %v6493_v37, 0.0  ;;  %v6183_v27 = vpop.f32.mrb[172].mxu1 }
 0x944   : > { %v13486_v40 = vpack.c.bf16 %v6767_v29, %v6763_v2  ;;  %v6184_v1 = vadd.f32 %v6183_v27, %v12950_v0  ;;  %v6185_v3 = vpop.f32.mrb[173].mxu1 }
 0x945   : > { %v13489_v22 = vpack.c.bf16 %v6768_v15, %v6764_v46  ;;  %v6186_v43 = vadd.f32 %v6185_v3, %v12955_v28  ;;  %v6187_v10 = vpop.f32.mrb[174].mxu1  ;;  %v6496_v4 = vpop.f32.mrb[28].mxu0 }
 0x946   : > { %14561 = vst [vmem:[#allocation51_spill] sm:$0xff] %v13486_v40  ;;  %v6188_v24 = vadd.f32 %v6187_v10, %v12950_v0  ;;  %v6497_v61 = vadd.f32 %v6496_v4, %v13039_v38  ;;  %v6189_v6 = vpop.f32.mrb[175].mxu1  ;;  %v6498_v41 = vpop.f32.mrb[29].mxu0  ;;  %v6801_v37 = vmax.f32 %v6184_v1, 0.0 }
 0x947   : > { %14562 = vst [vmem:[#allocation43_spill] sm:$0xff] %v13489_v22  ;;  %v6190_v56 = vadd.f32 %v6189_v6, %v12955_v28  ;;  %v6499_v45 = vadd.f32 %v6498_v41, %v13045_v47  ;;  %v6500_v59 = vpop.f32.mrb[30].mxu0  ;;  %v6802_v15 = vmax.f32 %v6186_v43, 0.0 }
 0x948   : > { %v6805_v2 = vmax.f32 %v6188_v24, 0.0  ;;  %v6501_v29 = vadd.f32 %v6500_v59, %v13039_v38  ;;  %v6502_v46 = vpop.f32.mrb[31].mxu0  ;;  %7441 = vmatmul.mubr.bf16.gmra.mrb[24].mxu1 %v13410_v49  ;;  %v6771_v4 = vmax.f32 %v6497_v61, 0.0 }
 0x949   : > { %v6806_v27 = vmax.f32 %v6190_v56, 0.0  ;;  %v6503_v3 = vadd.f32 %v6502_v46, %v13045_v47  ;;  %7448 = vmatprep.mubr.bf16.mxu1 %v13430_v16  ;;  %v6772_v41 = vmax.f32 %v6499_v45, 0.0 }
 0x94a   : > { %v13500_v10 = vpack.c.bf16 %v6805_v2, %v6801_v37  ;;  %v6775_v6 = vmax.f32 %v6501_v29, 0.0 }
 0x94b   : > { %v13502_v40 = vpack.c.bf16 %v6806_v27, %v6802_v15  ;;  %v6776_v1 = vmax.f32 %v6503_v3, 0.0  ;;  %v6193_v24 = vpop.f32.mrb[176].mxu1 }
 0x94c   : > { %v13504_v22 = vpack.c.bf16 %v6775_v6, %v6771_v4  ;;  %v6194_v59 = vadd.f32 %v6193_v24, %v12950_v0  ;;  %v6195_v49 = vpop.f32.mrb[177].mxu1 }
 0x94d   : > { %v13507_v43 = vpack.c.bf16 %v6776_v1, %v6772_v41  ;;  %v6196_v56 = vadd.f32 %v6195_v49, %v12955_v28  ;;  %v6197_v46 = vpop.f32.mrb[178].mxu1  ;;  %v6506_v16 = vpop.f32.mrb[32].mxu0 }
 0x94e   : > { %14563 = vst [vmem:[#allocation50_spill] sm:$0xff] %v13504_v22  ;;  %v6198_v37 = vadd.f32 %v6197_v46, %v12950_v0  ;;  %v6507_v61 = vadd.f32 %v6506_v16, %v13039_v38  ;;  %v6199_v2 = vpop.f32.mrb[179].mxu1  ;;  %v6508_v29 = vpop.f32.mrb[33].mxu0  ;;  %v6809_v3 = vmax.f32 %v6194_v59, 0.0 }
 0x94f   : > { %14564 = vst [vmem:[#allocation58_spill] sm:$0xff] %v13507_v43  ;;  %v6200_v45 = vadd.f32 %v6199_v2, %v12955_v28  ;;  %v6509_v15 = vadd.f32 %v6508_v29, %v13045_v47  ;;  %v6510_v27 = vpop.f32.mrb[34].mxu0  ;;  %v6810_v1 = vmax.f32 %v6196_v56, 0.0 }
 0x950   : > { %v6813_v4 = vmax.f32 %v6198_v37, 0.0  ;;  %v6511_v6 = vadd.f32 %v6510_v27, %v13039_v38  ;;  %v6512_v41 = vpop.f32.mrb[35].mxu0  ;;  %7449 = vmatmul.mubr.bf16.gmra.mrb[28].mxu1 %v13428_v23  ;;  %v6779_v16 = vmax.f32 %v6507_v61, 0.0 }
 0x951   : > { %v6814_v24 = vmax.f32 %v6200_v45, 0.0  ;;  %v6513_v49 = vadd.f32 %v6512_v41, %v13045_v47  ;;  %7456 = vmatprep.mubr.bf16.mxu1 %v13448_v21  ;;  %v6780_v29 = vmax.f32 %v6509_v15, 0.0 }
 0x952   : > { %v13518_v46 = vpack.c.bf16 %v6813_v4, %v6809_v3  ;;  %v6783_v2 = vmax.f32 %v6511_v6, 0.0 }
 0x953   : > { %v13520_v22 = vpack.c.bf16 %v6814_v24, %v6810_v1  ;;  %v6784_v59 = vmax.f32 %v6513_v49, 0.0  ;;  %v6203_v37 = vpop.f32.mrb[180].mxu1 }
 0x954   : > { %v13522_v43 = vpack.c.bf16 %v6783_v2, %v6779_v16  ;;  %v6204_v27 = vadd.f32 %v6203_v37, %v12950_v0  ;;  %v6205_v23 = vpop.f32.mrb[181].mxu1 }
 0x955   : > { %v13525_v56 = vpack.c.bf16 %v6784_v59, %v6780_v29  ;;  %v6206_v45 = vadd.f32 %v6205_v23, %v12955_v28  ;;  %v6207_v41 = vpop.f32.mrb[182].mxu1  ;;  %v6516_v21 = vpop.f32.mrb[36].mxu0 }
 0x956   : > { %14565 = vst [vmem:[#allocation52_spill] sm:$0xff] %v13522_v43  ;;  %v6208_v3 = vadd.f32 %v6207_v41, %v12950_v0  ;;  %v6517_v61 = vadd.f32 %v6516_v21, %v13039_v38  ;;  %v6209_v4 = vpop.f32.mrb[183].mxu1  ;;  %v6518_v6 = vpop.f32.mrb[37].mxu0  ;;  %v6817_v49 = vmax.f32 %v6204_v27, 0.0 }
 0x957   : > { %14566 = vst [vmem:[#allocation57_spill] sm:$0xff] %v13525_v56  ;;  %v6210_v15 = vadd.f32 %v6209_v4, %v12955_v28  ;;  %v6519_v1 = vadd.f32 %v6518_v6, %v13045_v47  ;;  %v6520_v24 = vpop.f32.mrb[38].mxu0  ;;  %v6818_v59 = vmax.f32 %v6206_v45, 0.0 }
 0x958   : > { %v6821_v16 = vmax.f32 %v6208_v3, 0.0  ;;  %v6521_v2 = vadd.f32 %v6520_v24, %v13039_v38  ;;  %v6522_v29 = vpop.f32.mrb[39].mxu0  ;;  %7457 = vmatmul.mubr.bf16.gmra.mrb[32].mxu1 %v13446_v25  ;;  %v6787_v21 = vmax.f32 %v6517_v61, 0.0 }
 0x959   : > { %v6822_v37 = vmax.f32 %v6210_v15, 0.0  ;;  %v6523_v23 = vadd.f32 %v6522_v29, %v13045_v47  ;;  %7464 = vmatprep.mubr.bf16.mxu1 %v13466_v60  ;;  %v6788_v6 = vmax.f32 %v6519_v1, 0.0 }
 0x95a   : > { %v13536_v41 = vpack.c.bf16 %v6821_v16, %v6817_v49  ;;  %v6791_v4 = vmax.f32 %v6521_v2, 0.0 }
 0x95b   : > { %v13538_v43 = vpack.c.bf16 %v6822_v37, %v6818_v59  ;;  %v6792_v27 = vmax.f32 %v6523_v23, 0.0  ;;  %v6213_v3 = vpop.f32.mrb[184].mxu1 }
 0x95c   : > { %v13540_v56 = vpack.c.bf16 %v6791_v4, %v6787_v21  ;;  %v6214_v24 = vadd.f32 %v6213_v3, %v12950_v0  ;;  %v6215_v25 = vpop.f32.mrb[185].mxu1 }
 0x95d   : > { %v13543_v45 = vpack.c.bf16 %v6792_v27, %v6788_v6  ;;  %v6216_v15 = vadd.f32 %v6215_v25, %v12955_v28  ;;  %v6217_v29 = vpop.f32.mrb[186].mxu1  ;;  %v6526_v60 = vpop.f32.mrb[40].mxu0 }
 0x95e   : > { %14567 = vst [vmem:[#allocation69_spill] sm:$0xff] %v13540_v56  ;;  %v6218_v49 = vadd.f32 %v6217_v29, %v12950_v0  ;;  %v6527_v61 = vadd.f32 %v6526_v60, %v13039_v38  ;;  %v6219_v16 = vpop.f32.mrb[187].mxu1  ;;  %v6528_v2 = vpop.f32.mrb[41].mxu0  ;;  %v6825_v23 = vmax.f32 %v6214_v24, 0.0 }
 0x95f   : > { %14568 = vst [vmem:[#allocation59_spill] sm:$0xff] %v13543_v45  ;;  %v6220_v1 = vadd.f32 %v6219_v16, %v12955_v28  ;;  %v6529_v59 = vadd.f32 %v6528_v2, %v13045_v47  ;;  %v6530_v37 = vpop.f32.mrb[42].mxu0  ;;  %v6826_v27 = vmax.f32 %v6216_v15, 0.0 }
 0x960   : > { %v6829_v21 = vmax.f32 %v6218_v49, 0.0  ;;  %v6531_v4 = vadd.f32 %v6530_v37, %v13039_v38  ;;  %v6532_v6 = vpop.f32.mrb[43].mxu0  ;;  %7465 = vmatmul.mubr.bf16.gmra.mrb[36].mxu1 %v13464_v11  ;;  %v6795_v60 = vmax.f32 %v6527_v61, 0.0 }
 0x961   : > { %v6830_v3 = vmax.f32 %v6220_v1, 0.0  ;;  %v6533_v25 = vadd.f32 %v6532_v6, %v13045_v47  ;;  %7472 = vmatprep.mubr.bf16.mxu1 %v13484_v14  ;;  %v6796_v2 = vmax.f32 %v6529_v59, 0.0 }
 0x962   : > { %v13554_v29 = vpack.c.bf16 %v6829_v21, %v6825_v23  ;;  %v6799_v16 = vmax.f32 %v6531_v4, 0.0 }
 0x963   : > { %v13556_v56 = vpack.c.bf16 %v6830_v3, %v6826_v27  ;;  %v6800_v24 = vmax.f32 %v6533_v25, 0.0  ;;  %v6223_v49 = vpop.f32.mrb[188].mxu1 }
 0x964   : > { %v13558_v45 = vpack.c.bf16 %v6799_v16, %v6795_v60  ;;  %v6224_v37 = vadd.f32 %v6223_v49, %v12950_v0  ;;  %v6225_v11 = vpop.f32.mrb[189].mxu1 }
 0x965   : > { %v13561_v15 = vpack.c.bf16 %v6800_v24, %v6796_v2  ;;  %v6226_v1 = vadd.f32 %v6225_v11, %v12955_v28  ;;  %v6227_v6 = vpop.f32.mrb[190].mxu1  ;;  %v6536_v14 = vpop.f32.mrb[44].mxu0 }
 0x966   : > { %v6228_v23 = vadd.f32 %v6227_v6, %v12950_v0  ;;  %v6537_v61 = vadd.f32 %v6536_v14, %v13039_v38  ;;  %v6229_v21 = vpop.f32.mrb[191].mxu1  ;;  %v6538_v4 = vpop.f32.mrb[45].mxu0  ;;  %v6833_v25 = vmax.f32 %v6224_v37, 0.0 }
 0x967   : > { %v6230_v59 = vadd.f32 %v6229_v21, %v12955_v28  ;;  %v6539_v27 = vadd.f32 %v6538_v4, %v13045_v47  ;;  %v6540_v3 = vpop.f32.mrb[46].mxu0  ;;  %v6834_v24 = vmax.f32 %v6226_v1, 0.0 }
 0x968   : > { %v6837_v60 = vmax.f32 %v6228_v23, 0.0  ;;  %v6541_v16 = vadd.f32 %v6540_v3, %v13039_v38  ;;  %v6542_v2 = vpop.f32.mrb[47].mxu0  ;;  %7473 = vmatmul.mubr.bf16.gmra.mrb[40].mxu1 %v13482_v35  ;;  %v6803_v6 = vmax.f32 %v6537_v61, 0.0 }
 0x969   : > { %v6838_v49 = vmax.f32 %v6230_v59, 0.0  ;;  %v6543_v0 = vadd.f32 %v6542_v2, %v13045_v47  ;;  %7480 = vmatprep.mubr.bf16.mxu1 %v13502_v40  ;;  %v6804_v21 = vmax.f32 %v6539_v27, 0.0 }
 0x96a   : > { %v13572_v11 = vpack.c.bf16 %v6837_v60, %v6833_v25  ;;  %v6807_v28 = vmax.f32 %v6541_v16, 0.0 }
 0x96b   : > { %v6966_v14 = vpack.c.bf16 %v6838_v49, %v6834_v24  ;;  %v6808_v4 = vmax.f32 %v6543_v0, 0.0 }
 0x96c   : > { %v13574_v37 = vpack.c.bf16 %v6807_v28, %v6803_v6 }
 0x96d   : > { %v13576_v23 = vpack.c.bf16 %v6808_v4, %v6804_v21  ;;  %v6546_v3 = vpop.f32.mrb[48].mxu0 }
 0x96e   : > { %v6547_v35 = vadd.f32 %v6546_v3, %v13039_v38  ;;  %v6548_v1 = vpop.f32.mrb[49].mxu0 }
 0x96f   : > { %v6549_v59 = vadd.f32 %v6548_v1, %v13045_v47  ;;  %v6550_v2 = vpop.f32.mrb[50].mxu0 }
 0x970   : > { %v6551_v40 = vadd.f32 %v6550_v2, %v13039_v38  ;;  %v6552_v25 = vpop.f32.mrb[51].mxu0  ;;  %7481 = vmatmul.mubr.bf16.gmra.mrb[44].mxu1 %v13500_v10  ;;  %v6811_v27 = vmax.f32 %v6547_v35, 0.0 }
 0x971   : > { %v6553_v61 = vadd.f32 %v6552_v25, %v13045_v47  ;;  %7488 = vmatprep.mubr.bf16.mxu1 %v13520_v22  ;;  %v6812_v16 = vmax.f32 %v6549_v59, 0.0 }
 0x972   : > { %v6815_v60 = vmax.f32 %v6551_v40, 0.0 }
 0x973   : > { %v6816_v24 = vmax.f32 %v6553_v61, 0.0 }
 0x974   : > { %v13584_v49 = vpack.c.bf16 %v6815_v60, %v6811_v27 }
 0x975   : > { %v13586_v0 = vpack.c.bf16 %v6816_v24, %v6812_v16  ;;  %v6556_v6 = vpop.f32.mrb[52].mxu0 }
 0x976   : > { %v6557_v28 = vadd.f32 %v6556_v6, %v13039_v38  ;;  %v6558_v21 = vpop.f32.mrb[53].mxu0 }
 0x977   : > { %v6559_v4 = vadd.f32 %v6558_v21, %v13045_v47  ;;  %v6560_v3 = vpop.f32.mrb[54].mxu0 }
 0x978   : > { %v6561_v10 = vadd.f32 %v6560_v3, %v13039_v38  ;;  %v6562_v1 = vpop.f32.mrb[55].mxu0  ;;  %7489 = vmatmul.mubr.bf16.gmra.mrb[48].mxu1 %v13518_v46  ;;  %v6819_v35 = vmax.f32 %v6557_v28, 0.0 }
 0x979   : > { %v6563_v22 = vadd.f32 %v6562_v1, %v13045_v47  ;;  %7496 = vmatprep.mubr.bf16.mxu1 %v13538_v43  ;;  %v6820_v2 = vmax.f32 %v6559_v4, 0.0 }
 0x97a   : > { %v6823_v59 = vmax.f32 %v6561_v10, 0.0 }
 0x97b   : > { %v6824_v40 = vmax.f32 %v6563_v22, 0.0 }
 0x97c   : > { %v13594_v25 = vpack.c.bf16 %v6823_v59, %v6819_v35 }
 0x97d   : > { %v13596_v61 = vpack.c.bf16 %v6824_v40, %v6820_v2  ;;  %v6566_v27 = vpop.f32.mrb[56].mxu0 }
 0x97e   : > { %v6567_v60 = vadd.f32 %v6566_v27, %v13039_v38  ;;  %v6568_v16 = vpop.f32.mrb[57].mxu0 }
 0x97f   : > { %v6569_v24 = vadd.f32 %v6568_v16, %v13045_v47  ;;  %v6570_v6 = vpop.f32.mrb[58].mxu0 }
 0x980   : > { %v6571_v46 = vadd.f32 %v6570_v6, %v13039_v38  ;;  %v6572_v21 = vpop.f32.mrb[59].mxu0  ;;  %7497 = vmatmul.mubr.bf16.gmra.mrb[52].mxu1 %v13536_v41  ;;  %v6827_v28 = vmax.f32 %v6567_v60, 0.0 }
 0x981   : > { %v6573_v43 = vadd.f32 %v6572_v21, %v13045_v47  ;;  %7504 = vmatprep.mubr.bf16.mxu1 %v13556_v56  ;;  %v6828_v3 = vmax.f32 %v6569_v24, 0.0 }
 0x982   : > { %v6831_v4 = vmax.f32 %v6571_v46, 0.0 }
 0x983   : > { %v6832_v10 = vmax.f32 %v6573_v43, 0.0 }
 0x984   : > { %v13604_v1 = vpack.c.bf16 %v6831_v4, %v6827_v28 }
 0x985   : > { %v13606_v22 = vpack.c.bf16 %v6832_v10, %v6828_v3  ;;  %v6576_v35 = vpop.f32.mrb[60].mxu0 }
 0x986   : > { %v6577_v59 = vadd.f32 %v6576_v35, %v13039_v38  ;;  %v6578_v2 = vpop.f32.mrb[61].mxu0 }
 0x987   : > { %v6579_v40 = vadd.f32 %v6578_v2, %v13045_v47  ;;  %v6580_v27 = vpop.f32.mrb[62].mxu0 }
 0x988   : > { %v6581_v41 = vadd.f32 %v6580_v27, %v13039_v38  ;;  %v6582_v16 = vpop.f32.mrb[63].mxu0  ;;  %7505 = vmatmul.mubr.bf16.gmra.mrb[56].mxu1 %v13554_v29  ;;  %v6835_v60 = vmax.f32 %v6577_v59, 0.0  ;;  %v14569_v38 = vld [vmem:[#allocation105_spill] sm:$0xff] }
 0x989   : > { %v6583_v56 = vadd.f32 %v6582_v16, %v13045_v47  ;;  %7512 = vmatprep.mubr.bf16.mxu1 %v6966_v14  ;;  %v6836_v6 = vmax.f32 %v6579_v40, 0.0  ;;  %v14570_v47 = vld [vmem:[#allocation104_spill] sm:$0xff] }
 0x98a   : > { %v6839_v24 = vmax.f32 %v6581_v41, 0.0 }
 0x98b   : > { %v6840_v46 = vmax.f32 %v6583_v56, 0.0 }
 0x98c   : > { %v13613_v21 = vpack.c.bf16 %v6839_v24, %v6835_v60 }
 0x98d   : > { %v13615_v43 = vpack.c.bf16 %v6840_v46, %v6836_v6 }
 0x990   : > { %7513 = vmatmul.mubr.bf16.gmra.mrb[60].mxu1 %v13572_v11 }
 0x991   : > { %7553 = vmatprep.mubr.bf16.mxu1 %v13071_v26  ;;  %v14572_v26 = vld [vmem:[#allocation117_spill] sm:$0xff] }
 0x998   : > { %7554 = vmatmul.mubr.bf16.vlgmr.msra.gmra.mrb[192].mxu1 %v13068_v5  ;;  %v14571_v5 = vld [vmem:[#allocation106_spill] sm:$0xff] }
 0x999   : > { %7561 = vmatprep.mubr.bf16.mxu1 %v13092_v55  ;;  %v14574_v55 = vld [vmem:[#allocation126_spill] sm:$0xff] }
 0x9a0   : > { %7562 = vmatmul.mubr.bf16.gmra.mrb[196].mxu1 %v13089_v9  ;;  %v14573_v9 = vld [vmem:[#allocation111_spill] sm:$0xff] }
 0x9a1   : > { %7569 = vmatprep.mubr.bf16.mxu1 %v13114_v34  ;;  %v14576_v34 = vld [vmem:[#allocation127_spill] sm:$0xff] }
 0x9a8   : > { %7570 = vmatmul.mubr.bf16.gmra.mrb[200].mxu1 %v13111_v50  ;;  %v14575_v50 = vld [vmem:[#allocation116_spill] sm:$0xff] }
 0x9a9   : > { %7577 = vmatprep.mubr.bf16.mxu1 %v13136_v54  ;;  %v14579_v54 = vld [vmem:[#allocation44_spill] sm:$0xff] }
 0x9b0   : > { %7578 = vmatmul.mubr.bf16.gmra.mrb[204].mxu1 %v13133_v30  ;;  %v14578_v30 = vld [vmem:[#allocation37_spill] sm:$0xff] }
 0x9b1   : > { %7585 = vmatprep.mubr.bf16.mxu1 %v13157_v62  ;;  %v14581_v62 = vld [vmem:[#allocation45_spill] sm:$0xff] }
 0x9b8   : > { %7586 = vmatmul.mubr.bf16.gmra.mrb[208].mxu1 %v13154_v19  ;;  %v14580_v19 = vld [vmem:[#allocation36_spill] sm:$0xff] }
 0x9b9   : > { %7593 = vmatprep.mubr.bf16.mxu1 %v13177_v63  ;;  %v14583_v63 = vld [vmem:[#allocation43_spill] sm:$0xff] }
 0x9c0   : > { %7594 = vmatmul.mubr.bf16.gmra.mrb[212].mxu1 %v13174_v39  ;;  %v14582_v39 = vld [vmem:[#allocation38_spill] sm:$0xff] }
 0x9c1   : > { %7601 = vmatprep.mubr.bf16.mxu1 %v13197_v31  ;;  %v14585_v31 = vld [vmem:[#allocation58_spill] sm:$0xff] }
 0x9c8   : > { %7602 = vmatmul.mubr.bf16.gmra.mrb[216].mxu1 %v13194_v48  ;;  %v14584_v48 = vld [vmem:[#allocation51_spill] sm:$0xff] }
 0x9c9   : > { %7609 = vmatprep.mubr.bf16.mxu1 %v13215_v12  ;;  %v14587_v12 = vld [vmem:[#allocation57_spill] sm:$0xff] }
 0x9d0   : > { %7610 = vmatmul.mubr.bf16.gmra.mrb[220].mxu1 %v13212_v33  ;;  %v14586_v33 = vld [vmem:[#allocation50_spill] sm:$0xff] }
 0x9d1   : > { %7617 = vmatprep.mubr.bf16.mxu1 %v13234_v44  ;;  %v14589_v44 = vld [vmem:[#allocation59_spill] sm:$0xff] }
 0x9d8   : > { %7618 = vmatmul.mubr.bf16.gmra.mrb[224].mxu1 %v13231_v58  ;;  %v14588_v58 = vld [vmem:[#allocation52_spill] sm:$0xff] }
 0x9d9   : > { %7625 = vmatprep.mubr.bf16.mxu1 %v13252_v13  ;;  %v13679_v13 = vld [vmem:[%s14591_s19] ss:$0 sm:$0xff] }
 0x9e0   : > { %7626 = vmatmul.mubr.bf16.gmra.mrb[228].mxu1 %v13249_v18  ;;  %v14590_v18 = vld [vmem:[#allocation69_spill] sm:$0xff] }
 0x9e1   : > { %7633 = vmatprep.mubr.bf16.mxu1 %v13271_v36 }
 0x9e8   : > { %7634 = vmatmul.mubr.bf16.gmra.mrb[232].mxu1 %v13268_v53 }
 0x9e9   : > { %7641 = vmatprep.mubr.bf16.mxu1 %v13289_v32 }
 0x9f0   : > { %7642 = vmatmul.mubr.bf16.gmra.mrb[236].mxu1 %v13286_v51 }
 0x9f1   : > { %7649 = vmatprep.mubr.bf16.mxu1 %v13308_v20 }
 0x9f8   : > { %7650 = vmatmul.mubr.bf16.gmra.mrb[240].mxu1 %v13305_v7 }
 0x9f9   : > { %7657 = vmatprep.mubr.bf16.mxu1 %v13326_v57 }
 0xa00   : > { %7658 = vmatmul.mubr.bf16.gmra.mrb[244].mxu1 %v13323_v17 }
 0xa01   : > { %7665 = vmatprep.mubr.bf16.mxu1 %v13345_v52 }
 0xa08   : > { %7666 = vmatmul.mubr.bf16.gmra.mrb[248].mxu1 %v13342_v42 }
 0xa09   : > { %7673 = vmatprep.mubr.bf16.mxu1 %v13363_v8 }
 0xa10   : > { %7674 = vmatmul.mubr.bf16.gmra.mrb[252].mxu1 %v14569_v38 }
 0xa11   : > { %7681 = vmatprep.mubr.bf16.mxu1 %v14570_v47 }
 0xa18   : > { %7682 = vmatmul.mubr.bf16.gmra.mrb[0].mxu1 %v14571_v5 }
 0xa19   : > { %7689 = vmatprep.mubr.bf16.mxu1 %v14572_v26 }
 0xa20   : > { %7690 = vmatmul.mubr.bf16.gmra.mrb[4].mxu1 %v14573_v9 }
 0xa21   : > { %7697 = vmatprep.mubr.bf16.mxu1 %v14574_v55 }
 0xa28   : > { %7698 = vmatmul.mubr.bf16.gmra.mrb[8].mxu1 %v14575_v50 }
 0xa29   : > { %7705 = vmatprep.mubr.bf16.mxu1 %v14576_v34 }
 0xa30   : > { %7706 = vmatmul.mubr.bf16.gmra.mrb[12].mxu1 %v14578_v30 }
 0xa31   : > { %7713 = vmatprep.mubr.bf16.mxu1 %v14579_v54 }
 0xa38   : > { %7714 = vmatmul.mubr.bf16.gmra.mrb[16].mxu1 %v14580_v19 }
 0xa39   : > { %7721 = vmatprep.mubr.bf16.mxu1 %v14581_v62 }
 0xa40   : > { %7722 = vmatmul.mubr.bf16.gmra.mrb[20].mxu1 %v14582_v39 }
 0xa41   : > { %7729 = vmatprep.mubr.bf16.mxu1 %v14583_v63 }
 0xa48   : > { %7730 = vmatmul.mubr.bf16.gmra.mrb[24].mxu1 %v14584_v48 }
 0xa49   : > { %7737 = vmatprep.mubr.bf16.mxu1 %v14585_v31 }
 0xa50   : > { %7738 = vmatmul.mubr.bf16.gmra.mrb[28].mxu1 %v14586_v33 }
 0xa51   : > { %7745 = vmatprep.mubr.bf16.mxu1 %v14587_v12 }
 0xa58   : > { %7746 = vmatmul.mubr.bf16.gmra.mrb[32].mxu1 %v14588_v58 }
 0xa59   : > { %7753 = vmatprep.mubr.bf16.mxu1 %v14589_v44 }
 0xa60   : > { %7754 = vmatmul.mubr.bf16.gmra.mrb[36].mxu1 %v14590_v18 }
 0xa61   : > { %7761 = vmatprep.mubr.bf16.mxu1 %v13561_v15 }
 0xa68   : > { %7762 = vmatmul.mubr.bf16.gmra.mrb[40].mxu1 %v13558_v45 }
 0xa69   : > { %7769 = vmatprep.mubr.bf16.mxu1 %v13576_v23 }
 0xa6b   : > { %v7555_v53 = vpop.f32.mrb[192].mxu1 }
 0xa6c   : > { %v8638_v36 = vadd.f32 %v13679_v13, %v7555_v53  ;;  %v7557_v51 = vpop.f32.mrb[193].mxu1 }
 0xa6d   : > { %v7558_v32 = vpop.f32.mrb[194].mxu1 }
 0xa6e   : > { %7810 = vst [vmem:[%s13682_s17] sm:$0xff] %v8638_v36  ;;  %v8639_v7 = vadd.f32 %v13679_v13, %v7558_v32  ;;  %v7560_v20 = vpop.f32.mrb[195].mxu1 }
 0xa70   : > { %7811 = vst [vmem:[%s13682_s17 + $0x8] sm:$0xff] %v8639_v7  ;;  %7770 = vmatmul.mubr.bf16.gmra.mrb[44].mxu1 %v13574_v37 }
 0xa71   : > { %7777 = vmatprep.mubr.bf16.mxu1 %v13586_v0 }
 0xa73   : > { %v7563_v17 = vpop.f32.mrb[196].mxu1 }
 0xa74   : > { %v8640_v57 = vadd.f32 %v13679_v13, %v7563_v17  ;;  %v7565_v42 = vpop.f32.mrb[197].mxu1 }
 0xa75   : > { %v7566_v52 = vpop.f32.mrb[198].mxu1 }
 0xa76   : > { %7812 = vst [vmem:[%s13682_s17 + $0x10] sm:$0xff] %v8640_v57  ;;  %v8641_v8 = vadd.f32 %v13679_v13, %v7566_v52  ;;  %v7568_v45 = vpop.f32.mrb[199].mxu1 }
 0xa78   : > { %7813 = vst [vmem:[%s13682_s17 + $0x18] sm:$0xff] %v8641_v8  ;;  %7778 = vmatmul.mubr.bf16.gmra.mrb[48].mxu1 %v13584_v49 }
 0xa79   : > { %7785 = vmatprep.mubr.bf16.mxu1 %v13596_v61 }
 0xa7b   : > { %v7571_v29 = vpop.f32.mrb[200].mxu1 }
 0xa7c   : > { %v8642_v15 = vadd.f32 %v13679_v13, %v7571_v29  ;;  %v7573_v11 = vpop.f32.mrb[201].mxu1 }
 0xa7d   : > { %v7574_v14 = vpop.f32.mrb[202].mxu1 }
 0xa7e   : > { %7814 = vst [vmem:[%s13682_s17 + $0x20] sm:$0xff] %v8642_v15  ;;  %v8643_v37 = vadd.f32 %v13679_v13, %v7574_v14  ;;  %v7576_v23 = vpop.f32.mrb[203].mxu1 }
 0xa80   : > { %7815 = vst [vmem:[%s13682_s17 + $0x28] sm:$0xff] %v8643_v37  ;;  %7786 = vmatmul.mubr.bf16.gmra.mrb[52].mxu1 %v13594_v25 }
 0xa81   : > { %7793 = vmatprep.mubr.bf16.mxu1 %v13606_v22 }
 0xa83   : > { %v7579_v49 = vpop.f32.mrb[204].mxu1 }
 0xa84   : > { %v8644_v0 = vadd.f32 %v13679_v13, %v7579_v49  ;;  %v7581_v61 = vpop.f32.mrb[205].mxu1 }
 0xa85   : > { %v7582_v28 = vpop.f32.mrb[206].mxu1 }
 0xa86   : > { %7816 = vst [vmem:[%s13682_s17 + $0x30] sm:$0xff] %v8644_v0  ;;  %v8645_v4 = vadd.f32 %v13679_v13, %v7582_v28  ;;  %v7584_v3 = vpop.f32.mrb[207].mxu1 }
 0xa88   : > { %7817 = vst [vmem:[%s13682_s17 + $0x38] sm:$0xff] %v8645_v4  ;;  %7794 = vmatmul.mubr.bf16.gmra.mrb[56].mxu1 %v13604_v1 }
 0xa89   : > { %7801 = vmatprep.mubr.bf16.mxu1 %v13615_v43 }
 0xa8b   : > { %v7587_v25 = vpop.f32.mrb[208].mxu1 }
 0xa8c   : > { %v8646_v10 = vadd.f32 %v13679_v13, %v7587_v25  ;;  %v7589_v22 = vpop.f32.mrb[209].mxu1 }
 0xa8d   : > { %v7590_v35 = vpop.f32.mrb[210].mxu1 }
 0xa8e   : > { %7818 = vst [vmem:[%s13682_s17 + $0x40] sm:$0xff] %v8646_v10  ;;  %v8647_v59 = vadd.f32 %v13679_v13, %v7590_v35  ;;  %v7592_v2 = vpop.f32.mrb[211].mxu1 }
 0xa90   : > { %7819 = vst [vmem:[%s13682_s17 + $0x48] sm:$0xff] %v8647_v59  ;;  %7802 = vmatmul.mubr.bf16.gmra.mrb[60].mxu1 %v13613_v21 }
 0xa93   : > { %v7595_v40 = vpop.f32.mrb[212].mxu1 }
 0xa94   : > { %v8648_v1 = vadd.f32 %v13679_v13, %v7595_v40  ;;  %v7597_v27 = vpop.f32.mrb[213].mxu1 }
 0xa95   : > { %v7598_v41 = vpop.f32.mrb[214].mxu1 }
 0xa96   : > { %7820 = vst [vmem:[%s13682_s17 + $0x50] sm:$0xff] %v8648_v1  ;;  %v8649_v16 = vadd.f32 %v13679_v13, %v7598_v41  ;;  %v7600_v56 = vpop.f32.mrb[215].mxu1 }
 0xa98   : > { %7821 = vst [vmem:[%s13682_s17 + $0x58] sm:$0xff] %v8649_v16 }
 0xa9b   : > { %v7603_v60 = vpop.f32.mrb[216].mxu1 }
 0xa9c   : > { %v8650_v24 = vadd.f32 %v13679_v13, %v7603_v60  ;;  %v7605_v6 = vpop.f32.mrb[217].mxu1 }
 0xa9d   : > { %v7606_v46 = vpop.f32.mrb[218].mxu1 }
 0xa9e   : > { %7822 = vst [vmem:[%s13682_s17 + $0x60] sm:$0xff] %v8650_v24  ;;  %v8651_v21 = vadd.f32 %v13679_v13, %v7606_v46  ;;  %v7608_v43 = vpop.f32.mrb[219].mxu1 }
 0xaa0   : > { %7823 = vst [vmem:[%s13682_s17 + $0x68] sm:$0xff] %v8651_v21 }
 0xaa3   : > { %v7611_v38 = vpop.f32.mrb[220].mxu1 }
 0xaa4   : > { %v8652_v47 = vadd.f32 %v13679_v13, %v7611_v38  ;;  %v7613_v5 = vpop.f32.mrb[221].mxu1 }
 0xaa5   : > { %v7614_v26 = vpop.f32.mrb[222].mxu1 }
 0xaa6   : > { %7824 = vst [vmem:[%s13682_s17 + $0x70] sm:$0xff] %v8652_v47  ;;  %v8653_v9 = vadd.f32 %v13679_v13, %v7614_v26  ;;  %v7616_v55 = vpop.f32.mrb[223].mxu1 }
 0xaa8   : > { %7825 = vst [vmem:[%s13682_s17 + $0x78] sm:$0xff] %v8653_v9 }
 0xaab   : > { %v7619_v50 = vpop.f32.mrb[224].mxu1 }
 0xaac   : > { %v8654_v34 = vadd.f32 %v13679_v13, %v7619_v50  ;;  %v7621_v30 = vpop.f32.mrb[225].mxu1 }
 0xaad   : > { %v7622_v54 = vpop.f32.mrb[226].mxu1 }
 0xaae   : > { %7826 = vst [vmem:[%s13682_s17 + $0x80] sm:$0xff] %v8654_v34  ;;  %v8655_v19 = vadd.f32 %v13679_v13, %v7622_v54  ;;  %v7624_v62 = vpop.f32.mrb[227].mxu1 }
 0xab0   : > { %7827 = vst [vmem:[%s13682_s17 + $0x88] sm:$0xff] %v8655_v19 }
 0xab3   : > { %v7627_v39 = vpop.f32.mrb[228].mxu1 }
 0xab4   : > { %v8656_v63 = vadd.f32 %v13679_v13, %v7627_v39  ;;  %v7629_v48 = vpop.f32.mrb[229].mxu1 }
 0xab5   : > { %v7630_v31 = vpop.f32.mrb[230].mxu1 }
 0xab6   : > { %7828 = vst [vmem:[%s13682_s17 + $0x90] sm:$0xff] %v8656_v63  ;;  %v8657_v33 = vadd.f32 %v13679_v13, %v7630_v31  ;;  %v7632_v12 = vpop.f32.mrb[231].mxu1 }
 0xab8   : > { %7829 = vst [vmem:[%s13682_s17 + $0x98] sm:$0xff] %v8657_v33 }
 0xabb   : > { %v7635_v58 = vpop.f32.mrb[232].mxu1 }
 0xabc   : > { %v8658_v44 = vadd.f32 %v13679_v13, %v7635_v58  ;;  %v7637_v18 = vpop.f32.mrb[233].mxu1 }
 0xabd   : > { %v7638_v53 = vpop.f32.mrb[234].mxu1 }
 0xabe   : > { %7830 = vst [vmem:[%s13682_s17 + $0xa0] sm:$0xff] %v8658_v44  ;;  %v8659_v36 = vadd.f32 %v13679_v13, %v7638_v53  ;;  %v7640_v51 = vpop.f32.mrb[235].mxu1 }
 0xac0   : > { %7831 = vst [vmem:[%s13682_s17 + $0xa8] sm:$0xff] %v8659_v36 }
 0xac3   : > { %v7643_v32 = vpop.f32.mrb[236].mxu1 }
 0xac4   : > { %v8660_v7 = vadd.f32 %v13679_v13, %v7643_v32  ;;  %v7645_v20 = vpop.f32.mrb[237].mxu1 }
 0xac5   : > { %v7646_v17 = vpop.f32.mrb[238].mxu1 }
 0xac6   : > { %7832 = vst [vmem:[%s13682_s17 + $0xb0] sm:$0xff] %v8660_v7  ;;  %v8661_v57 = vadd.f32 %v13679_v13, %v7646_v17  ;;  %v7648_v42 = vpop.f32.mrb[239].mxu1 }
 0xac8   : > { %7833 = vst [vmem:[%s13682_s17 + $0xb8] sm:$0xff] %v8661_v57 }
 0xacb   : > { %v7651_v52 = vpop.f32.mrb[240].mxu1 }
 0xacc   : > { %v8662_v8 = vadd.f32 %v13679_v13, %v7651_v52  ;;  %v7653_v45 = vpop.f32.mrb[241].mxu1 }
 0xacd   : > { %v7654_v29 = vpop.f32.mrb[242].mxu1 }
 0xace   : > { %7834 = vst [vmem:[%s13682_s17 + $0xc0] sm:$0xff] %v8662_v8  ;;  %v8663_v15 = vadd.f32 %v13679_v13, %v7654_v29  ;;  %v7656_v11 = vpop.f32.mrb[243].mxu1 }
 0xad0   : > { %7835 = vst [vmem:[%s13682_s17 + $0xc8] sm:$0xff] %v8663_v15 }
 0xad3   : > { %v7659_v14 = vpop.f32.mrb[244].mxu1 }
 0xad4   : > { %v8664_v37 = vadd.f32 %v13679_v13, %v7659_v14  ;;  %v7661_v23 = vpop.f32.mrb[245].mxu1 }
 0xad5   : > { %v7662_v49 = vpop.f32.mrb[246].mxu1 }
 0xad6   : > { %7836 = vst [vmem:[%s13682_s17 + $0xd0] sm:$0xff] %v8664_v37  ;;  %v8665_v0 = vadd.f32 %v13679_v13, %v7662_v49  ;;  %v7664_v61 = vpop.f32.mrb[247].mxu1 }
 0xad8   : > { %7837 = vst [vmem:[%s13682_s17 + $0xd8] sm:$0xff] %v8665_v0 }
 0xadb   : > { %v7667_v28 = vpop.f32.mrb[248].mxu1 }
 0xadc   : > { %v8666_v4 = vadd.f32 %v13679_v13, %v7667_v28  ;;  %v7669_v3 = vpop.f32.mrb[249].mxu1 }
 0xadd   : > { %v7670_v25 = vpop.f32.mrb[250].mxu1 }
 0xade   : > { %7838 = vst [vmem:[%s13682_s17 + $0xe0] sm:$0xff] %v8666_v4  ;;  %v8667_v10 = vadd.f32 %v13679_v13, %v7670_v25  ;;  %v7672_v22 = vpop.f32.mrb[251].mxu1 }
 0xae0   : > { %7839 = vst [vmem:[%s13682_s17 + $0xe8] sm:$0xff] %v8667_v10 }
 0xae3   : > { %v7675_v35 = vpop.f32.mrb[252].mxu1 }
 0xae4   : > { %v8668_v59 = vadd.f32 %v13679_v13, %v7675_v35  ;;  %v7677_v2 = vpop.f32.mrb[253].mxu1 }
 0xae5   : > { %v7678_v40 = vpop.f32.mrb[254].mxu1 }
 0xae6   : > { %7840 = vst [vmem:[%s13682_s17 + $0xf0] sm:$0xff] %v8668_v59  ;;  %v8669_v1 = vadd.f32 %v13679_v13, %v7678_v40  ;;  %v7680_v27 = vpop.f32.mrb[255].mxu1 }
 0xae8   : > { %7841 = vst [vmem:[%s13682_s17 + $0xf8] sm:$0xff] %v8669_v1 }
 0xaeb   : > { %v7683_v41 = vpop.f32.mrb[0].mxu1 }
 0xaec   : > { %v8670_v16 = vadd.f32 %v13679_v13, %v7683_v41  ;;  %v7685_v56 = vpop.f32.mrb[1].mxu1 }
 0xaed   : > { %v7686_v60 = vpop.f32.mrb[2].mxu1 }
 0xaee   : > { %7842 = vst [vmem:[%s13682_s17 + $0x100] sm:$0xff] %v8670_v16  ;;  %v8671_v24 = vadd.f32 %v13679_v13, %v7686_v60  ;;  %v7688_v6 = vpop.f32.mrb[3].mxu1 }
 0xaf0   : > { %7843 = vst [vmem:[%s13682_s17 + $0x108] sm:$0xff] %v8671_v24 }
 0xaf3   : > { %v7691_v46 = vpop.f32.mrb[4].mxu1 }
 0xaf4   : > { %v8672_v21 = vadd.f32 %v13679_v13, %v7691_v46  ;;  %v7693_v43 = vpop.f32.mrb[5].mxu1 }
 0xaf5   : > { %v7694_v38 = vpop.f32.mrb[6].mxu1 }
 0xaf6   : > { %7844 = vst [vmem:[%s13682_s17 + $0x110] sm:$0xff] %v8672_v21  ;;  %v8673_v47 = vadd.f32 %v13679_v13, %v7694_v38  ;;  %v7696_v5 = vpop.f32.mrb[7].mxu1 }
 0xaf8   : > { %7845 = vst [vmem:[%s13682_s17 + $0x118] sm:$0xff] %v8673_v47 }
 0xafb   : > { %v7699_v26 = vpop.f32.mrb[8].mxu1 }
 0xafc   : > { %v8674_v9 = vadd.f32 %v13679_v13, %v7699_v26  ;;  %v7701_v55 = vpop.f32.mrb[9].mxu1 }
 0xafd   : > { %v7702_v50 = vpop.f32.mrb[10].mxu1 }
 0xafe   : > { %7846 = vst [vmem:[%s13682_s17 + $0x120] sm:$0xff] %v8674_v9  ;;  %v8675_v34 = vadd.f32 %v13679_v13, %v7702_v50  ;;  %v7704_v30 = vpop.f32.mrb[11].mxu1 }
 0xb00   : > { %7847 = vst [vmem:[%s13682_s17 + $0x128] sm:$0xff] %v8675_v34 }
 0xb03   : > { %v7707_v54 = vpop.f32.mrb[12].mxu1 }
 0xb04   : > { %v8676_v19 = vadd.f32 %v13679_v13, %v7707_v54  ;;  %v7709_v62 = vpop.f32.mrb[13].mxu1 }
 0xb05   : > { %v7710_v39 = vpop.f32.mrb[14].mxu1 }
 0xb06   : > { %7848 = vst [vmem:[%s13682_s17 + $0x130] sm:$0xff] %v8676_v19  ;;  %v8677_v63 = vadd.f32 %v13679_v13, %v7710_v39  ;;  %v7712_v48 = vpop.f32.mrb[15].mxu1 }
 0xb08   : > { %7849 = vst [vmem:[%s13682_s17 + $0x138] sm:$0xff] %v8677_v63 }
 0xb0b   : > { %v7715_v31 = vpop.f32.mrb[16].mxu1 }
 0xb0c   : > { %v8678_v33 = vadd.f32 %v13679_v13, %v7715_v31  ;;  %v7717_v12 = vpop.f32.mrb[17].mxu1 }
 0xb0d   : > { %v7718_v58 = vpop.f32.mrb[18].mxu1 }
 0xb0e   : > { %7850 = vst [vmem:[%s13682_s17 + $0x140] sm:$0xff] %v8678_v33  ;;  %v8679_v44 = vadd.f32 %v13679_v13, %v7718_v58  ;;  %v7720_v18 = vpop.f32.mrb[19].mxu1 }
 0xb10   : > { %7851 = vst [vmem:[%s13682_s17 + $0x148] sm:$0xff] %v8679_v44 }
 0xb13   : > { %v7723_v53 = vpop.f32.mrb[20].mxu1 }
 0xb14   : > { %v8680_v36 = vadd.f32 %v13679_v13, %v7723_v53  ;;  %v7725_v51 = vpop.f32.mrb[21].mxu1 }
 0xb15   : > { %v7726_v32 = vpop.f32.mrb[22].mxu1 }
 0xb16   : > { %7852 = vst [vmem:[%s13682_s17 + $0x150] sm:$0xff] %v8680_v36  ;;  %v8681_v7 = vadd.f32 %v13679_v13, %v7726_v32  ;;  %v7728_v20 = vpop.f32.mrb[23].mxu1 }
 0xb18   : > { %7853 = vst [vmem:[%s13682_s17 + $0x158] sm:$0xff] %v8681_v7 }
 0xb1b   : > { %v7731_v17 = vpop.f32.mrb[24].mxu1 }
 0xb1c   : > { %v8682_v57 = vadd.f32 %v13679_v13, %v7731_v17  ;;  %v7733_v42 = vpop.f32.mrb[25].mxu1 }
 0xb1d   : > { %v7734_v52 = vpop.f32.mrb[26].mxu1 }
 0xb1e   : > { %7854 = vst [vmem:[%s13682_s17 + $0x160] sm:$0xff] %v8682_v57  ;;  %v8683_v8 = vadd.f32 %v13679_v13, %v7734_v52  ;;  %v7736_v45 = vpop.f32.mrb[27].mxu1 }
 0xb20   : > { %7855 = vst [vmem:[%s13682_s17 + $0x168] sm:$0xff] %v8683_v8 }
 0xb23   : > { %v7739_v29 = vpop.f32.mrb[28].mxu1 }
 0xb24   : > { %v8684_v15 = vadd.f32 %v13679_v13, %v7739_v29  ;;  %v7741_v11 = vpop.f32.mrb[29].mxu1 }
 0xb25   : > { %v7742_v14 = vpop.f32.mrb[30].mxu1 }
 0xb26   : > { %7856 = vst [vmem:[%s13682_s17 + $0x170] sm:$0xff] %v8684_v15  ;;  %v8685_v37 = vadd.f32 %v13679_v13, %v7742_v14  ;;  %v7744_v23 = vpop.f32.mrb[31].mxu1 }
 0xb28   : > { %7857 = vst [vmem:[%s13682_s17 + $0x178] sm:$0xff] %v8685_v37 }
 0xb2b   : > { %v7747_v49 = vpop.f32.mrb[32].mxu1 }
 0xb2c   : > { %v8686_v0 = vadd.f32 %v13679_v13, %v7747_v49  ;;  %v7749_v61 = vpop.f32.mrb[33].mxu1 }
 0xb2d   : > { %v7750_v28 = vpop.f32.mrb[34].mxu1 }
 0xb2e   : > { %7858 = vst [vmem:[%s13682_s17 + $0x180] sm:$0xff] %v8686_v0  ;;  %v8687_v4 = vadd.f32 %v13679_v13, %v7750_v28  ;;  %v7752_v3 = vpop.f32.mrb[35].mxu1 }
 0xb30   : > { %7859 = vst [vmem:[%s13682_s17 + $0x188] sm:$0xff] %v8687_v4 }
 0xb33   : > { %v7755_v25 = vpop.f32.mrb[36].mxu1 }
 0xb34   : > { %v8688_v10 = vadd.f32 %v13679_v13, %v7755_v25  ;;  %v7757_v22 = vpop.f32.mrb[37].mxu1 }
 0xb35   : > { %v7758_v35 = vpop.f32.mrb[38].mxu1 }
 0xb36   : > { %7860 = vst [vmem:[%s13682_s17 + $0x190] sm:$0xff] %v8688_v10  ;;  %v8689_v59 = vadd.f32 %v13679_v13, %v7758_v35  ;;  %v7760_v2 = vpop.f32.mrb[39].mxu1 }
 0xb38   : > { %7861 = vst [vmem:[%s13682_s17 + $0x198] sm:$0xff] %v8689_v59 }
 0xb3b   : > { %v7763_v40 = vpop.f32.mrb[40].mxu1 }
 0xb3c   : > { %v8690_v1 = vadd.f32 %v13679_v13, %v7763_v40  ;;  %v7765_v27 = vpop.f32.mrb[41].mxu1 }
 0xb3d   : > { %v7766_v41 = vpop.f32.mrb[42].mxu1 }
 0xb3e   : > { %7862 = vst [vmem:[%s13682_s17 + $0x1a0] sm:$0xff] %v8690_v1  ;;  %v8691_v16 = vadd.f32 %v13679_v13, %v7766_v41  ;;  %v7768_v56 = vpop.f32.mrb[43].mxu1 }
 0xb40   : > { %7863 = vst [vmem:[%s13682_s17 + $0x1a8] sm:$0xff] %v8691_v16 }
 0xb43   : > { %v7771_v60 = vpop.f32.mrb[44].mxu1 }
 0xb44   : > { %v8692_v24 = vadd.f32 %v13679_v13, %v7771_v60  ;;  %v7773_v6 = vpop.f32.mrb[45].mxu1 }
 0xb45   : > { %v7774_v46 = vpop.f32.mrb[46].mxu1 }
 0xb46   : > { %7864 = vst [vmem:[%s13682_s17 + $0x1b0] sm:$0xff] %v8692_v24  ;;  %v8693_v21 = vadd.f32 %v13679_v13, %v7774_v46  ;;  %v7776_v43 = vpop.f32.mrb[47].mxu1 }
 0xb48   : > { %7865 = vst [vmem:[%s13682_s17 + $0x1b8] sm:$0xff] %v8693_v21 }
 0xb4b   : > { %v7779_v38 = vpop.f32.mrb[48].mxu1 }
 0xb4c   : > { %v8694_v47 = vadd.f32 %v13679_v13, %v7779_v38  ;;  %v7781_v5 = vpop.f32.mrb[49].mxu1 }
 0xb4d   : > { %v7782_v26 = vpop.f32.mrb[50].mxu1 }
 0xb4e   : > { %7866 = vst [vmem:[%s13682_s17 + $0x1c0] sm:$0xff] %v8694_v47  ;;  %v8695_v9 = vadd.f32 %v13679_v13, %v7782_v26  ;;  %v7784_v55 = vpop.f32.mrb[51].mxu1 }
 0xb50   : > { %7867 = vst [vmem:[%s13682_s17 + $0x1c8] sm:$0xff] %v8695_v9 }
 0xb53   : > { %v7787_v50 = vpop.f32.mrb[52].mxu1 }
 0xb54   : > { %v8696_v34 = vadd.f32 %v13679_v13, %v7787_v50  ;;  %v7789_v30 = vpop.f32.mrb[53].mxu1 }
 0xb55   : > { %v7790_v54 = vpop.f32.mrb[54].mxu1 }
 0xb56   : > { %7868 = vst [vmem:[%s13682_s17 + $0x1d0] sm:$0xff] %v8696_v34  ;;  %v8697_v19 = vadd.f32 %v13679_v13, %v7790_v54  ;;  %v7792_v62 = vpop.f32.mrb[55].mxu1 }
 0xb58   : > { %7869 = vst [vmem:[%s13682_s17 + $0x1d8] sm:$0xff] %v8697_v19 }
 0xb5b   : > { %v7795_v39 = vpop.f32.mrb[56].mxu1 }
 0xb5c   : > { %v8698_v63 = vadd.f32 %v13679_v13, %v7795_v39  ;;  %v7797_v48 = vpop.f32.mrb[57].mxu1 }
 0xb5d   : > { %v7798_v31 = vpop.f32.mrb[58].mxu1 }
 0xb5e   : > { %7870 = vst [vmem:[%s13682_s17 + $0x1e0] sm:$0xff] %v8698_v63  ;;  %v8699_v33 = vadd.f32 %v13679_v13, %v7798_v31  ;;  %v7800_v12 = vpop.f32.mrb[59].mxu1 }
 0xb60   : > { %7871 = vst [vmem:[%s13682_s17 + $0x1e8] sm:$0xff] %v8699_v33 }
 0xb63   : > { %v7803_v58 = vpop.f32.mrb[60].mxu1 }
 0xb64   : > { %v8700_v44 = vadd.f32 %v13679_v13, %v7803_v58  ;;  %v7805_v18 = vpop.f32.mrb[61].mxu1 }
 0xb65   : > { %v7806_v53 = vpop.f32.mrb[62].mxu1 }
 0xb66   : > { %7872 = vst [vmem:[%s13682_s17 + $0x1f0] sm:$0xff] %v8700_v44  ;;  %v8701_v36 = vadd.f32 %v13679_v13, %v7806_v53  ;;  %v7808_v51 = vpop.f32.mrb[63].mxu1 }
 0xb68   : > { %7873 = vst [vmem:[%s13682_s17 + $0x1f8] sm:$0xff] %v8701_v36 }
 0xb69   : > { %9753 = shalt.err (!%p9750_p9)
}
 0xb6a   : > { %s9754_s29 = scalar_lea.hbm %s13822_s26, 8192  ;;  %s9758_s23 = scalar_lea.hbm %s14593_s14, 32768 }
 0xb6b   : > { %p9755_p10 = scmp.ne.s32.totalorder %s13822_s26, %s9754_s29  ;;  %p9759_p1 = scmp.lt.u32.totalorder %s13822_s26, %s14593_s14 }
 0xb6c   : > { %p9760_p2 = scmp.lt.u32.totalorder %s9758_s23, %s9754_s29  ;;  %p9762_p4 = scmp.lt.u32.totalorder %s9754_s29, %s13822_s26 }
 0xb6d   : > { %p9756_p13 = pnand %p9755_p10, %p14594_p7 }
 0xb6e   : > { %p9761_p3 = por %p9760_p2, %p9759_p1 }
 0xb6f   : > { %p9757_p12 = pneg %p9756_p13 }
 0xb70   : > { %p9763_p8 = por %p9762_p4, %p9761_p3 }
 0xb72   : > { %p9764_p11 = pnand %p9763_p8, %p9757_p12 }
 0xb74   : > { %9767 = shalt.err (!%p9764_p11)
}
 0xb75   : > { %s9836_s19 = smov 128   ;;  %s9837_s17 = smov 8  }
 0xb76   : > { %8986 = dma.vmem_to_hbm [thread:$0]  (%p14594_p7), %s13824_s7, 8192, %s13822_s26, %s13831_s22, %s9836_s19, %s9836_s19, %s9837_s17  }
 0xb77 PF: > { %s14595_s2 = sld [smem:[#allocation23_spill]]  ;;  %s14596_s21 = sld [smem:[#allocation20_spill]] }
 0xb78   : > { %s14597_s20 = sld [smem:[#allocation27_spill]] }
 0xb7d   : > { %p9028_p5 = scmp.ge.s32.totalorder %s14595_s2, 2  ;;  %s7903_s15 = sand.u32 1, %s14596_s21  }
 0xb7e   : > { %p14598_p0 = scmp.ne.s32.totalorder %s14597_s20, 0  ;;  %s7904_s28 = scalar_lea.sflag [#allocation4], %s7903_s15 }
 0xb80   : > { %p9011_p6 = pnand %p9028_p5, %p14598_p0 }
 0xb82   : > { %9801 = dma.done.wait (!%p9011_p6), %s7904_s28, 8192  }
 0xb83   : > { %9803 = vsyncadd (!%p9011_p6), %s7904_s28, 4294959104  ;;  %s14599_s21 = sld [smem:[#allocation24_spill]]  ;;  %s14600_s18 = sld [smem:[#allocation21_spill]] }
 0xb84   : > { %s14601_s19 = sld [smem:[#allocation22_spill]]  ;;  %s14602_s20 = sld [smem:[#allocation25_spill]] }
 0xb89   : > { %p29_p9 = scmp.ge.s32.totalorder %s14599_s21, 6  }
 0xb8b   :  { %31 = sbr.rel (!%p29_p9) target bundleno = 13 (0xd), region = 147 }
 0xb92   :  { %7909 = vsyncpa [#allocation3], 1 }
 0xb93   :  { %7911 = vsyncpa [#allocation3 + $0x1], 1 }
 0xb94   :  { %7912 = vsyncpa [#allocation6], 1 }
 0xb95   :  { %7913 = vsyncpa [#allocation9], 1 }
 0xb96   :  { %7914 = vsyncpa [#allocation12], 1 }
 0xb97   :  { %7915 = vsyncpa [#allocation4], 1 }
 0xb98   :  { %7917 = vsyncpa [#allocation4 + $0x1], 1 }

</bundles_post_ra>
